<compile_context>
chip_gen: v7x
topology: tpu7x:2x2x1
jax: 0.10.0
libtpu: 0.0.40
codegen_flags: <defaults>
</compile_context>

<pallas_src>
import jax
import jax.numpy as jnp
from jax.experimental import pallas as pl
from jax.experimental.pallas import tpu as pltpu

D_PTS = 60      # input_pts feature dim
D_VIEW = 24     # input_view feature dim (view Linear in = 256 + 24 = 280)
D_HID = 256
D_VDIR = 128
D_FA = 384      # fused feature(256) + alpha(@col 259) head, padded to lane multiple
D_OUT = 128     # lane-dense output slab: rgb lanes 0..2, alpha lane 3


# ----------------------------------------------------------------------------
# Kernel
# ----------------------------------------------------------------------------
def nerf_kernel(pts_ref, view_ref,
                w_pre_ref, b_pre_ref,
                w0_ref, b0_ref, w1_ref, b1_ref, w2_ref, b2_ref, w3_ref, b3_ref,
                w4p_ref, w4h_ref, b4_ref, w5_ref, b5_ref, w6_ref, b6_ref,
                w_fa_ref, b_fa_ref,
                wv_f_ref, wv_v_ref, b_view_ref,
                w_rgb_ref, b_rgb_ref,
                out_ref):
    f32 = jnp.float32
    bf16 = jnp.bfloat16

    pts = pts_ref[...].astype(bf16)
    view = view_ref[...].astype(bf16)

    def dense(x, w_ref, b_ref):
        # bf16 x bf16 on the MXU, f32 accumulation, f32 bias add.
        return jnp.dot(x, w_ref[...], preferred_element_type=f32) + b_ref[...]

    def relu_bf16(x):
        return jnp.maximum(x, 0.0).astype(bf16)

    # h = relu(linear_pre(input_pts))
    h = relu_bf16(dense(pts, w_pre_ref, b_pre_ref))
    # net[0..3]
    h = relu_bf16(dense(h, w0_ref, b0_ref))
    h = relu_bf16(dense(h, w1_ref, b1_ref))
    h = relu_bf16(dense(h, w2_ref, b2_ref))
    h = relu_bf16(dense(h, w3_ref, b3_ref))
    # skip connection at i==4: cat([pts, h]) @ W4 == pts @ W4[:60] + h @ W4[60:]
    h = relu_bf16(jnp.dot(pts, w4p_ref[...], preferred_element_type=f32)
                  + jnp.dot(h, w4h_ref[...], preferred_element_type=f32)
                  + b4_ref[...])
    # net[5..6]
    h = relu_bf16(dense(h, w5_ref, b5_ref))
    h = relu_bf16(dense(h, w6_ref, b6_ref))

    # Fused feature + alpha head: one (256, 384) matmul.
    #   cols 0..255  -> feature (no activation)
    #   col  259     -> alpha pre-activation (other pad cols are exactly 0)
    fa = dense(h, w_fa_ref, b_fa_ref)                   # (tile_m, 384) f32
    feature = fa[:, :D_HID].astype(bf16)                # (tile_m, 256)
    alpha_blk = jnp.maximum(fa[:, D_HID:], 0.0)         # (tile_m, 128), alpha in lane 3

    # h = relu(view(cat([feature, input_view]))) as split matmul.
    hv = relu_bf16(jnp.dot(feature, wv_f_ref[...], preferred_element_type=f32)
                   + jnp.dot(view, wv_v_ref[...], preferred_element_type=f32)
                   + b_view_ref[...])

    # rgb = sigmoid(RGB(hv)), RGB padded to 128 output columns (lanes 0..2 real).
    rgb_full = jax.nn.sigmoid(dense(hv, w_rgb_ref, b_rgb_ref))   # (tile_m, 128)

    # Lane-dense output slab: rgb in lanes 0..2, alpha in lane 3.
    lane = jax.lax.broadcasted_iota(jnp.int32, rgb_full.shape, 1)
    out = jnp.where(lane == 3, alpha_blk, rgb_full)
    out_ref[...] = out.astype(out_ref.dtype)


WEIGHT_ORDER = ["w_pre", "b_pre",
                "w0", "b0", "w1", "b1", "w2", "b2", "w3", "b3",
                "w4p", "w4h", "b4", "w5", "b5", "w6", "b6",
                "w_fa", "b_fa",
                "wv_f", "wv_v", "b_view",
                "w_rgb", "b_rgb"]


def _round_up(x, m):
    return (x + m - 1) // m * m


# ----------------------------------------------------------------------------
# Wrapper
# ----------------------------------------------------------------------------
def nerf_forward(input_pts, input_view, kparams, *, tile_m=1024):
    N = input_pts.shape[0]
    # Shrink the tile for tiny batches; keep it a multiple of 8 sublanes.
    tile_m = _round_up(min(tile_m, _round_up(N, 128)), 8)
    n_pad = _round_up(N, tile_m)
    if n_pad != N:
        input_pts = jnp.pad(input_pts, ((0, n_pad - N), (0, 0)))
        input_view = jnp.pad(input_view, ((0, n_pad - N), (0, 0)))
    grid = (n_pad // tile_m,)

    def row_spec(d):
        return pl.BlockSpec((tile_m, d), lambda i: (i, 0))

    def full_spec(shape):
        # whole array resident in VMEM across all grid steps
        return pl.BlockSpec(shape, lambda i: (0, 0))

    weights = [kparams[k] for k in WEIGHT_ORDER]
    in_specs = [row_spec(D_PTS), row_spec(D_VIEW)]
    in_specs += [full_spec(w.shape) for w in weights]

    weight_bytes = sum(int(w.size) * w.dtype.itemsize for w in weights)
    flops_per_row = 2 * (D_PTS * D_HID            # linear_pre
                         + 4 * D_HID * D_HID      # net[0..3]
                         + (D_PTS + D_HID) * D_HID  # net[4] (skip)
                         + 2 * D_HID * D_HID      # net[5..6]
                         + D_HID * D_FA           # fused feature+alpha
                         + (D_HID + D_VIEW) * D_VDIR  # view
                         + D_VDIR * D_OUT)        # rgb (padded)
    cost = pl.CostEstimate(
        flops=flops_per_row * n_pad,
        transcendentals=n_pad * D_OUT,            # sigmoid over the padded slab
        bytes_accessed=n_pad * (D_PTS + D_VIEW + D_OUT) * 4 + weight_bytes)

    out = pl.pallas_call(
        nerf_kernel,
        grid=grid,
        in_specs=in_specs,
        out_specs=pl.BlockSpec((tile_m, D_OUT), lambda i: (i, 0)),
        out_shape=jax.ShapeDtypeStruct((n_pad, D_OUT), jnp.float32),
        compiler_params=pltpu.CompilerParams(
            dimension_semantics=("parallel",),
            vmem_limit_bytes=48 * 1024 * 1024),
        cost_estimate=cost,
    )(input_pts, input_view, *weights)

    rgb = out[:N, 0:3]
    alpha = out[:N, 3:4]
    return rgb, alpha


# ----------------------------------------------------------------------------
# Parameter construction
# ----------------------------------------------------------------------------
def init_params(key):
    """Deterministic synthetic init (PyTorch-Linear-style uniform bounds)."""
    def linear(k, fan_in, fan_out):
        kw, kb = jax.random.split(k)
        bound = 1.0 / jnp.sqrt(jnp.float32(fan_in))
        w = jax.random.uniform(kw, (fan_in, fan_out), jnp.float32, -bound, bound)
        b = jax.random.uniform(kb, (1, fan_out), jnp.float32, -bound, bound)
        return w, b

    keys = jax.random.split(key, 12)
    p = {}
    p["w_pre"], p["b_pre"] = linear(keys[0], D_PTS, D_HID)
    for i in range(7):
        if i == 4:
            w4, p["b4"] = linear(keys[1 + i], D_HID + D_PTS, D_HID)
            p["w4p"], p["w4h"] = w4[:D_PTS], w4[D_PTS:]
        else:
            p[f"w{i}"], p[f"b{i}"] = linear(keys[1 + i], D_HID, D_HID)
    p["w_alpha"], p["b_alpha"] = linear(keys[8], D_HID, 1)
    p["w_feat"], p["b_feat"] = linear(keys[9], D_HID, D_HID)
    wv, p["b_view"] = linear(keys[10], D_HID + D_VIEW, D_VDIR)
    p["wv_f"], p["wv_v"] = wv[:D_HID], wv[D_HID:]
    p["w_rgb"], p["b_rgb"] = linear(keys[11], D_VDIR, 3)
    return p


def prepare_params(p, dtype=jnp.bfloat16):
    """Fuse/pad the logical Nerf params into the kernel layout (bf16 weights)."""
    def w(x):
        return x.astype(dtype)

    q = {}
    q["w_pre"], q["b_pre"] = w(p["w_pre"]), p["b_pre"]
    for i in (0, 1, 2, 3, 5, 6):
        q[f"w{i}"], q[f"b{i}"] = w(p[f"w{i}"]), p[f"b{i}"]
    q["w4p"], q["w4h"], q["b4"] = w(p["w4p"]), w(p["w4h"]), p["b4"]

    # Fused feature + alpha head: (256, 384); alpha weight goes to column 259
    # so its result lands directly in lane 3 of the second 128-lane block.
    w_fa = jnp.zeros((D_HID, D_FA), jnp.float32)
    w_fa = w_fa.at[:, :D_HID].set(p["w_feat"])
    w_fa = w_fa.at[:, D_HID + 3].set(p["w_alpha"][:, 0])
    b_fa = jnp.zeros((1, D_FA), jnp.float32)
    b_fa = b_fa.at[:, :D_HID].set(p["b_feat"])
    b_fa = b_fa.at[:, D_HID + 3].set(p["b_alpha"][:, 0])
    q["w_fa"], q["b_fa"] = w(w_fa), b_fa

    q["wv_f"], q["wv_v"], q["b_view"] = w(p["wv_f"]), w(p["wv_v"]), p["b_view"]

    # RGB head padded to 128 output columns (lane-dense store).
    w_rgb = jnp.zeros((D_VDIR, D_OUT), jnp.float32).at[:, :3].set(p["w_rgb"])
    b_rgb = jnp.zeros((1, D_OUT), jnp.float32).at[:, :3].set(p["b_rgb"])
    q["w_rgb"], q["b_rgb"] = w(w_rgb), b_rgb
    return q


# ----------------------------------------------------------------------------
# References
# ----------------------------------------------------------------------------
def nerf_reference_bf16(pts, view, kp):
    """Pure-JAX reference with the same bf16/f32 mixed precision as the kernel."""
    f32, bf16 = jnp.float32, jnp.bfloat16

    def dense(x, w, b):
        return jnp.dot(x, w, preferred_element_type=f32) + b

    def relu_bf16(x):
        return jnp.maximum(x, 0.0).astype(bf16)

    pts_b = pts.astype(bf16)
    view_b = view.astype(bf16)
    h = relu_bf16(dense(pts_b, kp["w_pre"], kp["b_pre"]))
    for i in range(7):
        if i == 4:
            h = relu_bf16(dense(pts_b, kp["w4p"], 0.0)
                          + dense(h, kp["w4h"], kp["b4"]))
        else:
            h = relu_bf16(dense(h, kp[f"w{i}"], kp[f"b{i}"]))
    fa = dense(h, kp["w_fa"], kp["b_fa"])
    feature = fa[:, :D_HID].astype(bf16)
    alpha = jnp.maximum(fa[:, D_HID + 3:D_HID + 4], 0.0)
    hv = relu_bf16(dense(feature, kp["wv_f"], 0.0)
                   + dense(view_b, kp["wv_v"], kp["b_view"]))
    rgb = jax.nn.sigmoid(dense(hv, kp["w_rgb"], kp["b_rgb"]))[:, :3]
    return rgb, alpha


def nerf_reference_f32(pts, view, p):
    """Full-precision reference mirroring the PyTorch forward exactly."""
    relu = jax.nn.relu
    h = relu(pts @ p["w_pre"] + p["b_pre"])
    ws = [p["w0"], p["w1"], p["w2"], p["w3"],
          jnp.concatenate([p["w4p"], p["w4h"]], axis=0),
          p["w5"], p["w6"]]
    bs = [p["b0"], p["b1"], p["b2"], p["b3"], p["b4"], p["b5"], p["b6"]]
    for i in range(7):
        h = relu(h @ ws[i] + bs[i])
        if i == 3:
            h = jnp.concatenate([pts, h], axis=-1)
    alpha = relu(h @ p["w_alpha"] + p["b_alpha"])
    feature = h @ p["w_feat"] + p["b_feat"]
    hv = jnp.concatenate([feature, view], axis=-1)
    wv = jnp.concatenate([p["wv_f"], p["wv_v"]], axis=0)
    hv = relu(hv @ wv + p["b_view"])
    rgb = jax.nn.sigmoid(hv @ p["w_rgb"] + p["b_rgb"])
    return rgb, alpha


if __name__ == "__main__":
    key = jax.random.PRNGKey(0)
    kp, kpts, kview = jax.random.split(key, 3)

    N = 256          # number of sample points (rows), small test shape
    raw_params = init_params(kp)
    kparams = prepare_params(raw_params)
    input_pts = jax.random.normal(kpts, (N, D_PTS), jnp.float32)
    input_view = jax.random.normal(kview, (N, D_VIEW), jnp.float32)

    rgb, alpha = nerf_forward(input_pts, input_view, kparams)
    rgb, alpha = jax.block_until_ready((rgb, alpha))

    rgb_ref, alpha_ref = nerf_reference_bf16(input_pts, input_view, kparams)
    rgb_f32, alpha_f32 = nerf_reference_f32(input_pts, input_view, raw_params)

    assert rgb.shape == (N, 3) and alpha.shape == (N, 1)
    # Exact-semantics check against a reference with identical mixed precision.
    assert jnp.allclose(rgb, rgb_ref, rtol=2e-2, atol=2e-2)
    assert jnp.allclose(alpha, alpha_ref, rtol=2e-2, atol=2e-2)
    # Structural check against the full-f32 PyTorch-equivalent forward
    # (loose tolerance because weights/activations are bf16 on the MXU).
    assert jnp.allclose(rgb, rgb_f32, rtol=1e-1, atol=1e-1)
    assert jnp.allclose(alpha, alpha_f32, rtol=1e-1, atol=1e-1)

    print("KERNEL_OK")
</pallas_src>

<mosaic_0001>
module attributes {stable_mosaic.version = 11 : i64} {
  func.func @nerf_kernel(%arg0: i32, %arg1: memref<256x60xf32, #tpu.memory_space<vmem>>, %arg2: memref<256x24xf32, #tpu.memory_space<vmem>>, %arg3: memref<60x256xbf16, #tpu.memory_space<vmem>>, %arg4: memref<1x256xf32, #tpu.memory_space<vmem>>, %arg5: memref<256x256xbf16, #tpu.memory_space<vmem>>, %arg6: memref<1x256xf32, #tpu.memory_space<vmem>>, %arg7: memref<256x256xbf16, #tpu.memory_space<vmem>>, %arg8: memref<1x256xf32, #tpu.memory_space<vmem>>, %arg9: memref<256x256xbf16, #tpu.memory_space<vmem>>, %arg10: memref<1x256xf32, #tpu.memory_space<vmem>>, %arg11: memref<256x256xbf16, #tpu.memory_space<vmem>>, %arg12: memref<1x256xf32, #tpu.memory_space<vmem>>, %arg13: memref<60x256xbf16, #tpu.memory_space<vmem>>, %arg14: memref<256x256xbf16, #tpu.memory_space<vmem>>, %arg15: memref<1x256xf32, #tpu.memory_space<vmem>>, %arg16: memref<256x256xbf16, #tpu.memory_space<vmem>>, %arg17: memref<1x256xf32, #tpu.memory_space<vmem>>, %arg18: memref<256x256xbf16, #tpu.memory_space<vmem>>, %arg19: memref<1x256xf32, #tpu.memory_space<vmem>>, %arg20: memref<256x384xbf16, #tpu.memory_space<vmem>>, %arg21: memref<1x384xf32, #tpu.memory_space<vmem>>, %arg22: memref<256x128xbf16, #tpu.memory_space<vmem>>, %arg23: memref<24x128xbf16, #tpu.memory_space<vmem>>, %arg24: memref<1x128xf32, #tpu.memory_space<vmem>>, %arg25: memref<128x128xbf16, #tpu.memory_space<vmem>>, %arg26: memref<1x128xf32, #tpu.memory_space<vmem>>, %arg27: memref<256x128xf32, #tpu.memory_space<vmem>>) attributes {dimension_semantics = [#tpu.dimension_semantics<parallel>], iteration_bounds = array<i64: 1>, scalar_prefetch = 0 : i64, scratch_operands = 0 : i64, tpu.core_type = #tpu.core_type<tc>, window_params = [{transform_indices = @transform_0, window_bounds = array<i64: 256, 60>}, {transform_indices = @transform_1, window_bounds = array<i64: 256, 24>}, {pipeline_mode = #tpu.pipeline_mode<synchronous>, transform_indices = @transform_2, window_bounds = array<i64: 60, 256>}, {pipeline_mode = #tpu.pipeline_mode<synchronous>, transform_indices = @transform_3, window_bounds = array<i64: 1, 256>}, {pipeline_mode = #tpu.pipeline_mode<synchronous>, transform_indices = @transform_4, window_bounds = array<i64: 256, 256>}, {pipeline_mode = #tpu.pipeline_mode<synchronous>, transform_indices = @transform_5, window_bounds = array<i64: 1, 256>}, {pipeline_mode = #tpu.pipeline_mode<synchronous>, transform_indices = @transform_6, window_bounds = array<i64: 256, 256>}, {pipeline_mode = #tpu.pipeline_mode<synchronous>, transform_indices = @transform_7, window_bounds = array<i64: 1, 256>}, {pipeline_mode = #tpu.pipeline_mode<synchronous>, transform_indices = @transform_8, window_bounds = array<i64: 256, 256>}, {pipeline_mode = #tpu.pipeline_mode<synchronous>, transform_indices = @transform_9, window_bounds = array<i64: 1, 256>}, {pipeline_mode = #tpu.pipeline_mode<synchronous>, transform_indices = @transform_10, window_bounds = array<i64: 256, 256>}, {pipeline_mode = #tpu.pipeline_mode<synchronous>, transform_indices = @transform_11, window_bounds = array<i64: 1, 256>}, {pipeline_mode = #tpu.pipeline_mode<synchronous>, transform_indices = @transform_12, window_bounds = array<i64: 60, 256>}, {pipeline_mode = #tpu.pipeline_mode<synchronous>, transform_indices = @transform_13, window_bounds = array<i64: 256, 256>}, {pipeline_mode = #tpu.pipeline_mode<synchronous>, transform_indices = @transform_14, window_bounds = array<i64: 1, 256>}, {pipeline_mode = #tpu.pipeline_mode<synchronous>, transform_indices = @transform_15, window_bounds = array<i64: 256, 256>}, {pipeline_mode = #tpu.pipeline_mode<synchronous>, transform_indices = @transform_16, window_bounds = array<i64: 1, 256>}, {pipeline_mode = #tpu.pipeline_mode<synchronous>, transform_indices = @transform_17, window_bounds = array<i64: 256, 256>}, {pipeline_mode = #tpu.pipeline_mode<synchronous>, transform_indices = @transform_18, window_bounds = array<i64: 1, 256>}, {pipeline_mode = #tpu.pipeline_mode<synchronous>, transform_indices = @transform_19, window_bounds = array<i64: 256, 384>}, {pipeline_mode = #tpu.pipeline_mode<synchronous>, transform_indices = @transform_20, window_bounds = array<i64: 1, 384>}, {pipeline_mode = #tpu.pipeline_mode<synchronous>, transform_indices = @transform_21, window_bounds = array<i64: 256, 128>}, {pipeline_mode = #tpu.pipeline_mode<synchronous>, transform_indices = @transform_22, window_bounds = array<i64: 24, 128>}, {pipeline_mode = #tpu.pipeline_mode<synchronous>, transform_indices = @transform_23, window_bounds = array<i64: 1, 128>}, {pipeline_mode = #tpu.pipeline_mode<synchronous>, transform_indices = @transform_24, window_bounds = array<i64: 128, 128>}, {pipeline_mode = #tpu.pipeline_mode<synchronous>, transform_indices = @transform_25, window_bounds = array<i64: 1, 128>}, {transform_indices = @transform_26, window_bounds = array<i64: 256, 128>}]} {
    %c0 = arith.constant 0 : index
    %c0_0 = arith.constant 0 : index
    %0 = vector.load %arg1[%c0, %c0_0] : memref<256x60xf32, #tpu.memory_space<vmem>>, vector<256x60xf32>
    %1 = arith.truncf %0 : vector<256x60xf32> to vector<256x60xbf16>
    %c0_1 = arith.constant 0 : index
    %c0_2 = arith.constant 0 : index
    %2 = vector.load %arg2[%c0_1, %c0_2] : memref<256x24xf32, #tpu.memory_space<vmem>>, vector<256x24xf32>
    %3 = arith.truncf %2 : vector<256x24xf32> to vector<256x24xbf16>
    %c0_3 = arith.constant 0 : index
    %c0_4 = arith.constant 0 : index
    %4 = vector.load %arg3[%c0_3, %c0_4] : memref<60x256xbf16, #tpu.memory_space<vmem>>, vector<60x256xbf16>
    %cst = arith.constant dense<0.000000e+00> : vector<256x256xf32>
    %5 = tpu.matmul %1, %4, %cst {dimension_numbers = #tpu.dot_dimension_numbers<[1], [0], [0], [1], [0, 0, 1, 1], [], []>} : vector<256x60xbf16>, vector<60x256xbf16>, vector<256x256xf32> -> vector<256x256xf32>
    %c0_5 = arith.constant 0 : index
    %c0_6 = arith.constant 0 : index
    %6 = vector.load %arg4[%c0_5, %c0_6] : memref<1x256xf32, #tpu.memory_space<vmem>>, vector<1x256xf32>
    %7 = vector.broadcast %6 : vector<1x256xf32> to vector<256x256xf32>
    %8 = arith.addf %5, %7 : vector<256x256xf32>
    %cst_7 = arith.constant 0.000000e+00 : f32
    %9 = vector.broadcast %cst_7 : f32 to vector<256x256xf32>
    %10 = arith.maximumf %8, %9 : vector<256x256xf32>
    %11 = arith.truncf %10 : vector<256x256xf32> to vector<256x256xbf16>
    %c0_8 = arith.constant 0 : index
    %c0_9 = arith.constant 0 : index
    %12 = vector.load %arg5[%c0_8, %c0_9] : memref<256x256xbf16, #tpu.memory_space<vmem>>, vector<256x256xbf16>
    %cst_10 = arith.constant dense<0.000000e+00> : vector<256x256xf32>
    %13 = tpu.matmul %11, %12, %cst_10 {dimension_numbers = #tpu.dot_dimension_numbers<[1], [0], [0], [1], [0, 0, 1, 1], [], []>} : vector<256x256xbf16>, vector<256x256xbf16>, vector<256x256xf32> -> vector<256x256xf32>
    %c0_11 = arith.constant 0 : index
    %c0_12 = arith.constant 0 : index
    %14 = vector.load %arg6[%c0_11, %c0_12] : memref<1x256xf32, #tpu.memory_space<vmem>>, vector<1x256xf32>
    %15 = vector.broadcast %14 : vector<1x256xf32> to vector<256x256xf32>
    %16 = arith.addf %13, %15 : vector<256x256xf32>
    %cst_13 = arith.constant 0.000000e+00 : f32
    %17 = vector.broadcast %cst_13 : f32 to vector<256x256xf32>
    %18 = arith.maximumf %16, %17 : vector<256x256xf32>
    %19 = arith.truncf %18 : vector<256x256xf32> to vector<256x256xbf16>
    %c0_14 = arith.constant 0 : index
    %c0_15 = arith.constant 0 : index
    %20 = vector.load %arg7[%c0_14, %c0_15] : memref<256x256xbf16, #tpu.memory_space<vmem>>, vector<256x256xbf16>
    %cst_16 = arith.constant dense<0.000000e+00> : vector<256x256xf32>
    %21 = tpu.matmul %19, %20, %cst_16 {dimension_numbers = #tpu.dot_dimension_numbers<[1], [0], [0], [1], [0, 0, 1, 1], [], []>} : vector<256x256xbf16>, vector<256x256xbf16>, vector<256x256xf32> -> vector<256x256xf32>
    %c0_17 = arith.constant 0 : index
    %c0_18 = arith.constant 0 : index
    %22 = vector.load %arg8[%c0_17, %c0_18] : memref<1x256xf32, #tpu.memory_space<vmem>>, vector<1x256xf32>
    %23 = vector.broadcast %22 : vector<1x256xf32> to vector<256x256xf32>
    %24 = arith.addf %21, %23 : vector<256x256xf32>
    %cst_19 = arith.constant 0.000000e+00 : f32
    %25 = vector.broadcast %cst_19 : f32 to vector<256x256xf32>
    %26 = arith.maximumf %24, %25 : vector<256x256xf32>
    %27 = arith.truncf %26 : vector<256x256xf32> to vector<256x256xbf16>
    %c0_20 = arith.constant 0 : index
    %c0_21 = arith.constant 0 : index
    %28 = vector.load %arg9[%c0_20, %c0_21] : memref<256x256xbf16, #tpu.memory_space<vmem>>, vector<256x256xbf16>
    %cst_22 = arith.constant dense<0.000000e+00> : vector<256x256xf32>
    %29 = tpu.matmul %27, %28, %cst_22 {dimension_numbers = #tpu.dot_dimension_numbers<[1], [0], [0], [1], [0, 0, 1, 1], [], []>} : vector<256x256xbf16>, vector<256x256xbf16>, vector<256x256xf32> -> vector<256x256xf32>
    %c0_23 = arith.constant 0 : index
    %c0_24 = arith.constant 0 : index
    %30 = vector.load %arg10[%c0_23, %c0_24] : memref<1x256xf32, #tpu.memory_space<vmem>>, vector<1x256xf32>
    %31 = vector.broadcast %30 : vector<1x256xf32> to vector<256x256xf32>
    %32 = arith.addf %29, %31 : vector<256x256xf32>
    %cst_25 = arith.constant 0.000000e+00 : f32
    %33 = vector.broadcast %cst_25 : f32 to vector<256x256xf32>
    %34 = arith.maximumf %32, %33 : vector<256x256xf32>
    %35 = arith.truncf %34 : vector<256x256xf32> to vector<256x256xbf16>
    %c0_26 = arith.constant 0 : index
    %c0_27 = arith.constant 0 : index
    %36 = vector.load %arg11[%c0_26, %c0_27] : memref<256x256xbf16, #tpu.memory_space<vmem>>, vector<256x256xbf16>
    %cst_28 = arith.constant dense<0.000000e+00> : vector<256x256xf32>
    %37 = tpu.matmul %35, %36, %cst_28 {dimension_numbers = #tpu.dot_dimension_numbers<[1], [0], [0], [1], [0, 0, 1, 1], [], []>} : vector<256x256xbf16>, vector<256x256xbf16>, vector<256x256xf32> -> vector<256x256xf32>
    %c0_29 = arith.constant 0 : index
    %c0_30 = arith.constant 0 : index
    %38 = vector.load %arg12[%c0_29, %c0_30] : memref<1x256xf32, #tpu.memory_space<vmem>>, vector<1x256xf32>
    %39 = vector.broadcast %38 : vector<1x256xf32> to vector<256x256xf32>
    %40 = arith.addf %37, %39 : vector<256x256xf32>
    %cst_31 = arith.constant 0.000000e+00 : f32
    %41 = vector.broadcast %cst_31 : f32 to vector<256x256xf32>
    %42 = arith.maximumf %40, %41 : vector<256x256xf32>
    %43 = arith.truncf %42 : vector<256x256xf32> to vector<256x256xbf16>
    %c0_32 = arith.constant 0 : index
    %c0_33 = arith.constant 0 : index
    %44 = vector.load %arg13[%c0_32, %c0_33] : memref<60x256xbf16, #tpu.memory_space<vmem>>, vector<60x256xbf16>
    %cst_34 = arith.constant dense<0.000000e+00> : vector<256x256xf32>
    %45 = tpu.matmul %1, %44, %cst_34 {dimension_numbers = #tpu.dot_dimension_numbers<[1], [0], [0], [1], [0, 0, 1, 1], [], []>} : vector<256x60xbf16>, vector<60x256xbf16>, vector<256x256xf32> -> vector<256x256xf32>
    %c0_35 = arith.constant 0 : index
    %c0_36 = arith.constant 0 : index
    %46 = vector.load %arg14[%c0_35, %c0_36] : memref<256x256xbf16, #tpu.memory_space<vmem>>, vector<256x256xbf16>
    %cst_37 = arith.constant dense<0.000000e+00> : vector<256x256xf32>
    %47 = tpu.matmul %43, %46, %cst_37 {dimension_numbers = #tpu.dot_dimension_numbers<[1], [0], [0], [1], [0, 0, 1, 1], [], []>} : vector<256x256xbf16>, vector<256x256xbf16>, vector<256x256xf32> -> vector<256x256xf32>
    %48 = arith.addf %45, %47 : vector<256x256xf32>
    %c0_38 = arith.constant 0 : index
    %c0_39 = arith.constant 0 : index
    %49 = vector.load %arg15[%c0_38, %c0_39] : memref<1x256xf32, #tpu.memory_space<vmem>>, vector<1x256xf32>
    %50 = vector.broadcast %49 : vector<1x256xf32> to vector<256x256xf32>
    %51 = arith.addf %48, %50 : vector<256x256xf32>
    %cst_40 = arith.constant 0.000000e+00 : f32
    %52 = vector.broadcast %cst_40 : f32 to vector<256x256xf32>
    %53 = arith.maximumf %51, %52 : vector<256x256xf32>
    %54 = arith.truncf %53 : vector<256x256xf32> to vector<256x256xbf16>
    %c0_41 = arith.constant 0 : index
    %c0_42 = arith.constant 0 : index
    %55 = vector.load %arg16[%c0_41, %c0_42] : memref<256x256xbf16, #tpu.memory_space<vmem>>, vector<256x256xbf16>
    %cst_43 = arith.constant dense<0.000000e+00> : vector<256x256xf32>
    %56 = tpu.matmul %54, %55, %cst_43 {dimension_numbers = #tpu.dot_dimension_numbers<[1], [0], [0], [1], [0, 0, 1, 1], [], []>} : vector<256x256xbf16>, vector<256x256xbf16>, vector<256x256xf32> -> vector<256x256xf32>
    %c0_44 = arith.constant 0 : index
    %c0_45 = arith.constant 0 : index
    %57 = vector.load %arg17[%c0_44, %c0_45] : memref<1x256xf32, #tpu.memory_space<vmem>>, vector<1x256xf32>
    %58 = vector.broadcast %57 : vector<1x256xf32> to vector<256x256xf32>
    %59 = arith.addf %56, %58 : vector<256x256xf32>
    %cst_46 = arith.constant 0.000000e+00 : f32
    %60 = vector.broadcast %cst_46 : f32 to vector<256x256xf32>
    %61 = arith.maximumf %59, %60 : vector<256x256xf32>
    %62 = arith.truncf %61 : vector<256x256xf32> to vector<256x256xbf16>
    %c0_47 = arith.constant 0 : index
    %c0_48 = arith.constant 0 : index
    %63 = vector.load %arg18[%c0_47, %c0_48] : memref<256x256xbf16, #tpu.memory_space<vmem>>, vector<256x256xbf16>
    %cst_49 = arith.constant dense<0.000000e+00> : vector<256x256xf32>
    %64 = tpu.matmul %62, %63, %cst_49 {dimension_numbers = #tpu.dot_dimension_numbers<[1], [0], [0], [1], [0, 0, 1, 1], [], []>} : vector<256x256xbf16>, vector<256x256xbf16>, vector<256x256xf32> -> vector<256x256xf32>
    %c0_50 = arith.constant 0 : index
    %c0_51 = arith.constant 0 : index
    %65 = vector.load %arg19[%c0_50, %c0_51] : memref<1x256xf32, #tpu.memory_space<vmem>>, vector<1x256xf32>
    %66 = vector.broadcast %65 : vector<1x256xf32> to vector<256x256xf32>
    %67 = arith.addf %64, %66 : vector<256x256xf32>
    %cst_52 = arith.constant 0.000000e+00 : f32
    %68 = vector.broadcast %cst_52 : f32 to vector<256x256xf32>
    %69 = arith.maximumf %67, %68 : vector<256x256xf32>
    %70 = arith.truncf %69 : vector<256x256xf32> to vector<256x256xbf16>
    %c0_53 = arith.constant 0 : index
    %c0_54 = arith.constant 0 : index
    %71 = vector.load %arg20[%c0_53, %c0_54] : memref<256x384xbf16, #tpu.memory_space<vmem>>, vector<256x384xbf16>
    %cst_55 = arith.constant dense<0.000000e+00> : vector<256x384xf32>
    %72 = tpu.matmul %70, %71, %cst_55 {dimension_numbers = #tpu.dot_dimension_numbers<[1], [0], [0], [1], [0, 0, 1, 1], [], []>} : vector<256x256xbf16>, vector<256x384xbf16>, vector<256x384xf32> -> vector<256x384xf32>
    %c0_56 = arith.constant 0 : index
    %c0_57 = arith.constant 0 : index
    %73 = vector.load %arg21[%c0_56, %c0_57] : memref<1x384xf32, #tpu.memory_space<vmem>>, vector<1x384xf32>
    %74 = vector.broadcast %73 : vector<1x384xf32> to vector<256x384xf32>
    %75 = arith.addf %72, %74 : vector<256x384xf32>
    %76 = vector.extract_strided_slice %75 {offsets = [0, 0], sizes = [256, 256], strides = [1, 1]} : vector<256x384xf32> to vector<256x256xf32>
    %77 = arith.truncf %76 : vector<256x256xf32> to vector<256x256xbf16>
    %78 = vector.extract_strided_slice %75 {offsets = [0, 256], sizes = [256, 128], strides = [1, 1]} : vector<256x384xf32> to vector<256x128xf32>
    %cst_58 = arith.constant 0.000000e+00 : f32
    %79 = vector.broadcast %cst_58 : f32 to vector<256x128xf32>
    %80 = arith.maximumf %78, %79 : vector<256x128xf32>
    %c0_59 = arith.constant 0 : index
    %c0_60 = arith.constant 0 : index
    %81 = vector.load %arg22[%c0_59, %c0_60] : memref<256x128xbf16, #tpu.memory_space<vmem>>, vector<256x128xbf16>
    %cst_61 = arith.constant dense<0.000000e+00> : vector<256x128xf32>
    %82 = tpu.matmul %77, %81, %cst_61 {dimension_numbers = #tpu.dot_dimension_numbers<[1], [0], [0], [1], [0, 0, 1, 1], [], []>} : vector<256x256xbf16>, vector<256x128xbf16>, vector<256x128xf32> -> vector<256x128xf32>
    %c0_62 = arith.constant 0 : index
    %c0_63 = arith.constant 0 : index
    %83 = vector.load %arg23[%c0_62, %c0_63] : memref<24x128xbf16, #tpu.memory_space<vmem>>, vector<24x128xbf16>
    %cst_64 = arith.constant dense<0.000000e+00> : vector<256x128xf32>
    %84 = tpu.matmul %3, %83, %cst_64 {dimension_numbers = #tpu.dot_dimension_numbers<[1], [0], [0], [1], [0, 0, 1, 1], [], []>} : vector<256x24xbf16>, vector<24x128xbf16>, vector<256x128xf32> -> vector<256x128xf32>
    %85 = arith.addf %82, %84 : vector<256x128xf32>
    %c0_65 = arith.constant 0 : index
    %c0_66 = arith.constant 0 : index
    %86 = vector.load %arg24[%c0_65, %c0_66] : memref<1x128xf32, #tpu.memory_space<vmem>>, vector<1x128xf32>
    %87 = vector.broadcast %86 : vector<1x128xf32> to vector<256x128xf32>
    %88 = arith.addf %85, %87 : vector<256x128xf32>
    %cst_67 = arith.constant 0.000000e+00 : f32
    %89 = vector.broadcast %cst_67 : f32 to vector<256x128xf32>
    %90 = arith.maximumf %88, %89 : vector<256x128xf32>
    %91 = arith.truncf %90 : vector<256x128xf32> to vector<256x128xbf16>
    %c0_68 = arith.constant 0 : index
    %c0_69 = arith.constant 0 : index
    %92 = vector.load %arg25[%c0_68, %c0_69] : memref<128x128xbf16, #tpu.memory_space<vmem>>, vector<128x128xbf16>
    %cst_70 = arith.constant dense<0.000000e+00> : vector<256x128xf32>
    %93 = tpu.matmul %91, %92, %cst_70 {dimension_numbers = #tpu.dot_dimension_numbers<[1], [0], [0], [1], [0, 0, 1, 1], [], []>} : vector<256x128xbf16>, vector<128x128xbf16>, vector<256x128xf32> -> vector<256x128xf32>
    %c0_71 = arith.constant 0 : index
    %c0_72 = arith.constant 0 : index
    %94 = vector.load %arg26[%c0_71, %c0_72] : memref<1x128xf32, #tpu.memory_space<vmem>>, vector<1x128xf32>
    %95 = vector.broadcast %94 : vector<1x128xf32> to vector<256x128xf32>
    %96 = arith.addf %93, %95 : vector<256x128xf32>
    %97 = arith.negf %96 : vector<256x128xf32>
    %98 = math.exp %97 : vector<256x128xf32>
    %cst_73 = arith.constant 1.000000e+00 : f32
    %99 = vector.broadcast %cst_73 : f32 to vector<256x128xf32>
    %100 = arith.addf %99, %98 : vector<256x128xf32>
    %101 = arith.divf %99, %100 : vector<256x128xf32>
    %102 = tpu.iota {dimensions = array<i32: 1>} : vector<256x128xi32>
    %c3_i32 = arith.constant 3 : i32
    %103 = vector.broadcast %c3_i32 : i32 to vector<256x128xi32>
    %104 = arith.cmpi eq, %102, %103 : vector<256x128xi32>
    %105 = arith.select %104, %80, %101 : vector<256x128xi1>, vector<256x128xf32>
    %c0_74 = arith.constant 0 : index
    %c0_75 = arith.constant 0 : index
    %106 = vector.load %arg27[%c0_74, %c0_75] : memref<256x128xf32, #tpu.memory_space<vmem>>, vector<256x128xf32>
    tpu.vector_store %arg27[%c0_74, %c0_75], %105 {strides = array<i32>} : memref<256x128xf32, #tpu.memory_space<vmem>>, vector<256x128xf32>,
    return
  }
  func.func @transform_0(%arg0: i32) -> (i32, i32) {
    %c0_i32 = arith.constant 0 : i32
    %c0_i32_0 = arith.constant 0 : i32
    return %arg0, %c0_i32 : i32, i32
  }
  func.func @transform_1(%arg0: i32) -> (i32, i32) {
    %c0_i32 = arith.constant 0 : i32
    %c0_i32_0 = arith.constant 0 : i32
    return %arg0, %c0_i32 : i32, i32
  }
  func.func @transform_2(%arg0: i32) -> (i32, i32) {
    %c0_i32 = arith.constant 0 : i32
    %c0_i32_0 = arith.constant 0 : i32
    %c0_i32_1 = arith.constant 0 : i32
    return %c0_i32, %c0_i32_0 : i32, i32
  }
  func.func @transform_3(%arg0: i32) -> (i32, i32) {
    %c0_i32 = arith.constant 0 : i32
    %c0_i32_0 = arith.constant 0 : i32
    %c0_i32_1 = arith.constant 0 : i32
    return %c0_i32, %c0_i32_0 : i32, i32
  }
  func.func @transform_4(%arg0: i32) -> (i32, i32) {
    %c0_i32 = arith.constant 0 : i32
    %c0_i32_0 = arith.constant 0 : i32
    %c0_i32_1 = arith.constant 0 : i32
    return %c0_i32, %c0_i32_0 : i32, i32
  }
  func.func @transform_5(%arg0: i32) -> (i32, i32) {
    %c0_i32 = arith.constant 0 : i32
    %c0_i32_0 = arith.constant 0 : i32
    %c0_i32_1 = arith.constant 0 : i32
    return %c0_i32, %c0_i32_0 : i32, i32
  }
  func.func @transform_6(%arg0: i32) -> (i32, i32) {
    %c0_i32 = arith.constant 0 : i32
    %c0_i32_0 = arith.constant 0 : i32
    %c0_i32_1 = arith.constant 0 : i32
    return %c0_i32, %c0_i32_0 : i32, i32
  }
  func.func @transform_7(%arg0: i32) -> (i32, i32) {
    %c0_i32 = arith.constant 0 : i32
    %c0_i32_0 = arith.constant 0 : i32
    %c0_i32_1 = arith.constant 0 : i32
    return %c0_i32, %c0_i32_0 : i32, i32
  }
  func.func @transform_8(%arg0: i32) -> (i32, i32) {
    %c0_i32 = arith.constant 0 : i32
    %c0_i32_0 = arith.constant 0 : i32
    %c0_i32_1 = arith.constant 0 : i32
    return %c0_i32, %c0_i32_0 : i32, i32
  }
  func.func @transform_9(%arg0: i32) -> (i32, i32) {
    %c0_i32 = arith.constant 0 : i32
    %c0_i32_0 = arith.constant 0 : i32
    %c0_i32_1 = arith.constant 0 : i32
    return %c0_i32, %c0_i32_0 : i32, i32
  }
  func.func @transform_10(%arg0: i32) -> (i32, i32) {
    %c0_i32 = arith.constant 0 : i32
    %c0_i32_0 = arith.constant 0 : i32
    %c0_i32_1 = arith.constant 0 : i32
    return %c0_i32, %c0_i32_0 : i32, i32
  }
  func.func @transform_11(%arg0: i32) -> (i32, i32) {
    %c0_i32 = arith.constant 0 : i32
    %c0_i32_0 = arith.constant 0 : i32
    %c0_i32_1 = arith.constant 0 : i32
    return %c0_i32, %c0_i32_0 : i32, i32
  }
  func.func @transform_12(%arg0: i32) -> (i32, i32) {
    %c0_i32 = arith.constant 0 : i32
    %c0_i32_0 = arith.constant 0 : i32
    %c0_i32_1 = arith.constant 0 : i32
    return %c0_i32, %c0_i32_0 : i32, i32
  }
  func.func @transform_13(%arg0: i32) -> (i32, i32) {
    %c0_i32 = arith.constant 0 : i32
    %c0_i32_0 = arith.constant 0 : i32
    %c0_i32_1 = arith.constant 0 : i32
    return %c0_i32, %c0_i32_0 : i32, i32
  }
  func.func @transform_14(%arg0: i32) -> (i32, i32) {
    %c0_i32 = arith.constant 0 : i32
    %c0_i32_0 = arith.constant 0 : i32
    %c0_i32_1 = arith.constant 0 : i32
    return %c0_i32, %c0_i32_0 : i32, i32
  }
  func.func @transform_15(%arg0: i32) -> (i32, i32) {
    %c0_i32 = arith.constant 0 : i32
    %c0_i32_0 = arith.constant 0 : i32
    %c0_i32_1 = arith.constant 0 : i32
    return %c0_i32, %c0_i32_0 : i32, i32
  }
  func.func @transform_16(%arg0: i32) -> (i32, i32) {
    %c0_i32 = arith.constant 0 : i32
    %c0_i32_0 = arith.constant 0 : i32
    %c0_i32_1 = arith.constant 0 : i32
    return %c0_i32, %c0_i32_0 : i32, i32
  }
  func.func @transform_17(%arg0: i32) -> (i32, i32) {
    %c0_i32 = arith.constant 0 : i32
    %c0_i32_0 = arith.constant 0 : i32
    %c0_i32_1 = arith.constant 0 : i32
    return %c0_i32, %c0_i32_0 : i32, i32
  }
  func.func @transform_18(%arg0: i32) -> (i32, i32) {
    %c0_i32 = arith.constant 0 : i32
    %c0_i32_0 = arith.constant 0 : i32
    %c0_i32_1 = arith.constant 0 : i32
    return %c0_i32, %c0_i32_0 : i32, i32
  }
  func.func @transform_19(%arg0: i32) -> (i32, i32) {
    %c0_i32 = arith.constant 0 : i32
    %c0_i32_0 = arith.constant 0 : i32
    %c0_i32_1 = arith.constant 0 : i32
    return %c0_i32, %c0_i32_0 : i32, i32
  }
  func.func @transform_20(%arg0: i32) -> (i32, i32) {
    %c0_i32 = arith.constant 0 : i32
    %c0_i32_0 = arith.constant 0 : i32
    %c0_i32_1 = arith.constant 0 : i32
    return %c0_i32, %c0_i32_0 : i32, i32
  }
  func.func @transform_21(%arg0: i32) -> (i32, i32) {
    %c0_i32 = arith.constant 0 : i32
    %c0_i32_0 = arith.constant 0 : i32
    %c0_i32_1 = arith.constant 0 : i32
    return %c0_i32, %c0_i32_0 : i32, i32
  }
  func.func @transform_22(%arg0: i32) -> (i32, i32) {
    %c0_i32 = arith.constant 0 : i32
    %c0_i32_0 = arith.constant 0 : i32
    %c0_i32_1 = arith.constant 0 : i32
    return %c0_i32, %c0_i32_0 : i32, i32
  }
  func.func @transform_23(%arg0: i32) -> (i32, i32) {
    %c0_i32 = arith.constant 0 : i32
    %c0_i32_0 = arith.constant 0 : i32
    %c0_i32_1 = arith.constant 0 : i32
    return %c0_i32, %c0_i32_0 : i32, i32
  }
  func.func @transform_24(%arg0: i32) -> (i32, i32) {
    %c0_i32 = arith.constant 0 : i32
    %c0_i32_0 = arith.constant 0 : i32
    %c0_i32_1 = arith.constant 0 : i32
    return %c0_i32, %c0_i32_0 : i32, i32
  }
  func.func @transform_25(%arg0: i32) -> (i32, i32) {
    %c0_i32 = arith.constant 0 : i32
    %c0_i32_0 = arith.constant 0 : i32
    %c0_i32_1 = arith.constant 0 : i32
    return %c0_i32, %c0_i32_0 : i32, i32
  }
  func.func @transform_26(%arg0: i32) -> (i32, i32) {
    %c0_i32 = arith.constant 0 : i32
    %c0_i32_0 = arith.constant 0 : i32
    return %arg0, %c0_i32 : i32, i32
  }
}

</mosaic_0001>

<bundles_post_ra>
// kernel: tpu_custom_call.1
= control target key start
LH: loop header
LB: loop body
LE: loop exit
PB: predicated region body
PF: predicated region fallthrough
CT: control target
= control target key end

     0   :  { %s10338_s0 = inlined_call_operand.vmem [shape: f32[256,60], index: 0, kind: input, shape index: {}]   ;;  %s10339_s1 = inlined_call_operand.vmem [shape: f32[256,24], index: 1, kind: input, shape index: {}]   ;;  %s10340_s2 = inlined_call_operand.vmem [shape: bf16[60,256], index: 2, kind: input, shape index: {}]   ;;  %s10341_s3 = inlined_call_operand.vmem [shape: f32[1,256], index: 3, kind: input, shape index: {}]   ;;  %s10342_s4 = inlined_call_operand.vmem [shape: bf16[256,256], index: 4, kind: input, shape index: {}]   ;;  %s10343_s5 = inlined_call_operand.vmem [shape: f32[1,256], index: 5, kind: input, shape index: {}]   ;;  %s10344_s6 = inlined_call_operand.hbm [shape: bf16[256,256], index: 6, kind: input, shape index: {}]   ;;  %s10345_s7 = inlined_call_operand.vmem [shape: f32[1,256], index: 7, kind: input, shape index: {}]   ;;  %s10346_s8 = inlined_call_operand.hbm [shape: bf16[256,256], index: 8, kind: input, shape index: {}]   ;;  %s10347_s9 = inlined_call_operand.hbm [shape: f32[1,256], index: 9, kind: input, shape index: {}]   ;;  %s10348_s10 = inlined_call_operand.hbm [shape: bf16[256,256], index: 10, kind: input, shape index: {}]   ;;  %s10349_s11 = inlined_call_operand.hbm [shape: f32[1,256], index: 11, kind: input, shape index: {}]   ;;  %s10350_s12 = inlined_call_operand.hbm [shape: bf16[60,256], index: 12, kind: input, shape index: {}]   ;;  %s10351_s13 = inlined_call_operand.hbm [shape: bf16[256,256], index: 13, kind: input, shape index: {}]   ;;  %s10352_s14 = inlined_call_operand.hbm [shape: f32[1,256], index: 14, kind: input, shape index: {}]   ;;  %s10353_s15 = inlined_call_operand.hbm [shape: bf16[256,256], index: 15, kind: input, shape index: {}]   ;;  %s10354_s16 = inlined_call_operand.hbm [shape: f32[1,256], index: 16, kind: input, shape index: {}]   ;;  %s10355_s17 = inlined_call_operand.hbm [shape: bf16[256,256], index: 17, kind: input, shape index: {}]   ;;  %s10356_s18 = inlined_call_operand.hbm [shape: f32[1,256], index: 18, kind: input, shape index: {}]   ;;  %s10357_s19 = inlined_call_operand.vmem [shape: bf16[256,384], index: 19, kind: input, shape index: {}]   ;;  %s10358_s20 = inlined_call_operand.vmem [shape: f32[1,384], index: 20, kind: input, shape index: {}]   ;;  %s10359_s21 = inlined_call_operand.hbm [shape: bf16[256,128], index: 21, kind: input, shape index: {}]   ;;  %s10360_s22 = inlined_call_operand.hbm [shape: bf16[24,128], index: 22, kind: input, shape index: {}]   ;;  %s10361_s23 = inlined_call_operand.vmem [shape: f32[1,128], index: 23, kind: input, shape index: {}]   ;;  %s10362_s24 = inlined_call_operand.vmem [shape: bf16[128,128], index: 24, kind: input, shape index: {}]   ;;  %s10363_s25 = inlined_call_operand.hbm [shape: f32[1,128], index: 25, kind: input, shape index: {}]   ;;  %s10364_s26 = inlined_call_operand.hbm [shape: f32[256,128], index: 26, kind: output, shape index: {}]  }
   0x1   :  { %10375 = sst [smem:[#allocation57_spill]] %s10338_s0 }
   0x2   :  { %10376 = sst [smem:[#allocation58_spill]] %s10339_s1 }
   0x3   :  { %10377 = sst [smem:[#allocation59_spill]] %s10340_s2 }
   0x4   :  { %10378 = sst [smem:[#allocation60_spill]] %s10341_s3 }
   0x5   :  { %10379 = sst [smem:[#allocation61_spill]] %s10342_s4 }
   0x6   :  { %10380 = sst [smem:[#allocation62_spill]] %s10343_s5 }
   0x7   :  { %10381 = sst [smem:[#allocation63_spill]] %s10344_s6 }
   0x8   :  { %10382 = sst [smem:[#allocation64_spill]] %s10345_s7 }
   0x9   :  { %10383 = sst [smem:[#allocation65_spill]] %s10346_s8 }
   0xa   :  { %10384 = sst [smem:[#allocation66_spill]] %s10347_s9 }
   0xb   :  { %10385 = sst [smem:[#allocation67_spill]] %s10348_s10 }
   0xc   :  { %10386 = sst [smem:[#allocation68_spill]] %s10361_s23 }
   0xd   :  { %10387 = sst [smem:[#allocation69_spill]] %s10364_s26 }
   0xe   :  { %31 = vsyncpa [#allocation3], 0 }
   0xf   :  { %32 = vsyncpa [#allocation6], 0 }
  0x10   :  { %33 = vsyncpa [#allocation9], 0 }
  0x11   :  { %34 = vsyncpa [#allocation12], 0 }
  0x12   :  { %35 = vsyncpa [#allocation15], 0 }
  0x13   :  { %36 = vsyncpa [#allocation18], 0 }
  0x14   :  { %37 = vsyncpa [#allocation21], 0 }
  0x15   :  { %38 = vsyncpa [#allocation24], 0 }
  0x16   :  { %39 = vsyncpa [#allocation4], 0  ;;  %s8211_s27 = smov [#allocation5]   ;;  %s8212_s7 = smov [#allocation8]  }
  0x17   :  { %s71_s3 = sshll.u32 %s8211_s27, 4  ;;  %s93_s28 = sshll.u32 %s8212_s7, 4  ;;  %s72_s3 = int_to_ptr.vmem [resolvable:$true] %s71_s3  ;;  %s8367_s28 = int_to_ptr.vmem [resolvable:$true] %s93_s28 }
  0x18   :  { %s10388_s29 = sld [smem:[#allocation65_spill]] }
  0x1e   :  { %s7841_s0 = scalar_lea.hbm %s10388_s29, 4096 }
  0x1f   :  { %p7842_p0 = scmp.ne.s32.totalorder %s10388_s29, %s7841_s0  ;;  %p7845_p1 = scmp.lt.u32.totalorder %s7841_s0, %s10388_s29 }
  0x21   :  { %p7847_p2 = pnand %p7845_p1, %p7842_p0 }
  0x23   :  { %7850 = shalt.err (!%p7847_p2)
}
  0x24   :  { %s7851_s10 = scalar_lea.vmem %s72_s3, 4096  ;;  %p7856_p4 = scmp.lt.s32.totalorder %s72_s3, %s72_s3 }
  0x25   :  { %p7852_p3 = scmp.ne.s32.totalorder %s72_s3, %s7851_s10  ;;  %p7857_p5 = scmp.lt.s32.totalorder %s7851_s10, %s7851_s10 }
  0x27   :  { %p7858_p6 = por %p7857_p5, %p7856_p4 }
  0x29   :  { %p7859_p7 = pnand %p7858_p6, %p7852_p3 }
  0x2b   :  { %7862 = shalt.err (!%p7859_p7)
}
  0x2c   :  { %s8213_s6 = smov 128   ;;  %s8214_s1 = smov 8  }
  0x2d   :  { %77 = dma.hbm_to_vmem [thread:$0]  %s10388_s29, 4096, %s72_s3, [#allocation6], %s8213_s6, %s8213_s6, %s8214_s1  }
  0x2e   :  { %s10389_s0 = sld [smem:[#allocation67_spill]] }
  0x34   :  { %s7863_s9 = scalar_lea.hbm %s10389_s0, 4096 }
  0x35   :  { %p7864_p8 = scmp.ne.s32.totalorder %s10389_s0, %s7863_s9  ;;  %p7867_p9 = scmp.lt.u32.totalorder %s7863_s9, %s10389_s0 }
  0x37   :  { %p7869_p10 = pnand %p7867_p9, %p7864_p8 }
  0x39   :  { %7872 = shalt.err (!%p7869_p10)
}
  0x3a   :  { %s7873_s26 = scalar_lea.vmem %s8367_s28, 4096  ;;  %p7878_p12 = scmp.lt.s32.totalorder %s8367_s28, %s8367_s28 }
  0x3b   :  { %p7874_p11 = scmp.ne.s32.totalorder %s8367_s28, %s7873_s26  ;;  %p7879_p13 = scmp.lt.s32.totalorder %s7873_s26, %s7873_s26 }
  0x3d   :  { %p7880_p0 = por %p7879_p13, %p7878_p12 }
  0x3f   :  { %p7881_p1 = pnand %p7880_p0, %p7874_p11 }
  0x41   :  { %7884 = shalt.err (!%p7881_p1)
}
  0x42   :  { %99 = dma.hbm_to_vmem [thread:$0]  %s10389_s0, 4096, %s8367_s28, [#allocation9], %s8213_s6, %s8213_s6, %s8214_s1  }
  0x43   :  { %s8215_s27 = smov [#allocation11]   ;;  %s8216_s8 = smov [#allocation14]  }
  0x44   :  { %s115_s7 = sshll.u32 %s8215_s27, 4  ;;  %s140_s4 = sshll.u32 %s8216_s8, 4  ;;  %s116_s7 = int_to_ptr.vmem [resolvable:$true] %s115_s7  ;;  %s141_s4 = int_to_ptr.vmem [resolvable:$true] %s140_s4 }
  0x45   :  { %s7885_s26 = scalar_lea.hbm %s10350_s12, 1024 }
  0x46   :  { %p7886_p2 = scmp.ne.s32.totalorder %s10350_s12, %s7885_s26  ;;  %p7889_p3 = scmp.lt.u32.totalorder %s7885_s26, %s10350_s12 }
  0x48   :  { %p7891_p4 = pnand %p7889_p3, %p7886_p2 }
  0x4a   :  { %7894 = shalt.err (!%p7891_p4)
}
  0x4b   :  { %s7895_s28 = scalar_lea.vmem %s116_s7, 1024  ;;  %p7900_p6 = scmp.lt.s32.totalorder %s116_s7, %s116_s7 }
  0x4c   :  { %p7896_p5 = scmp.ne.s32.totalorder %s116_s7, %s7895_s28  ;;  %p7901_p7 = scmp.lt.s32.totalorder %s7895_s28, %s7895_s28 }
  0x4e   :  { %p7902_p8 = por %p7901_p7, %p7900_p6 }
  0x50   :  { %p7903_p9 = pnand %p7902_p8, %p7896_p5 }
  0x52   :  { %7906 = shalt.err (!%p7903_p9)
}
  0x53   :  { %121 = dma.hbm_to_vmem [thread:$0]  %s10350_s12, 1024, %s116_s7, [#allocation12], %s8213_s6, %s8213_s6, %s8214_s1  }
  0x54   :  { %s7907_s23 = scalar_lea.hbm %s10352_s14, 32 }
  0x55   :  { %p7908_p10 = scmp.ne.s32.totalorder %s10352_s14, %s7907_s23  ;;  %p7911_p11 = scmp.lt.u32.totalorder %s7907_s23, %s10352_s14 }
  0x57   :  { %p7913_p12 = pnand %p7911_p11, %p7908_p10 }
  0x59   :  { %7916 = shalt.err (!%p7913_p12)
}
  0x5a   :  { %s7917_s2 = scalar_lea.vmem %s141_s4, 32  ;;  %p7922_p0 = scmp.lt.s32.totalorder %s141_s4, %s141_s4 }
  0x5b   :  { %p7918_p13 = scmp.ne.s32.totalorder %s141_s4, %s7917_s2  ;;  %p7923_p1 = scmp.lt.s32.totalorder %s7917_s2, %s7917_s2 }
  0x5d   :  { %p7924_p2 = por %p7923_p1, %p7922_p0 }
  0x5f   :  { %p7925_p3 = pnand %p7924_p2, %p7918_p13 }
  0x61   :  { %7928 = shalt.err (!%p7925_p3)
}
  0x62   :  { %143 = dma.hbm_to_vmem [thread:$0]  %s10352_s14, 32, %s141_s4, [#allocation15]  }
  0x63   :  { %s8217_s5 = smov [#allocation17]   ;;  %s8218_s28 = smov [#allocation20]  }
  0x64   :  { %s162_s10 = sshll.u32 %s8217_s5, 4  ;;  %s184_s0 = sshll.u32 %s8218_s28, 4  ;;  %s163_s10 = int_to_ptr.vmem [resolvable:$true] %s162_s10  ;;  %s185_s0 = int_to_ptr.vmem [resolvable:$true] %s184_s0 }
  0x65   :  { %s7929_s27 = scalar_lea.hbm %s10354_s16, 32 }
  0x66   :  { %p7930_p4 = scmp.ne.s32.totalorder %s10354_s16, %s7929_s27  ;;  %p7933_p5 = scmp.lt.u32.totalorder %s7929_s27, %s10354_s16 }
  0x68   :  { %p7935_p6 = pnand %p7933_p5, %p7930_p4 }
  0x6a   :  { %7938 = shalt.err (!%p7935_p6)
}
  0x6b   :  { %s7939_s14 = scalar_lea.vmem %s163_s10, 32  ;;  %p7944_p8 = scmp.lt.s32.totalorder %s163_s10, %s163_s10 }
  0x6c   :  { %p7940_p7 = scmp.ne.s32.totalorder %s163_s10, %s7939_s14  ;;  %p7945_p9 = scmp.lt.s32.totalorder %s7939_s14, %s7939_s14 }
  0x6e   :  { %p7946_p10 = por %p7945_p9, %p7944_p8 }
  0x70   :  { %p7947_p11 = pnand %p7946_p10, %p7940_p7 }
  0x72   :  { %7950 = shalt.err (!%p7947_p11)
}
  0x73   :  { %165 = dma.hbm_to_vmem [thread:$0]  %s10354_s16, 32, %s163_s10, [#allocation18]  }
  0x74   :  { %s7951_s7 = scalar_lea.hbm %s10356_s18, 32 }
  0x75   :  { %p7952_p12 = scmp.ne.s32.totalorder %s10356_s18, %s7951_s7  ;;  %p7955_p13 = scmp.lt.u32.totalorder %s7951_s7, %s10356_s18 }
  0x77   :  { %p7957_p0 = pnand %p7955_p13, %p7952_p12 }
  0x79   :  { %7960 = shalt.err (!%p7957_p0)
}
  0x7a   :  { %s7961_s27 = scalar_lea.vmem %s185_s0, 32  ;;  %p7966_p2 = scmp.lt.s32.totalorder %s185_s0, %s185_s0 }
  0x7b   :  { %p7962_p1 = scmp.ne.s32.totalorder %s185_s0, %s7961_s27  ;;  %p7967_p3 = scmp.lt.s32.totalorder %s7961_s27, %s7961_s27 }
  0x7d   :  { %p7968_p4 = por %p7967_p3, %p7966_p2 }
  0x7f   :  { %p7969_p5 = pnand %p7968_p4, %p7962_p1 }
  0x81   :  { %7972 = shalt.err (!%p7969_p5)
}
  0x82   :  { %187 = dma.hbm_to_vmem [thread:$0]  %s10356_s18, 32, %s185_s0, [#allocation21]  }
  0x83   :  { %s8219_s23 = smov [#allocation23]   ;;  %s8220_s9 = smov [#allocation2]  }
  0x84   :  { %s209_s8 = sshll.u32 %s8219_s23, 4  ;;  %s57_s30 = sshll.u32 %s8220_s9, 4  ;;  %s210_s8 = int_to_ptr.vmem [resolvable:$true] %s209_s8  ;;  %s8455_s30 = int_to_ptr.vmem [resolvable:$true] %s57_s30 }
  0x85   :  { %s7973_s26 = scalar_lea.hbm %s10360_s22, 192 }
  0x86   :  { %p7974_p6 = scmp.ne.s32.totalorder %s10360_s22, %s7973_s26  ;;  %p7977_p7 = scmp.lt.u32.totalorder %s7973_s26, %s10360_s22 }
  0x88   :  { %p7979_p8 = pnand %p7977_p7, %p7974_p6 }
  0x8a   :  { %7982 = shalt.err (!%p7979_p8)
}
  0x8b   :  { %s7983_s18 = scalar_lea.vmem %s210_s8, 192  ;;  %p7988_p10 = scmp.lt.s32.totalorder %s210_s8, %s210_s8 }
  0x8c   :  { %p7984_p9 = scmp.ne.s32.totalorder %s210_s8, %s7983_s18  ;;  %p7989_p11 = scmp.lt.s32.totalorder %s7983_s18, %s7983_s18 }
  0x8e   :  { %p7990_p12 = por %p7989_p11, %p7988_p10 }
  0x90   :  { %p7991_p13 = pnand %p7990_p12, %p7984_p9 }
  0x92   :  { %7994 = shalt.err (!%p7991_p13)
}
  0x93   :  { %s8221_s0 = smov 64   ;;  %s8222_s28 = smov 4  }
  0x94   :  { %215 = dma.hbm_to_vmem [thread:$0]  %s10360_s22, 192, %s210_s8, [#allocation24], %s8221_s0, %s8221_s0, %s8222_s28  }
  0x95   :  { %s10390_s10 = sld [smem:[#allocation63_spill]] }
  0x9b   :  { %s7995_s23 = scalar_lea.hbm %s10390_s10, 4096 }
  0x9c   :  { %p7996_p0 = scmp.ne.s32.totalorder %s10390_s10, %s7995_s23  ;;  %p7999_p1 = scmp.lt.u32.totalorder %s7995_s23, %s10390_s10 }
  0x9e   :  { %p8001_p2 = pnand %p7999_p1, %p7996_p0 }
  0xa0   :  { %8004 = shalt.err (!%p8001_p2)
}
  0xa1   :  { %s8005_s2 = scalar_lea.vmem %s8455_s30, 4096  ;;  %p8010_p4 = scmp.lt.s32.totalorder %s8455_s30, %s8455_s30 }
  0xa2   :  { %p8006_p3 = scmp.ne.s32.totalorder %s8455_s30, %s8005_s2  ;;  %p8011_p5 = scmp.lt.s32.totalorder %s8005_s2, %s8005_s2 }
  0xa4   :  { %p8012_p6 = por %p8011_p5, %p8010_p4 }
  0xa6   :  { %p8013_p7 = pnand %p8012_p6, %p8006_p3 }
  0xa8   :  { %8016 = shalt.err (!%p8013_p7)
}
  0xa9   :  { %63 = dma.hbm_to_vmem [thread:$0]  %s10390_s10, 4096, %s8455_s30, [#allocation3], %s8213_s6, %s8213_s6, %s8214_s1  }
  0xaa   :  { %s8223_s12 = smov [#allocation7]   ;;  %s8224_s5 = smov [#allocation10]  }
  0xab   :  { %s84_s7 = sshll.u32 %s8223_s12, 4  ;;  %s106_s18 = sshll.u32 %s8224_s5, 4  ;;  %s85_s7 = int_to_ptr.vmem [resolvable:$true] %s84_s7  ;;  %s107_s18 = int_to_ptr.vmem [resolvable:$true] %s106_s18 }
  0xac   :  { %s10391_s27 = sld [smem:[#allocation66_spill]] }
  0xb2   :  { %s8017_s16 = scalar_lea.hbm %s10391_s27, 32 }
  0xb3   :  { %p8018_p8 = scmp.ne.s32.totalorder %s10391_s27, %s8017_s16  ;;  %p8021_p9 = scmp.lt.u32.totalorder %s8017_s16, %s10391_s27 }
  0xb5   :  { %p8023_p10 = pnand %p8021_p9, %p8018_p8 }
  0xb7   :  { %8026 = shalt.err (!%p8023_p10)
}
  0xb8   :  { %s8027_s30 = scalar_lea.vmem %s85_s7, 32  ;;  %p8032_p12 = scmp.lt.s32.totalorder %s85_s7, %s85_s7 }
  0xb9   :  { %p8028_p11 = scmp.ne.s32.totalorder %s85_s7, %s8027_s30  ;;  %p8033_p13 = scmp.lt.s32.totalorder %s8027_s30, %s8027_s30 }
  0xbb   :  { %p8034_p0 = por %p8033_p13, %p8032_p12 }
  0xbd   :  { %p8035_p1 = pnand %p8034_p0, %p8028_p11 }
  0xbf   :  { %8038 = shalt.err (!%p8035_p1)
}
  0xc0   :  { %87 = dma.hbm_to_vmem [thread:$0]  %s10391_s27, 32, %s85_s7, [#allocation6]  }
  0xc1   :  { %s8039_s8 = scalar_lea.hbm %s10349_s11, 32 }
  0xc2   :  { %p8040_p2 = scmp.ne.s32.totalorder %s10349_s11, %s8039_s8  ;;  %p8043_p3 = scmp.lt.u32.totalorder %s8039_s8, %s10349_s11 }
  0xc4   :  { %p8045_p4 = pnand %p8043_p3, %p8040_p2 }
  0xc6   :  { %8048 = shalt.err (!%p8045_p4)
}
  0xc7   :  { %s8049_s16 = scalar_lea.vmem %s107_s18, 32  ;;  %p8054_p6 = scmp.lt.s32.totalorder %s107_s18, %s107_s18 }
  0xc8   :  { %p8050_p5 = scmp.ne.s32.totalorder %s107_s18, %s8049_s16  ;;  %p8055_p7 = scmp.lt.s32.totalorder %s8049_s16, %s8049_s16 }
  0xca   :  { %p8056_p8 = por %p8055_p7, %p8054_p6 }
  0xcc   :  { %p8057_p9 = pnand %p8056_p8, %p8050_p5 }
  0xce   :  { %8060 = shalt.err (!%p8057_p9)
}
  0xcf   :  { %109 = dma.hbm_to_vmem [thread:$0]  %s10349_s11, 32, %s107_s18, [#allocation9]  }
  0xd0   :  { %s8225_s23 = smov [#allocation13]   ;;  %s8226_s14 = smov [#allocation16]  }
  0xd1   :  { %s127_s9 = sshll.u32 %s8225_s23, 4  ;;  %s149_s4 = sshll.u32 %s8226_s14, 4  ;;  %s128_s9 = int_to_ptr.vmem [resolvable:$true] %s127_s9  ;;  %s8516_s4 = int_to_ptr.vmem [resolvable:$true] %s149_s4 }
  0xd2   :  { %s8061_s26 = scalar_lea.hbm %s10351_s13, 4096 }
  0xd3   :  { %p8062_p10 = scmp.ne.s32.totalorder %s10351_s13, %s8061_s26  ;;  %p8065_p11 = scmp.lt.u32.totalorder %s8061_s26, %s10351_s13 }
  0xd5   :  { %p8067_p12 = pnand %p8065_p11, %p8062_p10 }
  0xd7   :  { %8070 = shalt.err (!%p8067_p12)
}
  0xd8   :  { %s8071_s11 = scalar_lea.vmem %s128_s9, 4096  ;;  %p8076_p0 = scmp.lt.s32.totalorder %s128_s9, %s128_s9 }
  0xd9   :  { %p8072_p13 = scmp.ne.s32.totalorder %s128_s9, %s8071_s11  ;;  %p8077_p1 = scmp.lt.s32.totalorder %s8071_s11, %s8071_s11 }
  0xdb   :  { %p8078_p2 = por %p8077_p1, %p8076_p0 }
  0xdd   :  { %p8079_p3 = pnand %p8078_p2, %p8072_p13 }
  0xdf   :  { %8082 = shalt.err (!%p8079_p3)
}
  0xe0   :  { %133 = dma.hbm_to_vmem [thread:$0]  %s10351_s13, 4096, %s128_s9, [#allocation12], %s8213_s6, %s8213_s6, %s8214_s1  }
  0xe1   :  { %s8083_s16 = scalar_lea.hbm %s10353_s15, 4096 }
  0xe2   :  { %p8084_p4 = scmp.ne.s32.totalorder %s10353_s15, %s8083_s16  ;;  %p8087_p5 = scmp.lt.u32.totalorder %s8083_s16, %s10353_s15 }
  0xe4   :  { %p8089_p6 = pnand %p8087_p5, %p8084_p4 }
  0xe6   :  { %8092 = shalt.err (!%p8089_p6)
}
  0xe7   :  { %s8093_s30 = scalar_lea.vmem %s8516_s4, 4096  ;;  %p8098_p8 = scmp.lt.s32.totalorder %s8516_s4, %s8516_s4 }
  0xe8   :  { %p8094_p7 = scmp.ne.s32.totalorder %s8516_s4, %s8093_s30  ;;  %p8099_p9 = scmp.lt.s32.totalorder %s8093_s30, %s8093_s30 }
  0xea   :  { %p8100_p10 = por %p8099_p9, %p8098_p8 }
  0xec   :  { %p8101_p11 = pnand %p8100_p10, %p8094_p7 }
  0xee   :  { %8104 = shalt.err (!%p8101_p11)
}
  0xef   :  { %155 = dma.hbm_to_vmem [thread:$0]  %s10353_s15, 4096, %s8516_s4, [#allocation15], %s8213_s6, %s8213_s6, %s8214_s1  }
  0xf0   :  { %s8227_s10 = smov [#allocation19]   ;;  %s8228_s2 = smov [#allocation22]  }
  0xf1   :  { %s171_s26 = sshll.u32 %s8227_s10, 4  ;;  %s197_s22 = sshll.u32 %s8228_s2, 4  ;;  %s172_s26 = int_to_ptr.vmem [resolvable:$true] %s171_s26  ;;  %s8553_s22 = int_to_ptr.vmem [resolvable:$true] %s197_s22 }
  0xf2   :  { %s8105_s11 = scalar_lea.hbm %s10355_s17, 4096 }
  0xf3   :  { %p8106_p12 = scmp.ne.s32.totalorder %s10355_s17, %s8105_s11  ;;  %p8109_p13 = scmp.lt.u32.totalorder %s8105_s11, %s10355_s17 }
  0xf5   :  { %p8111_p0 = pnand %p8109_p13, %p8106_p12 }
  0xf7   :  { %8114 = shalt.err (!%p8111_p0)
}
  0xf8   :  { %s8115_s15 = scalar_lea.vmem %s172_s26, 4096  ;;  %p8120_p2 = scmp.lt.s32.totalorder %s172_s26, %s172_s26 }
  0xf9   :  { %p8116_p1 = scmp.ne.s32.totalorder %s172_s26, %s8115_s15  ;;  %p8121_p3 = scmp.lt.s32.totalorder %s8115_s15, %s8115_s15 }
  0xfb   :  { %p8122_p4 = por %p8121_p3, %p8120_p2 }
  0xfd   :  { %p8123_p5 = pnand %p8122_p4, %p8116_p1 }
  0xff   :  { %8126 = shalt.err (!%p8123_p5)
}
 0x100   :  { %177 = dma.hbm_to_vmem [thread:$0]  %s10355_s17, 4096, %s172_s26, [#allocation18], %s8213_s6, %s8213_s6, %s8214_s1  }
 0x101   :  { %s8127_s23 = scalar_lea.hbm %s10359_s21, 2048 }
 0x102   :  { %p8128_p6 = scmp.ne.s32.totalorder %s10359_s21, %s8127_s23  ;;  %p8131_p7 = scmp.lt.u32.totalorder %s8127_s23, %s10359_s21 }
 0x104   :  { %p8133_p8 = pnand %p8131_p7, %p8128_p6 }
 0x106   :  { %8136 = shalt.err (!%p8133_p8)
}
 0x107   :  { %s8137_s10 = scalar_lea.vmem %s8553_s22, 2048  ;;  %p8142_p10 = scmp.lt.s32.totalorder %s8553_s22, %s8553_s22 }
 0x108   :  { %p8138_p9 = scmp.ne.s32.totalorder %s8553_s22, %s8137_s10  ;;  %p8143_p11 = scmp.lt.s32.totalorder %s8137_s10, %s8137_s10 }
 0x10a   :  { %p8144_p12 = por %p8143_p11, %p8142_p10 }
 0x10c   :  { %p8145_p13 = pnand %p8144_p12, %p8138_p9 }
 0x10e   :  { %8148 = shalt.err (!%p8145_p13)
}
 0x10f   :  { %203 = dma.hbm_to_vmem [thread:$0]  %s10359_s21, 2048, %s8553_s22, [#allocation21], %s8221_s0, %s8221_s0, %s8222_s28  }
 0x110   :  { %s8229_s2 = smov [#allocation25]   ;;  %s8149_s18 = scalar_lea.hbm %s10363_s25, 16 }
 0x111   :  { %s226_s8 = sshll.u32 %s8229_s2, 4  ;;  %p8150_p0 = scmp.ne.s32.totalorder %s10363_s25, %s8149_s18  ;;  %s227_s8 = int_to_ptr.vmem [resolvable:$true] %s226_s8 }
 0x112   :  { %p8153_p1 = scmp.lt.u32.totalorder %s8149_s18, %s10363_s25 }
 0x114   :  { %p8155_p2 = pnand %p8153_p1, %p8150_p0 }
 0x116   :  { %8158 = shalt.err (!%p8155_p2)
}
 0x117   :  { %s8159_s4 = scalar_lea.vmem %s227_s8, 16  ;;  %s8163_s21 = scalar_lea.vmem %s227_s8, 32 }
 0x118   :  { %p8160_p3 = scmp.ne.s32.totalorder %s227_s8, %s8159_s4  ;;  %p8164_p4 = scmp.lt.s32.totalorder %s227_s8, %s227_s8 }
 0x119   :  { %p8165_p5 = scmp.lt.s32.totalorder %s8163_s21, %s8159_s4 }
 0x11b   :  { %p8166_p6 = por %p8165_p5, %p8164_p4 }
 0x11d   :  { %p8167_p7 = pnand %p8166_p6, %p8160_p3 }
 0x11f   :  { %8170 = shalt.err (!%p8167_p7)
}
 0x120   :  { %229 = dma.hbm_to_vmem [thread:$0]  %s10363_s25, 16, %s227_s8, [#allocation24]  }
 0x121   :  { %8193 = dma.done.wait [#allocation3], 4096  }
 0x122   :  { %8194 = vsyncadd [#allocation3], 4294963200 }
 0x123   :  { %8195 = dma.done.wait [#allocation6], 4128  }
 0x124   :  { %8196 = vsyncadd [#allocation6], 4294963168 }
 0x125   :  { %8197 = dma.done.wait [#allocation9], 4128  }
 0x126   :  { %8198 = vsyncadd [#allocation9], 4294963168 }
 0x127   :  { %8199 = dma.done.wait [#allocation12], 5120  }
 0x128   :  { %8200 = vsyncadd [#allocation12], 4294962176 }
 0x129   :  { %8201 = dma.done.wait [#allocation15], 4128  }
 0x12a   :  { %8202 = vsyncadd [#allocation15], 4294963168 }
 0x12b   :  { %8203 = dma.done.wait [#allocation18], 4128  }
 0x12c   :  { %8204 = vsyncadd [#allocation18], 4294963168 }
 0x12d   :  { %8205 = dma.done.wait [#allocation21], 2080  }
 0x12e   :  { %8206 = vsyncadd [#allocation21], 4294965216 }
 0x12f   :  { %8207 = dma.done.wait [#allocation24], 208  }
 0x130   :  { %8208 = vsyncadd [#allocation24], 4294967088  ;;  %v8230_v0 = vmov 0   ;;  %s10392_s16 = sld [smem:[#allocation59_spill]]  ;;  %vm479_vm0 = vcmask 1045504   ;;  %s10393_s3 = sld [smem:[#allocation57_spill]] }
 0x131   :  { %518 = vmatprep.mubr.bf16.mxu0 %v8230_v0  ;;  %vm430_vm1 = vcmask 490496   ;;  %s10394_s0 = sld [smem:[#allocation61_spill]]  ;;  %s10395_s22 = sld [smem:[#allocation60_spill]]  ;;  %vm5383_vm2 = vcmask 1043456   ;;  %vm5334_vm3 = vcmask 195584  }
 0x132   :  { %s10396_s27 = sld [smem:[#allocation62_spill]]  ;;  %s10397_s30 = sld [smem:[#allocation64_spill]] }
 0x136   :  { %v7262_v1 = vld [vmem:[%s10392_s16 + $0x4] ss:$8 sps:$4 sm:$0xff]   ;;  %v7264_v2 = vld [vmem:[%s10392_s16] ss:$8 sps:$4 sm:$0xff]   ;;  %v7265_v3 = vld [vmem:[%s10392_s16 + $0x14] ss:$8 sps:$4 sm:$0xff]  }
 0x137   :  { %486 = vmatprep.subr.bf16.mxu0 %v7262_v1  ;;  %v7267_v4 = vld [vmem:[%s10392_s16 + $0x10] ss:$8 sps:$4 sm:$0xff]   ;;  %v7268_v5 = vld [vmem:[%s10392_s16 + $0x24] ss:$8 sps:$4 sm:$0xff]   ;;  %v7270_v6 = vld [vmem:[%s10392_s16 + $0x20] ss:$8 sps:$4 sm:$0xff]  }
 0x138   :  { %487 = vmatpush1.bf16.msra.mxu0 %v7264_v2  ;;  %v7271_v7 = vld [vmem:[%s10392_s16 + $0x34] ss:$8 sps:$4 sm:$0x3f]   ;;  %v7273_v8 = vld [vmem:[%s10392_s16 + $0x30] ss:$8 sps:$4 sm:$0x3f]  }
 0x139   :  { %488 = vmatprep.subr.bf16.mxu0 %v7265_v3  ;;  %v276_v9 = vld [vmem:[%s10393_s3] sm:$0xff]  ;;  %v277_v10 = vld [vmem:[%s10393_s3 + $0x8] sm:$0xff]  ;;  %v481_v11 = vsel %vm479_vm0, %v7273_v8, 0  ;;  %v278_v15 = vld [vmem:[%s10393_s3 + $0x10] sm:$0xff] }
 0x13a   :  { %v8635_v12 = vpack.c.bf16 %v277_v10, %v276_v9  ;;  %v7274_v13 = vld [vmem:[%s10394_s0 + $0x4] ss:$8 sps:$4 sm:$0xff]   ;;  %v7276_v14 = vld [vmem:[%s10394_s0] ss:$8 sps:$4 sm:$0xff]   ;;  %v7277_v16 = vld [vmem:[%s10394_s0 + $0x14] ss:$8 sps:$4 sm:$0xff]  }
 0x13b   :  { %979 = vmatprep.subr.bf16.mxu1 %v7274_v13  ;;  %v279_v17 = vld [vmem:[%s10393_s3 + $0x18] sm:$0xff]  ;;  %v7280_v19 = vld [vmem:[%s10394_s0 + $0x24] ss:$8 sps:$4 sm:$0xff]   ;;  %v7282_v21 = vld [vmem:[%s10394_s0 + $0x20] ss:$8 sps:$4 sm:$0xff]  }
 0x13c   :  { %489 = vmatpush1.bf16.msra.mxu0 %v7267_v4  ;;  %980 = vmatpush1.bf16.msra.mxu1 %v7276_v14  ;;  %v7279_v18 = vld [vmem:[%s10394_s0 + $0x10] ss:$8 sps:$4 sm:$0xff]   ;;  %v8661_v20 = vpack.c.bf16 %v279_v17, %v278_v15  ;;  %v7283_v22 = vld [vmem:[%s10394_s0 + $0x34] ss:$8 sps:$4 sm:$0xff]   ;;  %v280_v23 = vld [vmem:[%s10393_s3 + $0x20] sm:$0xff] }
 0x13d   :  { %490 = vmatprep.subr.bf16.mxu0 %v7268_v5  ;;  %981 = vmatprep.subr.bf16.mxu1 %v7277_v16  ;;  %v281_v24 = vld [vmem:[%s10393_s3 + $0x28] sm:$0xff]  ;;  %v7285_v25 = vld [vmem:[%s10394_s0 + $0x30] ss:$8 sps:$4 sm:$0xff]   ;;  %v7289_v29 = vld [vmem:[%s10394_s0 + $0x54] ss:$8 sps:$4 sm:$0xff]  }
 0x13e   :  { %v7286_v26 = vld [vmem:[%s10394_s0 + $0x44] ss:$8 sps:$4 sm:$0xff]   ;;  %v8684_v27 = vpack.c.bf16 %v281_v24, %v280_v23  ;;  %v7288_v28 = vld [vmem:[%s10394_s0 + $0x40] ss:$8 sps:$4 sm:$0xff]   ;;  %v282_v30 = vld [vmem:[%s10393_s3 + $0x30] sm:$0xff] }
 0x13f   :  { %v283_v31 = vld [vmem:[%s10393_s3 + $0x38] sm:$0xff]  ;;  %v7292_v33 = vld [vmem:[%s10394_s0 + $0x64] ss:$8 sps:$4 sm:$0xff]   ;;  %v7294_v34 = vld [vmem:[%s10394_s0 + $0x60] ss:$8 sps:$4 sm:$0xff]  }
 0x140   :  { %491 = vmatpush1.bf16.msra.mxu0 %v7270_v6  ;;  %982 = vmatpush1.bf16.msra.mxu1 %v7279_v18  ;;  %v7291_v32 = vld [vmem:[%s10394_s0 + $0x50] ss:$8 sps:$4 sm:$0xff]   ;;  %v8710_v35 = vpack.c.bf16 %v283_v31, %v282_v30  ;;  %v7295_v36 = vld [vmem:[%s10394_s0 + $0x74] ss:$8 sps:$4 sm:$0xff]   ;;  %v284_v37 = vld [vmem:[%s10393_s3 + $0x40] sm:$0xff] }
 0x141   :  { %6415 = vmatprep.subr.msk.bf16.mxu0 %vm479_vm0, %v7271_v7  ;;  %983 = vmatprep.subr.bf16.mxu1 %v7280_v19  ;;  %v285_v38 = vld [vmem:[%s10393_s3 + $0x48] sm:$0xff]  ;;  %v7297_v39 = vld [vmem:[%s10394_s0 + $0x70] ss:$8 sps:$4 sm:$0xff]   ;;  %v7301_v43 = vld [vmem:[%s10394_s0 + $0x94] ss:$8 sps:$4 sm:$0xff]  }
 0x142   :  { %v7298_v40 = vld [vmem:[%s10394_s0 + $0x84] ss:$8 sps:$4 sm:$0xff]   ;;  %v7300_v41 = vld [vmem:[%s10394_s0 + $0x80] ss:$8 sps:$4 sm:$0xff]   ;;  %v8733_v42 = vpack.c.bf16 %v285_v38, %v284_v37  ;;  %v286_v44 = vld [vmem:[%s10393_s3 + $0x50] sm:$0xff] }
 0x143   :  { %v287_v45 = vld [vmem:[%s10393_s3 + $0x58] sm:$0xff]  ;;  %v7304_v47 = vld [vmem:[%s10394_s0 + $0xa4] ss:$8 sps:$4 sm:$0xff]   ;;  %v7306_v48 = vld [vmem:[%s10394_s0 + $0xa0] ss:$8 sps:$4 sm:$0xff]  }
 0x144   :  { %493 = vmatpush1.bf16.msra.mxu0 %v481_v11  ;;  %984 = vmatpush1.bf16.msra.mxu1 %v7282_v21  ;;  %v7303_v46 = vld [vmem:[%s10394_s0 + $0x90] ss:$8 sps:$4 sm:$0xff]   ;;  %v8756_v49 = vpack.c.bf16 %v287_v45, %v286_v44  ;;  %v7307_v50 = vld [vmem:[%s10394_s0 + $0xb4] ss:$8 sps:$4 sm:$0xff]   ;;  %v288_v51 = vld [vmem:[%s10393_s3 + $0x60] sm:$0xff] }
 0x145   :  { %985 = vmatprep.subr.bf16.mxu1 %v7283_v22  ;;  %v289_v52 = vld [vmem:[%s10393_s3 + $0x68] sm:$0xff]  ;;  %v7309_v53 = vld [vmem:[%s10394_s0 + $0xb0] ss:$8 sps:$4 sm:$0xff]   ;;  %v7313_v57 = vld [vmem:[%s10394_s0 + $0xd4] ss:$8 sps:$4 sm:$0xff]  }
 0x146   :  { %v7310_v54 = vld [vmem:[%s10394_s0 + $0xc4] ss:$8 sps:$4 sm:$0xff]   ;;  %v7312_v55 = vld [vmem:[%s10394_s0 + $0xc0] ss:$8 sps:$4 sm:$0xff]   ;;  %v8779_v56 = vpack.c.bf16 %v289_v52, %v288_v51  ;;  %v290_v58 = vld [vmem:[%s10393_s3 + $0x70] sm:$0xff] }
 0x147   :  { %6416 = vmatmul.mubr.msk.bf16.vlgmr.msra.gmra.mrb[0].mxu0 %vm430_vm1, %v8635_v12  ;;  %v291_v59 = vld [vmem:[%s10393_s3 + $0x78] sm:$0xff]  ;;  %v292_v61 = vld [vmem:[%s10393_s3 + $0x80] sm:$0xff]  ;;  %v293_v62 = vld [vmem:[%s10393_s3 + $0x88] sm:$0xff] }
 0x148   :  { %528 = vmatprep.mubr.bf16.mxu0 %v8230_v0  ;;  %986 = vmatpush1.bf16.msra.mxu1 %v7285_v25  ;;  %v8793_v60 = vpack.c.bf16 %v291_v59, %v290_v58  ;;  %v8804_v63 = vpack.c.bf16 %v293_v62, %v292_v61  ;;  %v294_v1 = vld [vmem:[%s10393_s3 + $0x90] sm:$0xff]  ;;  %v295_v2 = vld [vmem:[%s10393_s3 + $0x98] sm:$0xff]  ;;  %v296_v4 = vld [vmem:[%s10393_s3 + $0xa0] sm:$0xff] }
 0x149   :  { %987 = vmatprep.subr.bf16.mxu1 %v7286_v26  ;;  %v8815_v3 = vpack.c.bf16 %v295_v2, %v294_v1  ;;  %v297_v5 = vld [vmem:[%s10393_s3 + $0xa8] sm:$0xff]  ;;  %v298_v7 = vld [vmem:[%s10393_s3 + $0xb0] sm:$0xff]  ;;  %v299_v8 = vld [vmem:[%s10393_s3 + $0xb8] sm:$0xff] }
 0x14a   :  { %v8826_v6 = vpack.c.bf16 %v297_v5, %v296_v4  ;;  %v7315_v9 = vld [vmem:[%s10394_s0 + $0xd0] ss:$8 sps:$4 sm:$0xff]   ;;  %v8840_v10 = vpack.c.bf16 %v299_v8, %v298_v7  ;;  %v7316_v11 = vld [vmem:[%s10394_s0 + $0xe4] ss:$8 sps:$4 sm:$0xff]   ;;  %v7318_v13 = vld [vmem:[%s10394_s0 + $0xe0] ss:$8 sps:$4 sm:$0xff]  }
 0x14b   :  { %v300_v14 = vld [vmem:[%s10393_s3 + $0xc0] sm:$0xff]  ;;  %v301_v15 = vld [vmem:[%s10393_s3 + $0xc8] sm:$0xff]  ;;  %v7319_v16 = vld [vmem:[%s10394_s0 + $0xf4] ss:$8 sps:$4 sm:$0xff]  }
 0x14c   :  { %988 = vmatpush1.bf16.msra.mxu1 %v7288_v28  ;;  %v7321_v17 = vld [vmem:[%s10394_s0 + $0xf0] ss:$8 sps:$4 sm:$0xff]   ;;  %v8863_v18 = vpack.c.bf16 %v301_v15, %v300_v14  ;;  %v304_v23 = vld [vmem:[%s10393_s3 + $0xe0] sm:$0xff]  ;;  %v305_v24 = vld [vmem:[%s10393_s3 + $0xe8] sm:$0xff] }
 0x14d   :  { %989 = vmatprep.subr.bf16.mxu1 %v7289_v29  ;;  %v302_v19 = vld [vmem:[%s10393_s3 + $0xd0] sm:$0xff]  ;;  %v303_v21 = vld [vmem:[%s10393_s3 + $0xd8] sm:$0xff]  ;;  %v8885_v25 = vpack.c.bf16 %v305_v24, %v304_v23  ;;  %v7322_v30 = vld [vmem:[#allocation2] ss:$8 sps:$4 sm:$0xff]  }
 0x14e   :  { %v8874_v22 = vpack.c.bf16 %v303_v21, %v302_v19  ;;  %v306_v26 = vld [vmem:[%s10393_s3 + $0xf0] sm:$0xff]  ;;  %v307_v28 = vld [vmem:[%s10393_s3 + $0xf8] sm:$0xff]  ;;  %v7324_v31 = vld [vmem:[#allocation2 + $0x4] ss:$8 sps:$4 sm:$0xff]  }
 0x14f   :  { %6417 = vmatmul.mubr.msk.bf16.gmra.mrb[4].mxu0 %vm430_vm1, %v8661_v20  ;;  %v8896_v29 = vpack.c.bf16 %v307_v28, %v306_v26  ;;  %1472 = vmatprep.subr.bf16.mxu0 %v7324_v31  ;;  %v380_v38 = vld [vmem:[%s10395_s22] sm:$0x3]  ;;  %v7331_v45 = vld [vmem:[#allocation2 + $0x30] ss:$8 sps:$4 sm:$0xff]   ;;  %v7339_v59 = vld [vmem:[#allocation2 + $0x54] ss:$8 sps:$4 sm:$0xff]  }
 0x150   :  { %538 = vmatprep.mubr.bf16.mxu0 %v8230_v0  ;;  %990 = vmatpush1.bf16.msra.mxu1 %v7291_v32  ;;  %v10374_v32 = vlaneseq  ;;  %v7337_v4 = vld [vmem:[#allocation2 + $0x50] ss:$8 sps:$4 sm:$0xff]   ;;  %v7342_v7 = vld [vmem:[#allocation2 + $0x64] ss:$8 sps:$4 sm:$0xff]   ;;  %v7345_v21 = vld [vmem:[#allocation2 + $0x74] ss:$8 sps:$4 sm:$0xff]  }
 0x151   :  { %991 = vmatprep.subr.bf16.mxu1 %v7292_v33  ;;  %1473 = vmatpush1.bf16.msra.mxu0 %v7322_v30  ;;  %v7325_v33 = vld [vmem:[#allocation2 + $0x10] ss:$8 sps:$4 sm:$0xff]   ;;  %s10398_s22 = sld [smem:[#allocation58_spill]] }
 0x152   :  { %v7343_v31 = vld [vmem:[#allocation2 + $0x70] ss:$8 sps:$4 sm:$0xff]  }
 0x154   :  { %992 = vmatpush1.bf16.msra.mxu1 %v7294_v34  ;;  %v7327_v34 = vld [vmem:[#allocation2 + $0x14] ss:$8 sps:$4 sm:$0xff]  }
 0x155   :  { %993 = vmatprep.subr.bf16.mxu1 %v7295_v36  ;;  %v8901_v36 = vshrl.u32 %v10374_v32, 7  ;;  %1474 = vmatprep.subr.bf16.mxu0 %v7327_v34  ;;  %v7348_v34 = vld [vmem:[#allocation2 + $0x84] ss:$8 sps:$4 sm:$0xff]  }
 0x156   :  { %1475 = vmatpush1.bf16.msra.mxu0 %v7325_v33 }
 0x157   :  { %6418 = vmatmul.mubr.msk.bf16.gmra.mrb[8].mxu0 %vm430_vm1, %v8684_v27  ;;  %v8904_v37 = vsub.s32 0, %v8901_v36 }
 0x158   :  { %548 = vmatprep.mubr.bf16.mxu0 %v8230_v0  ;;  %994 = vmatpush1.bf16.msra.mxu1 %v7297_v39  ;;  %v8910_v39 = vsub.s32 1, %v8901_v36 }
 0x159   :  { %995 = vmatprep.subr.bf16.mxu1 %v7298_v40  ;;  %v7328_v40 = vld [vmem:[#allocation2 + $0x20] ss:$8 sps:$4 sm:$0xff]  }
 0x15a   :  { %v8916_v44 = vrot.slane %v380_v38, %v8910_v39 }
 0x15c   :  { %996 = vmatpush1.bf16.msra.mxu1 %v7300_v41  ;;  %v7330_v41 = vld [vmem:[#allocation2 + $0x24] ss:$8 sps:$4 sm:$0xff]  }
 0x15d   :  { %997 = vmatprep.subr.bf16.mxu1 %v7301_v43  ;;  %v8913_v43 = vrot.slane %v380_v38, %v8904_v37  ;;  %1476 = vmatprep.subr.bf16.mxu0 %v7330_v41 }
 0x15e   :  { %1477 = vmatpush1.bf16.msra.mxu0 %v7328_v40 }
 0x15f   :  { %6419 = vmatmul.mubr.msk.bf16.gmra.mrb[12].mxu0 %vm430_vm1, %v8710_v35 }
 0x160   :  { %558 = vmatprep.mubr.bf16.mxu0 %v8230_v0  ;;  %998 = vmatpush1.bf16.msra.mxu1 %v7303_v46  ;;  %v7333_v46 = vld [vmem:[#allocation2 + $0x34] ss:$8 sps:$4 sm:$0xff]  }
 0x161   :  { %999 = vmatprep.subr.bf16.mxu1 %v7304_v47  ;;  %1478 = vmatprep.subr.bf16.mxu0 %v7333_v46 }
 0x162   :  { %1479 = vmatpush1.bf16.msra.mxu0 %v7331_v45 }
 0x164   :  { %1000 = vmatpush1.bf16.msra.mxu1 %v7306_v48 }
 0x165   :  { %1001 = vmatprep.subr.bf16.mxu1 %v7307_v50 }
 0x167   :  { %6420 = vmatmul.mubr.msk.bf16.gmra.mrb[16].mxu0 %vm430_vm1, %v8733_v42 }
 0x168   :  { %568 = vmatprep.mubr.bf16.mxu0 %v8230_v0  ;;  %1002 = vmatpush1.bf16.msra.mxu1 %v7309_v53 }
 0x169   :  { %1003 = vmatprep.subr.bf16.mxu1 %v7310_v54 }
 0x16c   :  { %1004 = vmatpush1.bf16.msra.mxu1 %v7312_v55  ;;  %v7334_v55 = vld [vmem:[#allocation2 + $0x40] ss:$8 sps:$4 sm:$0xff]  }
 0x16d   :  { %1005 = vmatprep.subr.bf16.mxu1 %v7313_v57  ;;  %v7336_v57 = vld [vmem:[#allocation2 + $0x44] ss:$8 sps:$4 sm:$0xff]  }
 0x16e   :  { %1480 = vmatprep.subr.bf16.mxu0 %v7336_v57 }
 0x16f   :  { %6421 = vmatmul.mubr.msk.bf16.gmra.mrb[20].mxu0 %vm430_vm1, %v8756_v49 }
 0x170   :  { %578 = vmatprep.mubr.bf16.mxu0 %v8230_v0  ;;  %1006 = vmatpush1.bf16.msra.mxu1 %v7315_v9 }
 0x171   :  { %1007 = vmatprep.subr.bf16.mxu1 %v7316_v11  ;;  %1481 = vmatpush1.bf16.msra.mxu0 %v7334_v55 }
 0x172   :  { %1482 = vmatprep.subr.bf16.mxu0 %v7339_v59  ;;  %v7349_v59 = vld [vmem:[#allocation2 + $0x90] ss:$8 sps:$4 sm:$0xff]  }
 0x174   :  { %1008 = vmatpush1.bf16.msra.mxu1 %v7318_v13 }
 0x175   :  { %1009 = vmatprep.subr.bf16.mxu1 %v7319_v16  ;;  %1483 = vmatpush1.bf16.msra.mxu0 %v7337_v4  ;;  %v7340_v16 = vld [vmem:[#allocation2 + $0x60] ss:$8 sps:$4 sm:$0xff]  }
 0x176   :  { %1484 = vmatprep.subr.bf16.mxu0 %v7342_v7 }
 0x177   :  { %6422 = vmatmul.mubr.msk.bf16.gmra.mrb[24].mxu0 %vm430_vm1, %v8779_v56 }
 0x178   :  { %588 = vmatprep.mubr.bf16.mxu0 %v8230_v0  ;;  %1010 = vmatpush1.bf16.msra.mxu1 %v7321_v17 }
 0x179   :  { %1485 = vmatpush1.bf16.msra.mxu0 %v7340_v16 }
 0x17a   :  { %1486 = vmatprep.subr.bf16.mxu0 %v7345_v21 }
 0x17d   :  { %1487 = vmatpush1.bf16.msra.mxu0 %v7343_v31 }
 0x17e   :  { %1488 = vmatprep.subr.bf16.mxu0 %v7348_v34 }
 0x17f   :  { %6423 = vmatmul.mubr.msk.bf16.gmra.mrb[28].mxu0 %vm430_vm1, %v8793_v60 }
 0x180   :  { %598 = vmatprep.mubr.bf16.mxu0 %v8230_v0 }
 0x187   :  { %6424 = vmatmul.mubr.msk.bf16.gmra.mrb[32].mxu0 %vm430_vm1, %v8804_v63 }
 0x188   :  { %608 = vmatprep.mubr.bf16.mxu0 %v8230_v0 }
 0x18f   :  { %6425 = vmatmul.mubr.msk.bf16.gmra.mrb[36].mxu0 %vm430_vm1, %v8815_v3 }
 0x190   :  { %618 = vmatprep.mubr.bf16.mxu0 %v8230_v0 }
 0x197   :  { %6426 = vmatmul.mubr.msk.bf16.gmra.mrb[40].mxu0 %vm430_vm1, %v8826_v6 }
 0x198   :  { %628 = vmatprep.mubr.bf16.mxu0 %v8230_v0 }
 0x19f   :  { %6427 = vmatmul.mubr.msk.bf16.gmra.mrb[44].mxu0 %vm430_vm1, %v8840_v10 }
 0x1a0   :  { %638 = vmatprep.mubr.bf16.mxu0 %v8230_v0 }
 0x1a7   :  { %6428 = vmatmul.mubr.msk.bf16.gmra.mrb[48].mxu0 %vm430_vm1, %v8863_v18 }
 0x1a8   :  { %648 = vmatprep.mubr.bf16.mxu0 %v8230_v0 }
 0x1af   :  { %6429 = vmatmul.mubr.msk.bf16.gmra.mrb[52].mxu0 %vm430_vm1, %v8874_v22 }
 0x1b0   :  { %658 = vmatprep.mubr.bf16.mxu0 %v8230_v0 }
 0x1b7   :  { %6430 = vmatmul.mubr.msk.bf16.gmra.mrb[56].mxu0 %vm430_vm1, %v8885_v25 }
 0x1b8   :  { %668 = vmatprep.mubr.bf16.mxu0 %v8230_v0 }
 0x1bf   :  { %6431 = vmatmul.mubr.msk.bf16.gmra.mrb[60].mxu0 %vm430_vm1, %v8896_v29 }
 0x21a   :  { %v520_v47 = vpop.f32.mrb[0].mxu0 }
 0x21b   :  { %v521_v48 = vadd.f32 %v520_v47, %v8913_v43  ;;  %v522_v50 = vpop.f32.mrb[1].mxu0 }
 0x21c   :  { %v524_v51 = vpop.f32.mrb[2].mxu0  ;;  %v523_v52 = vadd.f32 %v522_v50, %v8916_v44 }
 0x21d   :  { %v525_v53 = vadd.f32 %v524_v51, %v8913_v43  ;;  %v526_v54 = vpop.f32.mrb[3].mxu0  ;;  %v679_v61 = vmax.f32 %v521_v48, 0.0  ;;  %v7346_v48 = vld [vmem:[#allocation2 + $0x80] ss:$8 sps:$4 sm:$0xff]  }
 0x21e   :  { %v527_v58 = vadd.f32 %v526_v54, %v8916_v44  ;;  %v680_v1 = vmax.f32 %v523_v52, 0.0  ;;  %v7351_v52 = vld [vmem:[#allocation2 + $0x94] ss:$8 sps:$4 sm:$0xff]   ;;  %1489 = vmatpush1.bf16.msra.mxu0 %v7346_v48 }
 0x21f   :  { %v681_v62 = vmax.f32 %v525_v53, 0.0  ;;  %1490 = vmatprep.subr.bf16.mxu0 %v7351_v52 }
 0x220   :  { %v682_v2 = vmax.f32 %v527_v58, 0.0 }
 0x221   :  { %v743_v5 = vpack.c.bf16 %v681_v62, %v679_v61  ;;  %v7354_v62 = vld [vmem:[#allocation2 + $0xa4] ss:$8 sps:$4 sm:$0xff]  }
 0x222   :  { %v530_v8 = vpop.f32.mrb[4].mxu0  ;;  %v744_v9 = vpack.c.bf16 %v682_v2, %v680_v1  ;;  %1491 = vmatpush1.bf16.msra.mxu0 %v7349_v59 }
 0x223   :  { %v531_v11 = vadd.f32 %v530_v8, %v8913_v43  ;;  %v532_v13 = vpop.f32.mrb[5].mxu0  ;;  %1492 = vmatprep.subr.bf16.mxu0 %v7354_v62 }
 0x224   :  { %v533_v14 = vadd.f32 %v532_v13, %v8916_v44  ;;  %v534_v15 = vpop.f32.mrb[6].mxu0  ;;  %1011 = vmatprep.mubr.bf16.mxu1 %v744_v9  ;;  %v7352_v9 = vld [vmem:[#allocation2 + $0xa0] ss:$8 sps:$4 sm:$0xff]  }
 0x225   :  { %v535_v17 = vadd.f32 %v534_v15, %v8913_v43  ;;  %v536_v19 = vpop.f32.mrb[7].mxu0  ;;  %1012 = vmatmul.mubr.bf16.vlgmr.msra.gmra.mrb[0].mxu1 %v743_v5  ;;  %v683_v24 = vmax.f32 %v531_v11, 0.0 }
 0x226   :  { %v537_v23 = vadd.f32 %v536_v19, %v8916_v44  ;;  %v684_v28 = vmax.f32 %v533_v14, 0.0  ;;  %v7357_v14 = vld [vmem:[#allocation2 + $0xb4] ss:$8 sps:$4 sm:$0xff]   ;;  %1493 = vmatpush1.bf16.msra.mxu0 %v7352_v9 }
 0x227   :  { %v685_v26 = vmax.f32 %v535_v17, 0.0  ;;  %1494 = vmatprep.subr.bf16.mxu0 %v7357_v14 }
 0x228   :  { %v686_v30 = vmax.f32 %v537_v23, 0.0  ;;  %v7355_v23 = vld [vmem:[#allocation2 + $0xb0] ss:$8 sps:$4 sm:$0xff]  }
 0x229   :  { %v745_v33 = vpack.c.bf16 %v685_v26, %v683_v24  ;;  %v7360_v26 = vld [vmem:[#allocation2 + $0xc4] ss:$8 sps:$4 sm:$0xff]  }
 0x22a   :  { %v540_v38 = vpop.f32.mrb[8].mxu0  ;;  %v746_v40 = vpack.c.bf16 %v686_v30, %v684_v28  ;;  %1495 = vmatpush1.bf16.msra.mxu0 %v7355_v23 }
 0x22b   :  { %v541_v41 = vadd.f32 %v540_v38, %v8913_v43  ;;  %v542_v45 = vpop.f32.mrb[9].mxu0  ;;  %1496 = vmatprep.subr.bf16.mxu0 %v7360_v26 }
 0x22c   :  { %v543_v46 = vadd.f32 %v542_v45, %v8916_v44  ;;  %v544_v47 = vpop.f32.mrb[10].mxu0  ;;  %1021 = vmatprep.mubr.bf16.mxu1 %v746_v40  ;;  %v7358_v40 = vld [vmem:[#allocation2 + $0xc0] ss:$8 sps:$4 sm:$0xff]  }
 0x22d   :  { %v545_v50 = vadd.f32 %v544_v47, %v8913_v43  ;;  %v546_v51 = vpop.f32.mrb[11].mxu0  ;;  %1022 = vmatmul.mubr.bf16.gmra.mrb[4].mxu1 %v745_v33  ;;  %v687_v54 = vmax.f32 %v541_v41, 0.0 }
 0x22e   :  { %v547_v53 = vadd.f32 %v546_v51, %v8916_v44  ;;  %v688_v57 = vmax.f32 %v543_v46, 0.0  ;;  %v7363_v46 = vld [vmem:[#allocation2 + $0xd4] ss:$8 sps:$4 sm:$0xff]   ;;  %1497 = vmatpush1.bf16.msra.mxu0 %v7358_v40 }
 0x22f   :  { %v689_v55 = vmax.f32 %v545_v50, 0.0  ;;  %1498 = vmatprep.subr.bf16.mxu0 %v7363_v46 }
 0x230   :  { %v690_v58 = vmax.f32 %v547_v53, 0.0  ;;  %v7361_v53 = vld [vmem:[#allocation2 + $0xd0] ss:$8 sps:$4 sm:$0xff]  }
 0x231   :  { %v747_v61 = vpack.c.bf16 %v689_v55, %v687_v54  ;;  %v7366_v55 = vld [vmem:[#allocation2 + $0xe4] ss:$8 sps:$4 sm:$0xff]  }
 0x232   :  { %v550_v1 = vpop.f32.mrb[12].mxu0  ;;  %v748_v2 = vpack.c.bf16 %v690_v58, %v688_v57  ;;  %1499 = vmatpush1.bf16.msra.mxu0 %v7361_v53 }
 0x233   :  { %v551_v4 = vadd.f32 %v550_v1, %v8913_v43  ;;  %v552_v5 = vpop.f32.mrb[13].mxu0  ;;  %1500 = vmatprep.subr.bf16.mxu0 %v7366_v55 }
 0x234   :  { %v553_v7 = vadd.f32 %v552_v5, %v8916_v44  ;;  %v554_v8 = vpop.f32.mrb[14].mxu0  ;;  %1031 = vmatprep.mubr.bf16.mxu1 %v748_v2  ;;  %v7364_v2 = vld [vmem:[#allocation2 + $0xe0] ss:$8 sps:$4 sm:$0xff]  }
 0x235   :  { %v555_v11 = vadd.f32 %v554_v8, %v8913_v43  ;;  %v556_v13 = vpop.f32.mrb[15].mxu0  ;;  %1032 = vmatmul.mubr.bf16.gmra.mrb[8].mxu1 %v747_v61  ;;  %v691_v16 = vmax.f32 %v551_v4, 0.0 }
 0x236   :  { %v557_v15 = vadd.f32 %v556_v13, %v8916_v44  ;;  %v692_v19 = vmax.f32 %v553_v7, 0.0  ;;  %1501 = vmatpush1.bf16.msra.mxu0 %v7364_v2 }
 0x237   :  { %v693_v17 = vmax.f32 %v555_v11, 0.0 }
 0x238   :  { %v694_v21 = vmax.f32 %v557_v15, 0.0 }
 0x239   :  { %v749_v24 = vpack.c.bf16 %v693_v17, %v691_v16 }
 0x23a   :  { %v560_v28 = vpop.f32.mrb[16].mxu0  ;;  %v750_v30 = vpack.c.bf16 %v694_v21, %v692_v19 }
 0x23b   :  { %v561_v31 = vadd.f32 %v560_v28, %v8913_v43  ;;  %v562_v33 = vpop.f32.mrb[17].mxu0 }
 0x23c   :  { %v563_v34 = vadd.f32 %v562_v33, %v8916_v44  ;;  %v564_v38 = vpop.f32.mrb[18].mxu0  ;;  %1041 = vmatprep.mubr.bf16.mxu1 %v750_v30 }
 0x23d   :  { %v565_v41 = vadd.f32 %v564_v38, %v8913_v43  ;;  %v566_v45 = vpop.f32.mrb[19].mxu0  ;;  %1042 = vmatmul.mubr.bf16.gmra.mrb[12].mxu1 %v749_v24  ;;  %v695_v48 = vmax.f32 %v561_v31, 0.0 }
 0x23e   :  { %v567_v47 = vadd.f32 %v566_v45, %v8916_v44  ;;  %v696_v51 = vmax.f32 %v563_v34, 0.0 }
 0x23f   :  { %v697_v50 = vmax.f32 %v565_v41, 0.0 }
 0x240   :  { %v698_v52 = vmax.f32 %v567_v47, 0.0 }
 0x241   :  { %v751_v54 = vpack.c.bf16 %v697_v50, %v695_v48 }
 0x242   :  { %v570_v57 = vpop.f32.mrb[20].mxu0  ;;  %v752_v58 = vpack.c.bf16 %v698_v52, %v696_v51 }
 0x243   :  { %v571_v59 = vadd.f32 %v570_v57, %v8913_v43  ;;  %v572_v61 = vpop.f32.mrb[21].mxu0 }
 0x244   :  { %v573_v62 = vadd.f32 %v572_v61, %v8916_v44  ;;  %v574_v1 = vpop.f32.mrb[22].mxu0  ;;  %1051 = vmatprep.mubr.bf16.mxu1 %v752_v58 }
 0x245   :  { %v575_v4 = vadd.f32 %v574_v1, %v8913_v43  ;;  %v576_v5 = vpop.f32.mrb[23].mxu0  ;;  %1052 = vmatmul.mubr.bf16.gmra.mrb[16].mxu1 %v751_v54  ;;  %v699_v8 = vmax.f32 %v571_v59, 0.0 }
 0x246   :  { %v577_v7 = vadd.f32 %v576_v5, %v8916_v44  ;;  %v700_v11 = vmax.f32 %v573_v62, 0.0 }
 0x247   :  { %v701_v9 = vmax.f32 %v575_v4, 0.0 }
 0x248   :  { %v702_v13 = vmax.f32 %v577_v7, 0.0 }
 0x249   :  { %v753_v14 = vpack.c.bf16 %v701_v9, %v699_v8 }
 0x24a   :  { %v580_v15 = vpop.f32.mrb[24].mxu0  ;;  %v754_v16 = vpack.c.bf16 %v702_v13, %v700_v11 }
 0x24b   :  { %v581_v17 = vadd.f32 %v580_v15, %v8913_v43  ;;  %v582_v19 = vpop.f32.mrb[25].mxu0 }
 0x24c   :  { %v583_v21 = vadd.f32 %v582_v19, %v8916_v44  ;;  %v584_v23 = vpop.f32.mrb[26].mxu0  ;;  %1061 = vmatprep.mubr.bf16.mxu1 %v754_v16 }
 0x24d   :  { %v585_v24 = vadd.f32 %v584_v23, %v8913_v43  ;;  %v586_v26 = vpop.f32.mrb[27].mxu0  ;;  %1062 = vmatmul.mubr.bf16.gmra.mrb[20].mxu1 %v753_v14  ;;  %v703_v30 = vmax.f32 %v581_v17, 0.0 }
 0x24e   :  { %v587_v28 = vadd.f32 %v586_v26, %v8916_v44  ;;  %v704_v33 = vmax.f32 %v583_v21, 0.0 }
 0x24f   :  { %v705_v31 = vmax.f32 %v585_v24, 0.0 }
 0x250   :  { %v706_v34 = vmax.f32 %v587_v28, 0.0 }
 0x251   :  { %v755_v38 = vpack.c.bf16 %v705_v31, %v703_v30 }
 0x252   :  { %v590_v40 = vpop.f32.mrb[28].mxu0  ;;  %v756_v41 = vpack.c.bf16 %v706_v34, %v704_v33 }
 0x253   :  { %v591_v45 = vadd.f32 %v590_v40, %v8913_v43  ;;  %v592_v46 = vpop.f32.mrb[29].mxu0 }
 0x254   :  { %v593_v47 = vadd.f32 %v592_v46, %v8916_v44  ;;  %v594_v48 = vpop.f32.mrb[30].mxu0  ;;  %1071 = vmatprep.mubr.bf16.mxu1 %v756_v41 }
 0x255   :  { %v595_v50 = vadd.f32 %v594_v48, %v8913_v43  ;;  %v596_v51 = vpop.f32.mrb[31].mxu0  ;;  %1072 = vmatmul.mubr.bf16.gmra.mrb[24].mxu1 %v755_v38  ;;  %v707_v53 = vmax.f32 %v591_v45, 0.0 }
 0x256   :  { %v597_v52 = vadd.f32 %v596_v51, %v8916_v44  ;;  %v708_v55 = vmax.f32 %v593_v47, 0.0 }
 0x257   :  { %v709_v54 = vmax.f32 %v595_v50, 0.0 }
 0x258   :  { %v710_v57 = vmax.f32 %v597_v52, 0.0 }
 0x259   :  { %v757_v58 = vpack.c.bf16 %v709_v54, %v707_v53 }
 0x25a   :  { %v600_v59 = vpop.f32.mrb[32].mxu0  ;;  %v758_v61 = vpack.c.bf16 %v710_v57, %v708_v55 }
 0x25b   :  { %v601_v62 = vadd.f32 %v600_v59, %v8913_v43  ;;  %v602_v1 = vpop.f32.mrb[33].mxu0 }
 0x25c   :  { %v603_v2 = vadd.f32 %v602_v1, %v8916_v44  ;;  %v604_v4 = vpop.f32.mrb[34].mxu0  ;;  %1081 = vmatprep.mubr.bf16.mxu1 %v758_v61 }
 0x25d   :  { %v605_v5 = vadd.f32 %v604_v4, %v8913_v43  ;;  %v606_v7 = vpop.f32.mrb[35].mxu0  ;;  %1082 = vmatmul.mubr.bf16.gmra.mrb[28].mxu1 %v757_v58  ;;  %v711_v9 = vmax.f32 %v601_v62, 0.0 }
 0x25e   :  { %v607_v8 = vadd.f32 %v606_v7, %v8916_v44  ;;  %v712_v13 = vmax.f32 %v603_v2, 0.0 }
 0x25f   :  { %v713_v11 = vmax.f32 %v605_v5, 0.0 }
 0x260   :  { %v714_v14 = vmax.f32 %v607_v8, 0.0 }
 0x261   :  { %v759_v15 = vpack.c.bf16 %v713_v11, %v711_v9 }
 0x262   :  { %v610_v16 = vpop.f32.mrb[36].mxu0  ;;  %v760_v17 = vpack.c.bf16 %v714_v14, %v712_v13 }
 0x263   :  { %v611_v19 = vadd.f32 %v610_v16, %v8913_v43  ;;  %v612_v21 = vpop.f32.mrb[37].mxu0 }
 0x264   :  { %v613_v23 = vadd.f32 %v612_v21, %v8916_v44  ;;  %v614_v24 = vpop.f32.mrb[38].mxu0  ;;  %1091 = vmatprep.mubr.bf16.mxu1 %v760_v17 }
 0x265   :  { %v615_v26 = vadd.f32 %v614_v24, %v8913_v43  ;;  %v616_v28 = vpop.f32.mrb[39].mxu0  ;;  %1092 = vmatmul.mubr.bf16.gmra.mrb[32].mxu1 %v759_v15  ;;  %v715_v31 = vmax.f32 %v611_v19, 0.0 }
 0x266   :  { %v617_v30 = vadd.f32 %v616_v28, %v8916_v44  ;;  %v716_v34 = vmax.f32 %v613_v23, 0.0 }
 0x267   :  { %v717_v33 = vmax.f32 %v615_v26, 0.0 }
 0x268   :  { %v718_v38 = vmax.f32 %v617_v30, 0.0 }
 0x269   :  { %v761_v40 = vpack.c.bf16 %v717_v33, %v715_v31  ;;  %v7369_v31 = vld [vmem:[#allocation2 + $0xf4] ss:$8 sps:$4 sm:$0xff]  }
 0x26a   :  { %v620_v41 = vpop.f32.mrb[40].mxu0  ;;  %v762_v45 = vpack.c.bf16 %v718_v38, %v716_v34  ;;  %v7367_v34 = vld [vmem:[#allocation2 + $0xf0] ss:$8 sps:$4 sm:$0xff]   ;;  %1502 = vmatprep.subr.bf16.mxu0 %v7369_v31 }
 0x26b   :  { %v621_v46 = vadd.f32 %v620_v41, %v8913_v43  ;;  %v622_v47 = vpop.f32.mrb[41].mxu0  ;;  %1503 = vmatpush1.bf16.msra.mxu0 %v7367_v34 }
 0x26c   :  { %v623_v48 = vadd.f32 %v622_v47, %v8916_v44  ;;  %v624_v50 = vpop.f32.mrb[42].mxu0  ;;  %1101 = vmatprep.mubr.bf16.mxu1 %v762_v45 }
 0x26d   :  { %v625_v51 = vadd.f32 %v624_v50, %v8913_v43  ;;  %v626_v52 = vpop.f32.mrb[43].mxu0  ;;  %1102 = vmatmul.mubr.bf16.gmra.mrb[36].mxu1 %v761_v40  ;;  %v719_v54 = vmax.f32 %v621_v46, 0.0 }
 0x26e   :  { %v627_v53 = vadd.f32 %v626_v52, %v8916_v44  ;;  %v720_v57 = vmax.f32 %v623_v48, 0.0 }
 0x26f   :  { %v721_v55 = vmax.f32 %v625_v51, 0.0 }
 0x270   :  { %v722_v58 = vmax.f32 %v627_v53, 0.0 }
 0x271   :  { %v763_v59 = vpack.c.bf16 %v721_v55, %v719_v54 }
 0x272   :  { %v630_v61 = vpop.f32.mrb[44].mxu0  ;;  %v764_v62 = vpack.c.bf16 %v722_v58, %v720_v57 }
 0x273   :  { %v631_v1 = vadd.f32 %v630_v61, %v8913_v43  ;;  %v632_v2 = vpop.f32.mrb[45].mxu0 }
 0x274   :  { %v633_v4 = vadd.f32 %v632_v2, %v8916_v44  ;;  %v634_v5 = vpop.f32.mrb[46].mxu0  ;;  %1111 = vmatprep.mubr.bf16.mxu1 %v764_v62 }
 0x275   :  { %v635_v7 = vadd.f32 %v634_v5, %v8913_v43  ;;  %v636_v8 = vpop.f32.mrb[47].mxu0  ;;  %1112 = vmatmul.mubr.bf16.gmra.mrb[40].mxu1 %v763_v59  ;;  %v723_v11 = vmax.f32 %v631_v1, 0.0 }
 0x276   :  { %v637_v9 = vadd.f32 %v636_v8, %v8916_v44  ;;  %v724_v14 = vmax.f32 %v633_v4, 0.0 }
 0x277   :  { %v725_v13 = vmax.f32 %v635_v7, 0.0 }
 0x278   :  { %v726_v15 = vmax.f32 %v637_v9, 0.0 }
 0x279   :  { %v765_v16 = vpack.c.bf16 %v725_v13, %v723_v11 }
 0x27a   :  { %v640_v17 = vpop.f32.mrb[48].mxu0  ;;  %v766_v19 = vpack.c.bf16 %v726_v15, %v724_v14 }
 0x27b   :  { %v641_v21 = vadd.f32 %v640_v17, %v8913_v43  ;;  %v642_v23 = vpop.f32.mrb[49].mxu0 }
 0x27c   :  { %v643_v24 = vadd.f32 %v642_v23, %v8916_v44  ;;  %v644_v26 = vpop.f32.mrb[50].mxu0  ;;  %1121 = vmatprep.mubr.bf16.mxu1 %v766_v19 }
 0x27d   :  { %v645_v28 = vadd.f32 %v644_v26, %v8913_v43  ;;  %v646_v30 = vpop.f32.mrb[51].mxu0  ;;  %1122 = vmatmul.mubr.bf16.gmra.mrb[44].mxu1 %v765_v16  ;;  %v727_v38 = vmax.f32 %v641_v21, 0.0 }
 0x27e   :  { %v647_v33 = vadd.f32 %v646_v30, %v8916_v44  ;;  %v728_v41 = vmax.f32 %v643_v24, 0.0 }
 0x27f   :  { %v729_v40 = vmax.f32 %v645_v28, 0.0 }
 0x280   :  { %v730_v45 = vmax.f32 %v647_v33, 0.0 }
 0x281   :  { %v767_v46 = vpack.c.bf16 %v729_v40, %v727_v38 }
 0x282   :  { %v650_v47 = vpop.f32.mrb[52].mxu0  ;;  %v768_v48 = vpack.c.bf16 %v730_v45, %v728_v41 }
 0x283   :  { %v651_v50 = vadd.f32 %v650_v47, %v8913_v43  ;;  %v652_v51 = vpop.f32.mrb[53].mxu0 }
 0x284   :  { %v653_v52 = vadd.f32 %v652_v51, %v8916_v44  ;;  %v654_v53 = vpop.f32.mrb[54].mxu0  ;;  %1131 = vmatprep.mubr.bf16.mxu1 %v768_v48  ;;  %v7372_v51 = vld [vmem:[#allocation5 + $0x4] ss:$8 sps:$4 sm:$0xff]  }
 0x285   :  { %v655_v54 = vadd.f32 %v654_v53, %v8913_v43  ;;  %v656_v55 = vpop.f32.mrb[55].mxu0  ;;  %1132 = vmatmul.mubr.bf16.gmra.mrb[48].mxu1 %v767_v46  ;;  %v731_v58 = vmax.f32 %v651_v50, 0.0  ;;  %v7370_v50 = vld [vmem:[#allocation5] ss:$8 sps:$4 sm:$0xff]   ;;  %1965 = vmatprep.subr.bf16.mxu1 %v7372_v51  ;;  %v7375_v53 = vld [vmem:[#allocation5 + $0x14] ss:$8 sps:$4 sm:$0xff]  }
 0x286   :  { %v657_v57 = vadd.f32 %v656_v55, %v8916_v44  ;;  %v732_v61 = vmax.f32 %v653_v52, 0.0  ;;  %1966 = vmatpush1.bf16.msra.mxu1 %v7370_v50  ;;  %v7373_v52 = vld [vmem:[#allocation5 + $0x10] ss:$8 sps:$4 sm:$0xff]  }
 0x287   :  { %v733_v59 = vmax.f32 %v655_v54, 0.0  ;;  %1967 = vmatprep.subr.bf16.mxu1 %v7375_v53  ;;  %v7378_v54 = vld [vmem:[#allocation5 + $0x24] ss:$8 sps:$4 sm:$0xff]   ;;  %v7391_v51 = vld [vmem:[#allocation5 + $0x70] ss:$8 sps:$4 sm:$0xff]  }
 0x288   :  { %v734_v62 = vmax.f32 %v657_v57, 0.0  ;;  %v7396_v53 = vld [vmem:[#allocation5 + $0x84] ss:$8 sps:$4 sm:$0xff]  }
 0x289   :  { %v769_v1 = vpack.c.bf16 %v733_v59, %v731_v58  ;;  %v7379_v58 = vld [vmem:[#allocation5 + $0x30] ss:$8 sps:$4 sm:$0xff]   ;;  %v7381_v59 = vld [vmem:[#allocation5 + $0x34] ss:$8 sps:$4 sm:$0xff]  }
 0x28a   :  { %v660_v2 = vpop.f32.mrb[56].mxu0  ;;  %v770_v4 = vpack.c.bf16 %v734_v62, %v732_v61  ;;  %1968 = vmatpush1.bf16.msra.mxu1 %v7373_v52 }
 0x28b   :  { %v661_v5 = vadd.f32 %v660_v2, %v8913_v43  ;;  %v662_v7 = vpop.f32.mrb[57].mxu0  ;;  %1969 = vmatprep.subr.bf16.mxu1 %v7378_v54 }
 0x28c   :  { %v663_v8 = vadd.f32 %v662_v7, %v8916_v44  ;;  %v664_v9 = vpop.f32.mrb[58].mxu0  ;;  %1141 = vmatprep.mubr.bf16.mxu1 %v770_v4 }
 0x28d   :  { %v665_v11 = vadd.f32 %v664_v9, %v8913_v43  ;;  %v666_v13 = vpop.f32.mrb[59].mxu0  ;;  %1142 = vmatmul.mubr.bf16.gmra.mrb[52].mxu1 %v769_v1  ;;  %v735_v15 = vmax.f32 %v661_v5, 0.0  ;;  %v7384_v9 = vld [vmem:[#allocation5 + $0x44] ss:$8 sps:$4 sm:$0xff]  }
 0x28e   :  { %v667_v14 = vadd.f32 %v666_v13, %v8916_v44  ;;  %v736_v17 = vmax.f32 %v663_v8, 0.0  ;;  %v7382_v8 = vld [vmem:[#allocation5 + $0x40] ss:$8 sps:$4 sm:$0xff]   ;;  %v7387_v13 = vld [vmem:[#allocation5 + $0x54] ss:$8 sps:$4 sm:$0xff]  }
 0x28f   :  { %v737_v16 = vmax.f32 %v665_v11, 0.0 }
 0x290   :  { %v738_v19 = vmax.f32 %v667_v14, 0.0 }
 0x291   :  { %v771_v21 = vpack.c.bf16 %v737_v16, %v735_v15 }
 0x292   :  { %v670_v23 = vpop.f32.mrb[60].mxu0  ;;  %v772_v24 = vpack.c.bf16 %v738_v19, %v736_v17  ;;  %v7385_v19 = vld [vmem:[#allocation5 + $0x50] ss:$8 sps:$4 sm:$0xff]  }
 0x293   :  { %v671_v26 = vadd.f32 %v670_v23, %v8913_v43  ;;  %v672_v28 = vpop.f32.mrb[61].mxu0  ;;  %v7390_v23 = vld [vmem:[#allocation5 + $0x64] ss:$8 sps:$4 sm:$0xff]  }
 0x294   :  { %v673_v30 = vadd.f32 %v672_v28, %v8916_v44  ;;  %v674_v31 = vpop.f32.mrb[62].mxu0  ;;  %1151 = vmatprep.mubr.bf16.mxu1 %v772_v24 }
 0x295   :  { %v675_v33 = vadd.f32 %v674_v31, %v8913_v43  ;;  %v676_v34 = vpop.f32.mrb[63].mxu0  ;;  %1152 = vmatmul.mubr.bf16.gmra.mrb[56].mxu1 %v771_v21  ;;  %v739_v40 = vmax.f32 %v671_v26, 0.0  ;;  %v807_v43 = vld [vmem:[%s10396_s27] sm:$0x3]  ;;  %s10420_s27 = sld [smem:[#allocation68_spill]] }
 0x296   :  { %v677_v38 = vadd.f32 %v676_v34, %v8916_v44  ;;  %v740_v45 = vmax.f32 %v673_v30, 0.0  ;;  %v7376_v44 = vld [vmem:[#allocation5 + $0x20] ss:$8 sps:$4 sm:$0xff]   ;;  %v8986_v55 = vrot.slane %v807_v43, %v8904_v37  ;;  %v8989_v57 = vrot.slane %v807_v43, %v8910_v39 }
 0x297   :  { %v741_v41 = vmax.f32 %v675_v33, 0.0  ;;  %1970 = vmatpush1.bf16.msra.mxu1 %v7376_v44  ;;  %v7388_v34 = vld [vmem:[#allocation5 + $0x60] ss:$8 sps:$4 sm:$0xff]  }
 0x298   :  { %v742_v46 = vmax.f32 %v677_v38, 0.0  ;;  %1971 = vmatprep.subr.bf16.mxu1 %v7381_v59 }
 0x299   :  { %v773_v47 = vpack.c.bf16 %v741_v41, %v739_v40  ;;  %v7393_v41 = vld [vmem:[#allocation5 + $0x74] ss:$8 sps:$4 sm:$0xff]  }
 0x29a   :  { %v774_v48 = vpack.c.bf16 %v742_v46, %v740_v45 }
 0x29b   :  { %1972 = vmatpush1.bf16.msra.mxu1 %v7379_v58 }
 0x29c   :  { %1161 = vmatprep.mubr.bf16.mxu1 %v774_v48  ;;  %1973 = vmatprep.subr.bf16.mxu1 %v7384_v9 }
 0x29d   :  { %1162 = vmatmul.mubr.bf16.gmra.mrb[60].mxu1 %v773_v47 }
 0x29f   :  { %1974 = vmatpush1.bf16.msra.mxu1 %v7382_v8 }
 0x2a0   :  { %1975 = vmatprep.subr.bf16.mxu1 %v7387_v13  ;;  %v7397_v13 = vld [vmem:[#allocation5 + $0x90] ss:$8 sps:$4 sm:$0xff]  }
 0x2a3   :  { %1976 = vmatpush1.bf16.msra.mxu1 %v7385_v19 }
 0x2a4   :  { %1977 = vmatprep.subr.bf16.mxu1 %v7390_v23 }
 0x2a7   :  { %1978 = vmatpush1.bf16.msra.mxu1 %v7388_v34 }
 0x2a8   :  { %1979 = vmatprep.subr.bf16.mxu1 %v7393_v41 }
 0x2ab   :  { %1980 = vmatpush1.bf16.msra.mxu1 %v7391_v51 }
 0x2ac   :  { %1981 = vmatprep.subr.bf16.mxu1 %v7396_v53 }
 0x2f8   :  { %v1013_v61 = vpop.f32.mrb[0].mxu1 }
 0x2f9   :  { %v1014_v62 = vadd.f32 %v1013_v61, %v8986_v55  ;;  %v1015_v1 = vpop.f32.mrb[1].mxu1 }
 0x2fa   :  { %v1016_v2 = vadd.f32 %v1015_v1, %v8989_v57  ;;  %v1017_v4 = vpop.f32.mrb[2].mxu1 }
 0x2fb   :  { %v1018_v5 = vadd.f32 %v1017_v4, %v8986_v55  ;;  %v1019_v7 = vpop.f32.mrb[3].mxu1  ;;  %v1172_v14 = vmax.f32 %v1014_v62, 0.0  ;;  %v7394_v62 = vld [vmem:[#allocation5 + $0x80] ss:$8 sps:$4 sm:$0xff]   ;;  %v7399_v4 = vld [vmem:[#allocation5 + $0x94] ss:$8 sps:$4 sm:$0xff]  }
 0x2fc   :  { %v1020_v11 = vadd.f32 %v1019_v7, %v8989_v57  ;;  %v1173_v16 = vmax.f32 %v1016_v2, 0.0  ;;  %1982 = vmatpush1.bf16.msra.mxu1 %v7394_v62 }
 0x2fd   :  { %v1174_v15 = vmax.f32 %v1018_v5, 0.0  ;;  %1983 = vmatprep.subr.bf16.mxu1 %v7399_v4 }
 0x2fe   :  { %v1175_v17 = vmax.f32 %v1020_v11, 0.0 }
 0x2ff   :  { %v1236_v21 = vpack.c.bf16 %v1174_v15, %v1172_v14  ;;  %v7402_v15 = vld [vmem:[#allocation5 + $0xa4] ss:$8 sps:$4 sm:$0xff]  }
 0x300   :  { %v1023_v24 = vpop.f32.mrb[4].mxu1  ;;  %v1237_v26 = vpack.c.bf16 %v1175_v17, %v1173_v16  ;;  %1984 = vmatpush1.bf16.msra.mxu1 %v7397_v13 }
 0x301   :  { %v1024_v28 = vadd.f32 %v1023_v24, %v8986_v55  ;;  %v1025_v30 = vpop.f32.mrb[5].mxu1  ;;  %1985 = vmatprep.subr.bf16.mxu1 %v7402_v15 }
 0x302   :  { %v1026_v31 = vadd.f32 %v1025_v30, %v8989_v57  ;;  %v1027_v33 = vpop.f32.mrb[6].mxu1  ;;  %1504 = vmatprep.mubr.bf16.mxu0 %v1237_v26  ;;  %v7400_v26 = vld [vmem:[#allocation5 + $0xa0] ss:$8 sps:$4 sm:$0xff]  }
 0x303   :  { %v1028_v38 = vadd.f32 %v1027_v33, %v8986_v55  ;;  %v1029_v40 = vpop.f32.mrb[7].mxu1  ;;  %1505 = vmatmul.mubr.bf16.vlgmr.msra.gmra.mrb[64].mxu0 %v1236_v21  ;;  %v1176_v46 = vmax.f32 %v1024_v28, 0.0 }
 0x304   :  { %v1030_v45 = vadd.f32 %v1029_v40, %v8989_v57  ;;  %v1177_v48 = vmax.f32 %v1026_v31, 0.0  ;;  %v7405_v31 = vld [vmem:[#allocation5 + $0xb4] ss:$8 sps:$4 sm:$0xff]   ;;  %1986 = vmatpush1.bf16.msra.mxu1 %v7400_v26 }
 0x305   :  { %v1178_v47 = vmax.f32 %v1028_v38, 0.0  ;;  %1987 = vmatprep.subr.bf16.mxu1 %v7405_v31 }
 0x306   :  { %v1179_v50 = vmax.f32 %v1030_v45, 0.0  ;;  %v7403_v45 = vld [vmem:[#allocation5 + $0xb0] ss:$8 sps:$4 sm:$0xff]  }
 0x307   :  { %v1238_v52 = vpack.c.bf16 %v1178_v47, %v1176_v46  ;;  %v7408_v47 = vld [vmem:[#allocation5 + $0xc4] ss:$8 sps:$4 sm:$0xff]  }
 0x308   :  { %v1033_v43 = vpop.f32.mrb[8].mxu1  ;;  %v1239_v44 = vpack.c.bf16 %v1179_v50, %v1177_v48  ;;  %1988 = vmatpush1.bf16.msra.mxu1 %v7403_v45 }
 0x309   :  { %v1034_v54 = vadd.f32 %v1033_v43, %v8986_v55  ;;  %v1035_v58 = vpop.f32.mrb[9].mxu1  ;;  %1989 = vmatprep.subr.bf16.mxu1 %v7408_v47 }
 0x30a   :  { %v1036_v59 = vadd.f32 %v1035_v58, %v8989_v57  ;;  %v1037_v61 = vpop.f32.mrb[10].mxu1  ;;  %1514 = vmatprep.mubr.bf16.mxu0 %v1239_v44  ;;  %v7406_v44 = vld [vmem:[#allocation5 + $0xc0] ss:$8 sps:$4 sm:$0xff]  }
 0x30b   :  { %v1038_v1 = vadd.f32 %v1037_v61, %v8986_v55  ;;  %v1039_v2 = vpop.f32.mrb[11].mxu1  ;;  %1515 = vmatmul.mubr.bf16.gmra.mrb[68].mxu0 %v1238_v52  ;;  %v1180_v7 = vmax.f32 %v1034_v54, 0.0 }
 0x30c   :  { %v1040_v5 = vadd.f32 %v1039_v2, %v8989_v57  ;;  %v1181_v9 = vmax.f32 %v1036_v59, 0.0  ;;  %v7411_v59 = vld [vmem:[#allocation5 + $0xd4] ss:$8 sps:$4 sm:$0xff]   ;;  %1990 = vmatpush1.bf16.msra.mxu1 %v7406_v44 }
 0x30d   :  { %v1182_v8 = vmax.f32 %v1038_v1, 0.0  ;;  %1991 = vmatprep.subr.bf16.mxu1 %v7411_v59 }
 0x30e   :  { %v1183_v11 = vmax.f32 %v1040_v5, 0.0  ;;  %v7409_v5 = vld [vmem:[#allocation5 + $0xd0] ss:$8 sps:$4 sm:$0xff]  }
 0x30f   :  { %v1240_v14 = vpack.c.bf16 %v1182_v8, %v1180_v7  ;;  %v7414_v8 = vld [vmem:[#allocation5 + $0xe4] ss:$8 sps:$4 sm:$0xff]  }
 0x310   :  { %v1043_v16 = vpop.f32.mrb[12].mxu1  ;;  %v1241_v17 = vpack.c.bf16 %v1183_v11, %v1181_v9  ;;  %1992 = vmatpush1.bf16.msra.mxu1 %v7409_v5 }
 0x311   :  { %v1044_v19 = vadd.f32 %v1043_v16, %v8986_v55  ;;  %v1045_v21 = vpop.f32.mrb[13].mxu1  ;;  %1993 = vmatprep.subr.bf16.mxu1 %v7414_v8 }
 0x312   :  { %v1046_v23 = vadd.f32 %v1045_v21, %v8989_v57  ;;  %v1047_v24 = vpop.f32.mrb[14].mxu1  ;;  %1524 = vmatprep.mubr.bf16.mxu0 %v1241_v17  ;;  %v7412_v17 = vld [vmem:[#allocation5 + $0xe0] ss:$8 sps:$4 sm:$0xff]  }
 0x313   :  { %v1048_v28 = vadd.f32 %v1047_v24, %v8986_v55  ;;  %v1049_v30 = vpop.f32.mrb[15].mxu1  ;;  %1525 = vmatmul.mubr.bf16.gmra.mrb[72].mxu0 %v1240_v14  ;;  %v1184_v34 = vmax.f32 %v1044_v19, 0.0 }
 0x314   :  { %v1050_v33 = vadd.f32 %v1049_v30, %v8989_v57  ;;  %v1185_v40 = vmax.f32 %v1046_v23, 0.0  ;;  %1994 = vmatpush1.bf16.msra.mxu1 %v7412_v17 }
 0x315   :  { %v1186_v38 = vmax.f32 %v1048_v28, 0.0 }
 0x316   :  { %v1187_v41 = vmax.f32 %v1050_v33, 0.0 }
 0x317   :  { %v1242_v46 = vpack.c.bf16 %v1186_v38, %v1184_v34 }
 0x318   :  { %v1053_v48 = vpop.f32.mrb[16].mxu1  ;;  %v1243_v50 = vpack.c.bf16 %v1187_v41, %v1185_v40 }
 0x319   :  { %v1054_v51 = vadd.f32 %v1053_v48, %v8986_v55  ;;  %v1055_v52 = vpop.f32.mrb[17].mxu1 }
 0x31a   :  { %v1056_v53 = vadd.f32 %v1055_v52, %v8989_v57  ;;  %v1057_v43 = vpop.f32.mrb[18].mxu1  ;;  %1534 = vmatprep.mubr.bf16.mxu0 %v1243_v50 }
 0x31b   :  { %v1058_v54 = vadd.f32 %v1057_v43, %v8986_v55  ;;  %v1059_v58 = vpop.f32.mrb[19].mxu1  ;;  %1535 = vmatmul.mubr.bf16.gmra.mrb[76].mxu0 %v1242_v46  ;;  %v1188_v62 = vmax.f32 %v1054_v51, 0.0 }
 0x31c   :  { %v1060_v61 = vadd.f32 %v1059_v58, %v8989_v57  ;;  %v1189_v2 = vmax.f32 %v1056_v53, 0.0 }
 0x31d   :  { %v1190_v1 = vmax.f32 %v1058_v54, 0.0 }
 0x31e   :  { %v1191_v4 = vmax.f32 %v1060_v61, 0.0 }
 0x31f   :  { %v1244_v7 = vpack.c.bf16 %v1190_v1, %v1188_v62 }
 0x320   :  { %v1063_v9 = vpop.f32.mrb[20].mxu1  ;;  %v1245_v11 = vpack.c.bf16 %v1191_v4, %v1189_v2 }
 0x321   :  { %v1064_v13 = vadd.f32 %v1063_v9, %v8986_v55  ;;  %v1065_v14 = vpop.f32.mrb[21].mxu1 }
 0x322   :  { %v1066_v15 = vadd.f32 %v1065_v14, %v8989_v57  ;;  %v1067_v16 = vpop.f32.mrb[22].mxu1  ;;  %1544 = vmatprep.mubr.bf16.mxu0 %v1245_v11 }
 0x323   :  { %v1068_v19 = vadd.f32 %v1067_v16, %v8986_v55  ;;  %v1069_v21 = vpop.f32.mrb[23].mxu1  ;;  %1545 = vmatmul.mubr.bf16.gmra.mrb[80].mxu0 %v1244_v7  ;;  %v1192_v24 = vmax.f32 %v1064_v13, 0.0 }
 0x324   :  { %v1070_v23 = vadd.f32 %v1069_v21, %v8989_v57  ;;  %v1193_v28 = vmax.f32 %v1066_v15, 0.0 }
 0x325   :  { %v1194_v26 = vmax.f32 %v1068_v19, 0.0 }
 0x326   :  { %v1195_v30 = vmax.f32 %v1070_v23, 0.0 }
 0x327   :  { %v1246_v31 = vpack.c.bf16 %v1194_v26, %v1192_v24 }
 0x328   :  { %v1073_v33 = vpop.f32.mrb[24].mxu1  ;;  %v1247_v34 = vpack.c.bf16 %v1195_v30, %v1193_v28 }
 0x329   :  { %v1074_v38 = vadd.f32 %v1073_v33, %v8986_v55  ;;  %v1075_v40 = vpop.f32.mrb[25].mxu1 }
 0x32a   :  { %v1076_v41 = vadd.f32 %v1075_v40, %v8989_v57  ;;  %v1077_v45 = vpop.f32.mrb[26].mxu1  ;;  %1554 = vmatprep.mubr.bf16.mxu0 %v1247_v34 }
 0x32b   :  { %v1078_v46 = vadd.f32 %v1077_v45, %v8986_v55  ;;  %v1079_v47 = vpop.f32.mrb[27].mxu1  ;;  %1555 = vmatmul.mubr.bf16.gmra.mrb[84].mxu0 %v1246_v31  ;;  %v1196_v50 = vmax.f32 %v1074_v38, 0.0 }
 0x32c   :  { %v1080_v48 = vadd.f32 %v1079_v47, %v8989_v57  ;;  %v1197_v52 = vmax.f32 %v1076_v41, 0.0 }
 0x32d   :  { %v1198_v51 = vmax.f32 %v1078_v46, 0.0 }
 0x32e   :  { %v1199_v53 = vmax.f32 %v1080_v48, 0.0 }
 0x32f   :  { %v1248_v43 = vpack.c.bf16 %v1198_v51, %v1196_v50 }
 0x330   :  { %v1083_v44 = vpop.f32.mrb[28].mxu1  ;;  %v1249_v54 = vpack.c.bf16 %v1199_v53, %v1197_v52 }
 0x331   :  { %v1084_v58 = vadd.f32 %v1083_v44, %v8986_v55  ;;  %v1085_v59 = vpop.f32.mrb[29].mxu1 }
 0x332   :  { %v1086_v61 = vadd.f32 %v1085_v59, %v8989_v57  ;;  %v1087_v62 = vpop.f32.mrb[30].mxu1  ;;  %1564 = vmatprep.mubr.bf16.mxu0 %v1249_v54 }
 0x333   :  { %v1088_v1 = vadd.f32 %v1087_v62, %v8986_v55  ;;  %v1089_v2 = vpop.f32.mrb[31].mxu1  ;;  %1565 = vmatmul.mubr.bf16.gmra.mrb[88].mxu0 %v1248_v43  ;;  %v1200_v5 = vmax.f32 %v1084_v58, 0.0 }
 0x334   :  { %v1090_v4 = vadd.f32 %v1089_v2, %v8989_v57  ;;  %v1201_v8 = vmax.f32 %v1086_v61, 0.0 }
 0x335   :  { %v1202_v7 = vmax.f32 %v1088_v1, 0.0 }
 0x336   :  { %v1203_v9 = vmax.f32 %v1090_v4, 0.0 }
 0x337   :  { %v1250_v11 = vpack.c.bf16 %v1202_v7, %v1200_v5 }
 0x338   :  { %v1093_v13 = vpop.f32.mrb[32].mxu1  ;;  %v1251_v14 = vpack.c.bf16 %v1203_v9, %v1201_v8 }
 0x339   :  { %v1094_v15 = vadd.f32 %v1093_v13, %v8986_v55  ;;  %v1095_v16 = vpop.f32.mrb[33].mxu1 }
 0x33a   :  { %v1096_v17 = vadd.f32 %v1095_v16, %v8989_v57  ;;  %v1097_v19 = vpop.f32.mrb[34].mxu1  ;;  %1574 = vmatprep.mubr.bf16.mxu0 %v1251_v14 }
 0x33b   :  { %v1098_v21 = vadd.f32 %v1097_v19, %v8986_v55  ;;  %v1099_v23 = vpop.f32.mrb[35].mxu1  ;;  %1575 = vmatmul.mubr.bf16.gmra.mrb[92].mxu0 %v1250_v11  ;;  %v1204_v26 = vmax.f32 %v1094_v15, 0.0 }
 0x33c   :  { %v1100_v24 = vadd.f32 %v1099_v23, %v8989_v57  ;;  %v1205_v30 = vmax.f32 %v1096_v17, 0.0 }
 0x33d   :  { %v1206_v28 = vmax.f32 %v1098_v21, 0.0 }
 0x33e   :  { %v1207_v31 = vmax.f32 %v1100_v24, 0.0 }
 0x33f   :  { %v1252_v33 = vpack.c.bf16 %v1206_v28, %v1204_v26 }
 0x340   :  { %v1103_v34 = vpop.f32.mrb[36].mxu1  ;;  %v1253_v38 = vpack.c.bf16 %v1207_v31, %v1205_v30 }
 0x341   :  { %v1104_v40 = vadd.f32 %v1103_v34, %v8986_v55  ;;  %v1105_v41 = vpop.f32.mrb[37].mxu1 }
 0x342   :  { %v1106_v45 = vadd.f32 %v1105_v41, %v8989_v57  ;;  %v1107_v46 = vpop.f32.mrb[38].mxu1  ;;  %1584 = vmatprep.mubr.bf16.mxu0 %v1253_v38 }
 0x343   :  { %v1108_v47 = vadd.f32 %v1107_v46, %v8986_v55  ;;  %v1109_v48 = vpop.f32.mrb[39].mxu1  ;;  %1585 = vmatmul.mubr.bf16.gmra.mrb[96].mxu0 %v1252_v33  ;;  %v1208_v51 = vmax.f32 %v1104_v40, 0.0 }
 0x344   :  { %v1110_v50 = vadd.f32 %v1109_v48, %v8989_v57  ;;  %v1209_v53 = vmax.f32 %v1106_v45, 0.0 }
 0x345   :  { %v1210_v52 = vmax.f32 %v1108_v47, 0.0 }
 0x346   :  { %v1211_v43 = vmax.f32 %v1110_v50, 0.0 }
 0x347   :  { %v1254_v44 = vpack.c.bf16 %v1210_v52, %v1208_v51  ;;  %v7417_v51 = vld [vmem:[#allocation5 + $0xf4] ss:$8 sps:$4 sm:$0xff]  }
 0x348   :  { %v1113_v54 = vpop.f32.mrb[40].mxu1  ;;  %v1255_v58 = vpack.c.bf16 %v1211_v43, %v1209_v53  ;;  %v7415_v53 = vld [vmem:[#allocation5 + $0xf0] ss:$8 sps:$4 sm:$0xff]   ;;  %1995 = vmatprep.subr.bf16.mxu1 %v7417_v51 }
 0x349   :  { %v1114_v59 = vadd.f32 %v1113_v54, %v8986_v55  ;;  %v1115_v61 = vpop.f32.mrb[41].mxu1  ;;  %1996 = vmatpush1.bf16.msra.mxu1 %v7415_v53 }
 0x34a   :  { %v1116_v62 = vadd.f32 %v1115_v61, %v8989_v57  ;;  %v1117_v1 = vpop.f32.mrb[42].mxu1  ;;  %1594 = vmatprep.mubr.bf16.mxu0 %v1255_v58 }
 0x34b   :  { %v1118_v2 = vadd.f32 %v1117_v1, %v8986_v55  ;;  %v1119_v4 = vpop.f32.mrb[43].mxu1  ;;  %1595 = vmatmul.mubr.bf16.gmra.mrb[100].mxu0 %v1254_v44  ;;  %v1212_v7 = vmax.f32 %v1114_v59, 0.0 }
 0x34c   :  { %v1120_v5 = vadd.f32 %v1119_v4, %v8989_v57  ;;  %v1213_v9 = vmax.f32 %v1116_v62, 0.0 }
 0x34d   :  { %v1214_v8 = vmax.f32 %v1118_v2, 0.0 }
 0x34e   :  { %v1215_v11 = vmax.f32 %v1120_v5, 0.0 }
 0x34f   :  { %v1256_v13 = vpack.c.bf16 %v1214_v8, %v1212_v7 }
 0x350   :  { %v1123_v14 = vpop.f32.mrb[44].mxu1  ;;  %v1257_v15 = vpack.c.bf16 %v1215_v11, %v1213_v9 }
 0x351   :  { %v1124_v16 = vadd.f32 %v1123_v14, %v8986_v55  ;;  %v1125_v17 = vpop.f32.mrb[45].mxu1 }
 0x352   :  { %v1126_v19 = vadd.f32 %v1125_v17, %v8989_v57  ;;  %v1127_v21 = vpop.f32.mrb[46].mxu1  ;;  %1604 = vmatprep.mubr.bf16.mxu0 %v1257_v15 }
 0x353   :  { %v1128_v23 = vadd.f32 %v1127_v21, %v8986_v55  ;;  %v1129_v24 = vpop.f32.mrb[47].mxu1  ;;  %1605 = vmatmul.mubr.bf16.gmra.mrb[104].mxu0 %v1256_v13  ;;  %v1216_v28 = vmax.f32 %v1124_v16, 0.0 }
 0x354   :  { %v1130_v26 = vadd.f32 %v1129_v24, %v8989_v57  ;;  %v1217_v31 = vmax.f32 %v1126_v19, 0.0 }
 0x355   :  { %v1218_v30 = vmax.f32 %v1128_v23, 0.0 }
 0x356   :  { %v1219_v33 = vmax.f32 %v1130_v26, 0.0 }
 0x357   :  { %v1258_v34 = vpack.c.bf16 %v1218_v30, %v1216_v28 }
 0x358   :  { %v1133_v38 = vpop.f32.mrb[48].mxu1  ;;  %v1259_v40 = vpack.c.bf16 %v1219_v33, %v1217_v31 }
 0x359   :  { %v1134_v41 = vadd.f32 %v1133_v38, %v8986_v55  ;;  %v1135_v45 = vpop.f32.mrb[49].mxu1 }
 0x35a   :  { %v1136_v46 = vadd.f32 %v1135_v45, %v8989_v57  ;;  %v1137_v47 = vpop.f32.mrb[50].mxu1  ;;  %1614 = vmatprep.mubr.bf16.mxu0 %v1259_v40 }
 0x35b   :  { %v1138_v48 = vadd.f32 %v1137_v47, %v8986_v55  ;;  %v1139_v50 = vpop.f32.mrb[51].mxu1  ;;  %1615 = vmatmul.mubr.bf16.gmra.mrb[108].mxu0 %v1258_v34  ;;  %v1220_v43 = vmax.f32 %v1134_v41, 0.0 }
 0x35c   :  { %v1140_v52 = vadd.f32 %v1139_v50, %v8989_v57  ;;  %v1221_v54 = vmax.f32 %v1136_v46, 0.0 }
 0x35d   :  { %v1222_v44 = vmax.f32 %v1138_v48, 0.0 }
 0x35e   :  { %v1223_v58 = vmax.f32 %v1140_v52, 0.0 }
 0x35f   :  { %v1260_v59 = vpack.c.bf16 %v1222_v44, %v1220_v43 }
 0x360   :  { %v1143_v61 = vpop.f32.mrb[52].mxu1  ;;  %v1261_v62 = vpack.c.bf16 %v1223_v58, %v1221_v54 }
 0x361   :  { %v1144_v1 = vadd.f32 %v1143_v61, %v8986_v55  ;;  %v1145_v2 = vpop.f32.mrb[53].mxu1 }
 0x362   :  { %v1146_v4 = vadd.f32 %v1145_v2, %v8989_v57  ;;  %v1147_v5 = vpop.f32.mrb[54].mxu1  ;;  %1624 = vmatprep.mubr.bf16.mxu0 %v1261_v62  ;;  %v7420_v2 = vld [vmem:[#allocation8 + $0x4] ss:$8 sps:$4 sm:$0xff]  }
 0x363   :  { %v1148_v7 = vadd.f32 %v1147_v5, %v8986_v55  ;;  %v1149_v8 = vpop.f32.mrb[55].mxu1  ;;  %1625 = vmatmul.mubr.bf16.gmra.mrb[112].mxu0 %v1260_v59  ;;  %v1224_v11 = vmax.f32 %v1144_v1, 0.0  ;;  %v7418_v1 = vld [vmem:[#allocation8] ss:$8 sps:$4 sm:$0xff]   ;;  %2458 = vmatprep.subr.bf16.mxu0 %v7420_v2  ;;  %v7423_v5 = vld [vmem:[#allocation8 + $0x14] ss:$8 sps:$4 sm:$0xff]  }
 0x364   :  { %v1150_v9 = vadd.f32 %v1149_v8, %v8989_v57  ;;  %v1225_v14 = vmax.f32 %v1146_v4, 0.0  ;;  %2459 = vmatpush1.bf16.msra.mxu0 %v7418_v1  ;;  %v7421_v4 = vld [vmem:[#allocation8 + $0x10] ss:$8 sps:$4 sm:$0xff]  }
 0x365   :  { %v1226_v13 = vmax.f32 %v1148_v7, 0.0  ;;  %2460 = vmatprep.subr.bf16.mxu0 %v7423_v5  ;;  %v7426_v7 = vld [vmem:[#allocation8 + $0x24] ss:$8 sps:$4 sm:$0xff]   ;;  %v7439_v2 = vld [vmem:[#allocation8 + $0x70] ss:$8 sps:$4 sm:$0xff]  }
 0x366   :  { %v1227_v15 = vmax.f32 %v1150_v9, 0.0  ;;  %v7444_v5 = vld [vmem:[#allocation8 + $0x84] ss:$8 sps:$4 sm:$0xff]  }
 0x367   :  { %v1262_v16 = vpack.c.bf16 %v1226_v13, %v1224_v11  ;;  %v7427_v11 = vld [vmem:[#allocation8 + $0x30] ss:$8 sps:$4 sm:$0xff]   ;;  %v7429_v13 = vld [vmem:[#allocation8 + $0x34] ss:$8 sps:$4 sm:$0xff]  }
 0x368   :  { %v1153_v17 = vpop.f32.mrb[56].mxu1  ;;  %v1263_v19 = vpack.c.bf16 %v1227_v15, %v1225_v14  ;;  %2461 = vmatpush1.bf16.msra.mxu0 %v7421_v4 }
 0x369   :  { %v1154_v21 = vadd.f32 %v1153_v17, %v8986_v55  ;;  %v1155_v23 = vpop.f32.mrb[57].mxu1  ;;  %2462 = vmatprep.subr.bf16.mxu0 %v7426_v7 }
 0x36a   :  { %v1156_v24 = vadd.f32 %v1155_v23, %v8989_v57  ;;  %v1157_v26 = vpop.f32.mrb[58].mxu1  ;;  %1634 = vmatprep.mubr.bf16.mxu0 %v1263_v19 }
 0x36b   :  { %v1158_v28 = vadd.f32 %v1157_v26, %v8986_v55  ;;  %v1159_v30 = vpop.f32.mrb[59].mxu1  ;;  %1635 = vmatmul.mubr.bf16.gmra.mrb[116].mxu0 %v1262_v16  ;;  %v1228_v33 = vmax.f32 %v1154_v21, 0.0  ;;  %v7432_v26 = vld [vmem:[#allocation8 + $0x44] ss:$8 sps:$4 sm:$0xff]  }
 0x36c   :  { %v1160_v31 = vadd.f32 %v1159_v30, %v8989_v57  ;;  %v1229_v38 = vmax.f32 %v1156_v24, 0.0  ;;  %v7430_v24 = vld [vmem:[#allocation8 + $0x40] ss:$8 sps:$4 sm:$0xff]   ;;  %v7435_v30 = vld [vmem:[#allocation8 + $0x54] ss:$8 sps:$4 sm:$0xff]  }
 0x36d   :  { %v1230_v34 = vmax.f32 %v1158_v28, 0.0 }
 0x36e   :  { %v1231_v40 = vmax.f32 %v1160_v31, 0.0 }
 0x36f   :  { %v1264_v41 = vpack.c.bf16 %v1230_v34, %v1228_v33 }
 0x370   :  { %v1163_v45 = vpop.f32.mrb[60].mxu1  ;;  %v1265_v46 = vpack.c.bf16 %v1231_v40, %v1229_v38  ;;  %v7433_v40 = vld [vmem:[#allocation8 + $0x50] ss:$8 sps:$4 sm:$0xff]  }
 0x371   :  { %v1164_v47 = vadd.f32 %v1163_v45, %v8986_v55  ;;  %v1165_v48 = vpop.f32.mrb[61].mxu1  ;;  %v7438_v45 = vld [vmem:[#allocation8 + $0x64] ss:$8 sps:$4 sm:$0xff]  }
 0x372   :  { %v1166_v50 = vadd.f32 %v1165_v48, %v8989_v57  ;;  %v1167_v51 = vpop.f32.mrb[62].mxu1  ;;  %1644 = vmatprep.mubr.bf16.mxu0 %v1265_v46 }
 0x373   :  { %v1168_v52 = vadd.f32 %v1167_v51, %v8986_v55  ;;  %v1169_v53 = vpop.f32.mrb[63].mxu1  ;;  %1645 = vmatmul.mubr.bf16.gmra.mrb[120].mxu0 %v1264_v41  ;;  %v1232_v44 = vmax.f32 %v1164_v47, 0.0  ;;  %v1300_v55 = vld [vmem:[%s10397_s30] sm:$0x3] }
 0x374   :  { %v1170_v43 = vadd.f32 %v1169_v53, %v8989_v57  ;;  %v1233_v58 = vmax.f32 %v1166_v50, 0.0  ;;  %v7424_v57 = vld [vmem:[#allocation8 + $0x20] ss:$8 sps:$4 sm:$0xff]   ;;  %v9059_v8 = vrot.slane %v1300_v55, %v8904_v37  ;;  %v9062_v9 = vrot.slane %v1300_v55, %v8910_v39 }
 0x375   :  { %v1234_v54 = vmax.f32 %v1168_v52, 0.0  ;;  %2463 = vmatpush1.bf16.msra.mxu0 %v7424_v57  ;;  %v7436_v53 = vld [vmem:[#allocation8 + $0x60] ss:$8 sps:$4 sm:$0xff]  }
 0x376   :  { %v1235_v59 = vmax.f32 %v1170_v43, 0.0  ;;  %2464 = vmatprep.subr.bf16.mxu0 %v7429_v13 }
 0x377   :  { %v1266_v61 = vpack.c.bf16 %v1234_v54, %v1232_v44  ;;  %v7441_v54 = vld [vmem:[#allocation8 + $0x74] ss:$8 sps:$4 sm:$0xff]  }
 0x378   :  { %v1267_v62 = vpack.c.bf16 %v1235_v59, %v1233_v58 }
 0x379   :  { %2465 = vmatpush1.bf16.msra.mxu0 %v7427_v11 }
 0x37a   :  { %1654 = vmatprep.mubr.bf16.mxu0 %v1267_v62  ;;  %2466 = vmatprep.subr.bf16.mxu0 %v7432_v26 }
 0x37b   :  { %1655 = vmatmul.mubr.bf16.gmra.mrb[124].mxu0 %v1266_v61 }
 0x37d   :  { %2467 = vmatpush1.bf16.msra.mxu0 %v7430_v24 }
 0x37e   :  { %2468 = vmatprep.subr.bf16.mxu0 %v7435_v30  ;;  %v7445_v30 = vld [vmem:[#allocation8 + $0x90] ss:$8 sps:$4 sm:$0xff]  }
 0x381   :  { %2469 = vmatpush1.bf16.msra.mxu0 %v7433_v40 }
 0x382   :  { %2470 = vmatprep.subr.bf16.mxu0 %v7438_v45 }
 0x385   :  { %2471 = vmatpush1.bf16.msra.mxu0 %v7436_v53 }
 0x386   :  { %2472 = vmatprep.subr.bf16.mxu0 %v7441_v54 }
 0x389   :  { %2473 = vmatpush1.bf16.msra.mxu0 %v7439_v2 }
 0x38a   :  { %2474 = vmatprep.subr.bf16.mxu0 %v7444_v5 }
 0x3d6   :  { %v1506_v14 = vpop.f32.mrb[64].mxu0 }
 0x3d7   :  { %v1507_v15 = vadd.f32 %v1506_v14, %v9059_v8  ;;  %v1508_v16 = vpop.f32.mrb[65].mxu0 }
 0x3d8   :  { %v1509_v17 = vadd.f32 %v1508_v16, %v9062_v9  ;;  %v1510_v19 = vpop.f32.mrb[66].mxu0 }
 0x3d9   :  { %v1511_v21 = vadd.f32 %v1510_v19, %v9059_v8  ;;  %v1512_v23 = vpop.f32.mrb[67].mxu0  ;;  %v1665_v31 = vmax.f32 %v1507_v15, 0.0  ;;  %v7442_v15 = vld [vmem:[#allocation8 + $0x80] ss:$8 sps:$4 sm:$0xff]   ;;  %v7447_v19 = vld [vmem:[#allocation8 + $0x94] ss:$8 sps:$4 sm:$0xff]  }
 0x3da   :  { %v1513_v28 = vadd.f32 %v1512_v23, %v9062_v9  ;;  %v1666_v34 = vmax.f32 %v1509_v17, 0.0  ;;  %2475 = vmatpush1.bf16.msra.mxu0 %v7442_v15 }
 0x3db   :  { %v1667_v33 = vmax.f32 %v1511_v21, 0.0  ;;  %2476 = vmatprep.subr.bf16.mxu0 %v7447_v19 }
 0x3dc   :  { %v1668_v38 = vmax.f32 %v1513_v28, 0.0 }
 0x3dd   :  { %v1729_v41 = vpack.c.bf16 %v1667_v33, %v1665_v31  ;;  %v7450_v33 = vld [vmem:[#allocation8 + $0xa4] ss:$8 sps:$4 sm:$0xff]  }
 0x3de   :  { %v1516_v46 = vpop.f32.mrb[68].mxu0  ;;  %v1730_v47 = vpack.c.bf16 %v1668_v38, %v1666_v34  ;;  %2477 = vmatpush1.bf16.msra.mxu0 %v7445_v30 }
 0x3df   :  { %v1517_v48 = vadd.f32 %v1516_v46, %v9059_v8  ;;  %v1518_v50 = vpop.f32.mrb[69].mxu0  ;;  %2478 = vmatprep.subr.bf16.mxu0 %v7450_v33 }
 0x3e0   :  { %v1519_v51 = vadd.f32 %v1518_v50, %v9062_v9  ;;  %v1520_v52 = vpop.f32.mrb[70].mxu0  ;;  %1997 = vmatprep.mubr.bf16.mxu1 %v1730_v47  ;;  %v7448_v47 = vld [vmem:[#allocation8 + $0xa0] ss:$8 sps:$4 sm:$0xff]  }
 0x3e1   :  { %v1521_v43 = vadd.f32 %v1520_v52, %v9059_v8  ;;  %v1522_v44 = vpop.f32.mrb[71].mxu0  ;;  %1998 = vmatmul.mubr.bf16.vlgmr.msra.gmra.mrb[64].mxu1 %v1729_v41  ;;  %v1669_v59 = vmax.f32 %v1517_v48, 0.0 }
 0x3e2   :  { %v1523_v58 = vadd.f32 %v1522_v44, %v9062_v9  ;;  %v1670_v62 = vmax.f32 %v1519_v51, 0.0  ;;  %v7453_v51 = vld [vmem:[#allocation8 + $0xb4] ss:$8 sps:$4 sm:$0xff]   ;;  %2479 = vmatpush1.bf16.msra.mxu0 %v7448_v47 }
 0x3e3   :  { %v1671_v61 = vmax.f32 %v1521_v43, 0.0  ;;  %2480 = vmatprep.subr.bf16.mxu0 %v7453_v51 }
 0x3e4   :  { %v1672_v1 = vmax.f32 %v1523_v58, 0.0  ;;  %v7451_v58 = vld [vmem:[#allocation8 + $0xb0] ss:$8 sps:$4 sm:$0xff]  }
 0x3e5   :  { %v1731_v4 = vpack.c.bf16 %v1671_v61, %v1669_v59  ;;  %v7456_v61 = vld [vmem:[#allocation8 + $0xc4] ss:$8 sps:$4 sm:$0xff]  }
 0x3e6   :  { %v1526_v55 = vpop.f32.mrb[72].mxu0  ;;  %v1732_v57 = vpack.c.bf16 %v1672_v1, %v1670_v62  ;;  %2481 = vmatpush1.bf16.msra.mxu0 %v7451_v58 }
 0x3e7   :  { %v1527_v7 = vadd.f32 %v1526_v55, %v9059_v8  ;;  %v1528_v11 = vpop.f32.mrb[73].mxu0  ;;  %2482 = vmatprep.subr.bf16.mxu0 %v7456_v61 }
 0x3e8   :  { %v1529_v13 = vadd.f32 %v1528_v11, %v9062_v9  ;;  %v1530_v14 = vpop.f32.mrb[74].mxu0  ;;  %2007 = vmatprep.mubr.bf16.mxu1 %v1732_v57  ;;  %v7454_v57 = vld [vmem:[#allocation8 + $0xc0] ss:$8 sps:$4 sm:$0xff]  }
 0x3e9   :  { %v1531_v16 = vadd.f32 %v1530_v14, %v9059_v8  ;;  %v1532_v17 = vpop.f32.mrb[75].mxu0  ;;  %2008 = vmatmul.mubr.bf16.gmra.mrb[68].mxu1 %v1731_v4  ;;  %v1673_v23 = vmax.f32 %v1527_v7, 0.0 }
 0x3ea   :  { %v1533_v21 = vadd.f32 %v1532_v17, %v9062_v9  ;;  %v1674_v26 = vmax.f32 %v1529_v13, 0.0  ;;  %v7459_v13 = vld [vmem:[#allocation8 + $0xd4] ss:$8 sps:$4 sm:$0xff]   ;;  %2483 = vmatpush1.bf16.msra.mxu0 %v7454_v57 }
 0x3eb   :  { %v1675_v24 = vmax.f32 %v1531_v16, 0.0  ;;  %2484 = vmatprep.subr.bf16.mxu0 %v7459_v13 }
 0x3ec   :  { %v1676_v28 = vmax.f32 %v1533_v21, 0.0  ;;  %v7457_v21 = vld [vmem:[#allocation8 + $0xd0] ss:$8 sps:$4 sm:$0xff]  }
 0x3ed   :  { %v1733_v31 = vpack.c.bf16 %v1675_v24, %v1673_v23  ;;  %v7462_v24 = vld [vmem:[#allocation8 + $0xe4] ss:$8 sps:$4 sm:$0xff]  }
 0x3ee   :  { %v1536_v34 = vpop.f32.mrb[76].mxu0  ;;  %v1734_v38 = vpack.c.bf16 %v1676_v28, %v1674_v26  ;;  %2485 = vmatpush1.bf16.msra.mxu0 %v7457_v21 }
 0x3ef   :  { %v1537_v40 = vadd.f32 %v1536_v34, %v9059_v8  ;;  %v1538_v41 = vpop.f32.mrb[77].mxu0  ;;  %2486 = vmatprep.subr.bf16.mxu0 %v7462_v24 }
 0x3f0   :  { %v1539_v45 = vadd.f32 %v1538_v41, %v9062_v9  ;;  %v1540_v46 = vpop.f32.mrb[78].mxu0  ;;  %2017 = vmatprep.mubr.bf16.mxu1 %v1734_v38  ;;  %v7460_v38 = vld [vmem:[#allocation8 + $0xe0] ss:$8 sps:$4 sm:$0xff]  }
 0x3f1   :  { %v1541_v48 = vadd.f32 %v1540_v46, %v9059_v8  ;;  %v1542_v50 = vpop.f32.mrb[79].mxu0  ;;  %2018 = vmatmul.mubr.bf16.gmra.mrb[72].mxu1 %v1733_v31  ;;  %v1677_v53 = vmax.f32 %v1537_v40, 0.0 }
 0x3f2   :  { %v1543_v52 = vadd.f32 %v1542_v50, %v9062_v9  ;;  %v1678_v44 = vmax.f32 %v1539_v45, 0.0  ;;  %2487 = vmatpush1.bf16.msra.mxu0 %v7460_v38 }
 0x3f3   :  { %v1679_v43 = vmax.f32 %v1541_v48, 0.0 }
 0x3f4   :  { %v1680_v54 = vmax.f32 %v1543_v52, 0.0 }
 0x3f5   :  { %v1735_v59 = vpack.c.bf16 %v1679_v43, %v1677_v53 }
 0x3f6   :  { %v1546_v62 = vpop.f32.mrb[80].mxu0  ;;  %v1736_v1 = vpack.c.bf16 %v1680_v54, %v1678_v44 }
 0x3f7   :  { %v1547_v2 = vadd.f32 %v1546_v62, %v9059_v8  ;;  %v1548_v4 = vpop.f32.mrb[81].mxu0 }
 0x3f8   :  { %v1549_v5 = vadd.f32 %v1548_v4, %v9062_v9  ;;  %v1550_v55 = vpop.f32.mrb[82].mxu0  ;;  %2027 = vmatprep.mubr.bf16.mxu1 %v1736_v1 }
 0x3f9   :  { %v1551_v7 = vadd.f32 %v1550_v55, %v9059_v8  ;;  %v1552_v11 = vpop.f32.mrb[83].mxu0  ;;  %2028 = vmatmul.mubr.bf16.gmra.mrb[76].mxu1 %v1735_v59  ;;  %v1681_v15 = vmax.f32 %v1547_v2, 0.0 }
 0x3fa   :  { %v1553_v14 = vadd.f32 %v1552_v11, %v9062_v9  ;;  %v1682_v17 = vmax.f32 %v1549_v5, 0.0 }
 0x3fb   :  { %v1683_v16 = vmax.f32 %v1551_v7, 0.0 }
 0x3fc   :  { %v1684_v19 = vmax.f32 %v1553_v14, 0.0 }
 0x3fd   :  { %v1737_v23 = vpack.c.bf16 %v1683_v16, %v1681_v15 }
 0x3fe   :  { %v1556_v26 = vpop.f32.mrb[84].mxu0  ;;  %v1738_v28 = vpack.c.bf16 %v1684_v19, %v1682_v17 }
 0x3ff   :  { %v1557_v30 = vadd.f32 %v1556_v26, %v9059_v8  ;;  %v1558_v31 = vpop.f32.mrb[85].mxu0 }
 0x400   :  { %v1559_v33 = vadd.f32 %v1558_v31, %v9062_v9  ;;  %v1560_v34 = vpop.f32.mrb[86].mxu0  ;;  %2037 = vmatprep.mubr.bf16.mxu1 %v1738_v28 }
 0x401   :  { %v1561_v40 = vadd.f32 %v1560_v34, %v9059_v8  ;;  %v1562_v41 = vpop.f32.mrb[87].mxu0  ;;  %2038 = vmatmul.mubr.bf16.gmra.mrb[80].mxu1 %v1737_v23  ;;  %v1685_v46 = vmax.f32 %v1557_v30, 0.0 }
 0x402   :  { %v1563_v45 = vadd.f32 %v1562_v41, %v9062_v9  ;;  %v1686_v48 = vmax.f32 %v1559_v33, 0.0 }
 0x403   :  { %v1687_v47 = vmax.f32 %v1561_v40, 0.0 }
 0x404   :  { %v1688_v50 = vmax.f32 %v1563_v45, 0.0 }
 0x405   :  { %v1739_v51 = vpack.c.bf16 %v1687_v47, %v1685_v46 }
 0x406   :  { %v1566_v52 = vpop.f32.mrb[88].mxu0  ;;  %v1740_v53 = vpack.c.bf16 %v1688_v50, %v1686_v48 }
 0x407   :  { %v1567_v43 = vadd.f32 %v1566_v52, %v9059_v8  ;;  %v1568_v44 = vpop.f32.mrb[89].mxu0 }
 0x408   :  { %v1569_v54 = vadd.f32 %v1568_v44, %v9062_v9  ;;  %v1570_v58 = vpop.f32.mrb[90].mxu0  ;;  %2047 = vmatprep.mubr.bf16.mxu1 %v1740_v53 }
 0x409   :  { %v1571_v59 = vadd.f32 %v1570_v58, %v9059_v8  ;;  %v1572_v61 = vpop.f32.mrb[91].mxu0  ;;  %2048 = vmatmul.mubr.bf16.gmra.mrb[84].mxu1 %v1739_v51  ;;  %v1689_v1 = vmax.f32 %v1567_v43, 0.0 }
 0x40a   :  { %v1573_v62 = vadd.f32 %v1572_v61, %v9062_v9  ;;  %v1690_v4 = vmax.f32 %v1569_v54, 0.0 }
 0x40b   :  { %v1691_v2 = vmax.f32 %v1571_v59, 0.0 }
 0x40c   :  { %v1692_v5 = vmax.f32 %v1573_v62, 0.0 }
 0x40d   :  { %v1741_v55 = vpack.c.bf16 %v1691_v2, %v1689_v1 }
 0x40e   :  { %v1576_v57 = vpop.f32.mrb[92].mxu0  ;;  %v1742_v7 = vpack.c.bf16 %v1692_v5, %v1690_v4 }
 0x40f   :  { %v1577_v11 = vadd.f32 %v1576_v57, %v9059_v8  ;;  %v1578_v13 = vpop.f32.mrb[93].mxu0 }
 0x410   :  { %v1579_v14 = vadd.f32 %v1578_v13, %v9062_v9  ;;  %v1580_v15 = vpop.f32.mrb[94].mxu0  ;;  %2057 = vmatprep.mubr.bf16.mxu1 %v1742_v7 }
 0x411   :  { %v1581_v16 = vadd.f32 %v1580_v15, %v9059_v8  ;;  %v1582_v17 = vpop.f32.mrb[95].mxu0  ;;  %2058 = vmatmul.mubr.bf16.gmra.mrb[88].mxu1 %v1741_v55  ;;  %v1693_v21 = vmax.f32 %v1577_v11, 0.0 }
 0x412   :  { %v1583_v19 = vadd.f32 %v1582_v17, %v9062_v9  ;;  %v1694_v24 = vmax.f32 %v1579_v14, 0.0 }
 0x413   :  { %v1695_v23 = vmax.f32 %v1581_v16, 0.0 }
 0x414   :  { %v1696_v26 = vmax.f32 %v1583_v19, 0.0 }
 0x415   :  { %v1743_v28 = vpack.c.bf16 %v1695_v23, %v1693_v21 }
 0x416   :  { %v1586_v30 = vpop.f32.mrb[96].mxu0  ;;  %v1744_v31 = vpack.c.bf16 %v1696_v26, %v1694_v24 }
 0x417   :  { %v1587_v33 = vadd.f32 %v1586_v30, %v9059_v8  ;;  %v1588_v34 = vpop.f32.mrb[97].mxu0 }
 0x418   :  { %v1589_v38 = vadd.f32 %v1588_v34, %v9062_v9  ;;  %v1590_v40 = vpop.f32.mrb[98].mxu0  ;;  %2067 = vmatprep.mubr.bf16.mxu1 %v1744_v31 }
 0x419   :  { %v1591_v41 = vadd.f32 %v1590_v40, %v9059_v8  ;;  %v1592_v45 = vpop.f32.mrb[99].mxu0  ;;  %2068 = vmatmul.mubr.bf16.gmra.mrb[92].mxu1 %v1743_v28  ;;  %v1697_v47 = vmax.f32 %v1587_v33, 0.0 }
 0x41a   :  { %v1593_v46 = vadd.f32 %v1592_v45, %v9062_v9  ;;  %v1698_v50 = vmax.f32 %v1589_v38, 0.0 }
 0x41b   :  { %v1699_v48 = vmax.f32 %v1591_v41, 0.0 }
 0x41c   :  { %v1700_v51 = vmax.f32 %v1593_v46, 0.0 }
 0x41d   :  { %v1745_v52 = vpack.c.bf16 %v1699_v48, %v1697_v47 }
 0x41e   :  { %v1596_v53 = vpop.f32.mrb[100].mxu0  ;;  %v1746_v43 = vpack.c.bf16 %v1700_v51, %v1698_v50 }
 0x41f   :  { %v1597_v44 = vadd.f32 %v1596_v53, %v9059_v8  ;;  %v1598_v54 = vpop.f32.mrb[101].mxu0 }
 0x420   :  { %v1599_v58 = vadd.f32 %v1598_v54, %v9062_v9  ;;  %v1600_v59 = vpop.f32.mrb[102].mxu0  ;;  %2077 = vmatprep.mubr.bf16.mxu1 %v1746_v43 }
 0x421   :  { %v1601_v61 = vadd.f32 %v1600_v59, %v9059_v8  ;;  %v1602_v62 = vpop.f32.mrb[103].mxu0  ;;  %2078 = vmatmul.mubr.bf16.gmra.mrb[96].mxu1 %v1745_v52  ;;  %v1701_v2 = vmax.f32 %v1597_v44, 0.0 }
 0x422   :  { %v1603_v1 = vadd.f32 %v1602_v62, %v9062_v9  ;;  %v1702_v5 = vmax.f32 %v1599_v58, 0.0 }
 0x423   :  { %v1703_v4 = vmax.f32 %v1601_v61, 0.0 }
 0x424   :  { %v1704_v55 = vmax.f32 %v1603_v1, 0.0 }
 0x425   :  { %v1747_v57 = vpack.c.bf16 %v1703_v4, %v1701_v2  ;;  %v7465_v2 = vld [vmem:[#allocation8 + $0xf4] ss:$8 sps:$4 sm:$0xff]  }
 0x426   :  { %v1606_v7 = vpop.f32.mrb[104].mxu0  ;;  %v1748_v11 = vpack.c.bf16 %v1704_v55, %v1702_v5  ;;  %v7463_v5 = vld [vmem:[#allocation8 + $0xf0] ss:$8 sps:$4 sm:$0xff]   ;;  %2488 = vmatprep.subr.bf16.mxu0 %v7465_v2 }
 0x427   :  { %v1607_v13 = vadd.f32 %v1606_v7, %v9059_v8  ;;  %v1608_v14 = vpop.f32.mrb[105].mxu0  ;;  %2489 = vmatpush1.bf16.msra.mxu0 %v7463_v5 }
 0x428   :  { %v1609_v15 = vadd.f32 %v1608_v14, %v9062_v9  ;;  %v1610_v16 = vpop.f32.mrb[106].mxu0  ;;  %2087 = vmatprep.mubr.bf16.mxu1 %v1748_v11 }
 0x429   :  { %v1611_v17 = vadd.f32 %v1610_v16, %v9059_v8  ;;  %v1612_v19 = vpop.f32.mrb[107].mxu0  ;;  %2088 = vmatmul.mubr.bf16.gmra.mrb[100].mxu1 %v1747_v57  ;;  %v1705_v23 = vmax.f32 %v1607_v13, 0.0 }
 0x42a   :  { %v1613_v21 = vadd.f32 %v1612_v19, %v9062_v9  ;;  %v1706_v26 = vmax.f32 %v1609_v15, 0.0 }
 0x42b   :  { %v1707_v24 = vmax.f32 %v1611_v17, 0.0 }
 0x42c   :  { %v1708_v28 = vmax.f32 %v1613_v21, 0.0 }
 0x42d   :  { %v1749_v30 = vpack.c.bf16 %v1707_v24, %v1705_v23 }
 0x42e   :  { %v1616_v31 = vpop.f32.mrb[108].mxu0  ;;  %v1750_v33 = vpack.c.bf16 %v1708_v28, %v1706_v26 }
 0x42f   :  { %v1617_v34 = vadd.f32 %v1616_v31, %v9059_v8  ;;  %v1618_v38 = vpop.f32.mrb[109].mxu0 }
 0x430   :  { %v1619_v40 = vadd.f32 %v1618_v38, %v9062_v9  ;;  %v1620_v41 = vpop.f32.mrb[110].mxu0  ;;  %2097 = vmatprep.mubr.bf16.mxu1 %v1750_v33 }
 0x431   :  { %v1621_v45 = vadd.f32 %v1620_v41, %v9059_v8  ;;  %v1622_v46 = vpop.f32.mrb[111].mxu0  ;;  %2098 = vmatmul.mubr.bf16.gmra.mrb[104].mxu1 %v1749_v30  ;;  %v1709_v48 = vmax.f32 %v1617_v34, 0.0 }
 0x432   :  { %v1623_v47 = vadd.f32 %v1622_v46, %v9062_v9  ;;  %v1710_v51 = vmax.f32 %v1619_v40, 0.0 }
 0x433   :  { %v1711_v50 = vmax.f32 %v1621_v45, 0.0 }
 0x434   :  { %v1712_v52 = vmax.f32 %v1623_v47, 0.0 }
 0x435   :  { %v1751_v53 = vpack.c.bf16 %v1711_v50, %v1709_v48 }
 0x436   :  { %v1626_v43 = vpop.f32.mrb[112].mxu0  ;;  %v1752_v44 = vpack.c.bf16 %v1712_v52, %v1710_v51 }
 0x437   :  { %v1627_v54 = vadd.f32 %v1626_v43, %v9059_v8  ;;  %v1628_v58 = vpop.f32.mrb[113].mxu0 }
 0x438   :  { %v1629_v59 = vadd.f32 %v1628_v58, %v9062_v9  ;;  %v1630_v61 = vpop.f32.mrb[114].mxu0  ;;  %2107 = vmatprep.mubr.bf16.mxu1 %v1752_v44 }
 0x439   :  { %v1631_v62 = vadd.f32 %v1630_v61, %v9059_v8  ;;  %v1632_v1 = vpop.f32.mrb[115].mxu0  ;;  %2108 = vmatmul.mubr.bf16.gmra.mrb[108].mxu1 %v1751_v53  ;;  %v1713_v55 = vmax.f32 %v1627_v54, 0.0 }
 0x43a   :  { %v1633_v4 = vadd.f32 %v1632_v1, %v9062_v9  ;;  %v1714_v7 = vmax.f32 %v1629_v59, 0.0 }
 0x43b   :  { %v1715_v57 = vmax.f32 %v1631_v62, 0.0 }
 0x43c   :  { %v1716_v11 = vmax.f32 %v1633_v4, 0.0 }
 0x43d   :  { %v1753_v13 = vpack.c.bf16 %v1715_v57, %v1713_v55 }
 0x43e   :  { %v1636_v14 = vpop.f32.mrb[116].mxu0  ;;  %v1754_v15 = vpack.c.bf16 %v1716_v11, %v1714_v7 }
 0x43f   :  { %v1637_v16 = vadd.f32 %v1636_v14, %v9059_v8  ;;  %v1638_v17 = vpop.f32.mrb[117].mxu0 }
 0x440   :  { %v1639_v19 = vadd.f32 %v1638_v17, %v9062_v9  ;;  %v1640_v21 = vpop.f32.mrb[118].mxu0  ;;  %2117 = vmatprep.mubr.bf16.mxu1 %v1754_v15  ;;  %v7468_v17 = vld [vmem:[#allocation13 + $0x4] ss:$8 sps:$4 sm:$0xff]  }
 0x441   :  { %v1641_v23 = vadd.f32 %v1640_v21, %v9059_v8  ;;  %v1642_v24 = vpop.f32.mrb[119].mxu0  ;;  %2118 = vmatmul.mubr.bf16.gmra.mrb[112].mxu1 %v1753_v13  ;;  %v1717_v28 = vmax.f32 %v1637_v16, 0.0  ;;  %v7466_v16 = vld [vmem:[#allocation13] ss:$8 sps:$4 sm:$0xff]   ;;  %2947 = vmatprep.subr.bf16.mxu1 %v7468_v17  ;;  %v7471_v21 = vld [vmem:[#allocation13 + $0x14] ss:$8 sps:$4 sm:$0xff]  }
 0x442   :  { %v1643_v26 = vadd.f32 %v1642_v24, %v9062_v9  ;;  %v1718_v31 = vmax.f32 %v1639_v19, 0.0  ;;  %2948 = vmatpush1.bf16.msra.mxu1 %v7466_v16  ;;  %v7469_v19 = vld [vmem:[#allocation13 + $0x10] ss:$8 sps:$4 sm:$0xff]   ;;  %v7474_v24 = vld [vmem:[#allocation13 + $0x24] ss:$8 sps:$4 sm:$0xff]  }
 0x443   :  { %v1719_v30 = vmax.f32 %v1641_v23, 0.0  ;;  %2949 = vmatprep.subr.bf16.mxu1 %v7471_v21  ;;  %v7472_v23 = vld [vmem:[#allocation13 + $0x20] ss:$8 sps:$4 sm:$0xff]  }
 0x444   :  { %v1720_v33 = vmax.f32 %v1643_v26, 0.0 }
 0x445   :  { %v1755_v34 = vpack.c.bf16 %v1719_v30, %v1717_v28  ;;  %v7475_v30 = vld [vmem:[#allocation13 + $0x30] ss:$8 sps:$4 sm:$0xff]  }
 0x446   :  { %v1646_v38 = vpop.f32.mrb[120].mxu0  ;;  %v1756_v40 = vpack.c.bf16 %v1720_v33, %v1718_v31  ;;  %2950 = vmatpush1.bf16.msra.mxu1 %v7469_v19  ;;  %v7477_v31 = vld [vmem:[#allocation13 + $0x34] ss:$8 sps:$4 sm:$0xff]   ;;  %v7487_v19 = vld [vmem:[#allocation13 + $0x70] ss:$8 sps:$4 sm:$0xff]  }
 0x447   :  { %v1647_v41 = vadd.f32 %v1646_v38, %v9059_v8  ;;  %v1648_v45 = vpop.f32.mrb[121].mxu0  ;;  %2951 = vmatprep.subr.bf16.mxu1 %v7474_v24 }
 0x448   :  { %v1649_v46 = vadd.f32 %v1648_v45, %v9062_v9  ;;  %v1650_v47 = vpop.f32.mrb[122].mxu0  ;;  %2127 = vmatprep.mubr.bf16.mxu1 %v1756_v40 }
 0x449   :  { %v1651_v48 = vadd.f32 %v1650_v47, %v9059_v8  ;;  %v1652_v50 = vpop.f32.mrb[123].mxu0  ;;  %2128 = vmatmul.mubr.bf16.gmra.mrb[116].mxu1 %v1755_v34  ;;  %v1721_v52 = vmax.f32 %v1647_v41, 0.0  ;;  %v7480_v47 = vld [vmem:[#allocation13 + $0x44] ss:$8 sps:$4 sm:$0xff]  }
 0x44a   :  { %v1653_v51 = vadd.f32 %v1652_v50, %v9062_v9  ;;  %v1722_v43 = vmax.f32 %v1649_v46, 0.0  ;;  %2952 = vmatpush1.bf16.msra.mxu1 %v7472_v23  ;;  %v7478_v46 = vld [vmem:[#allocation13 + $0x40] ss:$8 sps:$4 sm:$0xff]   ;;  %v7483_v50 = vld [vmem:[#allocation13 + $0x54] ss:$8 sps:$4 sm:$0xff]  }
 0x44b   :  { %v1723_v53 = vmax.f32 %v1651_v48, 0.0  ;;  %2953 = vmatprep.subr.bf16.mxu1 %v7477_v31  ;;  %v7492_v23 = vld [vmem:[#allocation13 + $0x84] ss:$8 sps:$4 sm:$0xff]  }
 0x44c   :  { %v1724_v44 = vmax.f32 %v1653_v51, 0.0 }
 0x44d   :  { %v1757_v54 = vpack.c.bf16 %v1723_v53, %v1721_v52 }
 0x44e   :  { %v1656_v58 = vpop.f32.mrb[124].mxu0  ;;  %v1758_v59 = vpack.c.bf16 %v1724_v44, %v1722_v43  ;;  %2954 = vmatpush1.bf16.msra.mxu1 %v7475_v30 }
 0x44f   :  { %v1657_v61 = vadd.f32 %v1656_v58, %v9059_v8  ;;  %v1658_v62 = vpop.f32.mrb[125].mxu0  ;;  %2955 = vmatprep.subr.bf16.mxu1 %v7480_v47 }
 0x450   :  { %v1659_v1 = vadd.f32 %v1658_v62, %v9062_v9  ;;  %v1660_v2 = vpop.f32.mrb[126].mxu0  ;;  %2137 = vmatprep.mubr.bf16.mxu1 %v1758_v59 }
 0x451   :  { %v1661_v4 = vadd.f32 %v1660_v2, %v9059_v8  ;;  %v1662_v5 = vpop.f32.mrb[127].mxu0  ;;  %2138 = vmatmul.mubr.bf16.gmra.mrb[120].mxu1 %v1757_v54  ;;  %v1725_v57 = vmax.f32 %v1657_v61, 0.0  ;;  %v1793_v8 = vld [vmem:[#allocation7] sm:$0x3]  ;;  %v7481_v54 = vld [vmem:[#allocation13 + $0x50] ss:$8 sps:$4 sm:$0xff]  }
 0x452   :  { %v1663_v55 = vadd.f32 %v1662_v5, %v9062_v9  ;;  %v1726_v11 = vmax.f32 %v1659_v1, 0.0  ;;  %v9129_v9 = vrot.slane %v1793_v8, %v8904_v37  ;;  %v9132_v26 = vrot.slane %v1793_v8, %v8910_v39  ;;  %2956 = vmatpush1.bf16.msra.mxu1 %v7478_v46  ;;  %v7486_v61 = vld [vmem:[#allocation13 + $0x64] ss:$8 sps:$4 sm:$0xff]  }
 0x453   :  { %v1727_v7 = vmax.f32 %v1661_v4, 0.0  ;;  %2957 = vmatprep.subr.bf16.mxu1 %v7483_v50 }
 0x454   :  { %v1728_v13 = vmax.f32 %v1663_v55, 0.0 }
 0x455   :  { %v1759_v14 = vpack.c.bf16 %v1727_v7, %v1725_v57  ;;  %v7484_v57 = vld [vmem:[#allocation13 + $0x60] ss:$8 sps:$4 sm:$0xff]  }
 0x456   :  { %v1760_v15 = vpack.c.bf16 %v1728_v13, %v1726_v11  ;;  %2958 = vmatpush1.bf16.msra.mxu1 %v7481_v54  ;;  %v7489_v11 = vld [vmem:[#allocation13 + $0x74] ss:$8 sps:$4 sm:$0xff]  }
 0x457   :  { %2959 = vmatprep.subr.bf16.mxu1 %v7486_v61 }
 0x458   :  { %2147 = vmatprep.mubr.bf16.mxu1 %v1760_v15 }
 0x459   :  { %2148 = vmatmul.mubr.bf16.gmra.mrb[124].mxu1 %v1759_v14 }
 0x45a   :  { %2960 = vmatpush1.bf16.msra.mxu1 %v7484_v57 }
 0x45b   :  { %2961 = vmatprep.subr.bf16.mxu1 %v7489_v11 }
 0x45e   :  { %2962 = vmatpush1.bf16.msra.mxu1 %v7487_v19 }
 0x45f   :  { %2963 = vmatprep.subr.bf16.mxu1 %v7492_v23 }
 0x4b4   :  { %v1999_v28 = vpop.f32.mrb[64].mxu1 }
 0x4b5   :  { %v2000_v33 = vadd.f32 %v1999_v28, %v9129_v9  ;;  %v2001_v34 = vpop.f32.mrb[65].mxu1 }
 0x4b6   :  { %v2002_v38 = vadd.f32 %v2001_v34, %v9132_v26  ;;  %v2003_v40 = vpop.f32.mrb[66].mxu1 }
 0x4b7   :  { %v2004_v41 = vadd.f32 %v2003_v40, %v9129_v9  ;;  %v2005_v45 = vpop.f32.mrb[67].mxu1  ;;  %v2158_v51 = vmax.f32 %v2000_v33, 0.0 }
 0x4b8   :  { %v2006_v48 = vadd.f32 %v2005_v45, %v9132_v26  ;;  %v2159_v53 = vmax.f32 %v2002_v38, 0.0  ;;  %v7490_v38 = vld [vmem:[#allocation13 + $0x80] ss:$8 sps:$4 sm:$0xff]  }
 0x4b9   :  { %v2160_v52 = vmax.f32 %v2004_v41, 0.0  ;;  %v7495_v41 = vld [vmem:[#allocation13 + $0x94] ss:$8 sps:$4 sm:$0xff]   ;;  %2964 = vmatpush1.bf16.msra.mxu1 %v7490_v38 }
 0x4ba   :  { %v2161_v43 = vmax.f32 %v2006_v48, 0.0  ;;  %2965 = vmatprep.subr.bf16.mxu1 %v7495_v41 }
 0x4bb   :  { %v2222_v44 = vpack.c.bf16 %v2160_v52, %v2158_v51  ;;  %v7493_v51 = vld [vmem:[#allocation13 + $0x90] ss:$8 sps:$4 sm:$0xff]  }
 0x4bc   :  { %v2009_v58 = vpop.f32.mrb[68].mxu1  ;;  %v2223_v59 = vpack.c.bf16 %v2161_v43, %v2159_v53  ;;  %v7498_v43 = vld [vmem:[#allocation13 + $0xa4] ss:$8 sps:$4 sm:$0xff]  }
 0x4bd   :  { %v2010_v62 = vadd.f32 %v2009_v58, %v9129_v9  ;;  %v2011_v1 = vpop.f32.mrb[69].mxu1  ;;  %2966 = vmatpush1.bf16.msra.mxu1 %v7493_v51 }
 0x4be   :  { %v2012_v2 = vadd.f32 %v2011_v1, %v9132_v26  ;;  %v2013_v4 = vpop.f32.mrb[70].mxu1  ;;  %2490 = vmatprep.mubr.bf16.mxu0 %v2223_v59  ;;  %v7496_v1 = vld [vmem:[#allocation13 + $0xa0] ss:$8 sps:$4 sm:$0xff]   ;;  %2967 = vmatprep.subr.bf16.mxu1 %v7498_v43 }
 0x4bf   :  { %v2014_v5 = vadd.f32 %v2013_v4, %v9129_v9  ;;  %v2015_v55 = vpop.f32.mrb[71].mxu1  ;;  %2491 = vmatmul.mubr.bf16.vlgmr.msra.gmra.mrb[128].mxu0 %v2222_v44  ;;  %v2162_v13 = vmax.f32 %v2010_v62, 0.0  ;;  %v7501_v4 = vld [vmem:[#allocation13 + $0xb4] ss:$8 sps:$4 sm:$0xff]  }
 0x4c0   :  { %v2016_v7 = vadd.f32 %v2015_v55, %v9132_v26  ;;  %v2163_v15 = vmax.f32 %v2012_v2, 0.0 }
 0x4c1   :  { %v2164_v14 = vmax.f32 %v2014_v5, 0.0  ;;  %2968 = vmatpush1.bf16.msra.mxu1 %v7496_v1 }
 0x4c2   :  { %v2165_v16 = vmax.f32 %v2016_v7, 0.0  ;;  %2969 = vmatprep.subr.bf16.mxu1 %v7501_v4 }
 0x4c3   :  { %v2224_v17 = vpack.c.bf16 %v2164_v14, %v2162_v13  ;;  %v7499_v13 = vld [vmem:[#allocation13 + $0xb0] ss:$8 sps:$4 sm:$0xff]  }
 0x4c4   :  { %v2019_v21 = vpop.f32.mrb[72].mxu1  ;;  %v2225_v8 = vpack.c.bf16 %v2165_v16, %v2163_v15  ;;  %v7504_v16 = vld [vmem:[#allocation13 + $0xc4] ss:$8 sps:$4 sm:$0xff]  }
 0x4c5   :  { %v2020_v24 = vadd.f32 %v2019_v21, %v9129_v9  ;;  %v2021_v28 = vpop.f32.mrb[73].mxu1  ;;  %2970 = vmatpush1.bf16.msra.mxu1 %v7499_v13 }
 0x4c6   :  { %v2022_v30 = vadd.f32 %v2021_v28, %v9132_v26  ;;  %v2023_v31 = vpop.f32.mrb[74].mxu1  ;;  %2500 = vmatprep.mubr.bf16.mxu0 %v2225_v8  ;;  %v7502_v28 = vld [vmem:[#allocation13 + $0xc0] ss:$8 sps:$4 sm:$0xff]   ;;  %2971 = vmatprep.subr.bf16.mxu1 %v7504_v16 }
 0x4c7   :  { %v2024_v33 = vadd.f32 %v2023_v31, %v9129_v9  ;;  %v2025_v34 = vpop.f32.mrb[75].mxu1  ;;  %2501 = vmatmul.mubr.bf16.gmra.mrb[132].mxu0 %v2224_v17  ;;  %v2166_v45 = vmax.f32 %v2020_v24, 0.0  ;;  %v7507_v31 = vld [vmem:[#allocation13 + $0xd4] ss:$8 sps:$4 sm:$0xff]  }
 0x4c8   :  { %v2026_v40 = vadd.f32 %v2025_v34, %v9132_v26  ;;  %v2167_v47 = vmax.f32 %v2022_v30, 0.0 }
 0x4c9   :  { %v2168_v46 = vmax.f32 %v2024_v33, 0.0  ;;  %2972 = vmatpush1.bf16.msra.mxu1 %v7502_v28 }
 0x4ca   :  { %v2169_v48 = vmax.f32 %v2026_v40, 0.0  ;;  %2973 = vmatprep.subr.bf16.mxu1 %v7507_v31 }
 0x4cb   :  { %v2226_v50 = vpack.c.bf16 %v2168_v46, %v2166_v45  ;;  %v7505_v45 = vld [vmem:[#allocation13 + $0xd0] ss:$8 sps:$4 sm:$0xff]  }
 0x4cc   :  { %v2029_v52 = vpop.f32.mrb[76].mxu1  ;;  %v2227_v53 = vpack.c.bf16 %v2169_v48, %v2167_v47  ;;  %v7510_v48 = vld [vmem:[#allocation13 + $0xe4] ss:$8 sps:$4 sm:$0xff]  }
 0x4cd   :  { %v2030_v44 = vadd.f32 %v2029_v52, %v9129_v9  ;;  %v2031_v54 = vpop.f32.mrb[77].mxu1  ;;  %2974 = vmatpush1.bf16.msra.mxu1 %v7505_v45 }
 0x4ce   :  { %v2032_v58 = vadd.f32 %v2031_v54, %v9132_v26  ;;  %v2033_v59 = vpop.f32.mrb[78].mxu1  ;;  %2510 = vmatprep.mubr.bf16.mxu0 %v2227_v53  ;;  %v7508_v54 = vld [vmem:[#allocation13 + $0xe0] ss:$8 sps:$4 sm:$0xff]   ;;  %2975 = vmatprep.subr.bf16.mxu1 %v7510_v48 }
 0x4cf   :  { %v2034_v61 = vadd.f32 %v2033_v59, %v9129_v9  ;;  %v2035_v62 = vpop.f32.mrb[79].mxu1  ;;  %2511 = vmatmul.mubr.bf16.gmra.mrb[136].mxu0 %v2226_v50  ;;  %v2170_v5 = vmax.f32 %v2030_v44, 0.0 }
 0x4d0   :  { %v2036_v2 = vadd.f32 %v2035_v62, %v9132_v26  ;;  %v2171_v57 = vmax.f32 %v2032_v58, 0.0 }
 0x4d1   :  { %v2172_v55 = vmax.f32 %v2034_v61, 0.0  ;;  %2976 = vmatpush1.bf16.msra.mxu1 %v7508_v54 }
 0x4d2   :  { %v2173_v7 = vmax.f32 %v2036_v2, 0.0 }
 0x4d3   :  { %v2228_v11 = vpack.c.bf16 %v2172_v55, %v2170_v5 }
 0x4d4   :  { %v2039_v14 = vpop.f32.mrb[80].mxu1  ;;  %v2229_v15 = vpack.c.bf16 %v2173_v7, %v2171_v57 }
 0x4d5   :  { %v2040_v17 = vadd.f32 %v2039_v14, %v9129_v9  ;;  %v2041_v19 = vpop.f32.mrb[81].mxu1 }
 0x4d6   :  { %v2042_v21 = vadd.f32 %v2041_v19, %v9132_v26  ;;  %v2043_v8 = vpop.f32.mrb[82].mxu1  ;;  %2520 = vmatprep.mubr.bf16.mxu0 %v2229_v15 }
 0x4d7   :  { %v2044_v23 = vadd.f32 %v2043_v8, %v9129_v9  ;;  %v2045_v24 = vpop.f32.mrb[83].mxu1  ;;  %2521 = vmatmul.mubr.bf16.gmra.mrb[140].mxu0 %v2228_v11  ;;  %v2174_v33 = vmax.f32 %v2040_v17, 0.0 }
 0x4d8   :  { %v2046_v30 = vadd.f32 %v2045_v24, %v9132_v26  ;;  %v2175_v38 = vmax.f32 %v2042_v21, 0.0 }
 0x4d9   :  { %v2176_v34 = vmax.f32 %v2044_v23, 0.0 }
 0x4da   :  { %v2177_v40 = vmax.f32 %v2046_v30, 0.0 }
 0x4db   :  { %v2230_v41 = vpack.c.bf16 %v2176_v34, %v2174_v33 }
 0x4dc   :  { %v2049_v46 = vpop.f32.mrb[84].mxu1  ;;  %v2231_v47 = vpack.c.bf16 %v2177_v40, %v2175_v38 }
 0x4dd   :  { %v2050_v50 = vadd.f32 %v2049_v46, %v9129_v9  ;;  %v2051_v51 = vpop.f32.mrb[85].mxu1 }
 0x4de   :  { %v2052_v52 = vadd.f32 %v2051_v51, %v9132_v26  ;;  %v2053_v53 = vpop.f32.mrb[86].mxu1  ;;  %2530 = vmatprep.mubr.bf16.mxu0 %v2231_v47 }
 0x4df   :  { %v2054_v43 = vadd.f32 %v2053_v53, %v9129_v9  ;;  %v2055_v44 = vpop.f32.mrb[87].mxu1  ;;  %2531 = vmatmul.mubr.bf16.gmra.mrb[144].mxu0 %v2230_v41  ;;  %v2178_v59 = vmax.f32 %v2050_v50, 0.0 }
 0x4e0   :  { %v2056_v58 = vadd.f32 %v2055_v44, %v9132_v26  ;;  %v2179_v62 = vmax.f32 %v2052_v52, 0.0 }
 0x4e1   :  { %v2180_v61 = vmax.f32 %v2054_v43, 0.0 }
 0x4e2   :  { %v2181_v1 = vmax.f32 %v2056_v58, 0.0 }
 0x4e3   :  { %v2232_v2 = vpack.c.bf16 %v2180_v61, %v2178_v59 }
 0x4e4   :  { %v2233_v4 = vpack.c.bf16 %v2181_v1, %v2179_v62  ;;  %v2059_v5 = vpop.f32.mrb[88].mxu1 }
 0x4e5   :  { %v2060_v55 = vadd.f32 %v2059_v5, %v9129_v9  ;;  %v2061_v57 = vpop.f32.mrb[89].mxu1 }
 0x4e6   :  { %v2062_v7 = vadd.f32 %v2061_v57, %v9132_v26  ;;  %v2063_v11 = vpop.f32.mrb[90].mxu1  ;;  %2540 = vmatprep.mubr.bf16.mxu0 %v2233_v4 }
 0x4e7   :  { %v2064_v13 = vadd.f32 %v2063_v11, %v9129_v9  ;;  %v2065_v14 = vpop.f32.mrb[91].mxu1  ;;  %2541 = vmatmul.mubr.bf16.gmra.mrb[148].mxu0 %v2232_v2  ;;  %v2182_v16 = vmax.f32 %v2060_v55, 0.0 }
 0x4e8   :  { %v2066_v15 = vadd.f32 %v2065_v14, %v9132_v26  ;;  %v2183_v19 = vmax.f32 %v2062_v7, 0.0 }
 0x4e9   :  { %v2184_v17 = vmax.f32 %v2064_v13, 0.0 }
 0x4ea   :  { %v2185_v21 = vmax.f32 %v2066_v15, 0.0 }
 0x4eb   :  { %v2234_v8 = vpack.c.bf16 %v2184_v17, %v2182_v16 }
 0x4ec   :  { %v2235_v23 = vpack.c.bf16 %v2185_v21, %v2183_v19  ;;  %v2069_v24 = vpop.f32.mrb[92].mxu1 }
 0x4ed   :  { %v2070_v28 = vadd.f32 %v2069_v24, %v9129_v9  ;;  %v2071_v30 = vpop.f32.mrb[93].mxu1 }
 0x4ee   :  { %v2072_v31 = vadd.f32 %v2071_v30, %v9132_v26  ;;  %v2073_v33 = vpop.f32.mrb[94].mxu1  ;;  %2550 = vmatprep.mubr.bf16.mxu0 %v2235_v23 }
 0x4ef   :  { %v2074_v34 = vadd.f32 %v2073_v33, %v9129_v9  ;;  %v2075_v38 = vpop.f32.mrb[95].mxu1  ;;  %2551 = vmatmul.mubr.bf16.gmra.mrb[152].mxu0 %v2234_v8  ;;  %v2186_v41 = vmax.f32 %v2070_v28, 0.0 }
 0x4f0   :  { %v2076_v40 = vadd.f32 %v2075_v38, %v9132_v26  ;;  %v2187_v46 = vmax.f32 %v2072_v31, 0.0 }
 0x4f1   :  { %v2188_v45 = vmax.f32 %v2074_v34, 0.0 }
 0x4f2   :  { %v2189_v47 = vmax.f32 %v2076_v40, 0.0 }
 0x4f3   :  { %v2236_v48 = vpack.c.bf16 %v2188_v45, %v2186_v41 }
 0x4f4   :  { %v2237_v50 = vpack.c.bf16 %v2189_v47, %v2187_v46  ;;  %v2079_v51 = vpop.f32.mrb[96].mxu1 }
 0x4f5   :  { %v2080_v52 = vadd.f32 %v2079_v51, %v9129_v9  ;;  %v2081_v53 = vpop.f32.mrb[97].mxu1 }
 0x4f6   :  { %v2082_v43 = vadd.f32 %v2081_v53, %v9132_v26  ;;  %v2083_v44 = vpop.f32.mrb[98].mxu1  ;;  %2560 = vmatprep.mubr.bf16.mxu0 %v2237_v50 }
 0x4f7   :  { %v2084_v54 = vadd.f32 %v2083_v44, %v9129_v9  ;;  %v2085_v58 = vpop.f32.mrb[99].mxu1  ;;  %2561 = vmatmul.mubr.bf16.gmra.mrb[156].mxu0 %v2236_v48  ;;  %v2190_v61 = vmax.f32 %v2080_v52, 0.0 }
 0x4f8   :  { %v2086_v59 = vadd.f32 %v2085_v58, %v9132_v26  ;;  %v2191_v1 = vmax.f32 %v2082_v43, 0.0 }
 0x4f9   :  { %v2192_v62 = vmax.f32 %v2084_v54, 0.0 }
 0x4fa   :  { %v2193_v2 = vmax.f32 %v2086_v59, 0.0 }
 0x4fb   :  { %v2238_v4 = vpack.c.bf16 %v2192_v62, %v2190_v61 }
 0x4fc   :  { %v2239_v5 = vpack.c.bf16 %v2193_v2, %v2191_v1  ;;  %v2089_v55 = vpop.f32.mrb[100].mxu1 }
 0x4fd   :  { %v2090_v57 = vadd.f32 %v2089_v55, %v9129_v9  ;;  %v2091_v7 = vpop.f32.mrb[101].mxu1 }
 0x4fe   :  { %v2092_v11 = vadd.f32 %v2091_v7, %v9132_v26  ;;  %v2093_v13 = vpop.f32.mrb[102].mxu1  ;;  %2570 = vmatprep.mubr.bf16.mxu0 %v2239_v5 }
 0x4ff   :  { %v2094_v14 = vadd.f32 %v2093_v13, %v9129_v9  ;;  %v2095_v15 = vpop.f32.mrb[103].mxu1  ;;  %2571 = vmatmul.mubr.bf16.gmra.mrb[160].mxu0 %v2238_v4  ;;  %v2194_v17 = vmax.f32 %v2090_v57, 0.0 }
 0x500   :  { %v2096_v16 = vadd.f32 %v2095_v15, %v9132_v26  ;;  %v2195_v21 = vmax.f32 %v2092_v11, 0.0 }
 0x501   :  { %v2196_v19 = vmax.f32 %v2094_v14, 0.0 }
 0x502   :  { %v2197_v8 = vmax.f32 %v2096_v16, 0.0 }
 0x503   :  { %v2240_v23 = vpack.c.bf16 %v2196_v19, %v2194_v17  ;;  %v7513_v17 = vld [vmem:[#allocation13 + $0xf4] ss:$8 sps:$4 sm:$0xff]  }
 0x504   :  { %v2241_v24 = vpack.c.bf16 %v2197_v8, %v2195_v21  ;;  %v2099_v28 = vpop.f32.mrb[104].mxu1  ;;  %v7511_v21 = vld [vmem:[#allocation13 + $0xf0] ss:$8 sps:$4 sm:$0xff]   ;;  %2977 = vmatprep.subr.bf16.mxu1 %v7513_v17 }
 0x505   :  { %v2100_v30 = vadd.f32 %v2099_v28, %v9129_v9  ;;  %v2101_v31 = vpop.f32.mrb[105].mxu1  ;;  %2978 = vmatpush1.bf16.msra.mxu1 %v7511_v21 }
 0x506   :  { %v2102_v33 = vadd.f32 %v2101_v31, %v9132_v26  ;;  %v2103_v34 = vpop.f32.mrb[106].mxu1  ;;  %2580 = vmatprep.mubr.bf16.mxu0 %v2241_v24 }
 0x507   :  { %v2104_v38 = vadd.f32 %v2103_v34, %v9129_v9  ;;  %v2105_v40 = vpop.f32.mrb[107].mxu1  ;;  %2581 = vmatmul.mubr.bf16.gmra.mrb[164].mxu0 %v2240_v23  ;;  %v2198_v45 = vmax.f32 %v2100_v30, 0.0 }
 0x508   :  { %v2106_v41 = vadd.f32 %v2105_v40, %v9132_v26  ;;  %v2199_v47 = vmax.f32 %v2102_v33, 0.0 }
 0x509   :  { %v2200_v46 = vmax.f32 %v2104_v38, 0.0 }
 0x50a   :  { %v2201_v48 = vmax.f32 %v2106_v41, 0.0 }
 0x50b   :  { %v2242_v50 = vpack.c.bf16 %v2200_v46, %v2198_v45 }
 0x50c   :  { %v2243_v51 = vpack.c.bf16 %v2201_v48, %v2199_v47  ;;  %v2109_v52 = vpop.f32.mrb[108].mxu1  ;;  %v7516_v47 = vld [vmem:[#allocation11 + $0x4] ss:$8 sps:$4 sm:$0xff]  }
 0x50d   :  { %v2110_v53 = vadd.f32 %v2109_v52, %v9129_v9  ;;  %v2111_v43 = vpop.f32.mrb[109].mxu1  ;;  %3184 = vmatprep.subr.bf16.mxu1 %v7516_v47 }
 0x50e   :  { %v2112_v44 = vadd.f32 %v2111_v43, %v9132_v26  ;;  %v2113_v54 = vpop.f32.mrb[110].mxu1  ;;  %2590 = vmatprep.mubr.bf16.mxu0 %v2243_v51 }
 0x50f   :  { %v2114_v58 = vadd.f32 %v2113_v54, %v9129_v9  ;;  %v2115_v59 = vpop.f32.mrb[111].mxu1  ;;  %2591 = vmatmul.mubr.bf16.gmra.mrb[168].mxu0 %v2242_v50  ;;  %v2202_v62 = vmax.f32 %v2110_v53, 0.0 }
 0x510   :  { %v2116_v61 = vadd.f32 %v2115_v59, %v9132_v26  ;;  %v2203_v2 = vmax.f32 %v2112_v44, 0.0 }
 0x511   :  { %v2204_v1 = vmax.f32 %v2114_v58, 0.0 }
 0x512   :  { %v2205_v4 = vmax.f32 %v2116_v61, 0.0 }
 0x513   :  { %v2244_v5 = vpack.c.bf16 %v2204_v1, %v2202_v62 }
 0x514   :  { %v2245_v55 = vpack.c.bf16 %v2205_v4, %v2203_v2  ;;  %v2119_v57 = vpop.f32.mrb[112].mxu1 }
 0x515   :  { %v2120_v7 = vadd.f32 %v2119_v57, %v9129_v9  ;;  %v2121_v11 = vpop.f32.mrb[113].mxu1 }
 0x516   :  { %v2122_v13 = vadd.f32 %v2121_v11, %v9132_v26  ;;  %v2123_v14 = vpop.f32.mrb[114].mxu1  ;;  %2600 = vmatprep.mubr.bf16.mxu0 %v2245_v55 }
 0x517   :  { %v2124_v15 = vadd.f32 %v2123_v14, %v9129_v9  ;;  %v2125_v16 = vpop.f32.mrb[115].mxu1  ;;  %2601 = vmatmul.mubr.bf16.gmra.mrb[172].mxu0 %v2244_v5  ;;  %v2206_v8 = vmax.f32 %v2120_v7, 0.0 }
 0x518   :  { %v2126_v19 = vadd.f32 %v2125_v16, %v9132_v26  ;;  %v2207_v24 = vmax.f32 %v2122_v13, 0.0 }
 0x519   :  { %v2208_v23 = vmax.f32 %v2124_v15, 0.0 }
 0x51a   :  { %v2209_v28 = vmax.f32 %v2126_v19, 0.0 }
 0x51b   :  { %v2246_v30 = vpack.c.bf16 %v2208_v23, %v2206_v8 }
 0x51c   :  { %v2247_v31 = vpack.c.bf16 %v2209_v28, %v2207_v24  ;;  %v2129_v33 = vpop.f32.mrb[116].mxu1 }
 0x51d   :  { %v2130_v34 = vadd.f32 %v2129_v33, %v9129_v9  ;;  %v2131_v38 = vpop.f32.mrb[117].mxu1 }
 0x51e   :  { %v2132_v40 = vadd.f32 %v2131_v38, %v9132_v26  ;;  %v2133_v41 = vpop.f32.mrb[118].mxu1  ;;  %2610 = vmatprep.mubr.bf16.mxu0 %v2247_v31  ;;  %v2286_v38 = vld [vmem:[#allocation10] sm:$0x3] }
 0x51f   :  { %v2134_v45 = vadd.f32 %v2133_v41, %v9129_v9  ;;  %v2135_v46 = vpop.f32.mrb[119].mxu1  ;;  %2611 = vmatmul.mubr.bf16.gmra.mrb[176].mxu0 %v2246_v30  ;;  %v2210_v50 = vmax.f32 %v2130_v34, 0.0  ;;  %v9202_v41 = vrot.slane %v2286_v38, %v8910_v39 }
 0x520   :  { %v2136_v48 = vadd.f32 %v2135_v46, %v9132_v26  ;;  %v2211_v52 = vmax.f32 %v2132_v40, 0.0  ;;  %v9199_v40 = vrot.slane %v2286_v38, %v8904_v37 }
 0x521   :  { %v2212_v51 = vmax.f32 %v2134_v45, 0.0 }
 0x522   :  { %v2213_v53 = vmax.f32 %v2136_v48, 0.0 }
 0x523   :  { %v2248_v43 = vpack.c.bf16 %v2212_v51, %v2210_v50 }
 0x524   :  { %v2249_v44 = vpack.c.bf16 %v2213_v53, %v2211_v52  ;;  %v2139_v54 = vpop.f32.mrb[120].mxu1 }
 0x525   :  { %v2140_v58 = vadd.f32 %v2139_v54, %v9129_v9  ;;  %v2141_v59 = vpop.f32.mrb[121].mxu1 }
 0x526   :  { %v2142_v61 = vadd.f32 %v2141_v59, %v9132_v26  ;;  %v2143_v62 = vpop.f32.mrb[122].mxu1  ;;  %2620 = vmatprep.mubr.bf16.mxu0 %v2249_v44 }
 0x527   :  { %v2144_v1 = vadd.f32 %v2143_v62, %v9129_v9  ;;  %v2145_v2 = vpop.f32.mrb[123].mxu1  ;;  %2621 = vmatmul.mubr.bf16.gmra.mrb[180].mxu0 %v2248_v43  ;;  %v2214_v5 = vmax.f32 %v2140_v58, 0.0 }
 0x528   :  { %v2146_v4 = vadd.f32 %v2145_v2, %v9132_v26  ;;  %v2215_v57 = vmax.f32 %v2142_v61, 0.0  ;;  %v7514_v61 = vld [vmem:[#allocation11] ss:$8 sps:$4 sm:$0xff]   ;;  %v7519_v2 = vld [vmem:[#allocation11 + $0x14] ss:$8 sps:$4 sm:$0xff]  }
 0x529   :  { %v2216_v55 = vmax.f32 %v2144_v1, 0.0 }
 0x52a   :  { %v2217_v7 = vmax.f32 %v2146_v4, 0.0 }
 0x52b   :  { %v2250_v11 = vpack.c.bf16 %v2216_v55, %v2214_v5 }
 0x52c   :  { %v2251_v13 = vpack.c.bf16 %v2217_v7, %v2215_v57  ;;  %v2149_v14 = vpop.f32.mrb[124].mxu1 }
 0x52d   :  { %v2150_v15 = vadd.f32 %v2149_v14, %v9129_v9  ;;  %v2151_v16 = vpop.f32.mrb[125].mxu1 }
 0x52e   :  { %v2152_v17 = vadd.f32 %v2151_v16, %v9132_v26  ;;  %v2153_v19 = vpop.f32.mrb[126].mxu1  ;;  %2630 = vmatprep.mubr.bf16.mxu0 %v2251_v13 }
 0x52f   :  { %v2154_v21 = vadd.f32 %v2153_v19, %v9129_v9  ;;  %v2155_v8 = vpop.f32.mrb[127].mxu1  ;;  %2631 = vmatmul.mubr.bf16.gmra.mrb[184].mxu0 %v2250_v11  ;;  %v2218_v24 = vmax.f32 %v2150_v15, 0.0  ;;  %v7517_v11 = vld [vmem:[#allocation11 + $0x10] ss:$8 sps:$4 sm:$0xff]   ;;  %v7522_v15 = vld [vmem:[#allocation11 + $0x24] ss:$8 sps:$4 sm:$0xff]  }
 0x530   :  { %v2156_v23 = vadd.f32 %v2155_v8, %v9132_v26  ;;  %v2219_v30 = vmax.f32 %v2152_v17, 0.0 }
 0x531   :  { %v2220_v28 = vmax.f32 %v2154_v21, 0.0 }
 0x532   :  { %v2221_v31 = vmax.f32 %v2156_v23, 0.0  ;;  %v7520_v23 = vld [vmem:[#allocation11 + $0x20] ss:$8 sps:$4 sm:$0xff]  }
 0x533   :  { %v2252_v33 = vpack.c.bf16 %v2220_v28, %v2218_v24  ;;  %v7523_v24 = vld [vmem:[#allocation11 + $0x34] ss:$8 sps:$4 sm:$0x3f]  }
 0x534   :  { %v2253_v34 = vpack.c.bf16 %v2221_v31, %v2219_v30  ;;  %v7525_v31 = vld [vmem:[#allocation11 + $0x30] ss:$8 sps:$4 sm:$0x3f]  }
 0x536   :  { %2640 = vmatprep.mubr.bf16.mxu0 %v2253_v34 }
 0x537   :  { %2641 = vmatmul.mubr.bf16.gmra.mrb[188].mxu0 %v2252_v33 }
 0x592   :  { %v2492_v9 = vpop.f32.mrb[128].mxu0 }
 0x593   :  { %v2493_v45 = vadd.f32 %v2492_v9, %v9199_v40  ;;  %v2494_v46 = vpop.f32.mrb[129].mxu0 }
 0x594   :  { %v2495_v26 = vadd.f32 %v2494_v46, %v9202_v41  ;;  %v2496_v47 = vpop.f32.mrb[130].mxu0 }
 0x595   :  { %v2497_v48 = vadd.f32 %v2496_v47, %v9199_v40  ;;  %v2498_v50 = vpop.f32.mrb[131].mxu0  ;;  %v2651_v52 = vmax.f32 %v2493_v45, 0.0  ;;  %v3179_v47 = vsel %vm479_vm0, %v7525_v31, 0 }
 0x596   :  { %v2499_v51 = vadd.f32 %v2498_v50, %v9202_v41  ;;  %v2652_v43 = vmax.f32 %v2495_v26, 0.0 }
 0x597   :  { %v2653_v53 = vmax.f32 %v2497_v48, 0.0 }
 0x598   :  { %v2654_v44 = vmax.f32 %v2499_v51, 0.0 }
 0x599   :  { %v2715_v54 = vpack.c.bf16 %v2653_v53, %v2651_v52 }
 0x59a   :  { %v2502_v58 = vpop.f32.mrb[132].mxu0  ;;  %v2716_v59 = vpack.c.bf16 %v2654_v44, %v2652_v43 }
 0x59b   :  { %v2503_v62 = vadd.f32 %v2502_v58, %v9199_v40  ;;  %v2504_v1 = vpop.f32.mrb[133].mxu0 }
 0x59c   :  { %v2505_v4 = vadd.f32 %v2504_v1, %v9202_v41  ;;  %v2506_v5 = vpop.f32.mrb[134].mxu0  ;;  %2979 = vmatprep.mubr.bf16.mxu1 %v2716_v59 }
 0x59d   :  { %v2507_v55 = vadd.f32 %v2506_v5, %v9199_v40  ;;  %v2508_v57 = vpop.f32.mrb[135].mxu0  ;;  %2980 = vmatmul.mubr.bf16.vlgmr.msra.gmra.mrb[128].mxu1 %v2715_v54  ;;  %v2655_v13 = vmax.f32 %v2503_v62, 0.0 }
 0x59e   :  { %v2509_v7 = vadd.f32 %v2508_v57, %v9202_v41  ;;  %3185 = vmatpush1.bf16.msra.mxu1 %v7514_v61  ;;  %v2656_v16 = vmax.f32 %v2505_v4, 0.0 }
 0x59f   :  { %v2657_v14 = vmax.f32 %v2507_v55, 0.0  ;;  %3186 = vmatprep.subr.bf16.mxu1 %v7519_v2 }
 0x5a0   :  { %v2658_v17 = vmax.f32 %v2509_v7, 0.0 }
 0x5a1   :  { %v2717_v19 = vpack.c.bf16 %v2657_v14, %v2655_v13 }
 0x5a2   :  { %v2512_v21 = vpop.f32.mrb[136].mxu0  ;;  %v2718_v8 = vpack.c.bf16 %v2658_v17, %v2656_v16  ;;  %3187 = vmatpush1.bf16.msra.mxu1 %v7517_v11 }
 0x5a3   :  { %v2513_v28 = vadd.f32 %v2512_v21, %v9199_v40  ;;  %v2514_v30 = vpop.f32.mrb[137].mxu0  ;;  %3188 = vmatprep.subr.bf16.mxu1 %v7522_v15 }
 0x5a4   :  { %v2515_v33 = vadd.f32 %v2514_v30, %v9202_v41  ;;  %v2516_v34 = vpop.f32.mrb[138].mxu0  ;;  %2989 = vmatprep.mubr.bf16.mxu1 %v2718_v8 }
 0x5a5   :  { %v2517_v38 = vadd.f32 %v2516_v34, %v9199_v40  ;;  %v2518_v9 = vpop.f32.mrb[139].mxu0  ;;  %2990 = vmatmul.mubr.bf16.gmra.mrb[132].mxu1 %v2717_v19  ;;  %v2659_v46 = vmax.f32 %v2513_v28, 0.0 }
 0x5a6   :  { %v2519_v45 = vadd.f32 %v2518_v9, %v9202_v41  ;;  %3189 = vmatpush1.bf16.msra.mxu1 %v7520_v23  ;;  %v2660_v48 = vmax.f32 %v2515_v33, 0.0 }
 0x5a7   :  { %v2661_v26 = vmax.f32 %v2517_v38, 0.0  ;;  %6600 = vmatprep.subr.msk.bf16.mxu1 %vm479_vm0, %v7523_v24 }
 0x5a8   :  { %v2662_v50 = vmax.f32 %v2519_v45, 0.0 }
 0x5a9   :  { %v2719_v51 = vpack.c.bf16 %v2661_v26, %v2659_v46 }
 0x5aa   :  { %v2522_v52 = vpop.f32.mrb[140].mxu0  ;;  %v2720_v53 = vpack.c.bf16 %v2662_v50, %v2660_v48  ;;  %3191 = vmatpush1.bf16.msra.mxu1 %v3179_v47 }
 0x5ab   :  { %v2523_v43 = vadd.f32 %v2522_v52, %v9199_v40  ;;  %v2524_v44 = vpop.f32.mrb[141].mxu0 }
 0x5ac   :  { %v2525_v54 = vadd.f32 %v2524_v44, %v9202_v41  ;;  %v2526_v58 = vpop.f32.mrb[142].mxu0  ;;  %2999 = vmatprep.mubr.bf16.mxu1 %v2720_v53 }
 0x5ad   :  { %v2527_v59 = vadd.f32 %v2526_v58, %v9199_v40  ;;  %v2528_v61 = vpop.f32.mrb[143].mxu0  ;;  %3000 = vmatmul.mubr.bf16.gmra.mrb[136].mxu1 %v2719_v51  ;;  %v2663_v1 = vmax.f32 %v2523_v43, 0.0 }
 0x5ae   :  { %v2529_v62 = vadd.f32 %v2528_v61, %v9202_v41  ;;  %v2664_v4 = vmax.f32 %v2525_v54, 0.0 }
 0x5af   :  { %v2665_v2 = vmax.f32 %v2527_v59, 0.0 }
 0x5b0   :  { %v2666_v5 = vmax.f32 %v2529_v62, 0.0 }
 0x5b1   :  { %v2721_v55 = vpack.c.bf16 %v2665_v2, %v2663_v1 }
 0x5b2   :  { %v2532_v57 = vpop.f32.mrb[144].mxu0  ;;  %v2722_v7 = vpack.c.bf16 %v2666_v5, %v2664_v4 }
 0x5b3   :  { %v2533_v11 = vadd.f32 %v2532_v57, %v9199_v40  ;;  %v2534_v13 = vpop.f32.mrb[145].mxu0 }
 0x5b4   :  { %v2535_v14 = vadd.f32 %v2534_v13, %v9202_v41  ;;  %v2536_v15 = vpop.f32.mrb[146].mxu0  ;;  %3009 = vmatprep.mubr.bf16.mxu1 %v2722_v7 }
 0x5b5   :  { %v2537_v16 = vadd.f32 %v2536_v15, %v9199_v40  ;;  %v2538_v17 = vpop.f32.mrb[147].mxu0  ;;  %3010 = vmatmul.mubr.bf16.gmra.mrb[140].mxu1 %v2721_v55  ;;  %v2667_v21 = vmax.f32 %v2533_v11, 0.0 }
 0x5b6   :  { %v2539_v19 = vadd.f32 %v2538_v17, %v9202_v41  ;;  %v2668_v23 = vmax.f32 %v2535_v14, 0.0 }
 0x5b7   :  { %v2669_v8 = vmax.f32 %v2537_v16, 0.0 }
 0x5b8   :  { %v2670_v24 = vmax.f32 %v2539_v19, 0.0 }
 0x5b9   :  { %v2723_v28 = vpack.c.bf16 %v2669_v8, %v2667_v21 }
 0x5ba   :  { %v2542_v30 = vpop.f32.mrb[148].mxu0  ;;  %v2724_v31 = vpack.c.bf16 %v2670_v24, %v2668_v23 }
 0x5bb   :  { %v2543_v33 = vadd.f32 %v2542_v30, %v9199_v40  ;;  %v2544_v34 = vpop.f32.mrb[149].mxu0 }
 0x5bc   :  { %v2545_v38 = vadd.f32 %v2544_v34, %v9202_v41  ;;  %v2546_v9 = vpop.f32.mrb[150].mxu0  ;;  %3019 = vmatprep.mubr.bf16.mxu1 %v2724_v31 }
 0x5bd   :  { %v2547_v45 = vadd.f32 %v2546_v9, %v9199_v40  ;;  %v2548_v46 = vpop.f32.mrb[151].mxu0  ;;  %3020 = vmatmul.mubr.bf16.gmra.mrb[144].mxu1 %v2723_v28  ;;  %v2671_v47 = vmax.f32 %v2543_v33, 0.0 }
 0x5be   :  { %v2549_v26 = vadd.f32 %v2548_v46, %v9202_v41  ;;  %v2672_v50 = vmax.f32 %v2545_v38, 0.0 }
 0x5bf   :  { %v2673_v48 = vmax.f32 %v2547_v45, 0.0 }
 0x5c0   :  { %v2674_v51 = vmax.f32 %v2549_v26, 0.0 }
 0x5c1   :  { %v2725_v52 = vpack.c.bf16 %v2673_v48, %v2671_v47 }
 0x5c2   :  { %v2552_v53 = vpop.f32.mrb[152].mxu0  ;;  %v2726_v43 = vpack.c.bf16 %v2674_v51, %v2672_v50 }
 0x5c3   :  { %v2553_v44 = vadd.f32 %v2552_v53, %v9199_v40  ;;  %v2554_v54 = vpop.f32.mrb[153].mxu0 }
 0x5c4   :  { %v2555_v58 = vadd.f32 %v2554_v54, %v9202_v41  ;;  %v2556_v59 = vpop.f32.mrb[154].mxu0  ;;  %3029 = vmatprep.mubr.bf16.mxu1 %v2726_v43 }
 0x5c5   :  { %v2557_v61 = vadd.f32 %v2556_v59, %v9199_v40  ;;  %v2558_v62 = vpop.f32.mrb[155].mxu0  ;;  %3030 = vmatmul.mubr.bf16.gmra.mrb[148].mxu1 %v2725_v52  ;;  %v2675_v2 = vmax.f32 %v2553_v44, 0.0 }
 0x5c6   :  { %v2559_v1 = vadd.f32 %v2558_v62, %v9202_v41  ;;  %v2676_v5 = vmax.f32 %v2555_v58, 0.0 }
 0x5c7   :  { %v2677_v4 = vmax.f32 %v2557_v61, 0.0 }
 0x5c8   :  { %v2678_v55 = vmax.f32 %v2559_v1, 0.0 }
 0x5c9   :  { %v2727_v57 = vpack.c.bf16 %v2677_v4, %v2675_v2 }
 0x5ca   :  { %v2562_v7 = vpop.f32.mrb[156].mxu0  ;;  %v2728_v11 = vpack.c.bf16 %v2678_v55, %v2676_v5 }
 0x5cb   :  { %v2563_v13 = vadd.f32 %v2562_v7, %v9199_v40  ;;  %v2564_v14 = vpop.f32.mrb[157].mxu0 }
 0x5cc   :  { %v2565_v15 = vadd.f32 %v2564_v14, %v9202_v41  ;;  %v2566_v16 = vpop.f32.mrb[158].mxu0  ;;  %3039 = vmatprep.mubr.bf16.mxu1 %v2728_v11 }
 0x5cd   :  { %v2567_v17 = vadd.f32 %v2566_v16, %v9199_v40  ;;  %v2568_v19 = vpop.f32.mrb[159].mxu0  ;;  %3040 = vmatmul.mubr.bf16.gmra.mrb[152].mxu1 %v2727_v57  ;;  %v2679_v8 = vmax.f32 %v2563_v13, 0.0 }
 0x5ce   :  { %v2569_v21 = vadd.f32 %v2568_v19, %v9202_v41  ;;  %v2680_v24 = vmax.f32 %v2565_v15, 0.0 }
 0x5cf   :  { %v2681_v23 = vmax.f32 %v2567_v17, 0.0 }
 0x5d0   :  { %v2682_v28 = vmax.f32 %v2569_v21, 0.0 }
 0x5d1   :  { %v2729_v30 = vpack.c.bf16 %v2681_v23, %v2679_v8 }
 0x5d2   :  { %v2572_v31 = vpop.f32.mrb[160].mxu0  ;;  %v2730_v33 = vpack.c.bf16 %v2682_v28, %v2680_v24 }
 0x5d3   :  { %v2573_v34 = vadd.f32 %v2572_v31, %v9199_v40  ;;  %v2574_v38 = vpop.f32.mrb[161].mxu0 }
 0x5d4   :  { %v2575_v9 = vadd.f32 %v2574_v38, %v9202_v41  ;;  %v2576_v45 = vpop.f32.mrb[162].mxu0  ;;  %3049 = vmatprep.mubr.bf16.mxu1 %v2730_v33 }
 0x5d5   :  { %v2577_v46 = vadd.f32 %v2576_v45, %v9199_v40  ;;  %v2578_v26 = vpop.f32.mrb[163].mxu0  ;;  %3050 = vmatmul.mubr.bf16.gmra.mrb[156].mxu1 %v2729_v30  ;;  %v2683_v48 = vmax.f32 %v2573_v34, 0.0 }
 0x5d6   :  { %v2579_v47 = vadd.f32 %v2578_v26, %v9202_v41  ;;  %v2684_v51 = vmax.f32 %v2575_v9, 0.0 }
 0x5d7   :  { %v2685_v50 = vmax.f32 %v2577_v46, 0.0 }
 0x5d8   :  { %v2686_v52 = vmax.f32 %v2579_v47, 0.0 }
 0x5d9   :  { %v2731_v53 = vpack.c.bf16 %v2685_v50, %v2683_v48 }
 0x5da   :  { %v2582_v43 = vpop.f32.mrb[164].mxu0  ;;  %v2732_v44 = vpack.c.bf16 %v2686_v52, %v2684_v51 }
 0x5db   :  { %v2583_v54 = vadd.f32 %v2582_v43, %v9199_v40  ;;  %v2584_v58 = vpop.f32.mrb[165].mxu0 }
 0x5dc   :  { %v2585_v59 = vadd.f32 %v2584_v58, %v9202_v41  ;;  %v2586_v61 = vpop.f32.mrb[166].mxu0  ;;  %3059 = vmatprep.mubr.bf16.mxu1 %v2732_v44 }
 0x5dd   :  { %v2587_v62 = vadd.f32 %v2586_v61, %v9199_v40  ;;  %v2588_v1 = vpop.f32.mrb[167].mxu0  ;;  %3060 = vmatmul.mubr.bf16.gmra.mrb[160].mxu1 %v2731_v53  ;;  %v2687_v4 = vmax.f32 %v2583_v54, 0.0 }
 0x5de   :  { %v2589_v2 = vadd.f32 %v2588_v1, %v9202_v41  ;;  %v2688_v55 = vmax.f32 %v2585_v59, 0.0 }
 0x5df   :  { %v2689_v5 = vmax.f32 %v2587_v62, 0.0 }
 0x5e0   :  { %v2690_v57 = vmax.f32 %v2589_v2, 0.0 }
 0x5e1   :  { %v2733_v7 = vpack.c.bf16 %v2689_v5, %v2687_v4  ;;  %v7526_v4 = vld [vmem:[#allocation16] ss:$8 sps:$4 sm:$0xff]   ;;  %v7528_v5 = vld [vmem:[#allocation16 + $0x4] ss:$8 sps:$4 sm:$0xff]  }
 0x5e2   :  { %v2592_v11 = vpop.f32.mrb[168].mxu0  ;;  %v2734_v13 = vpack.c.bf16 %v2690_v57, %v2688_v55  ;;  %3753 = vmatprep.subr.bf16.mxu0 %v7528_v5 }
 0x5e3   :  { %v2593_v14 = vadd.f32 %v2592_v11, %v9199_v40  ;;  %v2594_v15 = vpop.f32.mrb[169].mxu0  ;;  %3754 = vmatpush1.bf16.msra.mxu0 %v7526_v4 }
 0x5e4   :  { %v2595_v16 = vadd.f32 %v2594_v15, %v9202_v41  ;;  %v2596_v17 = vpop.f32.mrb[170].mxu0  ;;  %3069 = vmatprep.mubr.bf16.mxu1 %v2734_v13 }
 0x5e5   :  { %v2597_v19 = vadd.f32 %v2596_v17, %v9199_v40  ;;  %v2598_v21 = vpop.f32.mrb[171].mxu0  ;;  %3070 = vmatmul.mubr.bf16.gmra.mrb[164].mxu1 %v2733_v7  ;;  %v2691_v23 = vmax.f32 %v2593_v14, 0.0 }
 0x5e6   :  { %v2599_v8 = vadd.f32 %v2598_v21, %v9202_v41  ;;  %v2692_v28 = vmax.f32 %v2595_v16, 0.0 }
 0x5e7   :  { %v2693_v24 = vmax.f32 %v2597_v19, 0.0 }
 0x5e8   :  { %v2694_v30 = vmax.f32 %v2599_v8, 0.0 }
 0x5e9   :  { %v2735_v31 = vpack.c.bf16 %v2693_v24, %v2691_v23 }
 0x5ea   :  { %v2602_v33 = vpop.f32.mrb[172].mxu0  ;;  %v2736_v34 = vpack.c.bf16 %v2694_v30, %v2692_v28  ;;  %v7529_v28 = vld [vmem:[#allocation16 + $0x10] ss:$8 sps:$4 sm:$0xff]   ;;  %v7531_v30 = vld [vmem:[#allocation16 + $0x14] ss:$8 sps:$4 sm:$0xff]  }
 0x5eb   :  { %v2603_v38 = vadd.f32 %v2602_v33, %v9199_v40  ;;  %v2604_v9 = vpop.f32.mrb[173].mxu0  ;;  %3755 = vmatprep.subr.bf16.mxu0 %v7531_v30  ;;  %v7540_v30 = vld [vmem:[#allocation16 + $0x44] ss:$8 sps:$4 sm:$0xff]  }
 0x5ec   :  { %v2605_v45 = vadd.f32 %v2604_v9, %v9202_v41  ;;  %v2606_v46 = vpop.f32.mrb[174].mxu0  ;;  %3079 = vmatprep.mubr.bf16.mxu1 %v2736_v34  ;;  %3756 = vmatpush1.bf16.msra.mxu0 %v7529_v28  ;;  %v7538_v28 = vld [vmem:[#allocation16 + $0x40] ss:$8 sps:$4 sm:$0xff]  }
 0x5ed   :  { %v2607_v26 = vadd.f32 %v2606_v46, %v9199_v40  ;;  %v2608_v47 = vpop.f32.mrb[175].mxu0  ;;  %3080 = vmatmul.mubr.bf16.gmra.mrb[168].mxu1 %v2735_v31  ;;  %v2695_v50 = vmax.f32 %v2603_v38, 0.0 }
 0x5ee   :  { %v2609_v48 = vadd.f32 %v2608_v47, %v9202_v41  ;;  %v2696_v52 = vmax.f32 %v2605_v45, 0.0 }
 0x5ef   :  { %v2697_v51 = vmax.f32 %v2607_v26, 0.0 }
 0x5f0   :  { %v2698_v53 = vmax.f32 %v2609_v48, 0.0 }
 0x5f1   :  { %v2737_v43 = vpack.c.bf16 %v2697_v51, %v2695_v50 }
 0x5f2   :  { %v2738_v44 = vpack.c.bf16 %v2698_v53, %v2696_v52  ;;  %v2612_v54 = vpop.f32.mrb[176].mxu0 }
 0x5f3   :  { %v2613_v58 = vadd.f32 %v2612_v54, %v9199_v40  ;;  %v2614_v59 = vpop.f32.mrb[177].mxu0 }
 0x5f4   :  { %v2615_v61 = vadd.f32 %v2614_v59, %v9202_v41  ;;  %v2616_v62 = vpop.f32.mrb[178].mxu0  ;;  %3089 = vmatprep.mubr.bf16.mxu1 %v2738_v44  ;;  %v7534_v44 = vld [vmem:[#allocation16 + $0x24] ss:$8 sps:$4 sm:$0xff]  }
 0x5f5   :  { %v2617_v1 = vadd.f32 %v2616_v62, %v9199_v40  ;;  %v2618_v2 = vpop.f32.mrb[179].mxu0  ;;  %3090 = vmatmul.mubr.bf16.gmra.mrb[172].mxu1 %v2737_v43  ;;  %v2699_v57 = vmax.f32 %v2613_v58, 0.0  ;;  %v7532_v43 = vld [vmem:[#allocation16 + $0x20] ss:$8 sps:$4 sm:$0xff]   ;;  %3757 = vmatprep.subr.bf16.mxu0 %v7534_v44 }
 0x5f6   :  { %v2619_v55 = vadd.f32 %v2618_v2, %v9202_v41  ;;  %v2700_v11 = vmax.f32 %v2615_v61, 0.0  ;;  %3758 = vmatpush1.bf16.msra.mxu0 %v7532_v43  ;;  %v7568_v43 = vld [vmem:[#allocation16 + $0xe0] ss:$8 sps:$4 sm:$0xff]  }
 0x5f7   :  { %v2701_v7 = vmax.f32 %v2617_v1, 0.0 }
 0x5f8   :  { %v2702_v13 = vmax.f32 %v2619_v55, 0.0 }
 0x5f9   :  { %v2739_v14 = vpack.c.bf16 %v2701_v7, %v2699_v57 }
 0x5fa   :  { %v2740_v15 = vpack.c.bf16 %v2702_v13, %v2700_v11  ;;  %v2622_v16 = vpop.f32.mrb[180].mxu0 }
 0x5fb   :  { %v2623_v17 = vadd.f32 %v2622_v16, %v9199_v40  ;;  %v2624_v19 = vpop.f32.mrb[181].mxu0 }
 0x5fc   :  { %v2625_v21 = vadd.f32 %v2624_v19, %v9202_v41  ;;  %v2626_v8 = vpop.f32.mrb[182].mxu0  ;;  %3099 = vmatprep.mubr.bf16.mxu1 %v2740_v15  ;;  %v7537_v15 = vld [vmem:[#allocation16 + $0x34] ss:$8 sps:$4 sm:$0xff]  }
 0x5fd   :  { %v2627_v23 = vadd.f32 %v2626_v8, %v9199_v40  ;;  %v2628_v24 = vpop.f32.mrb[183].mxu0  ;;  %3100 = vmatmul.mubr.bf16.gmra.mrb[176].mxu1 %v2739_v14  ;;  %v2703_v33 = vmax.f32 %v2623_v17, 0.0  ;;  %v7535_v14 = vld [vmem:[#allocation16 + $0x30] ss:$8 sps:$4 sm:$0xff]   ;;  %3759 = vmatprep.subr.bf16.mxu0 %v7537_v15 }
 0x5fe   :  { %v2629_v31 = vadd.f32 %v2628_v24, %v9202_v41  ;;  %v2704_v38 = vmax.f32 %v2625_v21, 0.0  ;;  %3760 = vmatpush1.bf16.msra.mxu0 %v7535_v14  ;;  %v7577_v15 = vld [vmem:[#allocation19 + $0x10] ss:$8 sps:$4 sm:$0xff]  }
 0x5ff   :  { %v2705_v34 = vmax.f32 %v2627_v23, 0.0  ;;  %3761 = vmatprep.subr.bf16.mxu0 %v7540_v30  ;;  %v7580_v30 = vld [vmem:[#allocation19 + $0x20] ss:$8 sps:$4 sm:$0xff]  }
 0x600   :  { %v2706_v9 = vmax.f32 %v2629_v31, 0.0  ;;  %v7541_v31 = vld [vmem:[#allocation16 + $0x50] ss:$8 sps:$4 sm:$0xff]  }
 0x601   :  { %v2741_v45 = vpack.c.bf16 %v2705_v34, %v2703_v33  ;;  %v7544_v33 = vld [vmem:[#allocation16 + $0x60] ss:$8 sps:$4 sm:$0xff]   ;;  %v7549_v34 = vld [vmem:[#allocation16 + $0x74] ss:$8 sps:$4 sm:$0xff]  }
 0x602   :  { %v2742_v46 = vpack.c.bf16 %v2706_v9, %v2704_v38  ;;  %v2632_v26 = vpop.f32.mrb[184].mxu0  ;;  %3762 = vmatpush1.bf16.msra.mxu0 %v7538_v28  ;;  %v7547_v38 = vld [vmem:[#allocation16 + $0x70] ss:$8 sps:$4 sm:$0xff]   ;;  %v7552_v9 = vld [vmem:[#allocation16 + $0x84] ss:$8 sps:$4 sm:$0xff]  }
 0x603   :  { %v2633_v47 = vadd.f32 %v2632_v26, %v9199_v40  ;;  %v2634_v48 = vpop.f32.mrb[185].mxu0  ;;  %v7553_v26 = vld [vmem:[#allocation16 + $0x90] ss:$8 sps:$4 sm:$0xff]  }
 0x604   :  { %v2635_v50 = vadd.f32 %v2634_v48, %v9202_v41  ;;  %v2636_v51 = vpop.f32.mrb[186].mxu0  ;;  %3109 = vmatprep.mubr.bf16.mxu1 %v2742_v46  ;;  %v7555_v46 = vld [vmem:[#allocation16 + $0x94] ss:$8 sps:$4 sm:$0xff]  }
 0x605   :  { %v2637_v52 = vadd.f32 %v2636_v51, %v9199_v40  ;;  %v2638_v53 = vpop.f32.mrb[187].mxu0  ;;  %3110 = vmatmul.mubr.bf16.gmra.mrb[180].mxu1 %v2741_v45  ;;  %v2707_v58 = vmax.f32 %v2633_v47, 0.0  ;;  %v7550_v45 = vld [vmem:[#allocation16 + $0x80] ss:$8 sps:$4 sm:$0xff]   ;;  %v7561_v48 = vld [vmem:[#allocation16 + $0xb4] ss:$8 sps:$4 sm:$0xff]  }
 0x606   :  { %v2639_v54 = vadd.f32 %v2638_v53, %v9202_v41  ;;  %v2708_v61 = vmax.f32 %v2635_v50, 0.0  ;;  %v7556_v47 = vld [vmem:[#allocation16 + $0xa0] ss:$8 sps:$4 sm:$0xff]   ;;  %v7559_v50 = vld [vmem:[#allocation16 + $0xb0] ss:$8 sps:$4 sm:$0xff]  }
 0x607   :  { %v2709_v59 = vmax.f32 %v2637_v52, 0.0  ;;  %v7562_v51 = vld [vmem:[#allocation16 + $0xc0] ss:$8 sps:$4 sm:$0xff]   ;;  %v7567_v52 = vld [vmem:[#allocation16 + $0xd4] ss:$8 sps:$4 sm:$0xff]  }
 0x608   :  { %v2710_v62 = vmax.f32 %v2639_v54, 0.0  ;;  %v7565_v53 = vld [vmem:[#allocation16 + $0xd0] ss:$8 sps:$4 sm:$0xff]  }
 0x609   :  { %v2743_v1 = vpack.c.bf16 %v2709_v59, %v2707_v58 }
 0x60a   :  { %v2744_v2 = vpack.c.bf16 %v2710_v62, %v2708_v61  ;;  %v2642_v4 = vpop.f32.mrb[188].mxu0 }
 0x60b   :  { %v2643_v5 = vadd.f32 %v2642_v4, %v9199_v40  ;;  %v2644_v55 = vpop.f32.mrb[189].mxu0 }
 0x60c   :  { %v2645_v57 = vadd.f32 %v2644_v55, %v9202_v41  ;;  %v2646_v7 = vpop.f32.mrb[190].mxu0  ;;  %3119 = vmatprep.mubr.bf16.mxu1 %v2744_v2  ;;  %v7574_v2 = vld [vmem:[#allocation19] ss:$8 sps:$4 sm:$0xff]   ;;  %v7579_v55 = vld [vmem:[#allocation19 + $0x14] ss:$8 sps:$4 sm:$0xff]  }
 0x60d   :  { %v2647_v11 = vadd.f32 %v2646_v7, %v9199_v40  ;;  %v2648_v13 = vpop.f32.mrb[191].mxu0  ;;  %3120 = vmatmul.mubr.bf16.gmra.mrb[184].mxu1 %v2743_v1  ;;  %v2711_v17 = vmax.f32 %v2643_v5, 0.0  ;;  %v7543_v40 = vld [vmem:[#allocation16 + $0x54] ss:$8 sps:$4 sm:$0xff]  }
 0x60e   :  { %v2649_v16 = vadd.f32 %v2648_v13, %v9202_v41  ;;  %v2712_v21 = vmax.f32 %v2645_v57, 0.0  ;;  %3763 = vmatprep.subr.bf16.mxu0 %v7543_v40  ;;  %v7546_v41 = vld [vmem:[#allocation16 + $0x64] ss:$8 sps:$4 sm:$0xff]  }
 0x60f   :  { %v2713_v19 = vmax.f32 %v2647_v11, 0.0  ;;  %3764 = vmatpush1.bf16.msra.mxu0 %v7541_v31 }
 0x610   :  { %v2714_v8 = vmax.f32 %v2649_v16, 0.0  ;;  %3765 = vmatprep.subr.bf16.mxu0 %v7546_v41  ;;  %v7585_v41 = vld [vmem:[#allocation19 + $0x34] ss:$8 sps:$4 sm:$0xff]  }
 0x611   :  { %v2745_v23 = vpack.c.bf16 %v2713_v19, %v2711_v17  ;;  %v7582_v19 = vld [vmem:[#allocation19 + $0x24] ss:$8 sps:$4 sm:$0xff]  }
 0x612   :  { %v2746_v24 = vpack.c.bf16 %v2714_v8, %v2712_v21 }
 0x613   :  { %3766 = vmatpush1.bf16.msra.mxu0 %v7544_v33 }
 0x614   :  { %3129 = vmatprep.mubr.bf16.mxu1 %v2746_v24  ;;  %3767 = vmatprep.subr.bf16.mxu0 %v7549_v34 }
 0x615   :  { %3130 = vmatmul.mubr.bf16.gmra.mrb[188].mxu1 %v2745_v23 }
 0x616   :  { %3216 = vmatprep.mubr.bf16.mxu1 %v8230_v0 }
 0x617   :  { %3768 = vmatpush1.bf16.msra.mxu0 %v7547_v38 }
 0x618   :  { %3769 = vmatprep.subr.bf16.mxu0 %v7552_v9 }
 0x61b   :  { %3770 = vmatpush1.bf16.msra.mxu0 %v7550_v45 }
 0x61c   :  { %3771 = vmatprep.subr.bf16.mxu0 %v7555_v46  ;;  %v7583_v46 = vld [vmem:[#allocation19 + $0x30] ss:$8 sps:$4 sm:$0xff]  }
 0x61d   :  { %6601 = vmatmul.mubr.msk.bf16.vlgmr.msra.gmra.mrb[128].mxu1 %vm430_vm1, %v8635_v12  ;;  %v7558_v12 = vld [vmem:[#allocation16 + $0xa4] ss:$8 sps:$4 sm:$0xff]  }
 0x61e   :  { %3226 = vmatprep.mubr.bf16.mxu1 %v8230_v0 }
 0x61f   :  { %3772 = vmatpush1.bf16.msra.mxu0 %v7553_v26 }
 0x620   :  { %3773 = vmatprep.subr.bf16.mxu0 %v7558_v12 }
 0x623   :  { %3774 = vmatpush1.bf16.msra.mxu0 %v7556_v47  ;;  %v7588_v47 = vld [vmem:[#allocation19 + $0x44] ss:$8 sps:$4 sm:$0xff]  }
 0x624   :  { %3775 = vmatprep.subr.bf16.mxu0 %v7561_v48 }
 0x625   :  { %6602 = vmatmul.mubr.msk.bf16.gmra.mrb[132].mxu1 %vm430_vm1, %v8661_v20  ;;  %v7564_v20 = vld [vmem:[#allocation16 + $0xc4] ss:$8 sps:$4 sm:$0xff]  }
 0x626   :  { %3236 = vmatprep.mubr.bf16.mxu1 %v8230_v0 }
 0x627   :  { %3776 = vmatpush1.bf16.msra.mxu0 %v7559_v50 }
 0x628   :  { %3777 = vmatprep.subr.bf16.mxu0 %v7564_v20 }
 0x62b   :  { %3778 = vmatpush1.bf16.msra.mxu0 %v7562_v51 }
 0x62c   :  { %3779 = vmatprep.subr.bf16.mxu0 %v7567_v52 }
 0x62d   :  { %6603 = vmatmul.mubr.msk.bf16.gmra.mrb[136].mxu1 %vm430_vm1, %v8684_v27  ;;  %v7570_v27 = vld [vmem:[#allocation16 + $0xe4] ss:$8 sps:$4 sm:$0xff]  }
 0x62e   :  { %3246 = vmatprep.mubr.bf16.mxu1 %v8230_v0 }
 0x62f   :  { %3780 = vmatpush1.bf16.msra.mxu0 %v7565_v53  ;;  %v7586_v53 = vld [vmem:[#allocation19 + $0x40] ss:$8 sps:$4 sm:$0xff]  }
 0x630   :  { %3781 = vmatprep.subr.bf16.mxu0 %v7570_v27 }
 0x633   :  { %3782 = vmatpush1.bf16.msra.mxu0 %v7568_v43 }
 0x635   :  { %6604 = vmatmul.mubr.msk.bf16.gmra.mrb[140].mxu1 %vm430_vm1, %v8710_v35  ;;  %v7573_v35 = vld [vmem:[#allocation16 + $0xf4] ss:$8 sps:$4 sm:$0xff]  }
 0x636   :  { %3256 = vmatprep.mubr.bf16.mxu1 %v8230_v0  ;;  %3783 = vmatprep.subr.bf16.mxu0 %v7573_v35  ;;  %v7591_v35 = vld [vmem:[#allocation19 + $0x54] ss:$8 sps:$4 sm:$0xff]  }
 0x63d   :  { %6605 = vmatmul.mubr.msk.bf16.gmra.mrb[144].mxu1 %vm430_vm1, %v8733_v42  ;;  %v7571_v42 = vld [vmem:[#allocation16 + $0xf0] ss:$8 sps:$4 sm:$0xff]  }
 0x63e   :  { %3266 = vmatprep.mubr.bf16.mxu1 %v8230_v0  ;;  %3784 = vmatpush1.bf16.msra.mxu0 %v7571_v42 }
 0x645   :  { %6606 = vmatmul.mubr.msk.bf16.gmra.mrb[148].mxu1 %vm430_vm1, %v8756_v49  ;;  %v7576_v49 = vld [vmem:[#allocation19 + $0x4] ss:$8 sps:$4 sm:$0xff]  }
 0x646   :  { %3276 = vmatprep.mubr.bf16.mxu1 %v8230_v0  ;;  %4246 = vmatprep.subr.bf16.mxu0 %v7576_v49 }
 0x64d   :  { %6607 = vmatmul.mubr.msk.bf16.gmra.mrb[152].mxu1 %vm430_vm1, %v8779_v56  ;;  %v3377_v56 = vld [vmem:[#allocation14] sm:$0x3] }
 0x64e   :  { %3286 = vmatprep.mubr.bf16.mxu1 %v8230_v0 }
 0x655   :  { %6608 = vmatmul.mubr.msk.bf16.gmra.mrb[156].mxu1 %vm430_vm1, %v8793_v60  ;;  %v9319_v60 = vrot.slane %v3377_v56, %v8904_v37 }
 0x656   :  { %3296 = vmatprep.mubr.bf16.mxu1 %v8230_v0 }
 0x65d   :  { %6609 = vmatmul.mubr.msk.bf16.gmra.mrb[160].mxu1 %vm430_vm1, %v8804_v63  ;;  %v9322_v63 = vrot.slane %v3377_v56, %v8910_v39 }
 0x65e   :  { %3306 = vmatprep.mubr.bf16.mxu1 %v8230_v0 }
 0x665   :  { %6610 = vmatmul.mubr.msk.bf16.gmra.mrb[164].mxu1 %vm430_vm1, %v8815_v3 }
 0x666   :  { %3316 = vmatprep.mubr.bf16.mxu1 %v8230_v0 }
 0x66d   :  { %6611 = vmatmul.mubr.msk.bf16.gmra.mrb[168].mxu1 %vm430_vm1, %v8826_v6 }
 0x66e   :  { %3326 = vmatprep.mubr.bf16.mxu1 %v8230_v0 }
 0x675   :  { %6612 = vmatmul.mubr.msk.bf16.gmra.mrb[172].mxu1 %vm430_vm1, %v8840_v10 }
 0x676   :  { %3336 = vmatprep.mubr.bf16.mxu1 %v8230_v0 }
 0x67d   :  { %6613 = vmatmul.mubr.msk.bf16.gmra.mrb[176].mxu1 %vm430_vm1, %v8863_v18 }
 0x67e   :  { %3346 = vmatprep.mubr.bf16.mxu1 %v8230_v0 }
 0x685   :  { %6614 = vmatmul.mubr.msk.bf16.gmra.mrb[180].mxu1 %vm430_vm1, %v8874_v22 }
 0x686   :  { %3356 = vmatprep.mubr.bf16.mxu1 %v8230_v0 }
 0x68d   :  { %6615 = vmatmul.mubr.msk.bf16.gmra.mrb[184].mxu1 %vm430_vm1, %v8885_v25 }
 0x68e   :  { %3366 = vmatprep.mubr.bf16.mxu1 %v8230_v0 }
 0x695   :  { %6616 = vmatmul.mubr.msk.bf16.gmra.mrb[188].mxu1 %vm430_vm1, %v8896_v29 }
 0x6f0   :  { %v3218_v3 = vpop.f32.mrb[128].mxu1 }
 0x6f1   :  { %v3389_v6 = vadd.f32 %v9319_v60, %v3218_v3  ;;  %v3220_v10 = vpop.f32.mrb[129].mxu1 }
 0x6f2   :  { %v3390_v18 = vadd.f32 %v9322_v63, %v3220_v10  ;;  %v3222_v22 = vpop.f32.mrb[130].mxu1  ;;  %v7589_v10 = vld [vmem:[#allocation19 + $0x50] ss:$8 sps:$4 sm:$0xff]  }
 0x6f3   :  { %v3391_v0 = vadd.f32 %v9319_v60, %v3222_v22  ;;  %v3224_v25 = vpop.f32.mrb[131].mxu1  ;;  %v3453_v44 = vmax.f32 %v3389_v6, 0.0 }
 0x6f4   :  { %v3392_v29 = vadd.f32 %v9322_v63, %v3224_v25  ;;  %v3454_v58 = vmax.f32 %v3390_v18, 0.0 }
 0x6f5   :  { %v3455_v54 = vmax.f32 %v3391_v0, 0.0  ;;  %v7594_v0 = vld [vmem:[#allocation19 + $0x64] ss:$8 sps:$4 sm:$0xff]  }
 0x6f6   :  { %v3456_v59 = vmax.f32 %v3392_v29, 0.0 }
 0x6f7   :  { %v3517_v61 = vpack.c.bf16 %v3455_v54, %v3453_v44 }
 0x6f8   :  { %v3518_v62 = vpack.c.bf16 %v3456_v59, %v3454_v58  ;;  %v3228_v1 = vpop.f32.mrb[132].mxu1  ;;  %v7592_v59 = vld [vmem:[#allocation19 + $0x60] ss:$8 sps:$4 sm:$0xff]  }
 0x6f9   :  { %v3393_v4 = vadd.f32 %v9319_v60, %v3228_v1  ;;  %v3230_v5 = vpop.f32.mrb[133].mxu1  ;;  %v7597_v1 = vld [vmem:[#allocation19 + $0x74] ss:$8 sps:$4 sm:$0xff]  }
 0x6fa   :  { %v3394_v57 = vadd.f32 %v9322_v63, %v3230_v5  ;;  %v3232_v7 = vpop.f32.mrb[134].mxu1  ;;  %3785 = vmatprep.mubr.bf16.mxu0 %v3518_v62 }
 0x6fb   :  { %v3395_v11 = vadd.f32 %v9319_v60, %v3232_v7  ;;  %v3234_v13 = vpop.f32.mrb[135].mxu1  ;;  %3786 = vmatmul.mubr.bf16.vlgmr.msra.gmra.mrb[192].mxu0 %v3517_v61  ;;  %v3457_v16 = vmax.f32 %v3393_v4, 0.0  ;;  %v7595_v7 = vld [vmem:[#allocation19 + $0x70] ss:$8 sps:$4 sm:$0xff]  }
 0x6fc   :  { %v3396_v14 = vadd.f32 %v9322_v63, %v3234_v13  ;;  %4247 = vmatpush1.bf16.msra.mxu0 %v7574_v2  ;;  %v3458_v21 = vmax.f32 %v3394_v57, 0.0 }
 0x6fd   :  { %v3459_v17 = vmax.f32 %v3395_v11, 0.0  ;;  %4248 = vmatprep.subr.bf16.mxu0 %v7579_v55 }
 0x6fe   :  { %v3460_v8 = vmax.f32 %v3396_v14, 0.0  ;;  %v7600_v14 = vld [vmem:[#allocation19 + $0x84] ss:$8 sps:$4 sm:$0xff]  }
 0x6ff   :  { %v3519_v23 = vpack.c.bf16 %v3459_v17, %v3457_v16 }
 0x700   :  { %v3520_v24 = vpack.c.bf16 %v3460_v8, %v3458_v21  ;;  %v3238_v28 = vpop.f32.mrb[136].mxu1  ;;  %4249 = vmatpush1.bf16.msra.mxu0 %v7577_v15  ;;  %v7598_v8 = vld [vmem:[#allocation19 + $0x80] ss:$8 sps:$4 sm:$0xff]  }
 0x701   :  { %v3397_v40 = vadd.f32 %v9319_v60, %v3238_v28  ;;  %v3240_v31 = vpop.f32.mrb[137].mxu1  ;;  %4250 = vmatprep.subr.bf16.mxu0 %v7582_v19  ;;  %v7603_v28 = vld [vmem:[#allocation19 + $0x94] ss:$8 sps:$4 sm:$0xff]  }
 0x702   :  { %v3398_v33 = vadd.f32 %v9322_v63, %v3240_v31  ;;  %v3242_v34 = vpop.f32.mrb[138].mxu1  ;;  %3795 = vmatprep.mubr.bf16.mxu0 %v3520_v24 }
 0x703   :  { %v3399_v38 = vadd.f32 %v9319_v60, %v3242_v34  ;;  %v3244_v9 = vpop.f32.mrb[139].mxu1  ;;  %3796 = vmatmul.mubr.bf16.gmra.mrb[196].mxu0 %v3519_v23  ;;  %v3461_v26 = vmax.f32 %v3397_v40, 0.0  ;;  %v7601_v34 = vld [vmem:[#allocation19 + $0x90] ss:$8 sps:$4 sm:$0xff]  }
 0x704   :  { %v3400_v45 = vadd.f32 %v9322_v63, %v3244_v9  ;;  %4251 = vmatpush1.bf16.msra.mxu0 %v7580_v30  ;;  %v3462_v48 = vmax.f32 %v3398_v33, 0.0 }
 0x705   :  { %v3463_v12 = vmax.f32 %v3399_v38, 0.0  ;;  %4252 = vmatprep.subr.bf16.mxu0 %v7585_v41 }
 0x706   :  { %v3464_v50 = vmax.f32 %v3400_v45, 0.0  ;;  %v7606_v45 = vld [vmem:[#allocation19 + $0xa4] ss:$8 sps:$4 sm:$0xff]  }
 0x707   :  { %v3521_v20 = vpack.c.bf16 %v3463_v12, %v3461_v26 }
 0x708   :  { %v3522_v51 = vpack.c.bf16 %v3464_v50, %v3462_v48  ;;  %v3248_v52 = vpop.f32.mrb[140].mxu1  ;;  %4253 = vmatpush1.bf16.msra.mxu0 %v7583_v46  ;;  %v7604_v50 = vld [vmem:[#allocation19 + $0xa0] ss:$8 sps:$4 sm:$0xff]  }
 0x709   :  { %v3401_v27 = vadd.f32 %v9319_v60, %v3248_v52  ;;  %v3250_v43 = vpop.f32.mrb[141].mxu1  ;;  %4254 = vmatprep.subr.bf16.mxu0 %v7588_v47  ;;  %v7609_v52 = vld [vmem:[#allocation19 + $0xb4] ss:$8 sps:$4 sm:$0xff]  }
 0x70a   :  { %v3402_v42 = vadd.f32 %v9322_v63, %v3250_v43  ;;  %v3252_v49 = vpop.f32.mrb[142].mxu1  ;;  %3805 = vmatprep.mubr.bf16.mxu0 %v3522_v51 }
 0x70b   :  { %v3403_v56 = vadd.f32 %v9319_v60, %v3252_v49  ;;  %v3254_v3 = vpop.f32.mrb[143].mxu1  ;;  %3806 = vmatmul.mubr.bf16.gmra.mrb[200].mxu0 %v3521_v20  ;;  %v3465_v18 = vmax.f32 %v3401_v27, 0.0  ;;  %v7607_v49 = vld [vmem:[#allocation19 + $0xb0] ss:$8 sps:$4 sm:$0xff]  }
 0x70c   :  { %v3404_v6 = vadd.f32 %v9322_v63, %v3254_v3  ;;  %4255 = vmatpush1.bf16.msra.mxu0 %v7586_v53  ;;  %v3466_v25 = vmax.f32 %v3402_v42, 0.0 }
 0x70d   :  { %v3467_v22 = vmax.f32 %v3403_v56, 0.0  ;;  %4256 = vmatprep.subr.bf16.mxu0 %v7591_v35 }
 0x70e   :  { %v3468_v29 = vmax.f32 %v3404_v6, 0.0  ;;  %v7612_v6 = vld [vmem:[#allocation19 + $0xc4] ss:$8 sps:$4 sm:$0xff]  }
 0x70f   :  { %v3523_v44 = vpack.c.bf16 %v3467_v22, %v3465_v18 }
 0x710   :  { %v3524_v54 = vpack.c.bf16 %v3468_v29, %v3466_v25  ;;  %v3258_v58 = vpop.f32.mrb[144].mxu1  ;;  %4257 = vmatpush1.bf16.msra.mxu0 %v7589_v10  ;;  %v7610_v29 = vld [vmem:[#allocation19 + $0xc0] ss:$8 sps:$4 sm:$0xff]  }
 0x711   :  { %v3405_v61 = vadd.f32 %v9319_v60, %v3258_v58  ;;  %v3260_v62 = vpop.f32.mrb[145].mxu1  ;;  %4258 = vmatprep.subr.bf16.mxu0 %v7594_v0  ;;  %v7615_v58 = vld [vmem:[#allocation19 + $0xd4] ss:$8 sps:$4 sm:$0xff]  }
 0x712   :  { %v3406_v2 = vadd.f32 %v9322_v63, %v3260_v62  ;;  %v3262_v4 = vpop.f32.mrb[146].mxu1  ;;  %3815 = vmatprep.mubr.bf16.mxu0 %v3524_v54 }
 0x713   :  { %v3407_v5 = vadd.f32 %v9319_v60, %v3262_v4  ;;  %v3264_v55 = vpop.f32.mrb[147].mxu1  ;;  %3816 = vmatmul.mubr.bf16.gmra.mrb[204].mxu0 %v3523_v44  ;;  %v3469_v11 = vmax.f32 %v3405_v61, 0.0  ;;  %v7613_v4 = vld [vmem:[#allocation19 + $0xd0] ss:$8 sps:$4 sm:$0xff]  }
 0x714   :  { %v3408_v57 = vadd.f32 %v9322_v63, %v3264_v55  ;;  %4259 = vmatpush1.bf16.msra.mxu0 %v7592_v59  ;;  %v3470_v15 = vmax.f32 %v3406_v2, 0.0 }
 0x715   :  { %v3471_v13 = vmax.f32 %v3407_v5, 0.0  ;;  %4260 = vmatprep.subr.bf16.mxu0 %v7597_v1 }
 0x716   :  { %v3472_v16 = vmax.f32 %v3408_v57, 0.0  ;;  %v7618_v57 = vld [vmem:[#allocation19 + $0xe4] ss:$8 sps:$4 sm:$0xff]  }
 0x717   :  { %v3525_v17 = vpack.c.bf16 %v3471_v13, %v3469_v11 }
 0x718   :  { %v3526_v19 = vpack.c.bf16 %v3472_v16, %v3470_v15  ;;  %v3268_v21 = vpop.f32.mrb[148].mxu1  ;;  %4261 = vmatpush1.bf16.msra.mxu0 %v7595_v7  ;;  %v7616_v16 = vld [vmem:[#allocation19 + $0xe0] ss:$8 sps:$4 sm:$0xff]  }
 0x719   :  { %v3409_v23 = vadd.f32 %v9319_v60, %v3268_v21  ;;  %v3270_v24 = vpop.f32.mrb[149].mxu1  ;;  %4262 = vmatprep.subr.bf16.mxu0 %v7600_v14 }
 0x71a   :  { %v3410_v30 = vadd.f32 %v9322_v63, %v3270_v24  ;;  %v3272_v40 = vpop.f32.mrb[150].mxu1  ;;  %3825 = vmatprep.mubr.bf16.mxu0 %v3526_v19 }
 0x71b   :  { %v3411_v31 = vadd.f32 %v9319_v60, %v3272_v40  ;;  %v3274_v41 = vpop.f32.mrb[151].mxu1  ;;  %3826 = vmatmul.mubr.bf16.gmra.mrb[208].mxu0 %v3525_v17  ;;  %v3473_v38 = vmax.f32 %v3409_v23, 0.0 }
 0x71c   :  { %v3412_v33 = vadd.f32 %v9322_v63, %v3274_v41  ;;  %4263 = vmatpush1.bf16.msra.mxu0 %v7598_v8  ;;  %v3474_v46 = vmax.f32 %v3410_v30, 0.0 }
 0x71d   :  { %v3475_v9 = vmax.f32 %v3411_v31, 0.0  ;;  %4264 = vmatprep.subr.bf16.mxu0 %v7603_v28 }
 0x71e   :  { %v3476_v26 = vmax.f32 %v3412_v33, 0.0 }
 0x71f   :  { %v3527_v12 = vpack.c.bf16 %v3475_v9, %v3473_v38 }
 0x720   :  { %v3528_v47 = vpack.c.bf16 %v3476_v26, %v3474_v46  ;;  %v3278_v48 = vpop.f32.mrb[152].mxu1  ;;  %4265 = vmatpush1.bf16.msra.mxu0 %v7601_v34 }
 0x721   :  { %v3413_v20 = vadd.f32 %v9319_v60, %v3278_v48  ;;  %v3280_v51 = vpop.f32.mrb[153].mxu1  ;;  %4266 = vmatprep.subr.bf16.mxu0 %v7606_v45 }
 0x722   :  { %v3414_v53 = vadd.f32 %v9322_v63, %v3280_v51  ;;  %v3282_v27 = vpop.f32.mrb[154].mxu1  ;;  %3835 = vmatprep.mubr.bf16.mxu0 %v3528_v47 }
 0x723   :  { %v3415_v43 = vadd.f32 %v9319_v60, %v3282_v27  ;;  %v3284_v35 = vpop.f32.mrb[155].mxu1  ;;  %3836 = vmatmul.mubr.bf16.gmra.mrb[212].mxu0 %v3527_v12  ;;  %v3477_v56 = vmax.f32 %v3413_v20, 0.0 }
 0x724   :  { %v3416_v42 = vadd.f32 %v9322_v63, %v3284_v35  ;;  %4267 = vmatpush1.bf16.msra.mxu0 %v7604_v50  ;;  %v3478_v10 = vmax.f32 %v3414_v53, 0.0 }
 0x725   :  { %v3479_v3 = vmax.f32 %v3415_v43, 0.0  ;;  %4268 = vmatprep.subr.bf16.mxu0 %v7609_v52 }
 0x726   :  { %v3480_v18 = vmax.f32 %v3416_v42, 0.0 }
 0x727   :  { %v3529_v22 = vpack.c.bf16 %v3479_v3, %v3477_v56 }
 0x728   :  { %v3530_v0 = vpack.c.bf16 %v3480_v18, %v3478_v10  ;;  %v3288_v25 = vpop.f32.mrb[156].mxu1  ;;  %4269 = vmatpush1.bf16.msra.mxu0 %v7607_v49 }
 0x729   :  { %v3417_v44 = vadd.f32 %v9319_v60, %v3288_v25  ;;  %v3290_v54 = vpop.f32.mrb[157].mxu1  ;;  %4270 = vmatprep.subr.bf16.mxu0 %v7612_v6 }
 0x72a   :  { %v3418_v59 = vadd.f32 %v9322_v63, %v3290_v54  ;;  %v3292_v61 = vpop.f32.mrb[158].mxu1  ;;  %3845 = vmatprep.mubr.bf16.mxu0 %v3530_v0 }
 0x72b   :  { %v3419_v62 = vadd.f32 %v9319_v60, %v3292_v61  ;;  %v3294_v1 = vpop.f32.mrb[159].mxu1  ;;  %3846 = vmatmul.mubr.bf16.gmra.mrb[216].mxu0 %v3529_v22  ;;  %v3481_v5 = vmax.f32 %v3417_v44, 0.0 }
 0x72c   :  { %v3420_v2 = vadd.f32 %v9322_v63, %v3294_v1  ;;  %4271 = vmatpush1.bf16.msra.mxu0 %v7610_v29  ;;  %v3482_v7 = vmax.f32 %v3418_v59, 0.0 }
 0x72d   :  { %v3483_v55 = vmax.f32 %v3419_v62, 0.0  ;;  %4272 = vmatprep.subr.bf16.mxu0 %v7615_v58 }
 0x72e   :  { %v3484_v11 = vmax.f32 %v3420_v2, 0.0 }
 0x72f   :  { %v3531_v13 = vpack.c.bf16 %v3483_v55, %v3481_v5 }
 0x730   :  { %v3532_v14 = vpack.c.bf16 %v3484_v11, %v3482_v7  ;;  %v3298_v15 = vpop.f32.mrb[160].mxu1  ;;  %4273 = vmatpush1.bf16.msra.mxu0 %v7613_v4 }
 0x731   :  { %v3421_v17 = vadd.f32 %v9319_v60, %v3298_v15  ;;  %v3300_v19 = vpop.f32.mrb[161].mxu1  ;;  %4274 = vmatprep.subr.bf16.mxu0 %v7618_v57 }
 0x732   :  { %v3422_v21 = vadd.f32 %v9322_v63, %v3300_v19  ;;  %v3302_v8 = vpop.f32.mrb[162].mxu1  ;;  %3855 = vmatprep.mubr.bf16.mxu0 %v3532_v14 }
 0x733   :  { %v3423_v23 = vadd.f32 %v9319_v60, %v3302_v8  ;;  %v3304_v24 = vpop.f32.mrb[163].mxu1  ;;  %3856 = vmatmul.mubr.bf16.gmra.mrb[220].mxu0 %v3531_v13  ;;  %v3485_v30 = vmax.f32 %v3421_v17, 0.0 }
 0x734   :  { %v3424_v28 = vadd.f32 %v9322_v63, %v3304_v24  ;;  %4275 = vmatpush1.bf16.msra.mxu0 %v7616_v16  ;;  %v3486_v31 = vmax.f32 %v3422_v21, 0.0 }
 0x735   :  { %v3487_v40 = vmax.f32 %v3423_v23, 0.0  ;;  %v7621_v23 = vld [vmem:[#allocation19 + $0xf4] ss:$8 sps:$4 sm:$0xff]  }
 0x736   :  { %v3488_v41 = vmax.f32 %v3424_v28, 0.0  ;;  %v7619_v28 = vld [vmem:[#allocation19 + $0xf0] ss:$8 sps:$4 sm:$0xff]   ;;  %4276 = vmatprep.subr.bf16.mxu0 %v7621_v23 }
 0x737   :  { %v3533_v33 = vpack.c.bf16 %v3487_v40, %v3485_v30 }
 0x738   :  { %v3534_v34 = vpack.c.bf16 %v3488_v41, %v3486_v31  ;;  %v3308_v38 = vpop.f32.mrb[164].mxu1  ;;  %4277 = vmatpush1.bf16.msra.mxu0 %v7619_v28  ;;  %v7633_v28 = vld [vmem:[%s10357_s19 + $0x4c] ss:$12 sps:$4 sm:$0xff]  }
 0x739   :  { %v3425_v9 = vadd.f32 %v9319_v60, %v3308_v38  ;;  %v3310_v45 = vpop.f32.mrb[165].mxu1 }
 0x73a   :  { %v3426_v46 = vadd.f32 %v9322_v63, %v3310_v45  ;;  %v3312_v26 = vpop.f32.mrb[166].mxu1  ;;  %3865 = vmatprep.mubr.bf16.mxu0 %v3534_v34 }
 0x73b   :  { %v3427_v12 = vadd.f32 %v9319_v60, %v3312_v26  ;;  %v3314_v47 = vpop.f32.mrb[167].mxu1  ;;  %3866 = vmatmul.mubr.bf16.gmra.mrb[224].mxu0 %v3533_v33  ;;  %v3489_v50 = vmax.f32 %v3425_v9, 0.0 }
 0x73c   :  { %v3428_v48 = vadd.f32 %v9322_v63, %v3314_v47  ;;  %v3490_v51 = vmax.f32 %v3426_v46, 0.0 }
 0x73d   :  { %v3491_v20 = vmax.f32 %v3427_v12, 0.0 }
 0x73e   :  { %v3492_v52 = vmax.f32 %v3428_v48, 0.0 }
 0x73f   :  { %v3535_v53 = vpack.c.bf16 %v3491_v20, %v3489_v50 }
 0x740   :  { %v3536_v27 = vpack.c.bf16 %v3492_v52, %v3490_v51  ;;  %v3318_v43 = vpop.f32.mrb[168].mxu1 }
 0x741   :  { %v3429_v35 = vadd.f32 %v9319_v60, %v3318_v43  ;;  %v3320_v42 = vpop.f32.mrb[169].mxu1 }
 0x742   :  { %v3430_v49 = vadd.f32 %v9322_v63, %v3320_v42  ;;  %v3322_v56 = vpop.f32.mrb[170].mxu1  ;;  %3875 = vmatprep.mubr.bf16.mxu0 %v3536_v27 }
 0x743   :  { %v3431_v3 = vadd.f32 %v9319_v60, %v3322_v56  ;;  %v3324_v6 = vpop.f32.mrb[171].mxu1  ;;  %3876 = vmatmul.mubr.bf16.gmra.mrb[228].mxu0 %v3535_v53  ;;  %v3493_v18 = vmax.f32 %v3429_v35, 0.0 }
 0x744   :  { %v3432_v10 = vadd.f32 %v9322_v63, %v3324_v6  ;;  %v3494_v0 = vmax.f32 %v3430_v49, 0.0 }
 0x745   :  { %v3495_v22 = vmax.f32 %v3431_v3, 0.0 }
 0x746   :  { %v3496_v25 = vmax.f32 %v3432_v10, 0.0 }
 0x747   :  { %v3537_v29 = vpack.c.bf16 %v3495_v22, %v3493_v18 }
 0x748   :  { %v3538_v44 = vpack.c.bf16 %v3496_v25, %v3494_v0  ;;  %v3328_v54 = vpop.f32.mrb[172].mxu1 }
 0x749   :  { %v3433_v58 = vadd.f32 %v9319_v60, %v3328_v54  ;;  %v3330_v59 = vpop.f32.mrb[173].mxu1 }
 0x74a   :  { %v3434_v61 = vadd.f32 %v9322_v63, %v3330_v59  ;;  %v3332_v62 = vpop.f32.mrb[174].mxu1  ;;  %3885 = vmatprep.mubr.bf16.mxu0 %v3538_v44 }
 0x74b   :  { %v3435_v1 = vadd.f32 %v9319_v60, %v3332_v62  ;;  %v3334_v2 = vpop.f32.mrb[175].mxu1  ;;  %3886 = vmatmul.mubr.bf16.gmra.mrb[232].mxu0 %v3537_v29  ;;  %v3497_v5 = vmax.f32 %v3433_v58, 0.0 }
 0x74c   :  { %v3436_v4 = vadd.f32 %v9322_v63, %v3334_v2  ;;  %v3498_v57 = vmax.f32 %v3434_v61, 0.0 }
 0x74d   :  { %v3499_v55 = vmax.f32 %v3435_v1, 0.0 }
 0x74e   :  { %v3500_v7 = vmax.f32 %v3436_v4, 0.0 }
 0x74f   :  { %v3539_v11 = vpack.c.bf16 %v3499_v55, %v3497_v5 }
 0x750   :  { %v3540_v13 = vpack.c.bf16 %v3500_v7, %v3498_v57  ;;  %v3338_v14 = vpop.f32.mrb[176].mxu1 }
 0x751   :  { %v3437_v15 = vadd.f32 %v9319_v60, %v3338_v14  ;;  %v3340_v16 = vpop.f32.mrb[177].mxu1  ;;  %v7622_v14 = vld [vmem:[%s10357_s19] ss:$12 sps:$4 sm:$0xff]  }
 0x752   :  { %v3438_v17 = vadd.f32 %v9322_v63, %v3340_v16  ;;  %v3342_v19 = vpop.f32.mrb[178].mxu1  ;;  %3895 = vmatprep.mubr.bf16.mxu0 %v3540_v13  ;;  %v3581_v16 = vld [vmem:[#allocation17] sm:$0x3] }
 0x753   :  { %v3439_v21 = vadd.f32 %v9319_v60, %v3342_v19  ;;  %v3344_v8 = vpop.f32.mrb[179].mxu1  ;;  %3896 = vmatmul.mubr.bf16.gmra.mrb[236].mxu0 %v3539_v11  ;;  %v3501_v30 = vmax.f32 %v3437_v15, 0.0  ;;  %v7627_v15 = vld [vmem:[%s10357_s19 + $0x1c] ss:$12 sps:$4 sm:$0xff]   ;;  %v7630_v19 = vld [vmem:[%s10357_s19 + $0x34] ss:$12 sps:$4 sm:$0xff]  }
 0x754   :  { %v3440_v24 = vadd.f32 %v9322_v63, %v3344_v8  ;;  %v3502_v31 = vmax.f32 %v3438_v17, 0.0  ;;  %v7628_v17 = vld [vmem:[%s10357_s19 + $0x30] ss:$12 sps:$4 sm:$0xff]   ;;  %v9410_v8 = vrot.slane %v3581_v16, %v8910_v39 }
 0x755   :  { %v3503_v40 = vmax.f32 %v3439_v21, 0.0  ;;  %v9407_v21 = vrot.slane %v3581_v16, %v8904_v37  ;;  %v7651_v16 = vld [vmem:[%s10357_s19 + $0xdc] ss:$12 sps:$4 sm:$0xff]  }
 0x756   :  { %v3504_v41 = vmax.f32 %v3440_v24, 0.0  ;;  %v7631_v24 = vld [vmem:[%s10357_s19 + $0x48] ss:$12 sps:$4 sm:$0xff]  }
 0x757   :  { %v3541_v33 = vpack.c.bf16 %v3503_v40, %v3501_v30 }
 0x758   :  { %v3542_v34 = vpack.c.bf16 %v3504_v41, %v3502_v31  ;;  %v3348_v38 = vpop.f32.mrb[180].mxu1 }
 0x759   :  { %v3441_v9 = vadd.f32 %v9319_v60, %v3348_v38  ;;  %v3350_v45 = vpop.f32.mrb[181].mxu1  ;;  %v7634_v38 = vld [vmem:[%s10357_s19 + $0x60] ss:$12 sps:$4 sm:$0xff]  }
 0x75a   :  { %v3442_v46 = vadd.f32 %v9322_v63, %v3350_v45  ;;  %v3352_v26 = vpop.f32.mrb[182].mxu1  ;;  %3905 = vmatprep.mubr.bf16.mxu0 %v3542_v34 }
 0x75b   :  { %v3443_v12 = vadd.f32 %v9319_v60, %v3352_v26  ;;  %v3354_v47 = vpop.f32.mrb[183].mxu1  ;;  %3906 = vmatmul.mubr.bf16.gmra.mrb[240].mxu0 %v3541_v33  ;;  %v3505_v50 = vmax.f32 %v3441_v9, 0.0  ;;  %v7636_v9 = vld [vmem:[%s10357_s19 + $0x64] ss:$12 sps:$4 sm:$0xff]  }
 0x75c   :  { %v3444_v48 = vadd.f32 %v9322_v63, %v3354_v47  ;;  %v3506_v51 = vmax.f32 %v3442_v46, 0.0  ;;  %v7639_v46 = vld [vmem:[%s10357_s19 + $0x7c] ss:$12 sps:$4 sm:$0xff]  }
 0x75d   :  { %v3507_v20 = vmax.f32 %v3443_v12, 0.0 }
 0x75e   :  { %v3508_v52 = vmax.f32 %v3444_v48, 0.0 }
 0x75f   :  { %v3543_v53 = vpack.c.bf16 %v3507_v20, %v3505_v50  ;;  %v7637_v20 = vld [vmem:[%s10357_s19 + $0x78] ss:$12 sps:$4 sm:$0xff]  }
 0x760   :  { %v3544_v27 = vpack.c.bf16 %v3508_v52, %v3506_v51  ;;  %v3358_v43 = vpop.f32.mrb[184].mxu1 }
 0x761   :  { %v3445_v35 = vadd.f32 %v9319_v60, %v3358_v43  ;;  %v3360_v42 = vpop.f32.mrb[185].mxu1 }
 0x762   :  { %v3446_v49 = vadd.f32 %v9322_v63, %v3360_v42  ;;  %v3362_v56 = vpop.f32.mrb[186].mxu1  ;;  %3915 = vmatprep.mubr.bf16.mxu0 %v3544_v27 }
 0x763   :  { %v3447_v3 = vadd.f32 %v9319_v60, %v3362_v56  ;;  %v3364_v6 = vpop.f32.mrb[187].mxu1  ;;  %3916 = vmatmul.mubr.bf16.gmra.mrb[244].mxu0 %v3543_v53  ;;  %v3509_v18 = vmax.f32 %v3445_v35, 0.0  ;;  %v7642_v53 = vld [vmem:[%s10357_s19 + $0x94] ss:$12 sps:$4 sm:$0xff]  }
 0x764   :  { %v3448_v10 = vadd.f32 %v9322_v63, %v3364_v6  ;;  %v3510_v0 = vmax.f32 %v3446_v49, 0.0  ;;  %v9446_v6 = vld [vmem:[%s10357_s19 + $0xc8] ss:$12 sps:$4 sm:$0xff]  }
 0x765   :  { %v3511_v22 = vmax.f32 %v3447_v3, 0.0  ;;  %v7640_v3 = vld [vmem:[%s10357_s19 + $0x90] ss:$12 sps:$4 sm:$0xff]   ;;  %6805 = vmatprep.subr.bf16.mxu0 %v9446_v6 }
 0x766   :  { %v3512_v25 = vmax.f32 %v3448_v10, 0.0 }
 0x767   :  { %v3545_v29 = vpack.c.bf16 %v3511_v22, %v3509_v18  ;;  %v7645_v18 = vld [vmem:[%s10357_s19 + $0xac] ss:$12 sps:$4 sm:$0xff]   ;;  %v9455_v22 = vld [vmem:[%s10357_s19 + $0x8] ss:$12 sps:$4 sm:$0xff]  }
 0x768   :  { %v3546_v44 = vpack.c.bf16 %v3512_v25, %v3510_v0  ;;  %v3368_v54 = vpop.f32.mrb[188].mxu1  ;;  %v9460_v0 = vld [vmem:[%s10357_s19 + $0xe0] ss:$12 sps:$4 sm:$0xff]  }
 0x769   :  { %v3449_v58 = vadd.f32 %v9319_v60, %v3368_v54  ;;  %v3370_v59 = vpop.f32.mrb[189].mxu1 }
 0x76a   :  { %v3450_v61 = vadd.f32 %v9322_v63, %v3370_v59  ;;  %v3372_v62 = vpop.f32.mrb[190].mxu1  ;;  %3925 = vmatprep.mubr.bf16.mxu0 %v3546_v44 }
 0x76b   :  { %v3451_v1 = vadd.f32 %v9319_v60, %v3372_v62  ;;  %v3374_v2 = vpop.f32.mrb[191].mxu1  ;;  %3926 = vmatmul.mubr.bf16.gmra.mrb[248].mxu0 %v3545_v29  ;;  %v3513_v5 = vmax.f32 %v3449_v58, 0.0  ;;  %v7624_v60 = vld [vmem:[%s10357_s19 + $0x4] ss:$12 sps:$4 sm:$0xff]   ;;  %v9467_v58 = vld [vmem:[%s10357_s19 + $0x20] ss:$12 sps:$4 sm:$0xff]  }
 0x76c   :  { %v3452_v4 = vadd.f32 %v9322_v63, %v3374_v2  ;;  %v3514_v57 = vmax.f32 %v3450_v61, 0.0  ;;  %4872 = vmatprep.subr.bf16.mxu1 %v7624_v60  ;;  %v7625_v63 = vld [vmem:[%s10357_s19 + $0x18] ss:$12 sps:$4 sm:$0xff]   ;;  %v7643_v61 = vld [vmem:[%s10357_s19 + $0xa8] ss:$12 sps:$4 sm:$0xff]  }
 0x76d   :  { %v3515_v55 = vmax.f32 %v3451_v1, 0.0  ;;  %4873 = vmatpush1.bf16.msra.mxu1 %v7622_v14  ;;  %v7648_v2 = vld [vmem:[%s10357_s19 + $0xc4] ss:$12 sps:$4 sm:$0xff]   ;;  %v7646_v60 = vld [vmem:[%s10357_s19 + $0xc0] ss:$12 sps:$4 sm:$0xff]  }
 0x76e   :  { %v3516_v7 = vmax.f32 %v3452_v4, 0.0  ;;  %4874 = vmatprep.subr.bf16.mxu1 %v7627_v15  ;;  %v9479_v4 = vld [vmem:[%s10357_s19 + $0xf8] ss:$12 sps:$4 sm:$0xff]  }
 0x76f   :  { %v3547_v11 = vpack.c.bf16 %v3515_v55, %v3513_v5 }
 0x770   :  { %v3548_v13 = vpack.c.bf16 %v3516_v7, %v3514_v57 }
 0x771   :  { %4875 = vmatpush1.bf16.msra.mxu1 %v7625_v63  ;;  %v9496_v63 = vld [vmem:[%s10357_s19 + $0x110] ss:$12 sps:$4 sm:$0xff]  }
 0x772   :  { %3935 = vmatprep.mubr.bf16.mxu0 %v3548_v13  ;;  %4876 = vmatprep.subr.bf16.mxu1 %v7630_v19 }
 0x773   :  { %3936 = vmatmul.mubr.bf16.gmra.mrb[252].mxu0 %v3547_v11  ;;  %v9487_v11 = vld [vmem:[%s10357_s19 + $0x38] ss:$12 sps:$4 sm:$0xff]  }
 0x775   :  { %4877 = vmatpush1.bf16.msra.mxu1 %v7628_v17 }
 0x776   :  { %4878 = vmatprep.subr.bf16.mxu1 %v7633_v28  ;;  %v9507_v28 = vld [vmem:[%s10357_s19 + $0x50] ss:$12 sps:$4 sm:$0xff]  }
 0x779   :  { %4879 = vmatpush1.bf16.msra.mxu1 %v7631_v24 }
 0x77a   :  { %4880 = vmatprep.subr.bf16.mxu1 %v7636_v9 }
 0x77d   :  { %4881 = vmatpush1.bf16.msra.mxu1 %v7634_v38 }
 0x77e   :  { %4882 = vmatprep.subr.bf16.mxu1 %v7639_v46 }
 0x781   :  { %4883 = vmatpush1.bf16.msra.mxu1 %v7637_v20 }
 0x782   :  { %4884 = vmatprep.subr.bf16.mxu1 %v7642_v53 }
 0x785   :  { %4885 = vmatpush1.bf16.msra.mxu1 %v7640_v3  ;;  %v7660_v3 = vld [vmem:[%s10357_s19 + $0x124] ss:$12 sps:$4 sm:$0xff]  }
 0x786   :  { %4886 = vmatprep.subr.bf16.mxu1 %v7645_v18 }
 0x789   :  { %4887 = vmatpush1.bf16.msra.mxu1 %v7643_v61 }
 0x78a   :  { %4888 = vmatprep.subr.bf16.mxu1 %v7648_v2 }
 0x78d   :  { %4889 = vmatpush1.bf16.msra.mxu1 %v7646_v60  ;;  %v7674_v60 = vld [vmem:[%s10357_s19 + $0x154] ss:$12 sps:$4 sm:$0xff]  }
 0x78e   :  { %4890 = vmatprep.subr.bf16.mxu1 %v7651_v16 }
 0x7ce   :  { %v3787_v23 = vpop.f32.mrb[192].mxu0 }
 0x7cf   :  { %v3788_v30 = vadd.f32 %v3787_v23, %v9407_v21  ;;  %v3789_v40 = vpop.f32.mrb[193].mxu0 }
 0x7d0   :  { %v3790_v31 = vadd.f32 %v3789_v40, %v9410_v8  ;;  %v3791_v41 = vpop.f32.mrb[194].mxu0  ;;  %v7649_v40 = vld [vmem:[%s10357_s19 + $0xd8] ss:$12 sps:$4 sm:$0xff]  }
 0x7d1   :  { %v3792_v33 = vadd.f32 %v3791_v41, %v9407_v21  ;;  %v3793_v34 = vpop.f32.mrb[195].mxu0  ;;  %v3946_v26 = vmax.f32 %v3788_v30, 0.0  ;;  %4891 = vmatpush1.bf16.msra.mxu1 %v7649_v40 }
 0x7d2   :  { %v3794_v45 = vadd.f32 %v3793_v34, %v9410_v8  ;;  %v3947_v47 = vmax.f32 %v3790_v31, 0.0  ;;  %v9519_v34 = vld [vmem:[%s10357_s19 + $0x128] ss:$12 sps:$4 sm:$0xff]  }
 0x7d3   :  { %v3948_v12 = vmax.f32 %v3792_v33, 0.0  ;;  %v7654_v33 = vld [vmem:[%s10357_s19 + $0xf4] ss:$12 sps:$4 sm:$0xff]  }
 0x7d4   :  { %v3949_v48 = vmax.f32 %v3794_v45, 0.0  ;;  %4892 = vmatprep.subr.bf16.mxu1 %v7654_v33 }
 0x7d5   :  { %v4010_v50 = vpack.c.bf16 %v3948_v12, %v3946_v26  ;;  %v9527_v26 = vld [vmem:[%s10357_s19 + $0x68] ss:$12 sps:$4 sm:$0xff]  }
 0x7d6   :  { %v4011_v51 = vpack.c.bf16 %v3949_v48, %v3947_v47  ;;  %v3797_v52 = vpop.f32.mrb[196].mxu0  ;;  %v7652_v48 = vld [vmem:[%s10357_s19 + $0xf0] ss:$12 sps:$4 sm:$0xff]  }
 0x7d7   :  { %v3798_v27 = vadd.f32 %v3797_v52, %v9407_v21  ;;  %v3799_v43 = vpop.f32.mrb[197].mxu0  ;;  %4893 = vmatpush1.bf16.msra.mxu1 %v7652_v48 }
 0x7d8   :  { %v3800_v35 = vadd.f32 %v3799_v43, %v9410_v8  ;;  %v3801_v42 = vpop.f32.mrb[198].mxu0  ;;  %4278 = vmatprep.mubr.bf16.mxu0 %v4011_v51  ;;  %v7657_v51 = vld [vmem:[%s10357_s19 + $0x10c] ss:$12 sps:$4 sm:$0xff]  }
 0x7d9   :  { %v3802_v49 = vadd.f32 %v3801_v42, %v9407_v21  ;;  %v3803_v56 = vpop.f32.mrb[199].mxu0  ;;  %4279 = vmatmul.mubr.bf16.vlgmr.msra.gmra.mrb[0].mxu0 %v4010_v50  ;;  %v3950_v25 = vmax.f32 %v3798_v27, 0.0  ;;  %v9536_v50 = vld [vmem:[%s10357_s19 + $0x140] ss:$12 sps:$4 sm:$0xff]   ;;  %v7655_v42 = vld [vmem:[%s10357_s19 + $0x108] ss:$12 sps:$4 sm:$0xff]   ;;  %4894 = vmatprep.subr.bf16.mxu1 %v7657_v51 }
 0x7da   :  { %v3804_v10 = vadd.f32 %v3803_v56, %v9410_v8  ;;  %v3951_v44 = vmax.f32 %v3800_v35, 0.0  ;;  %6806 = vmatpush3.bf16.msra.mxu0 %v9455_v22 }
 0x7db   :  { %v3952_v29 = vmax.f32 %v3802_v49, 0.0  ;;  %6807 = vmatprep.subr.bf16.mxu0 %v9460_v0  ;;  %4895 = vmatpush1.bf16.msra.mxu1 %v7655_v42 }
 0x7dc   :  { %v3953_v54 = vmax.f32 %v3804_v10, 0.0  ;;  %4896 = vmatprep.subr.bf16.mxu1 %v7660_v3 }
 0x7dd   :  { %v4012_v59 = vpack.c.bf16 %v3952_v29, %v3950_v25 }
 0x7de   :  { %v4013_v62 = vpack.c.bf16 %v3953_v54, %v3951_v44  ;;  %v3807_v1 = vpop.f32.mrb[200].mxu0  ;;  %6808 = vmatpush3.bf16.msra.mxu0 %v9467_v58 }
 0x7df   :  { %v3808_v5 = vadd.f32 %v3807_v1, %v9407_v21  ;;  %v3809_v55 = vpop.f32.mrb[201].mxu0  ;;  %6809 = vmatprep.subr.bf16.mxu0 %v9479_v4 }
 0x7e0   :  { %v3810_v57 = vadd.f32 %v3809_v55, %v9410_v8  ;;  %v3811_v7 = vpop.f32.mrb[202].mxu0  ;;  %4288 = vmatprep.mubr.bf16.mxu0 %v4013_v62  ;;  %v7667_v62 = vld [vmem:[%s10357_s19 + $0x13c] ss:$12 sps:$4 sm:$0xff]  }
 0x7e1   :  { %v3812_v13 = vadd.f32 %v3811_v7, %v9407_v21  ;;  %v3813_v14 = vpop.f32.mrb[203].mxu0  ;;  %4289 = vmatmul.mubr.bf16.gmra.mrb[4].mxu0 %v4012_v59  ;;  %v3954_v17 = vmax.f32 %v3808_v5, 0.0  ;;  %v7658_v59 = vld [vmem:[%s10357_s19 + $0x120] ss:$12 sps:$4 sm:$0xff]   ;;  %v7665_v7 = vld [vmem:[%s10357_s19 + $0x138] ss:$12 sps:$4 sm:$0xff]  }
 0x7e2   :  { %v3814_v15 = vadd.f32 %v3813_v14, %v9410_v8  ;;  %v3955_v23 = vmax.f32 %v3810_v57, 0.0  ;;  %6810 = vmatpush3.bf16.msra.mxu0 %v9487_v11  ;;  %4897 = vmatpush1.bf16.msra.mxu1 %v7658_v59 }
 0x7e3   :  { %v3956_v19 = vmax.f32 %v3812_v13, 0.0  ;;  %6811 = vmatprep.subr.bf16.mxu0 %v9496_v63  ;;  %4898 = vmatprep.subr.bf16.mxu1 %v7667_v62 }
 0x7e4   :  { %v3957_v24 = vmax.f32 %v3814_v15, 0.0 }
 0x7e5   :  { %v4014_v30 = vpack.c.bf16 %v3956_v19, %v3954_v17 }
 0x7e6   :  { %v4015_v31 = vpack.c.bf16 %v3957_v24, %v3955_v23  ;;  %v3817_v41 = vpop.f32.mrb[204].mxu0  ;;  %6812 = vmatpush3.bf16.msra.mxu0 %v9507_v28  ;;  %4899 = vmatpush1.bf16.msra.mxu1 %v7665_v7 }
 0x7e7   :  { %v3818_v38 = vadd.f32 %v3817_v41, %v9407_v21  ;;  %v3819_v9 = vpop.f32.mrb[205].mxu0  ;;  %6813 = vmatprep.subr.bf16.mxu0 %v9519_v34  ;;  %4900 = vmatprep.subr.bf16.mxu1 %v7674_v60 }
 0x7e8   :  { %v3820_v45 = vadd.f32 %v3819_v9, %v9410_v8  ;;  %v3821_v46 = vpop.f32.mrb[206].mxu0  ;;  %4298 = vmatprep.mubr.bf16.mxu0 %v4015_v31 }
 0x7e9   :  { %v3822_v12 = vadd.f32 %v3821_v46, %v9407_v21  ;;  %v3823_v47 = vpop.f32.mrb[207].mxu0  ;;  %4299 = vmatmul.mubr.bf16.gmra.mrb[8].mxu0 %v4014_v30  ;;  %v3958_v52 = vmax.f32 %v3818_v38, 0.0  ;;  %v7672_v30 = vld [vmem:[%s10357_s19 + $0x150] ss:$12 sps:$4 sm:$0xff]  }
 0x7ea   :  { %v3824_v20 = vadd.f32 %v3823_v47, %v9410_v8  ;;  %v3959_v27 = vmax.f32 %v3820_v45, 0.0  ;;  %6814 = vmatpush3.bf16.msra.mxu0 %v9527_v26  ;;  %4901 = vmatpush1.bf16.msra.mxu1 %v7672_v30 }
 0x7eb   :  { %v3960_v53 = vmax.f32 %v3822_v12, 0.0  ;;  %6815 = vmatprep.subr.bf16.mxu0 %v9536_v50 }
 0x7ec   :  { %v3961_v43 = vmax.f32 %v3824_v20, 0.0 }
 0x7ed   :  { %v4016_v35 = vpack.c.bf16 %v3960_v53, %v3958_v52 }
 0x7ee   :  { %v4017_v49 = vpack.c.bf16 %v3961_v43, %v3959_v27  ;;  %v3827_v56 = vpop.f32.mrb[208].mxu0 }
 0x7ef   :  { %v3828_v10 = vadd.f32 %v3827_v56, %v9407_v21  ;;  %v3829_v18 = vpop.f32.mrb[209].mxu0 }
 0x7f0   :  { %v3830_v25 = vadd.f32 %v3829_v18, %v9410_v8  ;;  %v3831_v29 = vpop.f32.mrb[210].mxu0  ;;  %4308 = vmatprep.mubr.bf16.mxu0 %v4017_v49 }
 0x7f1   :  { %v3832_v44 = vadd.f32 %v3831_v29, %v9407_v21  ;;  %v3833_v54 = vpop.f32.mrb[211].mxu0  ;;  %4309 = vmatmul.mubr.bf16.gmra.mrb[12].mxu0 %v4016_v35  ;;  %v3962_v1 = vmax.f32 %v3828_v10, 0.0 }
 0x7f2   :  { %v3834_v61 = vadd.f32 %v3833_v54, %v9410_v8  ;;  %v3963_v5 = vmax.f32 %v3830_v25, 0.0 }
 0x7f3   :  { %v3964_v2 = vmax.f32 %v3832_v44, 0.0 }
 0x7f4   :  { %v3965_v55 = vmax.f32 %v3834_v61, 0.0 }
 0x7f5   :  { %v4018_v57 = vpack.c.bf16 %v3964_v2, %v3962_v1 }
 0x7f6   :  { %v4019_v13 = vpack.c.bf16 %v3965_v55, %v3963_v5  ;;  %v3837_v14 = vpop.f32.mrb[212].mxu0 }
 0x7f7   :  { %v3838_v15 = vadd.f32 %v3837_v14, %v9407_v21  ;;  %v3839_v16 = vpop.f32.mrb[213].mxu0 }
 0x7f8   :  { %v3840_v17 = vadd.f32 %v3839_v16, %v9410_v8  ;;  %v3841_v19 = vpop.f32.mrb[214].mxu0  ;;  %4318 = vmatprep.mubr.bf16.mxu0 %v4019_v13 }
 0x7f9   :  { %v3842_v23 = vadd.f32 %v3841_v19, %v9407_v21  ;;  %v3843_v24 = vpop.f32.mrb[215].mxu0  ;;  %4319 = vmatmul.mubr.bf16.gmra.mrb[16].mxu0 %v4018_v57  ;;  %v3966_v31 = vmax.f32 %v3838_v15, 0.0 }
 0x7fa   :  { %v3844_v40 = vadd.f32 %v3843_v24, %v9410_v8  ;;  %v3967_v33 = vmax.f32 %v3840_v17, 0.0 }
 0x7fb   :  { %v3968_v41 = vmax.f32 %v3842_v23, 0.0 }
 0x7fc   :  { %v3969_v38 = vmax.f32 %v3844_v40, 0.0 }
 0x7fd   :  { %v4020_v9 = vpack.c.bf16 %v3968_v41, %v3966_v31 }
 0x7fe   :  { %v4021_v45 = vpack.c.bf16 %v3969_v38, %v3967_v33  ;;  %v3847_v46 = vpop.f32.mrb[216].mxu0 }
 0x7ff   :  { %v3848_v12 = vadd.f32 %v3847_v46, %v9407_v21  ;;  %v3849_v47 = vpop.f32.mrb[217].mxu0 }
 0x800   :  { %v3850_v48 = vadd.f32 %v3849_v47, %v9410_v8  ;;  %v3851_v20 = vpop.f32.mrb[218].mxu0  ;;  %4328 = vmatprep.mubr.bf16.mxu0 %v4021_v45 }
 0x801   :  { %v3852_v51 = vadd.f32 %v3851_v20, %v9407_v21  ;;  %v3853_v52 = vpop.f32.mrb[219].mxu0  ;;  %4329 = vmatmul.mubr.bf16.gmra.mrb[20].mxu0 %v4020_v9  ;;  %v3970_v27 = vmax.f32 %v3848_v12, 0.0 }
 0x802   :  { %v3854_v53 = vadd.f32 %v3853_v52, %v9410_v8  ;;  %v3971_v35 = vmax.f32 %v3850_v48, 0.0 }
 0x803   :  { %v3972_v43 = vmax.f32 %v3852_v51, 0.0 }
 0x804   :  { %v3973_v42 = vmax.f32 %v3854_v53, 0.0 }
 0x805   :  { %v4022_v49 = vpack.c.bf16 %v3972_v43, %v3970_v27 }
 0x806   :  { %v4023_v56 = vpack.c.bf16 %v3973_v42, %v3971_v35  ;;  %v3857_v3 = vpop.f32.mrb[220].mxu0 }
 0x807   :  { %v3858_v10 = vadd.f32 %v3857_v3, %v9407_v21  ;;  %v3859_v18 = vpop.f32.mrb[221].mxu0 }
 0x808   :  { %v3860_v25 = vadd.f32 %v3859_v18, %v9410_v8  ;;  %v3861_v29 = vpop.f32.mrb[222].mxu0  ;;  %4338 = vmatprep.mubr.bf16.mxu0 %v4023_v56 }
 0x809   :  { %v3862_v44 = vadd.f32 %v3861_v29, %v9407_v21  ;;  %v3863_v54 = vpop.f32.mrb[223].mxu0  ;;  %4339 = vmatmul.mubr.bf16.gmra.mrb[24].mxu0 %v4022_v49  ;;  %v3974_v61 = vmax.f32 %v3858_v10, 0.0 }
 0x80a   :  { %v3864_v59 = vadd.f32 %v3863_v54, %v9410_v8  ;;  %v3975_v1 = vmax.f32 %v3860_v25, 0.0 }
 0x80b   :  { %v3976_v62 = vmax.f32 %v3862_v44, 0.0 }
 0x80c   :  { %v3977_v2 = vmax.f32 %v3864_v59, 0.0 }
 0x80d   :  { %v4024_v5 = vpack.c.bf16 %v3976_v62, %v3974_v61 }
 0x80e   :  { %v4025_v55 = vpack.c.bf16 %v3977_v2, %v3975_v1  ;;  %v3867_v57 = vpop.f32.mrb[224].mxu0 }
 0x80f   :  { %v3868_v7 = vadd.f32 %v3867_v57, %v9407_v21  ;;  %v3869_v13 = vpop.f32.mrb[225].mxu0 }
 0x810   :  { %v3870_v14 = vadd.f32 %v3869_v13, %v9410_v8  ;;  %v3871_v60 = vpop.f32.mrb[226].mxu0  ;;  %4348 = vmatprep.mubr.bf16.mxu0 %v4025_v55 }
 0x811   :  { %v3872_v15 = vadd.f32 %v3871_v60, %v9407_v21  ;;  %v3873_v16 = vpop.f32.mrb[227].mxu0  ;;  %4349 = vmatmul.mubr.bf16.gmra.mrb[28].mxu0 %v4024_v5  ;;  %v3978_v19 = vmax.f32 %v3868_v7, 0.0 }
 0x812   :  { %v3874_v17 = vadd.f32 %v3873_v16, %v9410_v8  ;;  %v3979_v24 = vmax.f32 %v3870_v14, 0.0  ;;  %v9601_v14 = vld [vmem:[%s10357_s19 + $0x80] ss:$12 sps:$4 sm:$0xff]  }
 0x813   :  { %v3980_v23 = vmax.f32 %v3872_v15, 0.0  ;;  %6816 = vmatpush3.bf16.msra.mxu0 %v9601_v14 }
 0x814   :  { %v3981_v30 = vmax.f32 %v3874_v17, 0.0 }
 0x815   :  { %v4026_v40 = vpack.c.bf16 %v3980_v23, %v3978_v19  ;;  %v9607_v23 = vld [vmem:[%s10357_s19 + $0x158] ss:$12 sps:$4 sm:$0xff]  }
 0x816   :  { %v4027_v31 = vpack.c.bf16 %v3981_v30, %v3979_v24  ;;  %v3877_v41 = vpop.f32.mrb[228].mxu0  ;;  %6817 = vmatprep.subr.bf16.mxu0 %v9607_v23 }
 0x817   :  { %v3878_v33 = vadd.f32 %v3877_v41, %v9407_v21  ;;  %v3879_v38 = vpop.f32.mrb[229].mxu0 }
 0x818   :  { %v3880_v9 = vadd.f32 %v3879_v38, %v9410_v8  ;;  %v3881_v45 = vpop.f32.mrb[230].mxu0  ;;  %4358 = vmatprep.mubr.bf16.mxu0 %v4027_v31 }
 0x819   :  { %v3882_v46 = vadd.f32 %v3881_v45, %v9407_v21  ;;  %v3883_v12 = vpop.f32.mrb[231].mxu0  ;;  %4359 = vmatmul.mubr.bf16.gmra.mrb[32].mxu0 %v4026_v40  ;;  %v3982_v48 = vmax.f32 %v3878_v33, 0.0  ;;  %v9612_v40 = vld [vmem:[%s10357_s19 + $0x98] ss:$12 sps:$4 sm:$0xff]  }
 0x81a   :  { %v3884_v47 = vadd.f32 %v3883_v12, %v9410_v8  ;;  %v3983_v51 = vmax.f32 %v3880_v9, 0.0  ;;  %6818 = vmatpush3.bf16.msra.mxu0 %v9612_v40  ;;  %v9625_v12 = vld [vmem:[%s10357_s19 + $0x170] ss:$12 sps:$4 sm:$0xff]  }
 0x81b   :  { %v3984_v20 = vmax.f32 %v3882_v46, 0.0  ;;  %v7681_v46 = vld [vmem:[%s10357_s19 + $0x16c] ss:$12 sps:$4 sm:$0xff]   ;;  %6819 = vmatprep.subr.bf16.mxu0 %v9625_v12 }
 0x81c   :  { %v3985_v52 = vmax.f32 %v3884_v47, 0.0  ;;  %4902 = vmatprep.subr.bf16.mxu1 %v7681_v46 }
 0x81d   :  { %v4028_v53 = vpack.c.bf16 %v3984_v20, %v3982_v48  ;;  %v7679_v48 = vld [vmem:[%s10357_s19 + $0x168] ss:$12 sps:$4 sm:$0xff]   ;;  %v9634_v20 = vld [vmem:[%s10357_s19 + $0xb0] ss:$12 sps:$4 sm:$0xff]  }
 0x81e   :  { %v4029_v27 = vpack.c.bf16 %v3985_v52, %v3983_v51  ;;  %v3887_v43 = vpop.f32.mrb[232].mxu0  ;;  %4903 = vmatpush1.bf16.msra.mxu1 %v7679_v48  ;;  %6820 = vmatpush3.bf16.msra.mxu0 %v9634_v20 }
 0x81f   :  { %v3888_v35 = vadd.f32 %v3887_v43, %v9407_v21  ;;  %v3889_v42 = vpop.f32.mrb[233].mxu0  ;;  %7155 = vmatprep.subr.bf16.mxu1 %v9446_v6 }
 0x820   :  { %v3890_v49 = vadd.f32 %v3889_v42, %v9410_v8  ;;  %v3891_v56 = vpop.f32.mrb[234].mxu0  ;;  %4368 = vmatprep.mubr.bf16.mxu0 %v4029_v27 }
 0x821   :  { %v3892_v3 = vadd.f32 %v3891_v56, %v9407_v21  ;;  %v3893_v10 = vpop.f32.mrb[235].mxu0  ;;  %4369 = vmatmul.mubr.bf16.gmra.mrb[36].mxu0 %v4028_v53  ;;  %v3986_v25 = vmax.f32 %v3888_v35, 0.0 }
 0x822   :  { %v3894_v18 = vadd.f32 %v3893_v10, %v9410_v8  ;;  %v3987_v44 = vmax.f32 %v3890_v49, 0.0 }
 0x823   :  { %v3988_v29 = vmax.f32 %v3892_v3, 0.0 }
 0x824   :  { %v3989_v54 = vmax.f32 %v3894_v18, 0.0 }
 0x825   :  { %v4030_v59 = vpack.c.bf16 %v3988_v29, %v3986_v25 }
 0x826   :  { %v4031_v61 = vpack.c.bf16 %v3989_v54, %v3987_v44  ;;  %v3897_v62 = vpop.f32.mrb[236].mxu0 }
 0x827   :  { %v3898_v1 = vadd.f32 %v3897_v62, %v9407_v21  ;;  %v3899_v2 = vpop.f32.mrb[237].mxu0 }
 0x828   :  { %v3900_v5 = vadd.f32 %v3899_v2, %v9410_v8  ;;  %v3901_v55 = vpop.f32.mrb[238].mxu0  ;;  %4378 = vmatprep.mubr.bf16.mxu0 %v4031_v61 }
 0x829   :  { %v3902_v57 = vadd.f32 %v3901_v55, %v9407_v21  ;;  %v3903_v7 = vpop.f32.mrb[239].mxu0  ;;  %4379 = vmatmul.mubr.bf16.gmra.mrb[40].mxu0 %v4030_v59  ;;  %v3990_v60 = vmax.f32 %v3898_v1, 0.0 }
 0x82a   :  { %v3904_v13 = vadd.f32 %v3903_v7, %v9410_v8  ;;  %v3991_v16 = vmax.f32 %v3900_v5, 0.0 }
 0x82b   :  { %v3992_v15 = vmax.f32 %v3902_v57, 0.0 }
 0x82c   :  { %v3993_v17 = vmax.f32 %v3904_v13, 0.0 }
 0x82d   :  { %v4032_v19 = vpack.c.bf16 %v3992_v15, %v3990_v60 }
 0x82e   :  { %v4033_v24 = vpack.c.bf16 %v3993_v17, %v3991_v16  ;;  %v3907_v30 = vpop.f32.mrb[240].mxu0 }
 0x82f   :  { %v3908_v31 = vadd.f32 %v3907_v30, %v9407_v21  ;;  %v3909_v41 = vpop.f32.mrb[241].mxu0 }
 0x830   :  { %v3910_v33 = vadd.f32 %v3909_v41, %v9410_v8  ;;  %v3911_v38 = vpop.f32.mrb[242].mxu0  ;;  %4388 = vmatprep.mubr.bf16.mxu0 %v4033_v24 }
 0x831   :  { %v3912_v9 = vadd.f32 %v3911_v38, %v9407_v21  ;;  %v3913_v45 = vpop.f32.mrb[243].mxu0  ;;  %4389 = vmatmul.mubr.bf16.gmra.mrb[44].mxu0 %v4032_v19  ;;  %v3994_v51 = vmax.f32 %v3908_v31, 0.0 }
 0x832   :  { %v3914_v47 = vadd.f32 %v3913_v45, %v9410_v8  ;;  %v3995_v53 = vmax.f32 %v3910_v33, 0.0 }
 0x833   :  { %v3996_v52 = vmax.f32 %v3912_v9, 0.0 }
 0x834   :  { %v3997_v27 = vmax.f32 %v3914_v47, 0.0 }
 0x835   :  { %v4034_v43 = vpack.c.bf16 %v3996_v52, %v3994_v51 }
 0x836   :  { %v4035_v35 = vpack.c.bf16 %v3997_v27, %v3995_v53  ;;  %v3917_v42 = vpop.f32.mrb[244].mxu0 }
 0x837   :  { %v3918_v49 = vadd.f32 %v3917_v42, %v9407_v21  ;;  %v3919_v56 = vpop.f32.mrb[245].mxu0 }
 0x838   :  { %v3920_v3 = vadd.f32 %v3919_v56, %v9410_v8  ;;  %v3921_v10 = vpop.f32.mrb[246].mxu0  ;;  %4398 = vmatprep.mubr.bf16.mxu0 %v4035_v35  ;;  %v4074_v35 = vld [vmem:[#allocation20] sm:$0x3] }
 0x839   :  { %v3922_v18 = vadd.f32 %v3921_v10, %v9407_v21  ;;  %v3923_v25 = vpop.f32.mrb[247].mxu0  ;;  %4399 = vmatmul.mubr.bf16.gmra.mrb[48].mxu0 %v4034_v43  ;;  %v3998_v44 = vmax.f32 %v3918_v49, 0.0  ;;  %v9652_v42 = vrot.slane %v4074_v35, %v8904_v37  ;;  %v9655_v49 = vrot.slane %v4074_v35, %v8910_v39 }
 0x83a   :  { %v3924_v29 = vadd.f32 %v3923_v25, %v9410_v8  ;;  %v3999_v59 = vmax.f32 %v3920_v3, 0.0 }
 0x83b   :  { %v4000_v54 = vmax.f32 %v3922_v18, 0.0 }
 0x83c   :  { %v4001_v61 = vmax.f32 %v3924_v29, 0.0 }
 0x83d   :  { %v4036_v6 = vpack.c.bf16 %v4000_v54, %v3998_v44 }
 0x83e   :  { %v4037_v62 = vpack.c.bf16 %v4001_v61, %v3999_v59  ;;  %v3927_v1 = vpop.f32.mrb[248].mxu0 }
 0x83f   :  { %v3928_v2 = vadd.f32 %v3927_v1, %v9407_v21  ;;  %v3929_v5 = vpop.f32.mrb[249].mxu0 }
 0x840   :  { %v3930_v55 = vadd.f32 %v3929_v5, %v9410_v8  ;;  %v3931_v57 = vpop.f32.mrb[250].mxu0  ;;  %4408 = vmatprep.mubr.bf16.mxu0 %v4037_v62 }
 0x841   :  { %v3932_v7 = vadd.f32 %v3931_v57, %v9407_v21  ;;  %v3933_v13 = vpop.f32.mrb[251].mxu0  ;;  %4409 = vmatmul.mubr.bf16.gmra.mrb[52].mxu0 %v4036_v6  ;;  %v4002_v15 = vmax.f32 %v3928_v2, 0.0 }
 0x842   :  { %v3934_v60 = vadd.f32 %v3933_v13, %v9410_v8  ;;  %v4003_v17 = vmax.f32 %v3930_v55, 0.0 }
 0x843   :  { %v4004_v16 = vmax.f32 %v3932_v7, 0.0 }
 0x844   :  { %v4005_v19 = vmax.f32 %v3934_v60, 0.0  ;;  %v9664_v60 = vld [vmem:[#allocation23] sm:$0xff]  }
 0x845   :  { %v4038_v24 = vpack.c.bf16 %v4004_v16, %v4002_v15  ;;  %7071 = vmatprep.subr.bf16.mxu0 %v9664_v60 }
 0x846   :  { %v4039_v30 = vpack.c.bf16 %v4005_v19, %v4003_v17  ;;  %v3937_v31 = vpop.f32.mrb[252].mxu0  ;;  %v9670_v19 = vld [vmem:[#allocation23 + $0x8] ss:$0 sps:$4 sm:$0xff]  }
 0x847   :  { %v3938_v41 = vadd.f32 %v3937_v31, %v9407_v21  ;;  %v3939_v33 = vpop.f32.mrb[253].mxu0 }
 0x848   :  { %v3940_v38 = vadd.f32 %v3939_v33, %v9410_v8  ;;  %v3941_v9 = vpop.f32.mrb[254].mxu0  ;;  %4418 = vmatprep.mubr.bf16.mxu0 %v4039_v30 }
 0x849   :  { %v3942_v45 = vadd.f32 %v3941_v9, %v9407_v21  ;;  %v3943_v46 = vpop.f32.mrb[255].mxu0  ;;  %4419 = vmatmul.mubr.bf16.gmra.mrb[56].mxu0 %v4038_v24  ;;  %v4006_v48 = vmax.f32 %v3938_v41, 0.0 }
 0x84a   :  { %v3944_v47 = vadd.f32 %v3943_v46, %v9410_v8  ;;  %v4007_v52 = vmax.f32 %v3940_v38, 0.0 }
 0x84b   :  { %v4008_v51 = vmax.f32 %v3942_v45, 0.0 }
 0x84c   :  { %v4009_v53 = vmax.f32 %v3944_v47, 0.0  ;;  %v9682_v47 = vsel %vm5383_vm2, %v9670_v19, 0 }
 0x84d   :  { %v4040_v27 = vpack.c.bf16 %v4008_v51, %v4006_v48 }
 0x84e   :  { %v4041_v43 = vpack.c.bf16 %v4009_v53, %v4007_v52 }
 0x850   :  { %4428 = vmatprep.mubr.bf16.mxu0 %v4041_v43 }
 0x851   :  { %4429 = vmatmul.mubr.bf16.gmra.mrb[60].mxu0 %v4040_v27 }
 0x8ac   :  { %v4280_v21 = vpop.f32.mrb[0].mxu0 }
 0x8ad   :  { %v4281_v56 = vadd.f32 %v4280_v21, %v9652_v42  ;;  %v4282_v3 = vpop.f32.mrb[1].mxu0 }
 0x8ae   :  { %v4283_v8 = vadd.f32 %v4282_v3, %v9655_v49  ;;  %v4284_v10 = vpop.f32.mrb[2].mxu0 }
 0x8af   :  { %v4285_v18 = vadd.f32 %v4284_v10, %v9652_v42  ;;  %v4286_v25 = vpop.f32.mrb[3].mxu0  ;;  %v4439_v44 = vmax.f32 %v4281_v56, 0.0 }
 0x8b0   :  { %v4287_v29 = vadd.f32 %v4286_v25, %v9655_v49  ;;  %v4440_v59 = vmax.f32 %v4283_v8, 0.0 }
 0x8b1   :  { %v4441_v54 = vmax.f32 %v4285_v18, 0.0 }
 0x8b2   :  { %v4442_v61 = vmax.f32 %v4287_v29, 0.0 }
 0x8b3   :  { %v4503_v6 = vpack.c.bf16 %v4441_v54, %v4439_v44 }
 0x8b4   :  { %v4504_v62 = vpack.c.bf16 %v4442_v61, %v4440_v59  ;;  %v4290_v1 = vpop.f32.mrb[4].mxu0 }
 0x8b5   :  { %v4291_v2 = vadd.f32 %v4290_v1, %v9652_v42  ;;  %v4292_v5 = vpop.f32.mrb[5].mxu0 }
 0x8b6   :  { %v4293_v55 = vadd.f32 %v4292_v5, %v9655_v49  ;;  %v4294_v57 = vpop.f32.mrb[6].mxu0  ;;  %4904 = vmatprep.mubr.bf16.mxu1 %v4504_v62  ;;  %5097 = vmatprep.mubr.bf16.mxu0 %v4504_v62 }
 0x8b7   :  { %v4295_v7 = vadd.f32 %v4294_v57, %v9652_v42  ;;  %v4296_v13 = vpop.f32.mrb[7].mxu0  ;;  %4905 = vmatmul.mubr.bf16.vlgmr.msra.gmra.mrb[192].mxu1 %v4503_v6  ;;  %5098 = vmatmul.mubr.bf16.vlgmr.msra.gmra.mrb[64].mxu0 %v4503_v6  ;;  %v4443_v16 = vmax.f32 %v4291_v2, 0.0 }
 0x8b8   :  { %v4297_v15 = vadd.f32 %v4296_v13, %v9655_v49  ;;  %7163 = vmatpush3.bf16.msra.mxu1 %v9455_v22  ;;  %v4444_v24 = vmax.f32 %v4293_v55, 0.0  ;;  %7072 = vmatpush3.bf16.msra.mxu0 %v9664_v60 }
 0x8b9   :  { %v4445_v17 = vmax.f32 %v4295_v7, 0.0  ;;  %7156 = vmatprep.subr.bf16.mxu1 %v9460_v0  ;;  %7239 = vmatprep.subr.msk.bf16.mxu0 %vm5383_vm2, %v9670_v19 }
 0x8ba   :  { %v4446_v30 = vmax.f32 %v4297_v15, 0.0 }
 0x8bb   :  { %v4505_v31 = vpack.c.bf16 %v4445_v17, %v4443_v16 }
 0x8bc   :  { %v4506_v41 = vpack.c.bf16 %v4446_v30, %v4444_v24  ;;  %v4300_v33 = vpop.f32.mrb[8].mxu0  ;;  %7164 = vmatpush3.bf16.msra.mxu1 %v9467_v58  ;;  %7074 = vmatpush3.bf16.msra.mxu0 %v9682_v47 }
 0x8bd   :  { %v4301_v22 = vadd.f32 %v4300_v33, %v9652_v42  ;;  %v4302_v0 = vpop.f32.mrb[9].mxu0  ;;  %7157 = vmatprep.subr.bf16.mxu1 %v9479_v4 }
 0x8be   :  { %v4303_v38 = vadd.f32 %v4302_v0, %v9655_v49  ;;  %v4304_v9 = vpop.f32.mrb[10].mxu0  ;;  %4914 = vmatprep.mubr.bf16.mxu1 %v4506_v41  ;;  %5105 = vmatprep.mubr.bf16.mxu0 %v4506_v41 }
 0x8bf   :  { %v4305_v45 = vadd.f32 %v4304_v9, %v9652_v42  ;;  %v4306_v46 = vpop.f32.mrb[11].mxu0  ;;  %4915 = vmatmul.mubr.bf16.gmra.mrb[196].mxu1 %v4505_v31  ;;  %5106 = vmatmul.mubr.bf16.gmra.mrb[68].mxu0 %v4505_v31  ;;  %v4447_v4 = vmax.f32 %v4301_v22, 0.0 }
 0x8c0   :  { %v4307_v58 = vadd.f32 %v4306_v46, %v9655_v49  ;;  %7165 = vmatpush3.bf16.msra.mxu1 %v9487_v11  ;;  %v4448_v51 = vmax.f32 %v4303_v38, 0.0 }
 0x8c1   :  { %v4449_v48 = vmax.f32 %v4305_v45, 0.0  ;;  %7158 = vmatprep.subr.bf16.mxu1 %v9496_v63 }
 0x8c2   :  { %v4450_v52 = vmax.f32 %v4307_v58, 0.0 }
 0x8c3   :  { %v4507_v53 = vpack.c.bf16 %v4449_v48, %v4447_v4 }
 0x8c4   :  { %v4508_v27 = vpack.c.bf16 %v4450_v52, %v4448_v51  ;;  %v4310_v43 = vpop.f32.mrb[12].mxu0  ;;  %7166 = vmatpush3.bf16.msra.mxu1 %v9507_v28 }
 0x8c5   :  { %v4311_v35 = vadd.f32 %v4310_v43, %v9652_v42  ;;  %v4312_v21 = vpop.f32.mrb[13].mxu0  ;;  %7159 = vmatprep.subr.bf16.mxu1 %v9519_v34 }
 0x8c6   :  { %v4313_v11 = vadd.f32 %v4312_v21, %v9655_v49  ;;  %v4314_v56 = vpop.f32.mrb[14].mxu0  ;;  %4924 = vmatprep.mubr.bf16.mxu1 %v4508_v27  ;;  %5113 = vmatprep.mubr.bf16.mxu0 %v4508_v27 }
 0x8c7   :  { %v4315_v3 = vadd.f32 %v4314_v56, %v9652_v42  ;;  %v4316_v63 = vpop.f32.mrb[15].mxu0  ;;  %4925 = vmatmul.mubr.bf16.gmra.mrb[200].mxu1 %v4507_v53  ;;  %5114 = vmatmul.mubr.bf16.gmra.mrb[72].mxu0 %v4507_v53  ;;  %v4451_v28 = vmax.f32 %v4311_v35, 0.0 }
 0x8c8   :  { %v4317_v8 = vadd.f32 %v4316_v63, %v9655_v49  ;;  %7167 = vmatpush3.bf16.msra.mxu1 %v9527_v26  ;;  %v4452_v18 = vmax.f32 %v4313_v11, 0.0 }
 0x8c9   :  { %v4453_v10 = vmax.f32 %v4315_v3, 0.0  ;;  %7160 = vmatprep.subr.bf16.mxu1 %v9536_v50 }
 0x8ca   :  { %v4454_v34 = vmax.f32 %v4317_v8, 0.0 }
 0x8cb   :  { %v4509_v25 = vpack.c.bf16 %v4453_v10, %v4451_v28 }
 0x8cc   :  { %v4510_v29 = vpack.c.bf16 %v4454_v34, %v4452_v18  ;;  %v4320_v44 = vpop.f32.mrb[16].mxu0  ;;  %7168 = vmatpush3.bf16.msra.mxu1 %v9601_v14 }
 0x8cd   :  { %v4321_v54 = vadd.f32 %v4320_v44, %v9652_v42  ;;  %v4322_v59 = vpop.f32.mrb[17].mxu0  ;;  %7161 = vmatprep.subr.bf16.mxu1 %v9607_v23 }
 0x8ce   :  { %v4323_v61 = vadd.f32 %v4322_v59, %v9655_v49  ;;  %v4324_v6 = vpop.f32.mrb[18].mxu0  ;;  %4934 = vmatprep.mubr.bf16.mxu1 %v4510_v29  ;;  %5121 = vmatprep.mubr.bf16.mxu0 %v4510_v29 }
 0x8cf   :  { %v4325_v26 = vadd.f32 %v4324_v6, %v9652_v42  ;;  %v4326_v50 = vpop.f32.mrb[19].mxu0  ;;  %4935 = vmatmul.mubr.bf16.gmra.mrb[204].mxu1 %v4509_v25  ;;  %5122 = vmatmul.mubr.bf16.gmra.mrb[76].mxu0 %v4509_v25  ;;  %v4455_v14 = vmax.f32 %v4321_v54, 0.0 }
 0x8d0   :  { %v4327_v62 = vadd.f32 %v4326_v50, %v9655_v49  ;;  %7169 = vmatpush3.bf16.msra.mxu1 %v9612_v40  ;;  %v4456_v2 = vmax.f32 %v4323_v61, 0.0 }
 0x8d1   :  { %v4457_v1 = vmax.f32 %v4325_v26, 0.0  ;;  %7162 = vmatprep.subr.bf16.mxu1 %v9625_v12 }
 0x8d2   :  { %v4458_v23 = vmax.f32 %v4327_v62, 0.0 }
 0x8d3   :  { %v4511_v5 = vpack.c.bf16 %v4457_v1, %v4455_v14 }
 0x8d4   :  { %v4512_v55 = vpack.c.bf16 %v4458_v23, %v4456_v2  ;;  %v4330_v57 = vpop.f32.mrb[20].mxu0  ;;  %7170 = vmatpush3.bf16.msra.mxu1 %v9634_v20 }
 0x8d5   :  { %v4331_v7 = vadd.f32 %v4330_v57, %v9652_v42  ;;  %v4332_v13 = vpop.f32.mrb[21].mxu0  ;;  %7171 = vmatprep.subr.bf16.mxu1 %v9664_v60 }
 0x8d6   :  { %v4333_v15 = vadd.f32 %v4332_v13, %v9655_v49  ;;  %v4334_v16 = vpop.f32.mrb[22].mxu0  ;;  %4944 = vmatprep.mubr.bf16.mxu1 %v4512_v55  ;;  %5129 = vmatprep.mubr.bf16.mxu0 %v4512_v55 }
 0x8d7   :  { %v4335_v40 = vadd.f32 %v4334_v16, %v9652_v42  ;;  %v4336_v12 = vpop.f32.mrb[23].mxu0  ;;  %4945 = vmatmul.mubr.bf16.gmra.mrb[208].mxu1 %v4511_v5  ;;  %5130 = vmatmul.mubr.bf16.gmra.mrb[80].mxu0 %v4511_v5  ;;  %v4459_v24 = vmax.f32 %v4331_v7, 0.0 }
 0x8d8   :  { %v4337_v17 = vadd.f32 %v4336_v12, %v9655_v49  ;;  %v4460_v20 = vmax.f32 %v4333_v15, 0.0 }
 0x8d9   :  { %v4461_v30 = vmax.f32 %v4335_v40, 0.0 }
 0x8da   :  { %v4462_v31 = vmax.f32 %v4337_v17, 0.0 }
 0x8db   :  { %v4513_v41 = vpack.c.bf16 %v4461_v30, %v4459_v24 }
 0x8dc   :  { %v4514_v33 = vpack.c.bf16 %v4462_v31, %v4460_v20  ;;  %v4340_v22 = vpop.f32.mrb[24].mxu0 }
 0x8dd   :  { %v4341_v0 = vadd.f32 %v4340_v22, %v9652_v42  ;;  %v4342_v38 = vpop.f32.mrb[25].mxu0 }
 0x8de   :  { %v4343_v9 = vadd.f32 %v4342_v38, %v9655_v49  ;;  %v4344_v45 = vpop.f32.mrb[26].mxu0  ;;  %4954 = vmatprep.mubr.bf16.mxu1 %v4514_v33  ;;  %5137 = vmatprep.mubr.bf16.mxu0 %v4514_v33 }
 0x8df   :  { %v4345_v46 = vadd.f32 %v4344_v45, %v9652_v42  ;;  %v4346_v58 = vpop.f32.mrb[27].mxu0  ;;  %4955 = vmatmul.mubr.bf16.gmra.mrb[212].mxu1 %v4513_v41  ;;  %5138 = vmatmul.mubr.bf16.gmra.mrb[84].mxu0 %v4513_v41  ;;  %v4463_v48 = vmax.f32 %v4341_v0, 0.0 }
 0x8e0   :  { %v4347_v4 = vadd.f32 %v4346_v58, %v9655_v49  ;;  %v4464_v52 = vmax.f32 %v4343_v9, 0.0 }
 0x8e1   :  { %v4465_v51 = vmax.f32 %v4345_v46, 0.0 }
 0x8e2   :  { %v4466_v53 = vmax.f32 %v4347_v4, 0.0 }
 0x8e3   :  { %v4515_v27 = vpack.c.bf16 %v4465_v51, %v4463_v48 }
 0x8e4   :  { %v4516_v43 = vpack.c.bf16 %v4466_v53, %v4464_v52  ;;  %v4350_v35 = vpop.f32.mrb[28].mxu0 }
 0x8e5   :  { %v4351_v21 = vadd.f32 %v4350_v35, %v9652_v42  ;;  %v4352_v11 = vpop.f32.mrb[29].mxu0 }
 0x8e6   :  { %v4353_v56 = vadd.f32 %v4352_v11, %v9655_v49  ;;  %v4354_v3 = vpop.f32.mrb[30].mxu0  ;;  %4964 = vmatprep.mubr.bf16.mxu1 %v4516_v43  ;;  %5145 = vmatprep.mubr.bf16.mxu0 %v4516_v43 }
 0x8e7   :  { %v4355_v63 = vadd.f32 %v4354_v3, %v9652_v42  ;;  %v4356_v8 = vpop.f32.mrb[31].mxu0  ;;  %4965 = vmatmul.mubr.bf16.gmra.mrb[216].mxu1 %v4515_v27  ;;  %5146 = vmatmul.mubr.bf16.gmra.mrb[88].mxu0 %v4515_v27  ;;  %v4467_v10 = vmax.f32 %v4351_v21, 0.0 }
 0x8e8   :  { %v4357_v28 = vadd.f32 %v4356_v8, %v9655_v49  ;;  %v4468_v34 = vmax.f32 %v4353_v56, 0.0 }
 0x8e9   :  { %v4469_v18 = vmax.f32 %v4355_v63, 0.0 }
 0x8ea   :  { %v4470_v25 = vmax.f32 %v4357_v28, 0.0 }
 0x8eb   :  { %v4517_v29 = vpack.c.bf16 %v4469_v18, %v4467_v10 }
 0x8ec   :  { %v4518_v44 = vpack.c.bf16 %v4470_v25, %v4468_v34  ;;  %v4360_v54 = vpop.f32.mrb[32].mxu0 }
 0x8ed   :  { %v4361_v59 = vadd.f32 %v4360_v54, %v9652_v42  ;;  %v4362_v61 = vpop.f32.mrb[33].mxu0 }
 0x8ee   :  { %v4363_v6 = vadd.f32 %v4362_v61, %v9655_v49  ;;  %v4364_v26 = vpop.f32.mrb[34].mxu0  ;;  %4974 = vmatprep.mubr.bf16.mxu1 %v4518_v44  ;;  %5153 = vmatprep.mubr.bf16.mxu0 %v4518_v44 }
 0x8ef   :  { %v4365_v50 = vadd.f32 %v4364_v26, %v9652_v42  ;;  %v4366_v62 = vpop.f32.mrb[35].mxu0  ;;  %4975 = vmatmul.mubr.bf16.gmra.mrb[220].mxu1 %v4517_v29  ;;  %5154 = vmatmul.mubr.bf16.gmra.mrb[92].mxu0 %v4517_v29  ;;  %v4471_v1 = vmax.f32 %v4361_v59, 0.0 }
 0x8f0   :  { %v4367_v14 = vadd.f32 %v4366_v62, %v9655_v49  ;;  %v4472_v23 = vmax.f32 %v4363_v6, 0.0 }
 0x8f1   :  { %v4473_v2 = vmax.f32 %v4365_v50, 0.0 }
 0x8f2   :  { %v4474_v5 = vmax.f32 %v4367_v14, 0.0 }
 0x8f3   :  { %v4519_v55 = vpack.c.bf16 %v4473_v2, %v4471_v1 }
 0x8f4   :  { %v4520_v57 = vpack.c.bf16 %v4474_v5, %v4472_v23  ;;  %v4370_v7 = vpop.f32.mrb[36].mxu0 }
 0x8f5   :  { %v4371_v13 = vadd.f32 %v4370_v7, %v9652_v42  ;;  %v4372_v15 = vpop.f32.mrb[37].mxu0 }
 0x8f6   :  { %v4373_v16 = vadd.f32 %v4372_v15, %v9655_v49  ;;  %v4374_v40 = vpop.f32.mrb[38].mxu0  ;;  %4984 = vmatprep.mubr.bf16.mxu1 %v4520_v57  ;;  %5161 = vmatprep.mubr.bf16.mxu0 %v4520_v57 }
 0x8f7   :  { %v4375_v12 = vadd.f32 %v4374_v40, %v9652_v42  ;;  %v4376_v17 = vpop.f32.mrb[39].mxu0  ;;  %4985 = vmatmul.mubr.bf16.gmra.mrb[224].mxu1 %v4519_v55  ;;  %5162 = vmatmul.mubr.bf16.gmra.mrb[96].mxu0 %v4519_v55  ;;  %v4475_v30 = vmax.f32 %v4371_v13, 0.0 }
 0x8f8   :  { %v4377_v24 = vadd.f32 %v4376_v17, %v9655_v49  ;;  %v4476_v31 = vmax.f32 %v4373_v16, 0.0 }
 0x8f9   :  { %v4477_v20 = vmax.f32 %v4375_v12, 0.0 }
 0x8fa   :  { %v4478_v41 = vmax.f32 %v4377_v24, 0.0 }
 0x8fb   :  { %v4521_v33 = vpack.c.bf16 %v4477_v20, %v4475_v30 }
 0x8fc   :  { %v4522_v22 = vpack.c.bf16 %v4478_v41, %v4476_v31  ;;  %v4380_v0 = vpop.f32.mrb[40].mxu0 }
 0x8fd   :  { %v4381_v38 = vadd.f32 %v4380_v0, %v9652_v42  ;;  %v4382_v9 = vpop.f32.mrb[41].mxu0 }
 0x8fe   :  { %v4383_v45 = vadd.f32 %v4382_v9, %v9655_v49  ;;  %v4384_v46 = vpop.f32.mrb[42].mxu0  ;;  %4994 = vmatprep.mubr.bf16.mxu1 %v4522_v22  ;;  %5169 = vmatprep.mubr.bf16.mxu0 %v4522_v22 }
 0x8ff   :  { %v4385_v58 = vadd.f32 %v4384_v46, %v9652_v42  ;;  %v4386_v4 = vpop.f32.mrb[43].mxu0  ;;  %4995 = vmatmul.mubr.bf16.gmra.mrb[228].mxu1 %v4521_v33  ;;  %5170 = vmatmul.mubr.bf16.gmra.mrb[100].mxu0 %v4521_v33  ;;  %v4479_v51 = vmax.f32 %v4381_v38, 0.0 }
 0x900   :  { %v4387_v48 = vadd.f32 %v4386_v4, %v9655_v49  ;;  %v4480_v53 = vmax.f32 %v4383_v45, 0.0 }
 0x901   :  { %v4481_v52 = vmax.f32 %v4385_v58, 0.0 }
 0x902   :  { %v4482_v27 = vmax.f32 %v4387_v48, 0.0 }
 0x903   :  { %v4523_v43 = vpack.c.bf16 %v4481_v52, %v4479_v51 }
 0x904   :  { %v4524_v35 = vpack.c.bf16 %v4482_v27, %v4480_v53  ;;  %v4390_v21 = vpop.f32.mrb[44].mxu0  ;;  %v324_v27 = vld [vmem:[%s10398_s22] sm:$0xff] }
 0x905   :  { %v4391_v11 = vadd.f32 %v4390_v21, %v9652_v42  ;;  %v4392_v56 = vpop.f32.mrb[45].mxu0 }
 0x906   :  { %v4393_v3 = vadd.f32 %v4392_v56, %v9655_v49  ;;  %v4394_v63 = vpop.f32.mrb[46].mxu0  ;;  %5004 = vmatprep.mubr.bf16.mxu1 %v4524_v35  ;;  %5177 = vmatprep.mubr.bf16.mxu0 %v4524_v35 }
 0x907   :  { %v4395_v8 = vadd.f32 %v4394_v63, %v9652_v42  ;;  %v4396_v28 = vpop.f32.mrb[47].mxu0  ;;  %5005 = vmatmul.mubr.bf16.gmra.mrb[232].mxu1 %v4523_v43  ;;  %5178 = vmatmul.mubr.bf16.gmra.mrb[104].mxu0 %v4523_v43  ;;  %v4483_v18 = vmax.f32 %v4391_v11, 0.0  ;;  %v325_v43 = vld [vmem:[%s10398_s22 + $0x8] sm:$0xff] }
 0x908   :  { %v4397_v10 = vadd.f32 %v4396_v28, %v9655_v49  ;;  %v4484_v25 = vmax.f32 %v4393_v3, 0.0  ;;  %v356_v63 = vpack.c.bf16 %v325_v43, %v324_v27  ;;  %v7693_v43 = vld [vmem:[#allocation22 + $0x10] sm:$0xff]  }
 0x909   :  { %v4485_v34 = vmax.f32 %v4395_v8, 0.0 }
 0x90a   :  { %v4486_v29 = vmax.f32 %v4397_v10, 0.0 }
 0x90b   :  { %v4525_v44 = vpack.c.bf16 %v4485_v34, %v4483_v18 }
 0x90c   :  { %v4526_v54 = vpack.c.bf16 %v4486_v29, %v4484_v25  ;;  %v4400_v59 = vpop.f32.mrb[48].mxu0 }
 0x90d   :  { %v4401_v61 = vadd.f32 %v4400_v59, %v9652_v42  ;;  %v4402_v6 = vpop.f32.mrb[49].mxu0 }
 0x90e   :  { %v4403_v26 = vadd.f32 %v4402_v6, %v9655_v49  ;;  %v4404_v50 = vpop.f32.mrb[50].mxu0  ;;  %5014 = vmatprep.mubr.bf16.mxu1 %v4526_v54  ;;  %5185 = vmatprep.mubr.bf16.mxu0 %v4526_v54  ;;  %v327_v54 = vld [vmem:[%s10398_s22 + $0x18] sm:$0xff] }
 0x90f   :  { %v4405_v62 = vadd.f32 %v4404_v50, %v9652_v42  ;;  %v4406_v14 = vpop.f32.mrb[51].mxu0  ;;  %5015 = vmatmul.mubr.bf16.gmra.mrb[236].mxu1 %v4525_v44  ;;  %5186 = vmatmul.mubr.bf16.gmra.mrb[108].mxu0 %v4525_v44  ;;  %v4487_v2 = vmax.f32 %v4401_v61, 0.0  ;;  %v326_v44 = vld [vmem:[%s10398_s22 + $0x10] sm:$0xff] }
 0x910   :  { %v4407_v1 = vadd.f32 %v4406_v14, %v9655_v49  ;;  %v4488_v5 = vmax.f32 %v4403_v26, 0.0 }
 0x911   :  { %v4489_v23 = vmax.f32 %v4405_v62, 0.0  ;;  %v357_v62 = vpack.c.bf16 %v327_v54, %v326_v44  ;;  %v354_v44 = vld [vmem:[%s10398_s22 + $0xf0] sm:$0xff]  ;;  %v355_v54 = vld [vmem:[%s10398_s22 + $0xf8] sm:$0xff] }
 0x912   :  { %v4490_v55 = vmax.f32 %v4407_v1, 0.0 }
 0x913   :  { %v4527_v57 = vpack.c.bf16 %v4489_v23, %v4487_v2  ;;  %v330_v2 = vld [vmem:[%s10398_s22 + $0x30] sm:$0xff]  ;;  %v331_v23 = vld [vmem:[%s10398_s22 + $0x38] sm:$0xff] }
 0x914   :  { %v4528_v7 = vpack.c.bf16 %v4490_v55, %v4488_v5  ;;  %v4410_v13 = vpop.f32.mrb[52].mxu0  ;;  %v340_v5 = vld [vmem:[%s10398_s22 + $0x80] sm:$0xff]  ;;  %v341_v55 = vld [vmem:[%s10398_s22 + $0x88] sm:$0xff] }
 0x915   :  { %v4411_v15 = vadd.f32 %v4410_v13, %v9652_v42  ;;  %v4412_v16 = vpop.f32.mrb[53].mxu0  ;;  %v359_v13 = vpack.c.bf16 %v331_v23, %v330_v2 }
 0x916   :  { %v4413_v40 = vadd.f32 %v4412_v16, %v9655_v49  ;;  %v4414_v12 = vpop.f32.mrb[54].mxu0  ;;  %5024 = vmatprep.mubr.bf16.mxu1 %v4528_v7  ;;  %5193 = vmatprep.mubr.bf16.mxu0 %v4528_v7  ;;  %v333_v7 = vld [vmem:[%s10398_s22 + $0x48] sm:$0xff] }
 0x917   :  { %v4415_v17 = vadd.f32 %v4414_v12, %v9652_v42  ;;  %v4416_v24 = vpop.f32.mrb[55].mxu0  ;;  %5025 = vmatmul.mubr.bf16.gmra.mrb[240].mxu1 %v4527_v57  ;;  %5194 = vmatmul.mubr.bf16.gmra.mrb[112].mxu0 %v4527_v57  ;;  %v4491_v20 = vmax.f32 %v4411_v15, 0.0  ;;  %v332_v57 = vld [vmem:[%s10398_s22 + $0x40] sm:$0xff]  ;;  %v364_v15 = vpack.c.bf16 %v341_v55, %v340_v5  ;;  %v343_v12 = vld [vmem:[%s10398_s22 + $0x98] sm:$0xff] }
 0x918   :  { %v4417_v30 = vadd.f32 %v4416_v24, %v9655_v49  ;;  %v4492_v41 = vmax.f32 %v4413_v40, 0.0  ;;  %v360_v16 = vpack.c.bf16 %v333_v7, %v332_v57  ;;  %v342_v40 = vld [vmem:[%s10398_s22 + $0x90] sm:$0xff]  ;;  %v335_v24 = vld [vmem:[%s10398_s22 + $0x58] sm:$0xff] }
 0x919   :  { %v4493_v31 = vmax.f32 %v4415_v17, 0.0  ;;  %v334_v17 = vld [vmem:[%s10398_s22 + $0x50] sm:$0xff] }
 0x91a   :  { %v4494_v33 = vmax.f32 %v4417_v30, 0.0  ;;  %v7688_v30 = vld [vmem:[#allocation22 + $0x40] sm:$0xff]  }
 0x91b   :  { %v4529_v22 = vpack.c.bf16 %v4493_v31, %v4491_v20  ;;  %v345_v20 = vld [vmem:[%s10398_s22 + $0xa8] sm:$0xff]  ;;  %v365_v31 = vpack.c.bf16 %v343_v12, %v342_v40 }
 0x91c   :  { %v4530_v0 = vpack.c.bf16 %v4494_v33, %v4492_v41  ;;  %v4420_v38 = vpop.f32.mrb[56].mxu0  ;;  %v361_v41 = vpack.c.bf16 %v335_v24, %v334_v17  ;;  %v7689_v33 = vld [vmem:[#allocation22] sm:$0xff]  }
 0x91d   :  { %v4421_v9 = vadd.f32 %v4420_v38, %v9652_v42  ;;  %v4422_v45 = vpop.f32.mrb[57].mxu0  ;;  %v346_v38 = vld [vmem:[%s10398_s22 + $0xb0] sm:$0xff] }
 0x91e   :  { %v4423_v46 = vadd.f32 %v4422_v45, %v9655_v49  ;;  %v4424_v58 = vpop.f32.mrb[58].mxu0  ;;  %5034 = vmatprep.mubr.bf16.mxu1 %v4530_v0  ;;  %5201 = vmatprep.mubr.bf16.mxu0 %v4530_v0  ;;  %v7690_v0 = vld [vmem:[#allocation22 + $0x48] sm:$0xff]   ;;  %v348_v45 = vld [vmem:[%s10398_s22 + $0xc0] sm:$0xff] }
 0x91f   :  { %v4425_v4 = vadd.f32 %v4424_v58, %v9652_v42  ;;  %v4426_v48 = vpop.f32.mrb[59].mxu0  ;;  %5035 = vmatmul.mubr.bf16.gmra.mrb[244].mxu1 %v4529_v22  ;;  %5202 = vmatmul.mubr.bf16.gmra.mrb[116].mxu0 %v4529_v22  ;;  %v4495_v52 = vmax.f32 %v4421_v9, 0.0  ;;  %v7692_v9 = vld [vmem:[#allocation22 + $0x50] sm:$0xff]  }
 0x920   :  { %v4427_v51 = vadd.f32 %v4426_v48, %v9655_v49  ;;  %v4496_v35 = vmax.f32 %v4423_v46, 0.0  ;;  %v349_v46 = vld [vmem:[%s10398_s22 + $0xc8] sm:$0xff]  ;;  %v336_v58 = vld [vmem:[%s10398_s22 + $0x60] sm:$0xff] }
 0x921   :  { %v4497_v53 = vmax.f32 %v4425_v4, 0.0  ;;  %v337_v4 = vld [vmem:[%s10398_s22 + $0x68] sm:$0xff] }
 0x922   :  { %v4498_v21 = vmax.f32 %v4427_v51, 0.0  ;;  %v362_v48 = vpack.c.bf16 %v337_v4, %v336_v58  ;;  %v338_v51 = vld [vmem:[%s10398_s22 + $0x70] sm:$0xff] }
 0x923   :  { %v4531_v11 = vpack.c.bf16 %v4497_v53, %v4495_v52  ;;  %v339_v52 = vld [vmem:[%s10398_s22 + $0x78] sm:$0xff] }
 0x924   :  { %v4532_v56 = vpack.c.bf16 %v4498_v21, %v4496_v35  ;;  %v4430_v3 = vpop.f32.mrb[60].mxu0  ;;  %v363_v27 = vpack.c.bf16 %v339_v52, %v338_v51  ;;  %v368_v35 = vpack.c.bf16 %v349_v46, %v348_v45  ;;  %v7694_v21 = vld [vmem:[#allocation22 + $0x58] sm:$0xff]  }
 0x925   :  { %v4431_v8 = vadd.f32 %v4430_v3, %v9652_v42  ;;  %v4432_v28 = vpop.f32.mrb[61].mxu0  ;;  %v351_v3 = vld [vmem:[%s10398_s22 + $0xd8] sm:$0xff] }
 0x926   :  { %v4433_v10 = vadd.f32 %v4432_v28, %v9655_v49  ;;  %v4434_v18 = vpop.f32.mrb[62].mxu0  ;;  %5044 = vmatprep.mubr.bf16.mxu1 %v4532_v56  ;;  %5209 = vmatprep.mubr.bf16.mxu0 %v4532_v56  ;;  %v350_v56 = vld [vmem:[%s10398_s22 + $0xd0] sm:$0xff]  ;;  %v353_v28 = vld [vmem:[%s10398_s22 + $0xe8] sm:$0xff] }
 0x927   :  { %v4435_v34 = vadd.f32 %v4434_v18, %v9652_v42  ;;  %v4436_v25 = vpop.f32.mrb[63].mxu0  ;;  %5045 = vmatmul.mubr.bf16.gmra.mrb[248].mxu1 %v4531_v11  ;;  %5210 = vmatmul.mubr.bf16.gmra.mrb[120].mxu0 %v4531_v11  ;;  %v4499_v59 = vmax.f32 %v4431_v8, 0.0  ;;  %v328_v42 = vld [vmem:[%s10398_s22 + $0x20] sm:$0xff]  ;;  %v7697_v18 = vld [vmem:[#allocation22 + $0x20] sm:$0xff]  }
 0x928   :  { %v4437_v29 = vadd.f32 %v4436_v25, %v9655_v49  ;;  %7075 = vmatprep.mubr.msk.bf16.mxu0 %vm5334_vm3, %v356_v63  ;;  %v329_v49 = vld [vmem:[%s10398_s22 + $0x28] sm:$0xff]  ;;  %v4500_v6 = vmax.f32 %v4433_v10, 0.0  ;;  %v352_v8 = vld [vmem:[%s10398_s22 + $0xe0] sm:$0xff]  ;;  %v369_v10 = vpack.c.bf16 %v351_v3, %v350_v56  ;;  %v7698_v25 = vld [vmem:[#allocation22 + $0x68] sm:$0xff]  }
 0x929   :  { %v4501_v61 = vmax.f32 %v4435_v34, 0.0  ;;  %v358_v1 = vpack.c.bf16 %v329_v49, %v328_v42  ;;  %v7695_v11 = vld [vmem:[#allocation22 + $0x18] sm:$0xff]   ;;  %v7696_v63 = vld [vmem:[#allocation22 + $0x60] sm:$0xff]   ;;  %v370_v34 = vpack.c.bf16 %v353_v28, %v352_v8  ;;  %v7701_v42 = vld [vmem:[#allocation22 + $0x30] sm:$0xff]  }
 0x92a   :  { %v4502_v26 = vmax.f32 %v4437_v29, 0.0  ;;  %v7699_v29 = vld [vmem:[#allocation22 + $0x28] sm:$0xff]   ;;  %v7702_v49 = vld [vmem:[#allocation22 + $0x78] sm:$0xff]  }
 0x92b   :  { %v4533_v50 = vpack.c.bf16 %v4501_v61, %v4499_v59  ;;  %v7700_v59 = vld [vmem:[#allocation22 + $0x70] sm:$0xff]   ;;  %v371_v61 = vpack.c.bf16 %v355_v54, %v354_v44 }
 0x92c   :  { %v4534_v14 = vpack.c.bf16 %v4502_v26, %v4500_v6  ;;  %v7703_v6 = vld [vmem:[#allocation22 + $0x38] sm:$0xff]  }
 0x92d   :  { %v4599_v26 = vld [vmem:[%s10358_s20] sm:$0x7] }
 0x92e   :  { %5054 = vmatprep.mubr.bf16.mxu1 %v4534_v14 }
 0x92f   :  { %5055 = vmatmul.mubr.bf16.gmra.mrb[252].mxu1 %v4533_v50  ;;  %7076 = vmatmul.mubr.msk.bf16.vlgmr.msra.gmra.mrb[124].mxu0 %vm5334_vm3, %v357_v62 }
 0x930   :  { %5217 = vmatprep.mubr.bf16.mxu1 %v4534_v14  ;;  %7079 = vmatprep.mubr.msk.bf16.mxu0 %vm5334_vm3, %v358_v1  ;;  %v9873_v1 = vrot.slane %v4599_v26, %v8910_v39 }
 0x937   :  { %5218 = vmatmul.mubr.bf16.vlgmr.msra.gmra.mrb[0].mxu1 %v4533_v50  ;;  %7080 = vmatmul.mubr.msk.bf16.gmra.mrb[128].mxu0 %vm5334_vm3, %v359_v13  ;;  %v9870_v50 = vrot.slane %v4599_v26, %v8904_v37 }
 0x938   :  { %7173 = vmatpush3.bf16.msra.mxu1 %v9664_v60  ;;  %7091 = vmatprep.mubr.msk.bf16.mxu1 %vm5334_vm3, %v364_v15  ;;  %v344_v60 = vld [vmem:[%s10398_s22 + $0xa0] sm:$0xff] }
 0x939   :  { %7240 = vmatprep.subr.msk.bf16.mxu1 %vm5383_vm2, %v9670_v19  ;;  %7083 = vmatprep.mubr.msk.bf16.mxu0 %vm5334_vm3, %v360_v16  ;;  %v366_v22 = vpack.c.bf16 %v345_v20, %v344_v60  ;;  %v7691_v19 = vld [vmem:[#allocation22 + $0x8] sm:$0xff]  }
 0x93c   :  { %7174 = vmatpush3.bf16.msra.mxu1 %v9682_v47  ;;  %v347_v47 = vld [vmem:[%s10398_s22 + $0xb8] sm:$0xff] }
 0x93d   :  { %6935 = vmatprep.subr.bf16.mxu1 %v7688_v30  ;;  %v367_v53 = vpack.c.bf16 %v347_v47, %v346_v38 }
 0x93f   :  { %7092 = vmatmul.mubr.msk.bf16.vlgmr.msra.gmra.mrb[4].mxu1 %vm5334_vm3, %v365_v31  ;;  %7084 = vmatmul.mubr.msk.bf16.gmra.mrb[132].mxu0 %vm5334_vm3, %v361_v41 }
 0x940   :  { %6936 = vmatpush3.bf16.msra.mxu1 %v7689_v33  ;;  %7095 = vmatprep.mubr.msk.bf16.mxu1 %vm5334_vm3, %v366_v22 }
 0x941   :  { %6937 = vmatprep.subr.bf16.mxu1 %v7690_v0  ;;  %7087 = vmatprep.mubr.msk.bf16.mxu0 %vm5334_vm3, %v362_v48 }
 0x944   :  { %6938 = vmatpush3.bf16.msra.mxu1 %v7691_v19 }
 0x945   :  { %6939 = vmatprep.subr.bf16.mxu1 %v7692_v9 }
 0x947   :  { %7096 = vmatmul.mubr.msk.bf16.gmra.mrb[8].mxu1 %vm5334_vm3, %v367_v53  ;;  %7088 = vmatmul.mubr.msk.bf16.gmra.mrb[136].mxu0 %vm5334_vm3, %v363_v27 }
 0x948   :  { %6940 = vmatpush3.bf16.msra.mxu1 %v7693_v43  ;;  %7099 = vmatprep.mubr.msk.bf16.mxu1 %vm5334_vm3, %v368_v35 }
 0x949   :  { %6941 = vmatprep.subr.bf16.mxu1 %v7694_v21 }
 0x94c   :  { %6942 = vmatpush3.bf16.msra.mxu1 %v7695_v11 }
 0x94d   :  { %6943 = vmatprep.subr.bf16.mxu1 %v7696_v63 }
 0x94f   :  { %7100 = vmatmul.mubr.msk.bf16.gmra.mrb[12].mxu1 %vm5334_vm3, %v369_v10 }
 0x950   :  { %6944 = vmatpush3.bf16.msra.mxu1 %v7697_v18  ;;  %7103 = vmatprep.mubr.msk.bf16.mxu1 %vm5334_vm3, %v370_v34 }
 0x951   :  { %6945 = vmatprep.subr.bf16.mxu1 %v7698_v25 }
 0x954   :  { %6946 = vmatpush3.bf16.msra.mxu1 %v7699_v29 }
 0x955   :  { %6947 = vmatprep.subr.bf16.mxu1 %v7700_v59 }
 0x957   :  { %7104 = vmatmul.mubr.msk.bf16.gmra.mrb[16].mxu1 %vm5334_vm3, %v371_v61 }
 0x958   :  { %6948 = vmatpush3.bf16.msra.mxu1 %v7701_v42 }
 0x959   :  { %6949 = vmatprep.subr.bf16.mxu1 %v7702_v49 }
 0x95c   :  { %6950 = vmatpush3.bf16.msra.mxu1 %v7703_v6 }
 0x98a   :  { %v4906_v62 = vpop.f32.mrb[192].mxu1  ;;  %v6821_v14 = vpop.f32.mrb[64].mxu0 }
 0x98b   :  { %v4908_v2 = vpop.f32.mrb[193].mxu1  ;;  %v6822_v23 = vpop.f32.mrb[65].mxu0  ;;  %v4907_v7 = vadd.f32 %v4906_v62, %v9870_v50 }
 0x98c   :  { %v9875_v5 = vadd.f32 %v6822_v23, %v6821_v14  ;;  %v4910_v55 = vpop.f32.mrb[194].mxu1  ;;  %v6824_v57 = vpop.f32.mrb[66].mxu0  ;;  %v4909_v37 = vadd.f32 %v4908_v2, %v9873_v1 }
 0x98d   :  { %v4911_v13 = vadd.f32 %v4910_v55, %v9870_v50  ;;  %v4912_v15 = vpop.f32.mrb[195].mxu1  ;;  %v6825_v16 = vpop.f32.mrb[67].mxu0 }
 0x98e   :  { %v4913_v40 = vadd.f32 %v4912_v15, %v9873_v1  ;;  %v9881_v12 = vadd.f32 %v6825_v16, %v6824_v57  ;;  %v7704_v15 = vld [vmem:[%s10362_s24] sm:$0xff]  }
 0x98f   :  { %v5226_v39 = vpack.c.bf16 %v4911_v13, %v4907_v7  ;;  %7107 = vmatprep.subr.bf16.mxu0 %v7704_v15 }
 0x990   :  { %v5227_v17 = vpack.c.bf16 %v4913_v40, %v4909_v37  ;;  %7108 = vmatpush3.bf16.msra.mxu0 %v7704_v15 }
 0x992   :  { %v4916_v24 = vpop.f32.mrb[196].mxu1  ;;  %v6827_v30 = vpop.f32.mrb[68].mxu0  ;;  %5676 = vmatprep.mubr.bf16.mxu1 %v5227_v17 }
 0x993   :  { %v4918_v60 = vpop.f32.mrb[197].mxu1  ;;  %v6828_v20 = vpop.f32.mrb[69].mxu0  ;;  %5677 = vmatmul.mubr.bf16.vlgmr.msra.gmra.mrb[20].mxu1 %v5226_v39  ;;  %v4917_v22 = vadd.f32 %v4916_v24, %v9870_v50 }
 0x994   :  { %v9883_v31 = vadd.f32 %v6828_v20, %v6827_v30  ;;  %v4920_v41 = vpop.f32.mrb[198].mxu1  ;;  %v6830_v33 = vpop.f32.mrb[70].mxu0  ;;  %v4919_v47 = vadd.f32 %v4918_v60, %v9873_v1  ;;  %v7705_v60 = vld [vmem:[%s10362_s24 + $0x8] sm:$0xff]  }
 0x995   :  { %v4921_v0 = vadd.f32 %v4920_v41, %v9870_v50  ;;  %v4922_v19 = vpop.f32.mrb[199].mxu1  ;;  %v6831_v38 = vpop.f32.mrb[71].mxu0  ;;  %7109 = vmatprep.subr.bf16.mxu0 %v7705_v60 }
 0x996   :  { %v4923_v9 = vadd.f32 %v4922_v19, %v9873_v1  ;;  %v9889_v45 = vadd.f32 %v6831_v38, %v6830_v33  ;;  %7110 = vmatpush3.bf16.msra.mxu0 %v7705_v60 }
 0x997   :  { %v5228_v46 = vpack.c.bf16 %v4921_v0, %v4917_v22  ;;  %v7706_v0 = vld [vmem:[%s10362_s24 + $0x10] sm:$0xff]  }
 0x998   :  { %v5229_v58 = vpack.c.bf16 %v4923_v9, %v4919_v47  ;;  %7111 = vmatprep.subr.bf16.mxu0 %v7706_v0 }
 0x99a   :  { %v4926_v4 = vpop.f32.mrb[200].mxu1  ;;  %v6833_v48 = vpop.f32.mrb[72].mxu0  ;;  %5684 = vmatprep.mubr.bf16.mxu1 %v5229_v58  ;;  %7112 = vmatpush3.bf16.msra.mxu0 %v7706_v0 }
 0x99b   :  { %v4928_v51 = vpop.f32.mrb[201].mxu1  ;;  %v6834_v52 = vpop.f32.mrb[73].mxu0  ;;  %5685 = vmatmul.mubr.bf16.gmra.mrb[24].mxu1 %v5228_v46  ;;  %v4927_v35 = vadd.f32 %v4926_v4, %v9870_v50 }
 0x99c   :  { %v9891_v53 = vadd.f32 %v6834_v52, %v6833_v48  ;;  %v4930_v27 = vpop.f32.mrb[202].mxu1  ;;  %v6836_v43 = vpop.f32.mrb[74].mxu0  ;;  %v4929_v3 = vadd.f32 %v4928_v51, %v9873_v1 }
 0x99d   :  { %v4931_v21 = vadd.f32 %v4930_v27, %v9870_v50  ;;  %v4932_v11 = vpop.f32.mrb[203].mxu1  ;;  %v6837_v56 = vpop.f32.mrb[75].mxu0 }
 0x99e   :  { %v4933_v63 = vadd.f32 %v4932_v11, %v9873_v1  ;;  %v9897_v8 = vadd.f32 %v6837_v56, %v6836_v43 }
 0x99f   :  { %v5230_v28 = vpack.c.bf16 %v4931_v21, %v4927_v35 }
 0x9a0   :  { %v5231_v10 = vpack.c.bf16 %v4933_v63, %v4929_v3 }
 0x9a2   :  { %v4936_v18 = vpop.f32.mrb[204].mxu1  ;;  %v6839_v34 = vpop.f32.mrb[76].mxu0  ;;  %5692 = vmatprep.mubr.bf16.mxu1 %v5231_v10 }
 0x9a3   :  { %v4938_v25 = vpop.f32.mrb[205].mxu1  ;;  %v6840_v29 = vpop.f32.mrb[77].mxu0  ;;  %5693 = vmatmul.mubr.bf16.gmra.mrb[28].mxu1 %v5230_v28  ;;  %v4937_v61 = vadd.f32 %v4936_v18, %v9870_v50 }
 0x9a4   :  { %v9899_v44 = vadd.f32 %v6840_v29, %v6839_v34  ;;  %v4940_v54 = vpop.f32.mrb[206].mxu1  ;;  %v6842_v59 = vpop.f32.mrb[78].mxu0  ;;  %v4939_v26 = vadd.f32 %v4938_v25, %v9873_v1 }
 0x9a5   :  { %v4941_v42 = vadd.f32 %v4940_v54, %v9870_v50  ;;  %v4942_v49 = vpop.f32.mrb[207].mxu1  ;;  %v6843_v6 = vpop.f32.mrb[79].mxu0 }
 0x9a6   :  { %v4943_v62 = vadd.f32 %v4942_v49, %v9873_v1  ;;  %v9905_v14 = vadd.f32 %v6843_v6, %v6842_v59 }
 0x9a7   :  { %v5232_v2 = vpack.c.bf16 %v4941_v42, %v4937_v61 }
 0x9a8   :  { %v5233_v23 = vpack.c.bf16 %v4943_v62, %v4939_v26 }
 0x9aa   :  { %v4946_v55 = vpop.f32.mrb[208].mxu1  ;;  %v6845_v57 = vpop.f32.mrb[80].mxu0  ;;  %5700 = vmatprep.mubr.bf16.mxu1 %v5233_v23 }
 0x9ab   :  { %v4948_v7 = vpop.f32.mrb[209].mxu1  ;;  %v6846_v13 = vpop.f32.mrb[81].mxu0  ;;  %5701 = vmatmul.mubr.bf16.gmra.mrb[32].mxu1 %v5232_v2  ;;  %v4947_v39 = vadd.f32 %v4946_v55, %v9870_v50 }
 0x9ac   :  { %v9910_v16 = vadd.f32 %v6846_v13, %v6845_v57  ;;  %v4950_v37 = vpop.f32.mrb[210].mxu1  ;;  %v6848_v40 = vpop.f32.mrb[82].mxu0  ;;  %v4949_v20 = vadd.f32 %v4948_v7, %v9873_v1 }
 0x9ad   :  { %v4951_v17 = vadd.f32 %v4950_v37, %v9870_v50  ;;  %v4952_v24 = vpop.f32.mrb[211].mxu1  ;;  %v6849_v30 = vpop.f32.mrb[83].mxu0 }
 0x9ae   :  { %v4953_v41 = vadd.f32 %v4952_v24, %v9873_v1  ;;  %v9919_v33 = vadd.f32 %v6849_v30, %v6848_v40 }
 0x9af   :  { %v5234_v22 = vpack.c.bf16 %v4951_v17, %v4947_v39 }
 0x9b0   :  { %10399 = vst [vmem:[#allocation36_spill] sm:$0xff] %v9919_v33  ;;  %v5235_v19 = vpack.c.bf16 %v4953_v41, %v4949_v20 }
 0x9b2   :  { %v4956_v38 = vpop.f32.mrb[212].mxu1  ;;  %v6851_v47 = vpop.f32.mrb[84].mxu0  ;;  %5708 = vmatprep.mubr.bf16.mxu1 %v5235_v19 }
 0x9b3   :  { %v4958_v9 = vpop.f32.mrb[213].mxu1  ;;  %v6852_v46 = vpop.f32.mrb[85].mxu0  ;;  %5709 = vmatmul.mubr.bf16.gmra.mrb[36].mxu1 %v5234_v22  ;;  %v4957_v51 = vadd.f32 %v4956_v38, %v9870_v50 }
 0x9b4   :  { %v9924_v58 = vadd.f32 %v6852_v46, %v6851_v47  ;;  %v4960_v4 = vpop.f32.mrb[214].mxu1  ;;  %v6854_v48 = vpop.f32.mrb[86].mxu0  ;;  %v4959_v35 = vadd.f32 %v4958_v9, %v9873_v1 }
 0x9b5   :  { %v4961_v52 = vadd.f32 %v4960_v4, %v9870_v50  ;;  %v4962_v27 = vpop.f32.mrb[215].mxu1  ;;  %v6855_v43 = vpop.f32.mrb[87].mxu0 }
 0x9b6   :  { %v4963_v21 = vadd.f32 %v4962_v27, %v9873_v1  ;;  %v9930_v11 = vadd.f32 %v6855_v43, %v6854_v48 }
 0x9b7   :  { %v5236_v56 = vpack.c.bf16 %v4961_v52, %v4957_v51 }
 0x9b8   :  { %v5237_v3 = vpack.c.bf16 %v4963_v21, %v4959_v35 }
 0x9ba   :  { %v4966_v63 = vpop.f32.mrb[216].mxu1  ;;  %v6857_v28 = vpop.f32.mrb[88].mxu0  ;;  %5716 = vmatprep.mubr.bf16.mxu1 %v5237_v3 }
 0x9bb   :  { %v4968_v10 = vpop.f32.mrb[217].mxu1  ;;  %v6858_v18 = vpop.f32.mrb[89].mxu0  ;;  %5717 = vmatmul.mubr.bf16.gmra.mrb[40].mxu1 %v5236_v56  ;;  %v4967_v54 = vadd.f32 %v4966_v63, %v9870_v50 }
 0x9bc   :  { %v9932_v34 = vadd.f32 %v6858_v18, %v6857_v28  ;;  %v4970_v25 = vpop.f32.mrb[218].mxu1  ;;  %v6860_v29 = vpop.f32.mrb[90].mxu0  ;;  %v4969_v49 = vadd.f32 %v4968_v10, %v9873_v1 }
 0x9bd   :  { %v4971_v59 = vadd.f32 %v4970_v25, %v9870_v50  ;;  %v4972_v61 = vpop.f32.mrb[219].mxu1  ;;  %v6861_v42 = vpop.f32.mrb[91].mxu0 }
 0x9be   :  { %10400 = vst [vmem:[#allocation37_spill] sm:$0xff] %v9932_v34  ;;  %v4973_v6 = vadd.f32 %v4972_v61, %v9873_v1  ;;  %v9938_v26 = vadd.f32 %v6861_v42, %v6860_v29 }
 0x9bf   :  { %v5238_v62 = vpack.c.bf16 %v4971_v59, %v4967_v54 }
 0x9c0   :  { %10401 = vst [vmem:[#allocation38_spill] sm:$0xff] %v9938_v26  ;;  %v5239_v2 = vpack.c.bf16 %v4973_v6, %v4969_v49 }
 0x9c2   :  { %v4976_v23 = vpop.f32.mrb[220].mxu1  ;;  %v6863_v55 = vpop.f32.mrb[92].mxu0  ;;  %5724 = vmatprep.mubr.bf16.mxu1 %v5239_v2 }
 0x9c3   :  { %v4978_v57 = vpop.f32.mrb[221].mxu1  ;;  %v6864_v7 = vpop.f32.mrb[93].mxu0  ;;  %5725 = vmatmul.mubr.bf16.gmra.mrb[44].mxu1 %v5238_v62  ;;  %v4977_v40 = vadd.f32 %v4976_v23, %v9870_v50 }
 0x9c4   :  { %v9940_v13 = vadd.f32 %v6864_v7, %v6863_v55  ;;  %v4980_v15 = vpop.f32.mrb[222].mxu1  ;;  %v6866_v37 = vpop.f32.mrb[94].mxu0  ;;  %v4979_v30 = vadd.f32 %v4978_v57, %v9873_v1 }
 0x9c5   :  { %v4981_v39 = vadd.f32 %v4980_v15, %v9870_v50  ;;  %v4982_v17 = vpop.f32.mrb[223].mxu1  ;;  %v6867_v24 = vpop.f32.mrb[95].mxu0 }
 0x9c6   :  { %10402 = vst [vmem:[#allocation39_spill] sm:$0xff] %v9940_v13  ;;  %v4983_v60 = vadd.f32 %v4982_v17, %v9873_v1  ;;  %v9946_v20 = vadd.f32 %v6867_v24, %v6866_v37 }
 0x9c7   :  { %v5240_v41 = vpack.c.bf16 %v4981_v39, %v4977_v40 }
 0x9c8   :  { %10403 = vst [vmem:[#allocation40_spill] sm:$0xff] %v9946_v20  ;;  %v5241_v22 = vpack.c.bf16 %v4983_v60, %v4979_v30 }
 0x9ca   :  { %v4986_v0 = vpop.f32.mrb[224].mxu1  ;;  %v6869_v19 = vpop.f32.mrb[96].mxu0  ;;  %5732 = vmatprep.mubr.bf16.mxu1 %v5241_v22 }
 0x9cb   :  { %v4988_v38 = vpop.f32.mrb[225].mxu1  ;;  %v6870_v47 = vpop.f32.mrb[97].mxu0  ;;  %5733 = vmatmul.mubr.bf16.gmra.mrb[48].mxu1 %v5240_v41  ;;  %v4987_v48 = vadd.f32 %v4986_v0, %v9870_v50 }
 0x9cc   :  { %v9948_v9 = vadd.f32 %v6870_v47, %v6869_v19  ;;  %v4990_v46 = vpop.f32.mrb[226].mxu1  ;;  %v6872_v4 = vpop.f32.mrb[98].mxu0  ;;  %v4989_v43 = vadd.f32 %v4988_v38, %v9873_v1 }
 0x9cd   :  { %v4991_v51 = vadd.f32 %v4990_v46, %v9870_v50  ;;  %v4992_v52 = vpop.f32.mrb[227].mxu1  ;;  %v6873_v27 = vpop.f32.mrb[99].mxu0 }
 0x9ce   :  { %10404 = vst [vmem:[#allocation41_spill] sm:$0xff] %v9948_v9  ;;  %v4993_v35 = vadd.f32 %v4992_v52, %v9873_v1  ;;  %v9954_v21 = vadd.f32 %v6873_v27, %v6872_v4 }
 0x9cf   :  { %v5242_v56 = vpack.c.bf16 %v4991_v51, %v4987_v48 }
 0x9d0   :  { %10405 = vst [vmem:[#allocation42_spill] sm:$0xff] %v9954_v21  ;;  %v5243_v3 = vpack.c.bf16 %v4993_v35, %v4989_v43 }
 0x9d2   :  { %v4996_v63 = vpop.f32.mrb[228].mxu1  ;;  %v6875_v28 = vpop.f32.mrb[100].mxu0  ;;  %5740 = vmatprep.mubr.bf16.mxu1 %v5243_v3 }
 0x9d3   :  { %v4998_v10 = vpop.f32.mrb[229].mxu1  ;;  %v6876_v18 = vpop.f32.mrb[101].mxu0  ;;  %5741 = vmatmul.mubr.bf16.gmra.mrb[52].mxu1 %v5242_v56  ;;  %v4997_v59 = vadd.f32 %v4996_v63, %v9870_v50 }
 0x9d4   :  { %v9956_v25 = vadd.f32 %v6876_v18, %v6875_v28  ;;  %v5000_v29 = vpop.f32.mrb[230].mxu1  ;;  %v6878_v54 = vpop.f32.mrb[102].mxu0  ;;  %v4999_v6 = vadd.f32 %v4998_v10, %v9873_v1 }
 0x9d5   :  { %v5001_v61 = vadd.f32 %v5000_v29, %v9870_v50  ;;  %v5002_v42 = vpop.f32.mrb[231].mxu1  ;;  %v6879_v49 = vpop.f32.mrb[103].mxu0  ;;  %v7707_v29 = vld [vmem:[%s10362_s24 + $0x18] sm:$0xff]  }
 0x9d6   :  { %10406 = vst [vmem:[#allocation43_spill] sm:$0xff] %v9956_v25  ;;  %v5003_v62 = vadd.f32 %v5002_v42, %v9873_v1  ;;  %v9962_v2 = vadd.f32 %v6879_v49, %v6878_v54  ;;  %7113 = vmatprep.subr.bf16.mxu0 %v7707_v29  ;;  %v7708_v49 = vld [vmem:[%s10362_s24 + $0x20] sm:$0xff]  }
 0x9d7   :  { %v5244_v23 = vpack.c.bf16 %v5001_v61, %v4997_v59  ;;  %7114 = vmatpush3.bf16.msra.mxu0 %v7707_v29  ;;  %v7711_v29 = vld [vmem:[%s10362_s24 + $0x38] sm:$0xff]  }
 0x9d8   :  { %10407 = vst [vmem:[#allocation44_spill] sm:$0xff] %v9962_v2  ;;  %v5245_v55 = vpack.c.bf16 %v5003_v62, %v4999_v6  ;;  %7115 = vmatprep.subr.bf16.mxu0 %v7708_v49 }
 0x9da   :  { %v5006_v57 = vpop.f32.mrb[232].mxu1  ;;  %v6881_v7 = vpop.f32.mrb[104].mxu0  ;;  %5748 = vmatprep.mubr.bf16.mxu1 %v5245_v55 }
 0x9db   :  { %v5008_v15 = vpop.f32.mrb[233].mxu1  ;;  %v6882_v37 = vpop.f32.mrb[105].mxu0  ;;  %5749 = vmatmul.mubr.bf16.gmra.mrb[56].mxu1 %v5244_v23  ;;  %v5007_v24 = vadd.f32 %v5006_v57, %v9870_v50  ;;  %7116 = vmatpush3.bf16.msra.mxu0 %v7708_v49 }
 0x9dc   :  { %v9964_v40 = vadd.f32 %v6882_v37, %v6881_v7  ;;  %v5010_v39 = vpop.f32.mrb[234].mxu1  ;;  %v6884_v17 = vpop.f32.mrb[106].mxu0  ;;  %v5009_v22 = vadd.f32 %v5008_v15, %v9873_v1 }
 0x9dd   :  { %v5011_v30 = vadd.f32 %v5010_v39, %v9870_v50  ;;  %v5012_v60 = vpop.f32.mrb[235].mxu1  ;;  %v6885_v41 = vpop.f32.mrb[107].mxu0 }
 0x9de   :  { %10408 = vst [vmem:[#allocation45_spill] sm:$0xff] %v9964_v40  ;;  %v5013_v0 = vadd.f32 %v5012_v60, %v9873_v1  ;;  %v9970_v19 = vadd.f32 %v6885_v41, %v6884_v17  ;;  %v7709_v60 = vld [vmem:[%s10362_s24 + $0x28] sm:$0xff]  }
 0x9df   :  { %v5246_v38 = vpack.c.bf16 %v5011_v30, %v5007_v24  ;;  %7117 = vmatprep.subr.bf16.mxu0 %v7709_v60 }
 0x9e0   :  { %10409 = vst [vmem:[#allocation46_spill] sm:$0xff] %v9970_v19  ;;  %v5247_v47 = vpack.c.bf16 %v5013_v0, %v5009_v22  ;;  %7118 = vmatpush3.bf16.msra.mxu0 %v7709_v60 }
 0x9e2   :  { %v5016_v46 = vpop.f32.mrb[236].mxu1  ;;  %v6887_v4 = vpop.f32.mrb[108].mxu0  ;;  %5756 = vmatprep.mubr.bf16.mxu1 %v5247_v47  ;;  %v7710_v47 = vld [vmem:[%s10362_s24 + $0x30] sm:$0xff]  }
 0x9e3   :  { %v5018_v48 = vpop.f32.mrb[237].mxu1  ;;  %v6888_v51 = vpop.f32.mrb[109].mxu0  ;;  %5757 = vmatmul.mubr.bf16.gmra.mrb[60].mxu1 %v5246_v38  ;;  %v5017_v35 = vadd.f32 %v5016_v46, %v9870_v50  ;;  %7119 = vmatprep.subr.bf16.mxu0 %v7710_v47 }
 0x9e4   :  { %v9972_v52 = vadd.f32 %v6888_v51, %v6887_v4  ;;  %v5020_v27 = vpop.f32.mrb[238].mxu1  ;;  %v6890_v43 = vpop.f32.mrb[110].mxu0  ;;  %v5019_v28 = vadd.f32 %v5018_v48, %v9873_v1  ;;  %7120 = vmatpush3.bf16.msra.mxu0 %v7710_v47 }
 0x9e5   :  { %v5021_v56 = vadd.f32 %v5020_v27, %v9870_v50  ;;  %v5022_v3 = vpop.f32.mrb[239].mxu1  ;;  %v6891_v63 = vpop.f32.mrb[111].mxu0  ;;  %7121 = vmatprep.subr.bf16.mxu0 %v7711_v29 }
 0x9e6   :  { %10410 = vst [vmem:[#allocation47_spill] sm:$0xff] %v9972_v52  ;;  %v5023_v10 = vadd.f32 %v5022_v3, %v9873_v1  ;;  %v9978_v18 = vadd.f32 %v6891_v63, %v6890_v43 }
 0x9e7   :  { %v5248_v54 = vpack.c.bf16 %v5021_v56, %v5017_v35 }
 0x9e8   :  { %10411 = vst [vmem:[#allocation48_spill] sm:$0xff] %v9978_v18  ;;  %v5249_v59 = vpack.c.bf16 %v5023_v10, %v5019_v28  ;;  %7122 = vmatpush3.bf16.msra.mxu0 %v7711_v29 }
 0x9ea   :  { %v5026_v61 = vpop.f32.mrb[240].mxu1  ;;  %v6893_v42 = vpop.f32.mrb[112].mxu0  ;;  %5764 = vmatprep.mubr.bf16.mxu1 %v5249_v59 }
 0x9eb   :  { %v5028_v6 = vpop.f32.mrb[241].mxu1  ;;  %v6894_v62 = vpop.f32.mrb[113].mxu0  ;;  %5765 = vmatmul.mubr.bf16.gmra.mrb[64].mxu1 %v5248_v54  ;;  %v5027_v7 = vadd.f32 %v5026_v61, %v9870_v50 }
 0x9ec   :  { %v9986_v23 = vadd.f32 %v6894_v62, %v6893_v42  ;;  %v5030_v55 = vpop.f32.mrb[242].mxu1  ;;  %v6896_v57 = vpop.f32.mrb[114].mxu0  ;;  %v5029_v17 = vadd.f32 %v5028_v6, %v9873_v1 }
 0x9ed   :  { %v5031_v15 = vadd.f32 %v5030_v55, %v9870_v50  ;;  %v5032_v37 = vpop.f32.mrb[243].mxu1  ;;  %v6897_v39 = vpop.f32.mrb[115].mxu0 }
 0x9ee   :  { %10412 = vst [vmem:[#allocation49_spill] sm:$0xff] %v9986_v23  ;;  %v5033_v24 = vadd.f32 %v5032_v37, %v9873_v1  ;;  %v9992_v30 = vadd.f32 %v6897_v39, %v6896_v57 }
 0x9ef   :  { %v5250_v41 = vpack.c.bf16 %v5031_v15, %v5027_v7 }
 0x9f0   :  { %10413 = vst [vmem:[#allocation50_spill] sm:$0xff] %v9992_v30  ;;  %v5251_v22 = vpack.c.bf16 %v5033_v24, %v5029_v17 }
 0x9f2   :  { %v5036_v0 = vpop.f32.mrb[244].mxu1  ;;  %v6899_v38 = vpop.f32.mrb[116].mxu0  ;;  %5772 = vmatprep.mubr.bf16.mxu1 %v5251_v22 }
 0x9f3   :  { %v5038_v46 = vpop.f32.mrb[245].mxu1  ;;  %v6900_v4 = vpop.f32.mrb[117].mxu0  ;;  %5773 = vmatmul.mubr.bf16.gmra.mrb[68].mxu1 %v5250_v41  ;;  %v5037_v43 = vadd.f32 %v5036_v0, %v9870_v50 }
 0x9f4   :  { %v10000_v48 = vadd.f32 %v6900_v4, %v6899_v38  ;;  %v5040_v51 = vpop.f32.mrb[246].mxu1  ;;  %v6902_v27 = vpop.f32.mrb[118].mxu0  ;;  %v5039_v63 = vadd.f32 %v5038_v46, %v9873_v1 }
 0x9f5   :  { %v5041_v35 = vadd.f32 %v5040_v51, %v9870_v50  ;;  %v5042_v56 = vpop.f32.mrb[247].mxu1  ;;  %v6903_v3 = vpop.f32.mrb[119].mxu0 }
 0x9f6   :  { %10414 = vst [vmem:[#allocation51_spill] sm:$0xff] %v10000_v48  ;;  %v5043_v28 = vadd.f32 %v5042_v56, %v9873_v1  ;;  %v10006_v10 = vadd.f32 %v6903_v3, %v6902_v27 }
 0x9f7   :  { %v5252_v54 = vpack.c.bf16 %v5041_v35, %v5037_v43 }
 0x9f8   :  { %10415 = vst [vmem:[#allocation52_spill] sm:$0xff] %v10006_v10  ;;  %v5253_v59 = vpack.c.bf16 %v5043_v28, %v5039_v63  ;;  %v10088_v10 = vld [vmem:[%s10420_s27] ss:$0 sm:$0xff] }
 0x9fa   :  { %v5046_v61 = vpop.f32.mrb[248].mxu1  ;;  %v6905_v42 = vpop.f32.mrb[120].mxu0  ;;  %5780 = vmatprep.mubr.bf16.mxu1 %v5253_v59 }
 0x9fb   :  { %v5048_v49 = vpop.f32.mrb[249].mxu1  ;;  %v6906_v6 = vpop.f32.mrb[121].mxu0  ;;  %5781 = vmatmul.mubr.bf16.gmra.mrb[72].mxu1 %v5252_v54  ;;  %v5047_v7 = vadd.f32 %v5046_v61, %v9870_v50 }
 0x9fc   :  { %v10011_v62 = vadd.f32 %v6906_v6, %v6905_v42  ;;  %v5050_v55 = vpop.f32.mrb[250].mxu1  ;;  %v6908_v57 = vpop.f32.mrb[122].mxu0  ;;  %v5049_v17 = vadd.f32 %v5048_v49, %v9873_v1 }
 0x9fd   :  { %v5051_v15 = vadd.f32 %v5050_v55, %v9870_v50  ;;  %v5052_v37 = vpop.f32.mrb[251].mxu1  ;;  %v6909_v39 = vpop.f32.mrb[123].mxu0 }
 0x9fe   :  { %10416 = vst [vmem:[#allocation53_spill] sm:$0xff] %v10011_v62  ;;  %v5053_v24 = vadd.f32 %v5052_v37, %v9873_v1  ;;  %v10017_v60 = vadd.f32 %v6909_v39, %v6908_v57 }
 0x9ff   :  { %v5254_v41 = vpack.c.bf16 %v5051_v15, %v5047_v7 }
 0xa00   :  { %10417 = vst [vmem:[#allocation54_spill] sm:$0xff] %v10017_v60  ;;  %v5255_v22 = vpack.c.bf16 %v5053_v24, %v5049_v17 }
 0xa02   :  { %v5056_v0 = vpop.f32.mrb[252].mxu1  ;;  %5788 = vmatprep.mubr.bf16.mxu1 %v5255_v22  ;;  %v10019_v38 = vpop.f32.mrb[124].mxu0 }
 0xa03   :  { %v5058_v47 = vpop.f32.mrb[253].mxu1  ;;  %5789 = vmatmul.mubr.bf16.gmra.mrb[76].mxu1 %v5254_v41  ;;  %v5421_v46 = vpop.f32.mrb[125].mxu0  ;;  %v5057_v27 = vadd.f32 %v5056_v0, %v9870_v50 }
 0xa04   :  { %v5060_v4 = vpop.f32.mrb[254].mxu1  ;;  %v10021_v51 = vpop.f32.mrb[126].mxu0  ;;  %v5059_v3 = vadd.f32 %v5058_v47, %v9873_v1 }
 0xa05   :  { %v5061_v43 = vadd.f32 %v5060_v4, %v9870_v50  ;;  %v5062_v35 = vpop.f32.mrb[255].mxu1  ;;  %v5424_v56 = vpop.f32.mrb[127].mxu0 }
 0xa06   :  { %v5063_v63 = vadd.f32 %v5062_v35, %v9873_v1 }
 0xa07   :  { %v5256_v28 = vpack.c.bf16 %v5061_v43, %v5057_v27 }
 0xa08   :  { %v5257_v29 = vpack.c.bf16 %v5063_v63, %v5059_v3 }
 0xa0a   :  { %v6911_v54 = vpop.f32.mrb[0].mxu1  ;;  %5796 = vmatprep.mubr.bf16.mxu1 %v5257_v29  ;;  %v10027_v59 = vpop.f32.mrb[128].mxu0 }
 0xa0b   :  { %v6912_v61 = vpop.f32.mrb[1].mxu1  ;;  %5797 = vmatmul.mubr.bf16.gmra.mrb[80].mxu1 %v5256_v28  ;;  %v10029_v42 = vpop.f32.mrb[129].mxu0 }
 0xa0c   :  { %v10031_v49 = vadd.f32 %v6912_v61, %v6911_v54  ;;  %v6914_v6 = vpop.f32.mrb[2].mxu1  ;;  %v10033_v50 = vpop.f32.mrb[130].mxu0 }
 0xa0d   :  { %v6915_v55 = vpop.f32.mrb[3].mxu1  ;;  %v5440_v57 = vpop.f32.mrb[131].mxu0 }
 0xa0e   :  { %10418 = vst [vmem:[#allocation55_spill] sm:$0xff] %v10031_v49  ;;  %v10035_v7 = vadd.f32 %v6915_v55, %v6914_v6 }
 0xa10   :  { %10419 = vst [vmem:[#allocation56_spill] sm:$0xff] %v10035_v7 }
 0xa12   :  { %v10037_v1 = vpop.f32.mrb[4].mxu1  ;;  %v10039_v15 = vpop.f32.mrb[132].mxu0 }
 0xa13   :  { %v10041_v37 = vpop.f32.mrb[5].mxu1  ;;  %v10043_v39 = vpop.f32.mrb[133].mxu0 }
 0xa14   :  { %v10045_v17 = vpop.f32.mrb[6].mxu1  ;;  %v10047_v24 = vpop.f32.mrb[134].mxu0 }
 0xa15   :  { %v10049_v41 = vpop.f32.mrb[7].mxu1  ;;  %v10051_v22 = vpop.f32.mrb[135].mxu0 }
 0xa1a   :  { %v10053_v0 = vpop.f32.mrb[8].mxu1  ;;  %v10055_v47 = vpop.f32.mrb[136].mxu0 }
 0xa1b   :  { %v10057_v4 = vpop.f32.mrb[9].mxu1  ;;  %v10059_v27 = vpop.f32.mrb[137].mxu0 }
 0xa1c   :  { %v10061_v43 = vpop.f32.mrb[10].mxu1  ;;  %v10063_v35 = vpop.f32.mrb[138].mxu0 }
 0xa1d   :  { %v10065_v3 = vpop.f32.mrb[11].mxu1  ;;  %v10067_v63 = vpop.f32.mrb[139].mxu0 }
 0xa22   :  { %v10069_v28 = vpop.f32.mrb[12].mxu1 }
 0xa23   :  { %v10071_v29 = vpop.f32.mrb[13].mxu1 }
 0xa24   :  { %v10073_v54 = vpop.f32.mrb[14].mxu1 }
 0xa25   :  { %v10075_v61 = vpop.f32.mrb[15].mxu1 }
 0xa2a   :  { %v10077_v6 = vpop.f32.mrb[16].mxu1 }
 0xa2b   :  { %v10079_v55 = vpop.f32.mrb[17].mxu1 }
 0xa2c   :  { %v10081_v32 = vpop.f32.mrb[18].mxu1 }
 0xa2d   :  { %v10083_v60 = vpop.f32.mrb[19].mxu1 }
 0xa66   :  { %v6951_v7 = vpop.f32.mrb[20].mxu1 }
 0xa67   :  { %v6952_v62 = vpop.f32.mrb[21].mxu1 }
 0xa68   :  { %v6953_v49 = vadd.f32 %v6952_v62, %v6951_v7  ;;  %v6954_v30 = vpop.f32.mrb[22].mxu1 }
 0xa69   :  { %v6955_v23 = vpop.f32.mrb[23].mxu1 }
 0xa6a   :  { %v5679_v48 = vadd.f32 %v6953_v49, %v5421_v46  ;;  %v6956_v19 = vadd.f32 %v6955_v23, %v6954_v30 }
 0xa6c   :  { %v5812_v18 = vadd.f32 %v10088_v10, %v5679_v48  ;;  %v5682_v40 = vadd.f32 %v6956_v19, %v5424_v56 }
 0xa6e   :  { %v5813_v52 = vadd.f32 %v10088_v10, %v5682_v40  ;;  %v6957_v21 = vpop.f32.mrb[24].mxu1  ;;  %v5844_v9 = vmax.f32 %v5812_v18, 0.0 }
 0xa6f   :  { %v6958_v2 = vpop.f32.mrb[25].mxu1 }
 0xa70   :  { %v5845_v25 = vmax.f32 %v5813_v52, 0.0  ;;  %v6959_v26 = vadd.f32 %v6958_v2, %v6957_v21  ;;  %v6960_v62 = vpop.f32.mrb[26].mxu1 }
 0xa71   :  { %v6961_v7 = vpop.f32.mrb[27].mxu1 }
 0xa72   :  { %v5687_v20 = vadd.f32 %v10019_v38, %v6959_v26  ;;  %v6962_v34 = vadd.f32 %v6961_v7, %v6960_v62  ;;  %v5876_v13 = vpack.c.bf16 %v5845_v25, %v5844_v9 }
 0xa74   :  { %v5814_v33 = vadd.f32 %v10088_v10, %v5687_v20  ;;  %v5690_v23 = vadd.f32 %v10021_v51, %v6962_v34  ;;  %7123 = vmatprep.mubr.bf16.mxu0 %v5876_v13 }
 0xa76   :  { %v5815_v19 = vadd.f32 %v10088_v10, %v5690_v23  ;;  %v6963_v30 = vpop.f32.mrb[28].mxu1  ;;  %v5846_v48 = vmax.f32 %v5814_v33, 0.0 }
 0xa77   :  { %v6964_v40 = vpop.f32.mrb[29].mxu1 }
 0xa78   :  { %v5847_v46 = vmax.f32 %v5815_v19, 0.0  ;;  %v6965_v18 = vadd.f32 %v6964_v40, %v6963_v30  ;;  %v6966_v52 = vpop.f32.mrb[30].mxu1 }
 0xa79   :  { %v6967_v21 = vpop.f32.mrb[31].mxu1 }
 0xa7a   :  { %v5877_v2 = vpack.c.bf16 %v5847_v46, %v5846_v48  ;;  %v5695_v56 = vadd.f32 %v6965_v18, %v10029_v42  ;;  %v6968_v26 = vadd.f32 %v6967_v21, %v6966_v52 }
 0xa7c   :  { %v5816_v9 = vadd.f32 %v10088_v10, %v5695_v56  ;;  %v5698_v25 = vadd.f32 %v6968_v26, %v5440_v57  ;;  %7124 = vmatmul.mubr.bf16.vlgmr.msra.gmra.mrb[140].mxu0 %v5877_v2 }
 0xa7e   :  { %v5817_v34 = vadd.f32 %v10088_v10, %v5698_v25  ;;  %v6969_v13 = vpop.f32.mrb[32].mxu1  ;;  %v5848_v38 = vmax.f32 %v5816_v9, 0.0 }
 0xa7f   :  { %v6970_v20 = vpop.f32.mrb[33].mxu1 }
 0xa80   :  { %v5849_v51 = vmax.f32 %v5817_v34, 0.0  ;;  %v6971_v49 = vadd.f32 %v6970_v20, %v6969_v13  ;;  %v6972_v33 = vpop.f32.mrb[34].mxu1 }
 0xa81   :  { %v6973_v62 = vpop.f32.mrb[35].mxu1 }
 0xa82   :  { %v5703_v7 = vadd.f32 %v10027_v59, %v6971_v49  ;;  %v6974_v23 = vadd.f32 %v6973_v62, %v6972_v33  ;;  %v5878_v19 = vpack.c.bf16 %v5849_v51, %v5848_v38 }
 0xa84   :  { %v5818_v42 = vadd.f32 %v10088_v10, %v5703_v7  ;;  %v5706_v30 = vadd.f32 %v10033_v50, %v6974_v23  ;;  %7127 = vmatprep.mubr.bf16.mxu0 %v5878_v19 }
 0xa86   :  { %v5819_v57 = vadd.f32 %v10088_v10, %v5706_v30  ;;  %v6975_v40 = vpop.f32.mrb[36].mxu1  ;;  %v5850_v46 = vmax.f32 %v5818_v42, 0.0 }
 0xa87   :  { %v6976_v48 = vpop.f32.mrb[37].mxu1 }
 0xa88   :  { %v5851_v18 = vmax.f32 %v5819_v57, 0.0  ;;  %v6977_v52 = vadd.f32 %v6976_v48, %v6975_v40  ;;  %v6978_v21 = vpop.f32.mrb[38].mxu1 }
 0xa89   :  { %v6979_v2 = vpop.f32.mrb[39].mxu1 }
 0xa8a   :  { %v5879_v56 = vpack.c.bf16 %v5851_v18, %v5850_v46  ;;  %v5711_v26 = vadd.f32 %v6977_v52, %v10043_v39  ;;  %v6980_v59 = vadd.f32 %v6979_v2, %v6978_v21 }
 0xa8c   :  { %v5820_v9 = vadd.f32 %v10088_v10, %v5711_v26  ;;  %v5714_v25 = vadd.f32 %v6980_v59, %v10051_v22  ;;  %7128 = vmatmul.mubr.bf16.gmra.mrb[144].mxu0 %v5879_v56 }
 0xa8e   :  { %v5821_v50 = vadd.f32 %v10088_v10, %v5714_v25  ;;  %v6981_v34 = vpop.f32.mrb[40].mxu1  ;;  %v5852_v20 = vmax.f32 %v5820_v9, 0.0 }
 0xa8f   :  { %v6982_v13 = vpop.f32.mrb[41].mxu1 }
 0xa90   :  { %v5853_v38 = vmax.f32 %v5821_v50, 0.0  ;;  %v6983_v51 = vadd.f32 %v6982_v13, %v6981_v34  ;;  %v6984_v49 = vpop.f32.mrb[42].mxu1 }
 0xa91   :  { %v6985_v33 = vpop.f32.mrb[43].mxu1 }
 0xa92   :  { %v5719_v62 = vadd.f32 %v10039_v15, %v6983_v51  ;;  %v6986_v7 = vadd.f32 %v6985_v33, %v6984_v49  ;;  %v5880_v23 = vpack.c.bf16 %v5853_v38, %v5852_v20 }
 0xa94   :  { %v5822_v39 = vadd.f32 %v10088_v10, %v5719_v62  ;;  %v5722_v19 = vadd.f32 %v10047_v24, %v6986_v7  ;;  %7131 = vmatprep.mubr.bf16.mxu0 %v5880_v23 }
 0xa96   :  { %v5823_v22 = vadd.f32 %v10088_v10, %v5722_v19  ;;  %v6987_v42 = vpop.f32.mrb[44].mxu1  ;;  %v5854_v57 = vmax.f32 %v5822_v39, 0.0 }
 0xa97   :  { %v6988_v30 = vpop.f32.mrb[45].mxu1 }
 0xa98   :  { %v5855_v40 = vmax.f32 %v5823_v22, 0.0  ;;  %v6989_v48 = vadd.f32 %v6988_v30, %v6987_v42  ;;  %v6990_v46 = vpop.f32.mrb[46].mxu1 }
 0xa99   :  { %v6991_v18 = vpop.f32.mrb[47].mxu1 }
 0xa9a   :  { %v5881_v52 = vpack.c.bf16 %v5855_v40, %v5854_v57  ;;  %v5727_v21 = vadd.f32 %v6989_v48, %v10059_v27  ;;  %v6992_v15 = vadd.f32 %v6991_v18, %v6990_v46 }
 0xa9c   :  { %v5824_v2 = vadd.f32 %v10088_v10, %v5727_v21  ;;  %v5730_v56 = vadd.f32 %v6992_v15, %v10067_v63  ;;  %7132 = vmatmul.mubr.bf16.gmra.mrb[148].mxu0 %v5881_v52 }
 0xa9e   :  { %v5825_v24 = vadd.f32 %v10088_v10, %v5730_v56  ;;  %v6993_v26 = vpop.f32.mrb[48].mxu1  ;;  %v5856_v9 = vmax.f32 %v5824_v2, 0.0 }
 0xa9f   :  { %v6994_v59 = vpop.f32.mrb[49].mxu1 }
 0xaa0   :  { %v5857_v25 = vmax.f32 %v5825_v24, 0.0  ;;  %v6995_v50 = vadd.f32 %v6994_v59, %v6993_v26  ;;  %v6996_v34 = vpop.f32.mrb[50].mxu1 }
 0xaa1   :  { %v6997_v13 = vpop.f32.mrb[51].mxu1 }
 0xaa2   :  { %v5735_v20 = vadd.f32 %v10055_v47, %v6995_v50  ;;  %v6998_v38 = vadd.f32 %v6997_v13, %v6996_v34  ;;  %v5882_v51 = vpack.c.bf16 %v5857_v25, %v5856_v9 }
 0xaa4   :  { %v5826_v27 = vadd.f32 %v10088_v10, %v5735_v20  ;;  %v5738_v49 = vadd.f32 %v10063_v35, %v6998_v38  ;;  %7135 = vmatprep.mubr.bf16.mxu0 %v5882_v51 }
 0xaa6   :  { %v5827_v63 = vadd.f32 %v10088_v10, %v5738_v49  ;;  %v6999_v33 = vpop.f32.mrb[52].mxu1  ;;  %v5858_v7 = vmax.f32 %v5826_v27, 0.0 }
 0xaa7   :  { %v7000_v62 = vpop.f32.mrb[53].mxu1 }
 0xaa8   :  { %v5859_v23 = vmax.f32 %v5827_v63, 0.0  ;;  %v7001_v39 = vadd.f32 %v7000_v62, %v6999_v33  ;;  %v7002_v19 = vpop.f32.mrb[54].mxu1 }
 0xaa9   :  { %v7003_v22 = vpop.f32.mrb[55].mxu1 }
 0xaaa   :  { %v5883_v42 = vpack.c.bf16 %v5859_v23, %v5858_v7  ;;  %v5743_v30 = vadd.f32 %v7001_v39, %v10041_v37  ;;  %v7004_v47 = vadd.f32 %v7003_v22, %v7002_v19 }
 0xaac   :  { %v5828_v57 = vadd.f32 %v10088_v10, %v5743_v30  ;;  %v5746_v40 = vadd.f32 %v7004_v47, %v10049_v41  ;;  %7136 = vmatmul.mubr.bf16.gmra.mrb[152].mxu0 %v5883_v42 }
 0xaae   :  { %v5829_v35 = vadd.f32 %v10088_v10, %v5746_v40  ;;  %v7005_v48 = vpop.f32.mrb[56].mxu1  ;;  %v5860_v18 = vmax.f32 %v5828_v57, 0.0 }
 0xaaf   :  { %v7006_v46 = vpop.f32.mrb[57].mxu1 }
 0xab0   :  { %v5861_v52 = vmax.f32 %v5829_v35, 0.0  ;;  %v7007_v21 = vadd.f32 %v7006_v46, %v7005_v48  ;;  %v7008_v15 = vpop.f32.mrb[58].mxu1 }
 0xab1   :  { %v7009_v2 = vpop.f32.mrb[59].mxu1 }
 0xab2   :  { %v5751_v56 = vadd.f32 %v10037_v1, %v7007_v21  ;;  %v7010_v24 = vadd.f32 %v7009_v2, %v7008_v15  ;;  %v5884_v26 = vpack.c.bf16 %v5861_v52, %v5860_v18 }
 0xab4   :  { %v5830_v37 = vadd.f32 %v10088_v10, %v5751_v56  ;;  %v5754_v59 = vadd.f32 %v10045_v17, %v7010_v24  ;;  %7139 = vmatprep.mubr.bf16.mxu0 %v5884_v26 }
 0xab6   :  { %v5831_v41 = vadd.f32 %v10088_v10, %v5754_v59  ;;  %v7011_v9 = vpop.f32.mrb[60].mxu1  ;;  %v5862_v50 = vmax.f32 %v5830_v37, 0.0 }
 0xab7   :  { %v7012_v25 = vpop.f32.mrb[61].mxu1 }
 0xab8   :  { %v5863_v34 = vmax.f32 %v5831_v41, 0.0  ;;  %v7013_v13 = vadd.f32 %v7012_v25, %v7011_v9  ;;  %v7014_v20 = vpop.f32.mrb[62].mxu1 }
 0xab9   :  { %v7015_v38 = vpop.f32.mrb[63].mxu1 }
 0xaba   :  { %v5885_v51 = vpack.c.bf16 %v5863_v34, %v5862_v50  ;;  %v5759_v27 = vadd.f32 %v7013_v13, %v10057_v4  ;;  %v7016_v1 = vadd.f32 %v7015_v38, %v7014_v20 }
 0xabc   :  { %v5832_v49 = vadd.f32 %v10088_v10, %v5759_v27  ;;  %v5762_v63 = vadd.f32 %v7016_v1, %v10065_v3  ;;  %7140 = vmatmul.mubr.bf16.gmra.mrb[156].mxu0 %v5885_v51 }
 0xabe   :  { %v5833_v17 = vadd.f32 %v10088_v10, %v5762_v63  ;;  %v7017_v33 = vpop.f32.mrb[64].mxu1  ;;  %v5864_v7 = vmax.f32 %v5832_v49, 0.0 }
 0xabf   :  { %v7018_v62 = vpop.f32.mrb[65].mxu1 }
 0xac0   :  { %v5865_v23 = vmax.f32 %v5833_v17, 0.0  ;;  %v7019_v39 = vadd.f32 %v7018_v62, %v7017_v33  ;;  %v7020_v19 = vpop.f32.mrb[66].mxu1 }
 0xac1   :  { %v7021_v22 = vpop.f32.mrb[67].mxu1 }
 0xac2   :  { %v5767_v42 = vadd.f32 %v10053_v0, %v7019_v39  ;;  %v7022_v30 = vadd.f32 %v7021_v22, %v7020_v19  ;;  %v5886_v47 = vpack.c.bf16 %v5865_v23, %v5864_v7 }
 0xac4   :  { %v5834_v4 = vadd.f32 %v10088_v10, %v5767_v42  ;;  %v5770_v57 = vadd.f32 %v10061_v43, %v7022_v30  ;;  %7143 = vmatprep.mubr.bf16.mxu0 %v5886_v47 }
 0xac6   :  { %v5835_v3 = vadd.f32 %v10088_v10, %v5770_v57  ;;  %v7023_v40 = vpop.f32.mrb[68].mxu1  ;;  %v5866_v48 = vmax.f32 %v5834_v4, 0.0 }
 0xac7   :  { %v7024_v35 = vpop.f32.mrb[69].mxu1 }
 0xac8   :  { %v5867_v46 = vmax.f32 %v5835_v3, 0.0  ;;  %v7025_v18 = vadd.f32 %v7024_v35, %v7023_v40  ;;  %v7026_v52 = vpop.f32.mrb[70].mxu1 }
 0xac9   :  { %v7027_v21 = vpop.f32.mrb[71].mxu1 }
 0xaca   :  { %v5887_v15 = vpack.c.bf16 %v5867_v46, %v5866_v48  ;;  %v5775_v2 = vadd.f32 %v7025_v18, %v10071_v29  ;;  %v7028_v0 = vadd.f32 %v7027_v21, %v7026_v52  ;;  %v10151_v21 = vld [vmem:[#allocation25] ss:$0 sm:$0xff] }
 0xacc   :  { %v5836_v56 = vadd.f32 %v10088_v10, %v5775_v2  ;;  %v5778_v24 = vadd.f32 %v7028_v0, %v10075_v61  ;;  %7144 = vmatmul.mubr.bf16.gmra.mrb[160].mxu0 %v5887_v15 }
 0xace   :  { %v5837_v43 = vadd.f32 %v10088_v10, %v5778_v24  ;;  %v7029_v26 = vpop.f32.mrb[72].mxu1  ;;  %v5868_v59 = vmax.f32 %v5836_v56, 0.0 }
 0xacf   :  { %v7030_v37 = vpop.f32.mrb[73].mxu1 }
 0xad0   :  { %v5869_v41 = vmax.f32 %v5837_v43, 0.0  ;;  %v7031_v9 = vadd.f32 %v7030_v37, %v7029_v26  ;;  %v7032_v25 = vpop.f32.mrb[74].mxu1 }
 0xad1   :  { %v7033_v50 = vpop.f32.mrb[75].mxu1 }
 0xad2   :  { %v5783_v34 = vadd.f32 %v10069_v28, %v7031_v9  ;;  %v7034_v13 = vadd.f32 %v7033_v50, %v7032_v25  ;;  %v5888_v20 = vpack.c.bf16 %v5869_v41, %v5868_v59  ;;  %v4611_v25 = vsub.s32 2, %v8901_v36  ;;  %v7840_v36 = vld [vmem:[%s10358_s20] sm:$0x7]  ;;  %s8231_s20 = smov [#allocation26]  }
 0xad3   :  { %s6388_s30 = sshll.u32 %s8231_s20, 4  ;;  %s6389_s30 = int_to_ptr.vmem [resolvable:$true] %s6388_s30 }
 0xad4   :  { %v5838_v29 = vadd.f32 %v10088_v10, %v5783_v34  ;;  %v5786_v38 = vadd.f32 %v10073_v54, %v7034_v13  ;;  %7147 = vmatprep.mubr.bf16.mxu0 %v5888_v20  ;;  %s8171_s13 = scalar_lea.vmem %s6389_s30, 4096  ;;  %p8176_p9 = scmp.lt.s32.totalorder %s6389_s30, %s6389_s30 }
 0xad5   :  { %p8172_p8 = scmp.ne.s32.totalorder %s6389_s30, %s8171_s13  ;;  %p8177_p10 = scmp.lt.s32.totalorder %s8171_s13, %s8171_s13 }
 0xad6   :  { %v5839_v61 = vadd.f32 %v10088_v10, %v5786_v38  ;;  %v7035_v51 = vpop.f32.mrb[76].mxu1  ;;  %v5870_v1 = vmax.f32 %v5838_v29, 0.0 }
 0xad7   :  { %v7036_v27 = vpop.f32.mrb[77].mxu1  ;;  %p8178_p11 = por %p8177_p10, %p8176_p9 }
 0xad8   :  { %v5871_v49 = vmax.f32 %v5839_v61, 0.0  ;;  %v7037_v63 = vadd.f32 %v7036_v27, %v7035_v51  ;;  %v7038_v17 = vpop.f32.mrb[78].mxu1 }
 0xad9   :  { %v7039_v33 = vpop.f32.mrb[79].mxu1  ;;  %p8179_p12 = pnand %p8178_p11, %p8172_p8 }
 0xada   :  { %v5889_v62 = vpack.c.bf16 %v5871_v49, %v5870_v1  ;;  %v5791_v7 = vadd.f32 %v7037_v63, %v10079_v55  ;;  %v7040_v28 = vadd.f32 %v7039_v33, %v7038_v17 }
 0xadc   :  { %v5840_v23 = vadd.f32 %v10088_v10, %v5791_v7  ;;  %v5794_v39 = vadd.f32 %v7040_v28, %v10083_v60  ;;  %7148 = vmatmul.mubr.bf16.gmra.mrb[164].mxu0 %v5889_v62  ;;  %v10164_v62 = vrot.slane %v7840_v36, %v4611_v25 }
 0xade   :  { %v5841_v54 = vadd.f32 %v10088_v10, %v5794_v39  ;;  %v7041_v19 = vpop.f32.mrb[80].mxu1  ;;  %v5872_v42 = vmax.f32 %v5840_v23, 0.0  ;;  %v10421_v39 = vlaneseq }
 0xadf   :  { %v7042_v22 = vpop.f32.mrb[81].mxu1 }
 0xae0   :  { %v5873_v30 = vmax.f32 %v5841_v54, 0.0  ;;  %v7043_v47 = vadd.f32 %v7042_v22, %v7041_v19  ;;  %v7044_v4 = vpop.f32.mrb[82].mxu1  ;;  %v10168_v54 = vand.u32 127, %v10421_v39  ;;  %v5108_v22 = vadd.f32 %v9883_v31, %v10164_v62 }
 0xae1   :  { %v7045_v57 = vpop.f32.mrb[83].mxu1 }
 0xae2   :  { %v5799_v3 = vadd.f32 %v10077_v6, %v7043_v47  ;;  %v7046_v40 = vadd.f32 %v7045_v57, %v7044_v4  ;;  %v5890_v35 = vpack.c.bf16 %v5873_v30, %v5872_v42  ;;  %v5100_v42 = vadd.f32 %v9875_v5, %v10164_v62 }
 0xae3   :  { %v5111_v30 = vadd.f32 %v9889_v45, %v10164_v62  ;;  %v5103_v47 = vadd.f32 %v9881_v12, %v10164_v62  ;;  %vm6318_vm4 = vcmp.eq.s32.totalorder %v10168_v54, 3  ;;  %v5260_v4 = vmax.f32 %v5108_v22, 0.0 }
 0xae4   :  { %v5842_v55 = vadd.f32 %v10088_v10, %v5799_v3  ;;  %v5802_v48 = vadd.f32 %v10081_v32, %v7046_v40  ;;  %7151 = vmatprep.mubr.bf16.mxu0 %v5890_v35  ;;  %v5258_v3 = vmax.f32 %v5100_v42, 0.0 }
 0xae5   :  { %v5261_v35 = vmax.f32 %v5111_v30, 0.0  ;;  %v5259_v5 = vmax.f32 %v5103_v47, 0.0 }
 0xae6   :  { %v5843_v60 = vadd.f32 %v10088_v10, %v5802_v48  ;;  %v5874_v46 = vmax.f32 %v5842_v55, 0.0 }
 0xae8   :  { %v5875_v18 = vmax.f32 %v5843_v60, 0.0 }
 0xaea   :  { %v5891_v52 = vpack.c.bf16 %v5875_v18, %v5874_v46 }
 0xaec   :  { %7152 = vmatmul.mubr.bf16.gmra.mrb[168].mxu0 %v5891_v52 }
 0xb4f   :  { %v7125_v15 = vpop.f32.mrb[140].mxu0 }
 0xb50   :  { %v6006_v2 = vadd.f32 %v7125_v15, %v10151_v21  ;;  %v5997_v0 = vpop.f32.mrb[141].mxu0 }
 0xb51   :  { %v5998_v6 = vadd.f32 %v10151_v21, %v5997_v0  ;;  %v7126_v56 = vpop.f32.mrb[142].mxu0 }
 0xb52   :  { %v6775_v24 = vmul.f32 -1.442695, %v6006_v2  ;;  %v6009_v43 = vadd.f32 %v7126_v56, %v10151_v21  ;;  %v6000_v32 = vpop.f32.mrb[143].mxu0 }
 0xb53   :  { %v6773_v26 = vmul.f32 -1.442695, %v5998_v6  ;;  %v6001_v10 = vadd.f32 %v10151_v21, %v6000_v32 }
 0xb54   :  { %7712 = vpow2.f32 %v6775_v24  ;;  %v6776_v37 = vmul.f32 -1.442695, %v6009_v43 }
 0xb55   :  { %7714 = vpow2.f32 %v6773_v26  ;;  %v6774_v59 = vmul.f32 -1.442695, %v6001_v10 }
 0xb56   :  { %7716 = vpow2.f32 %v6776_v37 }
 0xb57   :  { %7718 = vpow2.f32 %v6774_v59 }
 0xb5e   :  { %v7713_v41 = vpop.eup %7712 }
 0xb5f   :  { %v7715_v9 = vpop.eup %7714  ;;  %v6222_v50 = vadd.f32 1.0, %v7713_v41  ;;  %v7129_v34 = vpop.f32.mrb[144].mxu0 }
 0xb60   :  { %v7717_v13 = vpop.eup %7716  ;;  %v6220_v20 = vadd.f32 1.0, %v7715_v9  ;;  %v6022_v29 = vadd.f32 %v7129_v34, %v10151_v21  ;;  %v6013_v38 = vpop.f32.mrb[145].mxu0 }
 0xb61   :  { %v7719_v61 = vpop.eup %7718  ;;  %7720 = vrcp.f32 %v6222_v50  ;;  %v6223_v51 = vadd.f32 1.0, %v7717_v13  ;;  %v6014_v27 = vadd.f32 %v10151_v21, %v6013_v38  ;;  %v7130_v1 = vpop.f32.mrb[146].mxu0  ;;  %v5124_v13 = vadd.f32 %v9899_v44, %v10164_v62 }
 0xb62   :  { %7722 = vrcp.f32 %v6220_v20  ;;  %v6221_v49 = vadd.f32 1.0, %v7719_v61  ;;  %v6779_v63 = vmul.f32 -1.442695, %v6022_v29  ;;  %v6025_v17 = vadd.f32 %v7130_v1, %v10151_v21  ;;  %v6016_v33 = vpop.f32.mrb[147].mxu0 }
 0xb63   :  { %7724 = vrcp.f32 %v6223_v51  ;;  %v6777_v7 = vmul.f32 -1.442695, %v6014_v27  ;;  %v6017_v28 = vadd.f32 %v10151_v21, %v6016_v33  ;;  %v5116_v20 = vadd.f32 %v9891_v53, %v10164_v62 }
 0xb64   :  { %7726 = vrcp.f32 %v6221_v49  ;;  %v6780_v23 = vmul.f32 -1.442695, %v6025_v17  ;;  %v5127_v29 = vadd.f32 %v9905_v14, %v10164_v62  ;;  %v5119_v38 = vadd.f32 %v9897_v8, %v10164_v62 }
 0xb65   :  { %7728 = vpow2.f32 %v6779_v63  ;;  %v6778_v19 = vmul.f32 -1.442695, %v6017_v28  ;;  %v5264_v61 = vmax.f32 %v5124_v13, 0.0  ;;  %v5262_v27 = vmax.f32 %v5116_v20, 0.0 }
 0xb66   :  { %7730 = vpow2.f32 %v6777_v7  ;;  %v5265_v49 = vmax.f32 %v5127_v29, 0.0  ;;  %v5263_v17 = vmax.f32 %v5119_v38, 0.0 }
 0xb67   :  { %7732 = vpow2.f32 %v6780_v23 }
 0xb68   :  { %7734 = vpow2.f32 %v6778_v19 }
 0xb6b   :  { %v7721_v57 = vpop.eup %7720 }
 0xb6c   :  { %v7723_v40 = vpop.eup %7722  ;;  %v6321_v31 = vsel %vm6318_vm4, %v5260_v4, %v7721_v57 }
 0xb6d   :  { %v7725_v55 = vpop.eup %7724  ;;  %6353 = vst [vmem:[#allocation26 + $0x10] sm:$0xff] %v6321_v31  ;;  %v6319_v45 = vsel %vm6318_vm4, %v5258_v3, %v7723_v40 }
 0xb6e   :  { %v7727_v48 = vpop.eup %7726  ;;  %6351 = vst [vmem:[#allocation26] sm:$0xff] %v6319_v45  ;;  %v6322_v12 = vsel %vm6318_vm4, %v5261_v35, %v7725_v55 }
 0xb6f   :  { %v7729_v60 = vpop.eup %7728  ;;  %6354 = vst [vmem:[#allocation26 + $0x18] sm:$0xff] %v6322_v12  ;;  %v6320_v46 = vsel %vm6318_vm4, %v5259_v5, %v7727_v48  ;;  %v7133_v18 = vpop.f32.mrb[148].mxu0  ;;  %v5140_v12 = vadd.f32 %v9924_v58, %v10164_v62 }
 0xb70   :  { %v7731_v52 = vpop.eup %7730  ;;  %6352 = vst [vmem:[#allocation26 + $0x8] sm:$0xff] %v6320_v46  ;;  %v6226_v15 = vadd.f32 1.0, %v7729_v60  ;;  %v6038_v2 = vadd.f32 %v7133_v18, %v10151_v21  ;;  %v6029_v0 = vpop.f32.mrb[149].mxu0  ;;  %v5132_v60 = vadd.f32 %v9910_v16, %v10164_v62  ;;  %v5143_v46 = vadd.f32 %v9930_v11, %v10164_v62  ;;  %v10422_v18 = vld [vmem:[#allocation36_spill] sm:$0xff] }
 0xb71   :  { %v7733_v6 = vpop.eup %7732  ;;  %v6224_v56 = vadd.f32 1.0, %v7731_v52  ;;  %v6030_v24 = vadd.f32 %v10151_v21, %v6029_v0  ;;  %v7134_v43 = vpop.f32.mrb[150].mxu0  ;;  %v5135_v52 = vadd.f32 %v10422_v18, %v10164_v62 }
 0xb72   :  { %v7735_v32 = vpop.eup %7734  ;;  %7736 = vrcp.f32 %v6226_v15  ;;  %v6227_v26 = vadd.f32 1.0, %v7733_v6  ;;  %v6783_v10 = vmul.f32 -1.442695, %v6038_v2  ;;  %v6041_v37 = vadd.f32 %v7134_v43, %v10151_v21  ;;  %v6032_v59 = vpop.f32.mrb[151].mxu0 }
 0xb73   :  { %7738 = vrcp.f32 %v6224_v56  ;;  %v6225_v41 = vadd.f32 1.0, %v7735_v32  ;;  %v6781_v9 = vmul.f32 -1.442695, %v6030_v24  ;;  %v6033_v25 = vadd.f32 %v10151_v21, %v6032_v59 }
 0xb74   :  { %7740 = vrcp.f32 %v6227_v26  ;;  %v6784_v50 = vmul.f32 -1.442695, %v6041_v37  ;;  %v5268_v15 = vmax.f32 %v5140_v12, 0.0  ;;  %v5266_v0 = vmax.f32 %v5132_v60, 0.0 }
 0xb75   :  { %7742 = vrcp.f32 %v6225_v41  ;;  %v6782_v34 = vmul.f32 -1.442695, %v6033_v25  ;;  %v5269_v56 = vmax.f32 %v5143_v46, 0.0  ;;  %v5267_v43 = vmax.f32 %v5135_v52, 0.0 }
 0xb76   :  { %7744 = vpow2.f32 %v6783_v10 }
 0xb77   :  { %7746 = vpow2.f32 %v6781_v9 }
 0xb78   :  { %7748 = vpow2.f32 %v6784_v50 }
 0xb79   :  { %7750 = vpow2.f32 %v6782_v34 }
 0xb7c   :  { %v7737_v51 = vpop.eup %7736 }
 0xb7d   :  { %v7739_v1 = vpop.eup %7738  ;;  %v6325_v44 = vsel %vm6318_vm4, %v5264_v61, %v7737_v51 }
 0xb7e   :  { %v7741_v63 = vpop.eup %7740  ;;  %6357 = vst [vmem:[#allocation26 + $0x30] sm:$0xff] %v6325_v44  ;;  %v6323_v53 = vsel %vm6318_vm4, %v5262_v27, %v7739_v1 }
 0xb7f   :  { %v7743_v33 = vpop.eup %7742  ;;  %6355 = vst [vmem:[#allocation26 + $0x20] sm:$0xff] %v6323_v53  ;;  %v6326_v14 = vsel %vm6318_vm4, %v5265_v49, %v7741_v63  ;;  %v7137_v8 = vpop.f32.mrb[152].mxu0  ;;  %v10423_v53 = vld [vmem:[#allocation39_spill] sm:$0xff] }
 0xb80   :  { %v7745_v36 = vpop.eup %7744  ;;  %6358 = vst [vmem:[#allocation26 + $0x38] sm:$0xff] %v6326_v14  ;;  %v6324_v7 = vsel %vm6318_vm4, %v5263_v17, %v7743_v33  ;;  %v6054_v28 = vadd.f32 %v7137_v8, %v10151_v21  ;;  %v6045_v23 = vpop.f32.mrb[153].mxu0  ;;  %v5156_v33 = vadd.f32 %v10423_v53, %v10164_v62  ;;  %v10424_v14 = vld [vmem:[#allocation37_spill] sm:$0xff] }
 0xb81   :  { %v7747_v39 = vpop.eup %7746  ;;  %6356 = vst [vmem:[#allocation26 + $0x28] sm:$0xff] %v6324_v7  ;;  %v6230_v19 = vadd.f32 1.0, %v7745_v36  ;;  %v6046_v22 = vadd.f32 %v10151_v21, %v6045_v23  ;;  %v7138_v42 = vpop.f32.mrb[154].mxu0  ;;  %v5148_v8 = vadd.f32 %v10424_v14, %v10164_v62  ;;  %v10425_v36 = vld [vmem:[#allocation40_spill] sm:$0xff] }
 0xb82   :  { %v7749_v30 = vpop.eup %7748  ;;  %v6228_v47 = vadd.f32 1.0, %v7747_v39  ;;  %v6057_v4 = vadd.f32 %v7138_v42, %v10151_v21  ;;  %v6048_v57 = vpop.f32.mrb[155].mxu0  ;;  %v6787_v35 = vmul.f32 -1.442695, %v6054_v28  ;;  %v5159_v7 = vadd.f32 %v10425_v36, %v10164_v62  ;;  %v10426_v28 = vld [vmem:[#allocation38_spill] sm:$0xff] }
 0xb83   :  { %v7751_v3 = vpop.eup %7750  ;;  %7752 = vrcp.f32 %v6230_v19  ;;  %v6231_v40 = vadd.f32 1.0, %v7749_v30  ;;  %v6049_v31 = vadd.f32 %v10151_v21, %v6048_v57  ;;  %v6785_v5 = vmul.f32 -1.442695, %v6046_v22 }
 0xb84   :  { %7754 = vrcp.f32 %v6228_v47  ;;  %v6229_v55 = vadd.f32 1.0, %v7751_v3  ;;  %v6788_v45 = vmul.f32 -1.442695, %v6057_v4  ;;  %v5151_v23 = vadd.f32 %v10426_v28, %v10164_v62 }
 0xb85   :  { %7756 = vrcp.f32 %v6231_v40  ;;  %v6786_v48 = vmul.f32 -1.442695, %v6049_v31  ;;  %v5272_v39 = vmax.f32 %v5156_v33, 0.0  ;;  %v5270_v22 = vmax.f32 %v5148_v8, 0.0 }
 0xb86   :  { %7758 = vrcp.f32 %v6229_v55  ;;  %v5273_v30 = vmax.f32 %v5159_v7, 0.0  ;;  %v5271_v3 = vmax.f32 %v5151_v23, 0.0 }
 0xb87   :  { %7760 = vpow2.f32 %v6787_v35 }
 0xb88   :  { %7762 = vpow2.f32 %v6785_v5 }
 0xb89   :  { %7764 = vpow2.f32 %v6788_v45 }
 0xb8a   :  { %7766 = vpow2.f32 %v6786_v48 }
 0xb8d   :  { %v7753_v2 = vpop.eup %7752 }
 0xb8e   :  { %v7755_v6 = vpop.eup %7754  ;;  %v6329_v58 = vsel %vm6318_vm4, %v5268_v15, %v7753_v2 }
 0xb8f   :  { %v7757_v24 = vpop.eup %7756  ;;  %6361 = vst [vmem:[#allocation26 + $0x50] sm:$0xff] %v6329_v58  ;;  %v6327_v16 = vsel %vm6318_vm4, %v5266_v0, %v7755_v6  ;;  %v7141_v32 = vpop.f32.mrb[156].mxu0 }
 0xb90   :  { %v7759_v11 = vpop.eup %7758  ;;  %6359 = vst [vmem:[#allocation26 + $0x40] sm:$0xff] %v6327_v16  ;;  %v6330_v26 = vsel %vm6318_vm4, %v5269_v56, %v7757_v24  ;;  %v6070_v10 = vadd.f32 %v7141_v32, %v10151_v21  ;;  %v6061_v37 = vpop.f32.mrb[157].mxu0 }
 0xb91   :  { %v7761_v59 = vpop.eup %7760  ;;  %6362 = vst [vmem:[#allocation26 + $0x58] sm:$0xff] %v6330_v26  ;;  %v6328_v41 = vsel %vm6318_vm4, %v5267_v43, %v7759_v11  ;;  %v6062_v9 = vadd.f32 %v10151_v21, %v6061_v37  ;;  %v7142_v25 = vpop.f32.mrb[158].mxu0  ;;  %v10427_v26 = vld [vmem:[#allocation43_spill] sm:$0xff]  ;;  %v10428_v37 = vld [vmem:[#allocation41_spill] sm:$0xff] }
 0xb92   :  { %v7763_v50 = vpop.eup %7762  ;;  %6360 = vst [vmem:[#allocation26 + $0x48] sm:$0xff] %v6328_v41  ;;  %v6234_v34 = vadd.f32 1.0, %v7761_v59  ;;  %v6073_v13 = vadd.f32 %v7142_v25, %v10151_v21  ;;  %v6064_v20 = vpop.f32.mrb[159].mxu0  ;;  %v6791_v1 = vmul.f32 -1.442695, %v6070_v10  ;;  %v5172_v10 = vadd.f32 %v10427_v26, %v10164_v62  ;;  %v10429_v41 = vld [vmem:[#allocation44_spill] sm:$0xff] }
 0xb93   :  { %v7765_v29 = vpop.eup %7764  ;;  %v6232_v38 = vadd.f32 1.0, %v7763_v50  ;;  %v6065_v61 = vadd.f32 %v10151_v21, %v6064_v20  ;;  %v6789_v44 = vmul.f32 -1.442695, %v6062_v9  ;;  %v5164_v59 = vadd.f32 %v10428_v37, %v10164_v62  ;;  %v10430_v25 = vld [vmem:[#allocation42_spill] sm:$0xff] }
 0xb94   :  { %v7767_v51 = vpop.eup %7766  ;;  %7768 = vrcp.f32 %v6234_v34  ;;  %v6235_v27 = vadd.f32 1.0, %v7765_v29  ;;  %v6792_v63 = vmul.f32 -1.442695, %v6073_v13  ;;  %v5175_v9 = vadd.f32 %v10429_v41, %v10164_v62 }
 0xb95   :  { %7770 = vrcp.f32 %v6232_v38  ;;  %v6233_v49 = vadd.f32 1.0, %v7767_v51  ;;  %v6790_v17 = vmul.f32 -1.442695, %v6065_v61  ;;  %v5167_v50 = vadd.f32 %v10430_v25, %v10164_v62 }
 0xb96   :  { %7772 = vrcp.f32 %v6235_v27  ;;  %v5276_v13 = vmax.f32 %v5172_v10, 0.0  ;;  %v5274_v29 = vmax.f32 %v5164_v59, 0.0  ;;  %v5277_v27 = vmax.f32 %v5175_v9, 0.0 }
 0xb97   :  { %7774 = vrcp.f32 %v6233_v49 }
 0xb98   :  { %7776 = vpow2.f32 %v6791_v1 }
 0xb99   :  { %7778 = vpow2.f32 %v6789_v44 }
 0xb9a   :  { %7780 = vpow2.f32 %v6792_v63 }
 0xb9b   :  { %7782 = vpow2.f32 %v6790_v17  ;;  %v5275_v17 = vmax.f32 %v5167_v50, 0.0 }
 0xb9e   :  { %v7769_v19 = vpop.eup %7768 }
 0xb9f   :  { %v7771_v42 = vpop.eup %7770  ;;  %v6333_v47 = vsel %vm6318_vm4, %v5272_v39, %v7769_v19  ;;  %v7145_v4 = vpop.f32.mrb[160].mxu0 }
 0xba0   :  { %v7773_v57 = vpop.eup %7772  ;;  %6365 = vst [vmem:[#allocation26 + $0x70] sm:$0xff] %v6333_v47  ;;  %v6331_v40 = vsel %vm6318_vm4, %v5270_v22, %v7771_v42  ;;  %v6086_v35 = vadd.f32 %v7145_v4, %v10151_v21  ;;  %v6077_v31 = vpop.f32.mrb[161].mxu0 }
 0xba1   :  { %v7775_v55 = vpop.eup %7774  ;;  %6363 = vst [vmem:[#allocation26 + $0x60] sm:$0xff] %v6331_v40  ;;  %v6334_v5 = vsel %vm6318_vm4, %v5273_v30, %v7773_v57  ;;  %v6078_v45 = vadd.f32 %v10151_v21, %v6077_v31  ;;  %v7146_v48 = vpop.f32.mrb[162].mxu0  ;;  %v10431_v40 = vld [vmem:[#allocation47_spill] sm:$0xff] }
 0xba2   :  { %v7777_v12 = vpop.eup %7776  ;;  %6366 = vst [vmem:[#allocation26 + $0x78] sm:$0xff] %v6334_v5  ;;  %v6332_v60 = vsel %vm6318_vm4, %v5271_v3, %v7775_v55  ;;  %v6795_v46 = vmul.f32 -1.442695, %v6086_v35  ;;  %v6089_v18 = vadd.f32 %v7146_v48, %v10151_v21  ;;  %v6080_v52 = vpop.f32.mrb[163].mxu0  ;;  %v5188_v35 = vadd.f32 %v10431_v40, %v10164_v62  ;;  %v10432_v48 = vld [vmem:[#allocation45_spill] sm:$0xff] }
 0xba3   :  { %v7779_v15 = vpop.eup %7778  ;;  %6364 = vst [vmem:[#allocation26 + $0x68] sm:$0xff] %v6332_v60  ;;  %v6238_v2 = vadd.f32 1.0, %v7777_v12  ;;  %v6081_v0 = vadd.f32 %v10151_v21, %v6080_v52  ;;  %v6793_v43 = vmul.f32 -1.442695, %v6078_v45  ;;  %v5180_v12 = vadd.f32 %v10432_v48, %v10164_v62  ;;  %v10433_v60 = vld [vmem:[#allocation48_spill] sm:$0xff]  ;;  %v10434_v52 = vld [vmem:[#allocation46_spill] sm:$0xff] }
 0xba4   :  { %v7781_v6 = vpop.eup %7780  ;;  %v6236_v56 = vadd.f32 1.0, %v7779_v15  ;;  %7784 = vpow2.f32 %v6795_v46  ;;  %v6796_v32 = vmul.f32 -1.442695, %v6089_v18  ;;  %v5280_v5 = vmax.f32 %v5188_v35, 0.0 }
 0xba5   :  { %v7783_v58 = vpop.eup %7782  ;;  %7786 = vrcp.f32 %v6238_v2  ;;  %v6239_v24 = vadd.f32 1.0, %v7781_v6  ;;  %v6794_v11 = vmul.f32 -1.442695, %v6081_v0  ;;  %v5191_v46 = vadd.f32 %v10433_v60, %v10164_v62  ;;  %v10439_v60 = vld [vmem:[#allocation55_spill] sm:$0xff] }
 0xba6   :  { %7788 = vrcp.f32 %v6236_v56  ;;  %v6237_v16 = vadd.f32 1.0, %v7783_v58  ;;  %v5183_v15 = vadd.f32 %v10434_v52, %v10164_v62  ;;  %v5278_v6 = vmax.f32 %v5180_v12, 0.0 }
 0xba7   :  { %7790 = vrcp.f32 %v6239_v24 }
 0xba8   :  { %7792 = vrcp.f32 %v6237_v16  ;;  %v5279_v10 = vmax.f32 %v5183_v15, 0.0 }
 0xba9   :  { %7794 = vpow2.f32 %v6793_v43  ;;  %v5281_v43 = vmax.f32 %v5191_v46, 0.0  ;;  %v5220_v46 = vadd.f32 %v10439_v60, %v10164_v62 }
 0xbaa   :  { %7796 = vpow2.f32 %v6796_v32 }
 0xbab   :  { %7798 = vpow2.f32 %v6794_v11  ;;  %v5288_v15 = vmax.f32 %v5220_v46, 0.0 }
 0xbae   :  { %v7785_v34 = vpop.eup %7784 }
 0xbaf   :  { %v7787_v20 = vpop.eup %7786  ;;  %v6242_v38 = vadd.f32 1.0, %v7785_v34  ;;  %v7149_v61 = vpop.f32.mrb[164].mxu0 }
 0xbb0   :  { %v7789_v51 = vpop.eup %7788  ;;  %v6337_v1 = vsel %vm6318_vm4, %v5276_v13, %v7787_v20  ;;  %v6102_v49 = vadd.f32 %v7149_v61, %v10151_v21  ;;  %v6093_v44 = vpop.f32.mrb[165].mxu0 }
 0xbb1   :  { %v7791_v63 = vpop.eup %7790  ;;  %6369 = vst [vmem:[#allocation26 + $0x90] sm:$0xff] %v6337_v1  ;;  %v6335_v53 = vsel %vm6318_vm4, %v5274_v29, %v7789_v51  ;;  %7800 = vrcp.f32 %v6242_v38  ;;  %v6094_v33 = vadd.f32 %v10151_v21, %v6093_v44  ;;  %v7150_v14 = vpop.f32.mrb[166].mxu0 }
 0xbb2   :  { %v7793_v8 = vpop.eup %7792  ;;  %6367 = vst [vmem:[#allocation26 + $0x80] sm:$0xff] %v6335_v53  ;;  %v6338_v36 = vsel %vm6318_vm4, %v5277_v27, %v7791_v63  ;;  %v6799_v7 = vmul.f32 -1.442695, %v6102_v49  ;;  %v6105_v28 = vadd.f32 %v7150_v14, %v10151_v21  ;;  %v6096_v23 = vpop.f32.mrb[167].mxu0  ;;  %v10435_v63 = vld [vmem:[#allocation51_spill] sm:$0xff]  ;;  %v10436_v53 = vld [vmem:[#allocation49_spill] sm:$0xff] }
 0xbb3   :  { %v7795_v39 = vpop.eup %7794  ;;  %6370 = vst [vmem:[#allocation26 + $0x98] sm:$0xff] %v6338_v36  ;;  %v6336_v19 = vsel %vm6318_vm4, %v5275_v17, %v7793_v8  ;;  %v6797_v22 = vmul.f32 -1.442695, %v6094_v33  ;;  %v6097_v42 = vadd.f32 %v10151_v21, %v6096_v23  ;;  %v5204_v17 = vadd.f32 %v10435_v63, %v10164_v62  ;;  %v10437_v36 = vld [vmem:[#allocation52_spill] sm:$0xff]  ;;  %v10438_v23 = vld [vmem:[#allocation50_spill] sm:$0xff] }
 0xbb4   :  { %v7797_v30 = vpop.eup %7796  ;;  %6368 = vst [vmem:[#allocation26 + $0x88] sm:$0xff] %v6336_v19  ;;  %v6240_v47 = vadd.f32 1.0, %v7795_v39  ;;  %7802 = vpow2.f32 %v6799_v7  ;;  %v6800_v3 = vmul.f32 -1.442695, %v6105_v28  ;;  %v5196_v33 = vadd.f32 %v10436_v53, %v10164_v62 }
 0xbb5   :  { %v7799_v4 = vpop.eup %7798  ;;  %v6243_v57 = vadd.f32 1.0, %v7797_v30  ;;  %7804 = vpow2.f32 %v6797_v22  ;;  %v6798_v55 = vmul.f32 -1.442695, %v6097_v42  ;;  %v5284_v14 = vmax.f32 %v5204_v17, 0.0 }
 0xbb6   :  { %7806 = vrcp.f32 %v6240_v47  ;;  %v6241_v31 = vadd.f32 1.0, %v7799_v4  ;;  %v5282_v8 = vmax.f32 %v5196_v33, 0.0  ;;  %v5207_v7 = vadd.f32 %v10437_v36, %v10164_v62 }
 0xbb7   :  { %7808 = vrcp.f32 %v6243_v57  ;;  %v5199_v39 = vadd.f32 %v10438_v23, %v10164_v62 }
 0xbb8   :  { %7810 = vrcp.f32 %v6241_v31  ;;  %v5285_v47 = vmax.f32 %v5207_v7, 0.0 }
 0xbb9   :  { %7812 = vpow2.f32 %v6800_v3  ;;  %v5283_v3 = vmax.f32 %v5199_v39, 0.0 }
 0xbba   :  { %7814 = vpow2.f32 %v6798_v55 }
 0xbbb   :  { %v7801_v45 = vpop.eup %7800 }
 0xbbc   :  { %v6341_v18 = vsel %vm6318_vm4, %v5280_v5, %v7801_v45 }
 0xbbd   :  { %6373 = vst [vmem:[#allocation26 + $0xb0] sm:$0xff] %v6341_v18  ;;  %v10440_v18 = vld [vmem:[#allocation53_spill] sm:$0xff] }
 0xbbe   :  { %v7803_v2 = vpop.eup %7802  ;;  %v5212_v52 = vadd.f32 %v10440_v18, %v10164_v62 }
 0xbbf   :  { %v7805_v0 = vpop.eup %7804  ;;  %v6246_v56 = vadd.f32 1.0, %v7803_v2  ;;  %v7153_v58 = vpop.f32.mrb[168].mxu0  ;;  %v10441_v2 = vld [vmem:[#allocation56_spill] sm:$0xff] }
 0xbc0   :  { %v7807_v24 = vpop.eup %7806  ;;  %v6244_v16 = vadd.f32 1.0, %v7805_v0  ;;  %v6118_v32 = vadd.f32 %v7153_v58, %v10151_v21  ;;  %v6109_v11 = vpop.f32.mrb[169].mxu0  ;;  %v5223_v0 = vadd.f32 %v10441_v2, %v10164_v62  ;;  %v10442_v58 = vld [vmem:[#allocation54_spill] sm:$0xff] }
 0xbc1   :  { %v7809_v26 = vpop.eup %7808  ;;  %v6339_v37 = vsel %vm6318_vm4, %v5278_v6, %v7807_v24  ;;  %7816 = vrcp.f32 %v6246_v56  ;;  %v6110_v59 = vadd.f32 %v10151_v21, %v6109_v11  ;;  %v7154_v41 = vpop.f32.mrb[170].mxu0  ;;  %v5286_v56 = vmax.f32 %v5212_v52, 0.0 }
 0xbc2   :  { %v7811_v9 = vpop.eup %7810  ;;  %6371 = vst [vmem:[#allocation26 + $0xa0] sm:$0xff] %v6339_v37  ;;  %v6342_v25 = vsel %vm6318_vm4, %v5281_v43, %v7809_v26  ;;  %7818 = vrcp.f32 %v6244_v16  ;;  %v6803_v50 = vmul.f32 -1.442695, %v6118_v32  ;;  %v6121_v34 = vadd.f32 %v7154_v41, %v10151_v21  ;;  %v6112_v13 = vpop.f32.mrb[171].mxu0 }
 0xbc3   :  { %v7813_v20 = vpop.eup %7812  ;;  %6374 = vst [vmem:[#allocation26 + $0xb8] sm:$0xff] %v6342_v25  ;;  %v6340_v29 = vsel %vm6318_vm4, %v5279_v10, %v7811_v9  ;;  %v6801_v38 = vmul.f32 -1.442695, %v6110_v59  ;;  %v6113_v61 = vadd.f32 %v10151_v21, %v6112_v13  ;;  %v5215_v24 = vadd.f32 %v10442_v58, %v10164_v62 }
 0xbc4   :  { %v7815_v51 = vpop.eup %7814  ;;  %6372 = vst [vmem:[#allocation26 + $0xa8] sm:$0xff] %v6340_v29  ;;  %v6247_v27 = vadd.f32 1.0, %v7813_v20  ;;  %7820 = vpow2.f32 %v6803_v50  ;;  %v6804_v1 = vmul.f32 -1.442695, %v6121_v34  ;;  %v5289_v11 = vmax.f32 %v5223_v0, 0.0 }
 0xbc5   :  { %v6245_v49 = vadd.f32 1.0, %v7815_v51  ;;  %7822 = vpow2.f32 %v6801_v38  ;;  %v6802_v44 = vmul.f32 -1.442695, %v6113_v61  ;;  %v5287_v10 = vmax.f32 %v5215_v24, 0.0 }
 0xbc6   :  { %7824 = vrcp.f32 %v6247_v27 }
 0xbc7   :  { %7826 = vrcp.f32 %v6245_v49 }
 0xbc8   :  { %7828 = vpow2.f32 %v6804_v1 }
 0xbc9   :  { %7830 = vpow2.f32 %v6802_v44 }
 0xbcb   :  { %v7817_v21 = vpop.eup %7816 }
 0xbcc   :  { %v7819_v28 = vpop.eup %7818  ;;  %v6345_v19 = vsel %vm6318_vm4, %v5284_v14, %v7817_v21 }
 0xbcd   :  { %6377 = vst [vmem:[#allocation26 + $0xd0] sm:$0xff] %v6345_v19  ;;  %v6343_v22 = vsel %vm6318_vm4, %v5282_v8, %v7819_v28 }
 0xbce   :  { %v7821_v42 = vpop.eup %7820  ;;  %6375 = vst [vmem:[#allocation26 + $0xc0] sm:$0xff] %v6343_v22 }
 0xbcf   :  { %v7823_v30 = vpop.eup %7822  ;;  %v6250_v4 = vadd.f32 1.0, %v7821_v42 }
 0xbd0   :  { %v7825_v57 = vpop.eup %7824  ;;  %v6248_v40 = vadd.f32 1.0, %v7823_v30 }
 0xbd1   :  { %v7827_v35 = vpop.eup %7826  ;;  %v6346_v31 = vsel %vm6318_vm4, %v5285_v47, %v7825_v57  ;;  %7832 = vrcp.f32 %v6250_v4 }
 0xbd2   :  { %v7829_v55 = vpop.eup %7828  ;;  %6378 = vst [vmem:[#allocation26 + $0xd8] sm:$0xff] %v6346_v31  ;;  %v6344_v5 = vsel %vm6318_vm4, %v5283_v3, %v7827_v35  ;;  %7834 = vrcp.f32 %v6248_v40 }
 0xbd3   :  { %v7831_v45 = vpop.eup %7830  ;;  %6376 = vst [vmem:[#allocation26 + $0xc8] sm:$0xff] %v6344_v5  ;;  %v6251_v48 = vadd.f32 1.0, %v7829_v55 }
 0xbd4   :  { %v6249_v12 = vadd.f32 1.0, %v7831_v45 }
 0xbd5   :  { %7836 = vrcp.f32 %v6251_v48 }
 0xbd6   :  { %7838 = vrcp.f32 %v6249_v12 }
 0xbdb   :  { %v7833_v6 = vpop.eup %7832 }
 0xbdc   :  { %v7835_v43 = vpop.eup %7834  ;;  %v6349_v16 = vsel %vm6318_vm4, %v5288_v15, %v7833_v6 }
 0xbdd   :  { %6381 = vst [vmem:[#allocation26 + $0xf0] sm:$0xff] %v6349_v16  ;;  %v6347_v32 = vsel %vm6318_vm4, %v5286_v56, %v7835_v43 }
 0xbde   :  { %6379 = vst [vmem:[#allocation26 + $0xe0] sm:$0xff] %v6347_v32 }
 0xbdf   :  { %v7837_v26 = vpop.eup %7836 }
 0xbe0   :  { %v7839_v37 = vpop.eup %7838  ;;  %v6350_v59 = vsel %vm6318_vm4, %v5289_v11, %v7837_v26 }
 0xbe1   :  { %6382 = vst [vmem:[#allocation26 + $0xf8] sm:$0xff] %v6350_v59  ;;  %v6348_v62 = vsel %vm6318_vm4, %v5287_v10, %v7839_v37 }
 0xbe2   :  { %6380 = vst [vmem:[#allocation26 + $0xe8] sm:$0xff] %v6348_v62 }
 0xbe3   :  { %8182 = shalt.err (!%p8179_p12)
}
 0xbe4   :  { %s10443_s17 = sld [smem:[#allocation69_spill]] }
 0xbea   :  { %s8183_s26 = scalar_lea.hbm %s10443_s17, 4096 }
 0xbeb   :  { %p8184_p13 = scmp.ne.s32.totalorder %s10443_s17, %s8183_s26  ;;  %p8187_p0 = scmp.lt.u32.totalorder %s8183_s26, %s10443_s17 }
 0xbed   :  { %p8189_p1 = pnand %p8187_p0, %p8184_p13 }
 0xbef   :  { %8192 = shalt.err (!%p8189_p1)
}
 0xbf0   :  { %6394 = dma.vmem_to_hbm [thread:$0]  %s6389_s30, 4096, %s10443_s17, [#allocation4], %s8213_s6, %s8213_s6, %s8214_s1  }
 0xbf1   :  { %8209 = dma.done.wait [#allocation4], 4096  }
 0xbf2   :  { %8210 = vsyncadd [#allocation4], 4294963200 }
 0xbf3   :  { %6398 = vsyncpa [#allocation3], 1 }
 0xbf4   :  { %6399 = vsyncpa [#allocation6], 1 }
 0xbf5   :  { %6400 = vsyncpa [#allocation9], 1 }
 0xbf6   :  { %6401 = vsyncpa [#allocation12], 1 }
 0xbf7   :  { %6402 = vsyncpa [#allocation15], 1 }
 0xbf8   :  { %6403 = vsyncpa [#allocation18], 1 }
 0xbf9   :  { %6404 = vsyncpa [#allocation21], 1 }
 0xbfa   :  { %6405 = vsyncpa [#allocation24], 1 }
 0xbfb   :  { %6406 = vsyncpa [#allocation4], 1 }

</bundles_post_ra>
